<compile_context>
chip_gen: v6e
topology: v6e:2x2x1
jax: 0.10.0
libtpu: 0.0.40
codegen_flags: <defaults>
</compile_context>

<pallas_src>
import functools

import jax
import jax.numpy as jnp
from jax.experimental import pallas as pl
from jax.experimental.pallas import tpu as pltpu

WINDOW_SIZE = 99
DROP_OUT = 0.1          # unused at inference
LANE = 128              # channel padding width (lane-dense)
BB = 8                  # samples per grid step (one sublane tile)

_CONV_CFG = [  # (c_in, c_out, kernel, stride) -- mirrors NILMTKModel.__init__
    (1, 30, 10, 2),
    (30, 30, 8, 2),
    (30, 40, 6, 1),
    (40, 50, 5, 1),
    (50, 50, 5, 1),
]


def _final_conv_len(window):
    l = window
    for (_, _, k, s) in _CONV_CFG:
        l = (l - k) // s + 1
    return l


# ----------------------------------------------------------------------------
# In-kernel helpers (all ops are vreg-selection reshapes / slices + matmuls).
# ----------------------------------------------------------------------------
def _stride2_view(act):
    """Regroup rows by parity: (L, BB, C) -> (ceil(L/2), 2, BB, C).

    Row 2g + p of `act` lands at [g, p]; pure leading-dim regroup => free.
    """
    l = act.shape[0]
    if l % 2:
        act = jnp.concatenate([act, jnp.zeros_like(act[:1])], axis=0)
        l += 1
    return act.reshape(l // 2, 2, *act.shape[1:])


def _conv_taps(act, w_ref, stride, use_mxu):
    """Tap-sliced conv over layout (L, BB, C_in) -> (L_out, BB, C_out)."""
    f32 = jnp.float32
    k = w_ref.shape[0]
    cout = w_ref.shape[-1]
    l_in, bb = act.shape[0], act.shape[1]
    lo = (l_in - k) // stride + 1
    src = _stride2_view(act) if stride == 2 else act

    if use_mxu:
        acc = jnp.zeros((lo * bb, cout), f32)
    else:
        acc = jnp.zeros((lo, bb, cout), f32)

    for t in range(k):
        if stride == 2:
            lhs = src[t // 2: t // 2 + lo, t % 2]          # rows 2i + t
        else:
            lhs = src[t: t + lo]
        if use_mxu:
            acc = acc + jnp.dot(lhs.reshape(lo * bb, -1), w_ref[t],
                                preferred_element_type=f32)
        else:                                              # C_in == 1: VPU
            acc = acc + lhs * w_ref[t]                     # (lo,bb,1)*(1,cout)

    if use_mxu:
        acc = acc.reshape(lo, bb, cout)
    return acc


def _relu_bias(acc, b_ref):
    c = b_ref.shape[-1]
    return jnp.maximum(acc + b_ref[...].reshape(1, 1, c), 0.0)


# ----------------------------------------------------------------------------
# Fused kernel: one grid step == BB samples, everything stays in VMEM.
# ----------------------------------------------------------------------------
def _fused_kernel(x_ref, w1, b1, w2, b2, w3, b3, w4, b4, w5, b5,
                  wf1, bf1, wf2, bf2, o_ref):
    f32 = jnp.float32

    x = x_ref[0]                                   # (L0, BB, 1) channels-last
    bb = x.shape[1]

    # ---- conv1 (C_in=1, k=10, s=2): VPU broadcast taps, stride folded in ----
    act = _relu_bias(_conv_taps(x, w1, stride=2, use_mxu=False), b1)

    # ---- conv2..conv5: MXU tap matmuls, batch folded into the M dim --------
    act = _relu_bias(_conv_taps(act, w2, stride=2, use_mxu=True), b2)
    act = _relu_bias(_conv_taps(act, w3, stride=1, use_mxu=True), b3)
    act = _relu_bias(_conv_taps(act, w4, stride=1, use_mxu=True), b4)
    act = _relu_bias(_conv_taps(act, w5, stride=1, use_mxu=True), b5)

    # ---- fc1 (PyTorch C-major flatten folded into pre-permuted weights) ----
    l5 = act.shape[0]
    h = jnp.zeros((bb, wf1.shape[2]), f32)
    for l in range(l5):
        h = h + jnp.dot(act[l], wf1[l], preferred_element_type=f32)
    h = jnp.maximum(h + bf1[...], 0.0)             # (BB, 1024)

    # ---- fc2 ----------------------------------------------------------------
    y = jnp.dot(h, wf2[...], preferred_element_type=f32) + bf2[...]   # (BB,128)
    o_ref[0] = y.astype(o_ref.dtype)


def _zero_map(ndim, b):
    return (0,) * ndim


def nilmtk_forward(packed, x):
    """x: (N, 1, window) float32 -> (N, 1, window) float32."""
    n, _, l0 = x.shape
    n_pad = ((n + BB - 1) // BB) * BB
    nb = n_pad // BB

    x2 = x[:, 0, :]                                # (N, L0)
    if n_pad != n:
        x2 = jnp.pad(x2, ((0, n_pad - n), (0, 0)))
    # (nb, L0, BB, 1): per block, length on sublanes, batch on the tile rows.
    x_k = x2.reshape(nb, BB, l0).transpose(0, 2, 1)[..., None]

    in_specs = [pl.BlockSpec((1, l0, BB, 1), lambda b: (b, 0, 0, 0))]
    in_specs += [pl.BlockSpec(a.shape, functools.partial(_zero_map, a.ndim))
                 for a in packed]

    out_pad = pl.pallas_call(
        _fused_kernel,
        out_shape=jax.ShapeDtypeStruct((nb, BB, LANE), jnp.float32),
        grid=(nb,),
        in_specs=in_specs,
        out_specs=pl.BlockSpec((1, BB, LANE), lambda b: (b, 0, 0)),
        compiler_params=pltpu.CompilerParams(
            dimension_semantics=("parallel",),
            vmem_limit_bytes=32 * 1024 * 1024),
    )(x_k, *packed)

    out = out_pad.reshape(n_pad, LANE)[:n, :l0]
    return out[:, None, :]


# ----------------------------------------------------------------------------
# Parameters: PyTorch-layout init + one-time packing into kernel layout.
# ----------------------------------------------------------------------------
def init_params(key, window_size):
    params = {}
    keys = jax.random.split(key, 7)
    length = window_size
    for i, (cin, cout, k, s) in enumerate(_CONV_CFG, start=1):
        wk, bk = jax.random.split(keys[i - 1])
        params[f"conv{i}_w"] = 0.05 * jax.random.normal(wk, (cout, cin, k), jnp.float32)
        params[f"conv{i}_b"] = 0.05 * jax.random.normal(bk, (cout,), jnp.float32)
        length = (length - k) // s + 1
    num_flattened = _CONV_CFG[-1][1] * length          # == tmp_x.shape[1]
    w1k, b1k = jax.random.split(keys[5])
    params["fc1_w"] = 0.05 * jax.random.normal(w1k, (1024, num_flattened), jnp.float32)
    params["fc1_b"] = 0.05 * jax.random.normal(b1k, (1024,), jnp.float32)
    w2k, b2k = jax.random.split(keys[6])
    params["fc2_w"] = 0.05 * jax.random.normal(w2k, (window_size, 1024), jnp.float32)
    params["fc2_b"] = 0.05 * jax.random.normal(b2k, (window_size,), jnp.float32)
    return params


def pack_params(params, window_size):
    """One-time re-layout: channels-last, zero-padded to 128 lanes, FC pre-transposed."""
    packed = []
    for i, (cin, cout, k, s) in enumerate(_CONV_CFG, start=1):
        w = params[f"conv{i}_w"]                       # (cout, cin, k)
        b = params[f"conv{i}_b"]
        wt = jnp.transpose(w, (2, 1, 0))               # (k, cin, cout)
        cin_pad = cin if i == 1 else LANE              # conv1 keeps C_in = 1
        wt = jnp.pad(wt, ((0, 0), (0, cin_pad - cin), (0, LANE - cout)))
        bp = jnp.pad(b, (0, LANE - cout)).reshape(1, LANE)
        packed += [wt, bp]

    l5 = _final_conv_len(window_size)
    c5 = _CONV_CFG[-1][1]
    w1 = params["fc1_w"]                               # (1024, c5*l5), feature = c*l5 + l
    assert w1.shape[1] == c5 * l5
    w1p = jnp.transpose(w1.reshape(w1.shape[0], c5, l5), (2, 1, 0))   # (l5, c5, 1024)
    w1p = jnp.pad(w1p, ((0, 0), (0, LANE - c5), (0, 0)))              # (l5, 128, 1024)
    packed += [w1p, params["fc1_b"].reshape(1, -1)]

    w2 = params["fc2_w"]                               # (window, 1024)
    w2p = jnp.pad(w2.T, ((0, 0), (0, LANE - w2.shape[0])))            # (1024, 128)
    b2p = jnp.pad(params["fc2_b"], (0, LANE - w2.shape[0])).reshape(1, LANE)
    packed += [w2p, b2p]
    return packed


# ----------------------------------------------------------------------------
# Pure-JAX reference (PyTorch semantics, eval mode) for correctness check.
# ----------------------------------------------------------------------------
def _ref_forward(params, x):
    hi = jax.lax.Precision.HIGHEST

    def conv_relu(x, w, b, stride):
        n, c, l = x.shape
        co, ci, k = w.shape
        lo = (l - k) // stride + 1
        idx = jnp.arange(lo)[:, None] * stride + jnp.arange(k)[None, :]
        p = x[:, :, idx]                                        # (n, c, lo, k)
        p = jnp.transpose(p, (0, 2, 1, 3)).reshape(n * lo, c * k)
        y = jnp.dot(p, w.reshape(co, ci * k).T, precision=hi) + b
        return jnp.maximum(y, 0.0).reshape(n, lo, co).transpose(0, 2, 1)

    x = conv_relu(x, params["conv1_w"], params["conv1_b"], 2)
    x = conv_relu(x, params["conv2_w"], params["conv2_b"], 2)
    x = conv_relu(x, params["conv3_w"], params["conv3_b"], 1)
    x = conv_relu(x, params["conv4_w"], params["conv4_b"], 1)
    x = conv_relu(x, params["conv5_w"], params["conv5_b"], 1)
    n = x.shape[0]
    x = x.reshape(n, -1)
    x = jnp.maximum(jnp.dot(x, params["fc1_w"].T, precision=hi) + params["fc1_b"], 0.0)
    x = jnp.dot(x, params["fc2_w"].T, precision=hi) + params["fc2_b"]
    return x[:, None, :]


if __name__ == "__main__":
    key = jax.random.PRNGKey(0)
    pkey, xkey = jax.random.split(key)
    params = init_params(pkey, WINDOW_SIZE)
    packed = pack_params(params, WINDOW_SIZE)

    batch = 2
    x = jax.random.normal(xkey, (batch, 1, WINDOW_SIZE), jnp.float32)

    fwd = jax.jit(nilmtk_forward)
    out = jax.block_until_ready(fwd(packed, x))

    assert out.shape == (batch, 1, WINDOW_SIZE), out.shape
    assert out.dtype == jnp.float32
    assert bool(jnp.all(jnp.isfinite(out)))

    ref = jax.block_until_ready(jax.jit(_ref_forward)(params, x))
    assert bool(jnp.allclose(out, ref, atol=1e-2, rtol=1e-2)), float(
        jnp.max(jnp.abs(out - ref)))

    print("KERNEL_OK")
</pallas_src>

<mosaic_0001>
module attributes {stable_mosaic.version = 11 : i64} {
  func.func @_fused_kernel(%arg0: i32, %arg1: memref<1x99x8x1xf32, #tpu.memory_space<vmem>>, %arg2: memref<10x1x128xf32, #tpu.memory_space<vmem>>, %arg3: memref<1x128xf32, #tpu.memory_space<vmem>>, %arg4: memref<8x128x128xf32, #tpu.memory_space<vmem>>, %arg5: memref<1x128xf32, #tpu.memory_space<vmem>>, %arg6: memref<6x128x128xf32, #tpu.memory_space<vmem>>, %arg7: memref<1x128xf32, #tpu.memory_space<vmem>>, %arg8: memref<5x128x128xf32, #tpu.memory_space<vmem>>, %arg9: memref<1x128xf32, #tpu.memory_space<vmem>>, %arg10: memref<5x128x128xf32, #tpu.memory_space<vmem>>, %arg11: memref<1x128xf32, #tpu.memory_space<vmem>>, %arg12: memref<6x128x1024xf32, #tpu.memory_space<vmem>>, %arg13: memref<1x1024xf32, #tpu.memory_space<vmem>>, %arg14: memref<1024x128xf32, #tpu.memory_space<vmem>>, %arg15: memref<1x128xf32, #tpu.memory_space<vmem>>, %arg16: memref<1x8x128xf32, #tpu.memory_space<vmem>>) attributes {dimension_semantics = [#tpu.dimension_semantics<parallel>], iteration_bounds = array<i64: 1>, scalar_prefetch = 0 : i64, scratch_operands = 0 : i64, tpu.core_type = #tpu.core_type<tc>, window_params = [{transform_indices = @transform_0, window_bounds = array<i64: 1, 99, 8, 1>}, {pipeline_mode = #tpu.pipeline_mode<synchronous>, transform_indices = @transform_1, window_bounds = array<i64: 10, 1, 128>}, {pipeline_mode = #tpu.pipeline_mode<synchronous>, transform_indices = @transform_2, window_bounds = array<i64: 1, 128>}, {pipeline_mode = #tpu.pipeline_mode<synchronous>, transform_indices = @transform_3, window_bounds = array<i64: 8, 128, 128>}, {pipeline_mode = #tpu.pipeline_mode<synchronous>, transform_indices = @transform_4, window_bounds = array<i64: 1, 128>}, {pipeline_mode = #tpu.pipeline_mode<synchronous>, transform_indices = @transform_5, window_bounds = array<i64: 6, 128, 128>}, {pipeline_mode = #tpu.pipeline_mode<synchronous>, transform_indices = @transform_6, window_bounds = array<i64: 1, 128>}, {pipeline_mode = #tpu.pipeline_mode<synchronous>, transform_indices = @transform_7, window_bounds = array<i64: 5, 128, 128>}, {pipeline_mode = #tpu.pipeline_mode<synchronous>, transform_indices = @transform_8, window_bounds = array<i64: 1, 128>}, {pipeline_mode = #tpu.pipeline_mode<synchronous>, transform_indices = @transform_9, window_bounds = array<i64: 5, 128, 128>}, {pipeline_mode = #tpu.pipeline_mode<synchronous>, transform_indices = @transform_10, window_bounds = array<i64: 1, 128>}, {pipeline_mode = #tpu.pipeline_mode<synchronous>, transform_indices = @transform_11, window_bounds = array<i64: 6, 128, 1024>}, {pipeline_mode = #tpu.pipeline_mode<synchronous>, transform_indices = @transform_12, window_bounds = array<i64: 1, 1024>}, {pipeline_mode = #tpu.pipeline_mode<synchronous>, transform_indices = @transform_13, window_bounds = array<i64: 1024, 128>}, {pipeline_mode = #tpu.pipeline_mode<synchronous>, transform_indices = @transform_14, window_bounds = array<i64: 1, 128>}, {transform_indices = @transform_15, window_bounds = array<i64: 1, 8, 128>}]} {
    %c0 = arith.constant 0 : index
    %c0_0 = arith.constant 0 : index
    %c0_1 = arith.constant 0 : index
    %c0_2 = arith.constant 0 : index
    %0 = vector.load %arg1[%c0, %c0_0, %c0_1, %c0_2] : memref<1x99x8x1xf32, #tpu.memory_space<vmem>>, vector<1x99x8x1xf32>
    %1 = vector.shape_cast %0 : vector<1x99x8x1xf32> to vector<99x8x1xf32>
    %cst = arith.constant 0.000000e+00 : f32
    %2 = vector.broadcast %cst : f32 to vector<1x8x1xf32>
    %3 = tpu.concatenate %1, %2 in 0 : vector<99x8x1xf32>, vector<1x8x1xf32> -> vector<100x8x1xf32>
    %4 = vector.shape_cast %3 : vector<100x8x1xf32> to vector<50x2x8x1xf32>
    %cst_3 = arith.constant 0.000000e+00 : f32
    %5 = vector.broadcast %cst_3 : f32 to vector<45x8x128xf32>
    %6 = vector.extract_strided_slice %4 {offsets = [0, 0, 0, 0], sizes = [45, 1, 8, 1], strides = [1, 1, 1, 1]} : vector<50x2x8x1xf32> to vector<45x1x8x1xf32>
    %7 = vector.shape_cast %6 : vector<45x1x8x1xf32> to vector<45x8x1xf32>
    %c0_4 = arith.constant 0 : index
    %c0_5 = arith.constant 0 : index
    %c0_6 = arith.constant 0 : index
    %8 = vector.load %arg2[%c0_4, %c0_5, %c0_6] : memref<10x1x128xf32, #tpu.memory_space<vmem>>, vector<1x1x128xf32>
    %9 = vector.shape_cast %8 : vector<1x1x128xf32> to vector<1x128xf32>
    %10 = vector.shape_cast %9 : vector<1x128xf32> to vector<1x1x128xf32>
    %11 = vector.broadcast %7 : vector<45x8x1xf32> to vector<45x8x128xf32>
    %12 = vector.broadcast %10 : vector<1x1x128xf32> to vector<45x8x128xf32>
    %13 = arith.mulf %11, %12 : vector<45x8x128xf32>
    %14 = arith.addf %5, %13 : vector<45x8x128xf32>
    %15 = vector.extract_strided_slice %4 {offsets = [0, 1, 0, 0], sizes = [45, 1, 8, 1], strides = [1, 1, 1, 1]} : vector<50x2x8x1xf32> to vector<45x1x8x1xf32>
    %16 = vector.shape_cast %15 : vector<45x1x8x1xf32> to vector<45x8x1xf32>
    %c1 = arith.constant 1 : index
    %c0_7 = arith.constant 0 : index
    %c0_8 = arith.constant 0 : index
    %17 = vector.load %arg2[%c1, %c0_7, %c0_8] : memref<10x1x128xf32, #tpu.memory_space<vmem>>, vector<1x1x128xf32>
    %18 = vector.shape_cast %17 : vector<1x1x128xf32> to vector<1x128xf32>
    %19 = vector.shape_cast %18 : vector<1x128xf32> to vector<1x1x128xf32>
    %20 = vector.broadcast %16 : vector<45x8x1xf32> to vector<45x8x128xf32>
    %21 = vector.broadcast %19 : vector<1x1x128xf32> to vector<45x8x128xf32>
    %22 = arith.mulf %20, %21 : vector<45x8x128xf32>
    %23 = arith.addf %14, %22 : vector<45x8x128xf32>
    %24 = vector.extract_strided_slice %4 {offsets = [1, 0, 0, 0], sizes = [45, 1, 8, 1], strides = [1, 1, 1, 1]} : vector<50x2x8x1xf32> to vector<45x1x8x1xf32>
    %25 = vector.shape_cast %24 : vector<45x1x8x1xf32> to vector<45x8x1xf32>
    %c2 = arith.constant 2 : index
    %c0_9 = arith.constant 0 : index
    %c0_10 = arith.constant 0 : index
    %26 = vector.load %arg2[%c2, %c0_9, %c0_10] : memref<10x1x128xf32, #tpu.memory_space<vmem>>, vector<1x1x128xf32>
    %27 = vector.shape_cast %26 : vector<1x1x128xf32> to vector<1x128xf32>
    %28 = vector.shape_cast %27 : vector<1x128xf32> to vector<1x1x128xf32>
    %29 = vector.broadcast %25 : vector<45x8x1xf32> to vector<45x8x128xf32>
    %30 = vector.broadcast %28 : vector<1x1x128xf32> to vector<45x8x128xf32>
    %31 = arith.mulf %29, %30 : vector<45x8x128xf32>
    %32 = arith.addf %23, %31 : vector<45x8x128xf32>
    %33 = vector.extract_strided_slice %4 {offsets = [1, 1, 0, 0], sizes = [45, 1, 8, 1], strides = [1, 1, 1, 1]} : vector<50x2x8x1xf32> to vector<45x1x8x1xf32>
    %34 = vector.shape_cast %33 : vector<45x1x8x1xf32> to vector<45x8x1xf32>
    %c3 = arith.constant 3 : index
    %c0_11 = arith.constant 0 : index
    %c0_12 = arith.constant 0 : index
    %35 = vector.load %arg2[%c3, %c0_11, %c0_12] : memref<10x1x128xf32, #tpu.memory_space<vmem>>, vector<1x1x128xf32>
    %36 = vector.shape_cast %35 : vector<1x1x128xf32> to vector<1x128xf32>
    %37 = vector.shape_cast %36 : vector<1x128xf32> to vector<1x1x128xf32>
    %38 = vector.broadcast %34 : vector<45x8x1xf32> to vector<45x8x128xf32>
    %39 = vector.broadcast %37 : vector<1x1x128xf32> to vector<45x8x128xf32>
    %40 = arith.mulf %38, %39 : vector<45x8x128xf32>
    %41 = arith.addf %32, %40 : vector<45x8x128xf32>
    %42 = vector.extract_strided_slice %4 {offsets = [2, 0, 0, 0], sizes = [45, 1, 8, 1], strides = [1, 1, 1, 1]} : vector<50x2x8x1xf32> to vector<45x1x8x1xf32>
    %43 = vector.shape_cast %42 : vector<45x1x8x1xf32> to vector<45x8x1xf32>
    %c4 = arith.constant 4 : index
    %c0_13 = arith.constant 0 : index
    %c0_14 = arith.constant 0 : index
    %44 = vector.load %arg2[%c4, %c0_13, %c0_14] : memref<10x1x128xf32, #tpu.memory_space<vmem>>, vector<1x1x128xf32>
    %45 = vector.shape_cast %44 : vector<1x1x128xf32> to vector<1x128xf32>
    %46 = vector.shape_cast %45 : vector<1x128xf32> to vector<1x1x128xf32>
    %47 = vector.broadcast %43 : vector<45x8x1xf32> to vector<45x8x128xf32>
    %48 = vector.broadcast %46 : vector<1x1x128xf32> to vector<45x8x128xf32>
    %49 = arith.mulf %47, %48 : vector<45x8x128xf32>
    %50 = arith.addf %41, %49 : vector<45x8x128xf32>
    %51 = vector.extract_strided_slice %4 {offsets = [2, 1, 0, 0], sizes = [45, 1, 8, 1], strides = [1, 1, 1, 1]} : vector<50x2x8x1xf32> to vector<45x1x8x1xf32>
    %52 = vector.shape_cast %51 : vector<45x1x8x1xf32> to vector<45x8x1xf32>
    %c5 = arith.constant 5 : index
    %c0_15 = arith.constant 0 : index
    %c0_16 = arith.constant 0 : index
    %53 = vector.load %arg2[%c5, %c0_15, %c0_16] : memref<10x1x128xf32, #tpu.memory_space<vmem>>, vector<1x1x128xf32>
    %54 = vector.shape_cast %53 : vector<1x1x128xf32> to vector<1x128xf32>
    %55 = vector.shape_cast %54 : vector<1x128xf32> to vector<1x1x128xf32>
    %56 = vector.broadcast %52 : vector<45x8x1xf32> to vector<45x8x128xf32>
    %57 = vector.broadcast %55 : vector<1x1x128xf32> to vector<45x8x128xf32>
    %58 = arith.mulf %56, %57 : vector<45x8x128xf32>
    %59 = arith.addf %50, %58 : vector<45x8x128xf32>
    %60 = vector.extract_strided_slice %4 {offsets = [3, 0, 0, 0], sizes = [45, 1, 8, 1], strides = [1, 1, 1, 1]} : vector<50x2x8x1xf32> to vector<45x1x8x1xf32>
    %61 = vector.shape_cast %60 : vector<45x1x8x1xf32> to vector<45x8x1xf32>
    %c6 = arith.constant 6 : index
    %c0_17 = arith.constant 0 : index
    %c0_18 = arith.constant 0 : index
    %62 = vector.load %arg2[%c6, %c0_17, %c0_18] : memref<10x1x128xf32, #tpu.memory_space<vmem>>, vector<1x1x128xf32>
    %63 = vector.shape_cast %62 : vector<1x1x128xf32> to vector<1x128xf32>
    %64 = vector.shape_cast %63 : vector<1x128xf32> to vector<1x1x128xf32>
    %65 = vector.broadcast %61 : vector<45x8x1xf32> to vector<45x8x128xf32>
    %66 = vector.broadcast %64 : vector<1x1x128xf32> to vector<45x8x128xf32>
    %67 = arith.mulf %65, %66 : vector<45x8x128xf32>
    %68 = arith.addf %59, %67 : vector<45x8x128xf32>
    %69 = vector.extract_strided_slice %4 {offsets = [3, 1, 0, 0], sizes = [45, 1, 8, 1], strides = [1, 1, 1, 1]} : vector<50x2x8x1xf32> to vector<45x1x8x1xf32>
    %70 = vector.shape_cast %69 : vector<45x1x8x1xf32> to vector<45x8x1xf32>
    %c7 = arith.constant 7 : index
    %c0_19 = arith.constant 0 : index
    %c0_20 = arith.constant 0 : index
    %71 = vector.load %arg2[%c7, %c0_19, %c0_20] : memref<10x1x128xf32, #tpu.memory_space<vmem>>, vector<1x1x128xf32>
    %72 = vector.shape_cast %71 : vector<1x1x128xf32> to vector<1x128xf32>
    %73 = vector.shape_cast %72 : vector<1x128xf32> to vector<1x1x128xf32>
    %74 = vector.broadcast %70 : vector<45x8x1xf32> to vector<45x8x128xf32>
    %75 = vector.broadcast %73 : vector<1x1x128xf32> to vector<45x8x128xf32>
    %76 = arith.mulf %74, %75 : vector<45x8x128xf32>
    %77 = arith.addf %68, %76 : vector<45x8x128xf32>
    %78 = vector.extract_strided_slice %4 {offsets = [4, 0, 0, 0], sizes = [45, 1, 8, 1], strides = [1, 1, 1, 1]} : vector<50x2x8x1xf32> to vector<45x1x8x1xf32>
    %79 = vector.shape_cast %78 : vector<45x1x8x1xf32> to vector<45x8x1xf32>
    %c8 = arith.constant 8 : index
    %c0_21 = arith.constant 0 : index
    %c0_22 = arith.constant 0 : index
    %80 = vector.load %arg2[%c8, %c0_21, %c0_22] : memref<10x1x128xf32, #tpu.memory_space<vmem>>, vector<1x1x128xf32>
    %81 = vector.shape_cast %80 : vector<1x1x128xf32> to vector<1x128xf32>
    %82 = vector.shape_cast %81 : vector<1x128xf32> to vector<1x1x128xf32>
    %83 = vector.broadcast %79 : vector<45x8x1xf32> to vector<45x8x128xf32>
    %84 = vector.broadcast %82 : vector<1x1x128xf32> to vector<45x8x128xf32>
    %85 = arith.mulf %83, %84 : vector<45x8x128xf32>
    %86 = arith.addf %77, %85 : vector<45x8x128xf32>
    %87 = vector.extract_strided_slice %4 {offsets = [4, 1, 0, 0], sizes = [45, 1, 8, 1], strides = [1, 1, 1, 1]} : vector<50x2x8x1xf32> to vector<45x1x8x1xf32>
    %88 = vector.shape_cast %87 : vector<45x1x8x1xf32> to vector<45x8x1xf32>
    %c9 = arith.constant 9 : index
    %c0_23 = arith.constant 0 : index
    %c0_24 = arith.constant 0 : index
    %89 = vector.load %arg2[%c9, %c0_23, %c0_24] : memref<10x1x128xf32, #tpu.memory_space<vmem>>, vector<1x1x128xf32>
    %90 = vector.shape_cast %89 : vector<1x1x128xf32> to vector<1x128xf32>
    %91 = vector.shape_cast %90 : vector<1x128xf32> to vector<1x1x128xf32>
    %92 = vector.broadcast %88 : vector<45x8x1xf32> to vector<45x8x128xf32>
    %93 = vector.broadcast %91 : vector<1x1x128xf32> to vector<45x8x128xf32>
    %94 = arith.mulf %92, %93 : vector<45x8x128xf32>
    %95 = arith.addf %86, %94 : vector<45x8x128xf32>
    %c0_25 = arith.constant 0 : index
    %c0_26 = arith.constant 0 : index
    %96 = vector.load %arg3[%c0_25, %c0_26] : memref<1x128xf32, #tpu.memory_space<vmem>>, vector<1x128xf32>
    %97 = vector.shape_cast %96 : vector<1x128xf32> to vector<1x1x128xf32>
    %98 = vector.broadcast %97 : vector<1x1x128xf32> to vector<45x8x128xf32>
    %99 = arith.addf %95, %98 : vector<45x8x128xf32>
    %cst_27 = arith.constant 0.000000e+00 : f32
    %100 = vector.broadcast %cst_27 : f32 to vector<45x8x128xf32>
    %101 = arith.maximumf %99, %100 : vector<45x8x128xf32>
    %cst_28 = arith.constant 0.000000e+00 : f32
    %102 = vector.broadcast %cst_28 : f32 to vector<1x8x128xf32>
    %103 = tpu.concatenate %101, %102 in 0 : vector<45x8x128xf32>, vector<1x8x128xf32> -> vector<46x8x128xf32>
    %104 = vector.shape_cast %103 : vector<46x8x128xf32> to vector<23x2x8x128xf32>
    %cst_29 = arith.constant 0.000000e+00 : f32
    %105 = vector.broadcast %cst_29 : f32 to vector<152x128xf32>
    %106 = vector.extract_strided_slice %104 {offsets = [0, 0, 0, 0], sizes = [19, 1, 8, 128], strides = [1, 1, 1, 1]} : vector<23x2x8x128xf32> to vector<19x1x8x128xf32>
    %107 = vector.shape_cast %106 : vector<19x1x8x128xf32> to vector<19x8x128xf32>
    %108 = vector.shape_cast %107 : vector<19x8x128xf32> to vector<152x128xf32>
    %c0_30 = arith.constant 0 : index
    %c0_31 = arith.constant 0 : index
    %c0_32 = arith.constant 0 : index
    %109 = vector.load %arg4[%c0_30, %c0_31, %c0_32] : memref<8x128x128xf32, #tpu.memory_space<vmem>>, vector<1x128x128xf32>
    %110 = vector.shape_cast %109 : vector<1x128x128xf32> to vector<128x128xf32>
    %cst_33 = arith.constant dense<0.000000e+00> : vector<152x128xf32>
    %111 = tpu.matmul %108, %110, %cst_33 {dimension_numbers = #tpu.dot_dimension_numbers<[1], [0], [0], [1], [0, 0, 1, 1], [], []>} : vector<152x128xf32>, vector<128x128xf32>, vector<152x128xf32> -> vector<152x128xf32>
    %112 = arith.addf %105, %111 : vector<152x128xf32>
    %113 = vector.extract_strided_slice %104 {offsets = [0, 1, 0, 0], sizes = [19, 1, 8, 128], strides = [1, 1, 1, 1]} : vector<23x2x8x128xf32> to vector<19x1x8x128xf32>
    %114 = vector.shape_cast %113 : vector<19x1x8x128xf32> to vector<19x8x128xf32>
    %115 = vector.shape_cast %114 : vector<19x8x128xf32> to vector<152x128xf32>
    %c1_34 = arith.constant 1 : index
    %c0_35 = arith.constant 0 : index
    %c0_36 = arith.constant 0 : index
    %116 = vector.load %arg4[%c1_34, %c0_35, %c0_36] : memref<8x128x128xf32, #tpu.memory_space<vmem>>, vector<1x128x128xf32>
    %117 = vector.shape_cast %116 : vector<1x128x128xf32> to vector<128x128xf32>
    %cst_37 = arith.constant dense<0.000000e+00> : vector<152x128xf32>
    %118 = tpu.matmul %115, %117, %cst_37 {dimension_numbers = #tpu.dot_dimension_numbers<[1], [0], [0], [1], [0, 0, 1, 1], [], []>} : vector<152x128xf32>, vector<128x128xf32>, vector<152x128xf32> -> vector<152x128xf32>
    %119 = arith.addf %112, %118 : vector<152x128xf32>
    %120 = vector.extract_strided_slice %104 {offsets = [1, 0, 0, 0], sizes = [19, 1, 8, 128], strides = [1, 1, 1, 1]} : vector<23x2x8x128xf32> to vector<19x1x8x128xf32>
    %121 = vector.shape_cast %120 : vector<19x1x8x128xf32> to vector<19x8x128xf32>
    %122 = vector.shape_cast %121 : vector<19x8x128xf32> to vector<152x128xf32>
    %c2_38 = arith.constant 2 : index
    %c0_39 = arith.constant 0 : index
    %c0_40 = arith.constant 0 : index
    %123 = vector.load %arg4[%c2_38, %c0_39, %c0_40] : memref<8x128x128xf32, #tpu.memory_space<vmem>>, vector<1x128x128xf32>
    %124 = vector.shape_cast %123 : vector<1x128x128xf32> to vector<128x128xf32>
    %cst_41 = arith.constant dense<0.000000e+00> : vector<152x128xf32>
    %125 = tpu.matmul %122, %124, %cst_41 {dimension_numbers = #tpu.dot_dimension_numbers<[1], [0], [0], [1], [0, 0, 1, 1], [], []>} : vector<152x128xf32>, vector<128x128xf32>, vector<152x128xf32> -> vector<152x128xf32>
    %126 = arith.addf %119, %125 : vector<152x128xf32>
    %127 = vector.extract_strided_slice %104 {offsets = [1, 1, 0, 0], sizes = [19, 1, 8, 128], strides = [1, 1, 1, 1]} : vector<23x2x8x128xf32> to vector<19x1x8x128xf32>
    %128 = vector.shape_cast %127 : vector<19x1x8x128xf32> to vector<19x8x128xf32>
    %129 = vector.shape_cast %128 : vector<19x8x128xf32> to vector<152x128xf32>
    %c3_42 = arith.constant 3 : index
    %c0_43 = arith.constant 0 : index
    %c0_44 = arith.constant 0 : index
    %130 = vector.load %arg4[%c3_42, %c0_43, %c0_44] : memref<8x128x128xf32, #tpu.memory_space<vmem>>, vector<1x128x128xf32>
    %131 = vector.shape_cast %130 : vector<1x128x128xf32> to vector<128x128xf32>
    %cst_45 = arith.constant dense<0.000000e+00> : vector<152x128xf32>
    %132 = tpu.matmul %129, %131, %cst_45 {dimension_numbers = #tpu.dot_dimension_numbers<[1], [0], [0], [1], [0, 0, 1, 1], [], []>} : vector<152x128xf32>, vector<128x128xf32>, vector<152x128xf32> -> vector<152x128xf32>
    %133 = arith.addf %126, %132 : vector<152x128xf32>
    %134 = vector.extract_strided_slice %104 {offsets = [2, 0, 0, 0], sizes = [19, 1, 8, 128], strides = [1, 1, 1, 1]} : vector<23x2x8x128xf32> to vector<19x1x8x128xf32>
    %135 = vector.shape_cast %134 : vector<19x1x8x128xf32> to vector<19x8x128xf32>
    %136 = vector.shape_cast %135 : vector<19x8x128xf32> to vector<152x128xf32>
    %c4_46 = arith.constant 4 : index
    %c0_47 = arith.constant 0 : index
    %c0_48 = arith.constant 0 : index
    %137 = vector.load %arg4[%c4_46, %c0_47, %c0_48] : memref<8x128x128xf32, #tpu.memory_space<vmem>>, vector<1x128x128xf32>
    %138 = vector.shape_cast %137 : vector<1x128x128xf32> to vector<128x128xf32>
    %cst_49 = arith.constant dense<0.000000e+00> : vector<152x128xf32>
    %139 = tpu.matmul %136, %138, %cst_49 {dimension_numbers = #tpu.dot_dimension_numbers<[1], [0], [0], [1], [0, 0, 1, 1], [], []>} : vector<152x128xf32>, vector<128x128xf32>, vector<152x128xf32> -> vector<152x128xf32>
    %140 = arith.addf %133, %139 : vector<152x128xf32>
    %141 = vector.extract_strided_slice %104 {offsets = [2, 1, 0, 0], sizes = [19, 1, 8, 128], strides = [1, 1, 1, 1]} : vector<23x2x8x128xf32> to vector<19x1x8x128xf32>
    %142 = vector.shape_cast %141 : vector<19x1x8x128xf32> to vector<19x8x128xf32>
    %143 = vector.shape_cast %142 : vector<19x8x128xf32> to vector<152x128xf32>
    %c5_50 = arith.constant 5 : index
    %c0_51 = arith.constant 0 : index
    %c0_52 = arith.constant 0 : index
    %144 = vector.load %arg4[%c5_50, %c0_51, %c0_52] : memref<8x128x128xf32, #tpu.memory_space<vmem>>, vector<1x128x128xf32>
    %145 = vector.shape_cast %144 : vector<1x128x128xf32> to vector<128x128xf32>
    %cst_53 = arith.constant dense<0.000000e+00> : vector<152x128xf32>
    %146 = tpu.matmul %143, %145, %cst_53 {dimension_numbers = #tpu.dot_dimension_numbers<[1], [0], [0], [1], [0, 0, 1, 1], [], []>} : vector<152x128xf32>, vector<128x128xf32>, vector<152x128xf32> -> vector<152x128xf32>
    %147 = arith.addf %140, %146 : vector<152x128xf32>
    %148 = vector.extract_strided_slice %104 {offsets = [3, 0, 0, 0], sizes = [19, 1, 8, 128], strides = [1, 1, 1, 1]} : vector<23x2x8x128xf32> to vector<19x1x8x128xf32>
    %149 = vector.shape_cast %148 : vector<19x1x8x128xf32> to vector<19x8x128xf32>
    %150 = vector.shape_cast %149 : vector<19x8x128xf32> to vector<152x128xf32>
    %c6_54 = arith.constant 6 : index
    %c0_55 = arith.constant 0 : index
    %c0_56 = arith.constant 0 : index
    %151 = vector.load %arg4[%c6_54, %c0_55, %c0_56] : memref<8x128x128xf32, #tpu.memory_space<vmem>>, vector<1x128x128xf32>
    %152 = vector.shape_cast %151 : vector<1x128x128xf32> to vector<128x128xf32>
    %cst_57 = arith.constant dense<0.000000e+00> : vector<152x128xf32>
    %153 = tpu.matmul %150, %152, %cst_57 {dimension_numbers = #tpu.dot_dimension_numbers<[1], [0], [0], [1], [0, 0, 1, 1], [], []>} : vector<152x128xf32>, vector<128x128xf32>, vector<152x128xf32> -> vector<152x128xf32>
    %154 = arith.addf %147, %153 : vector<152x128xf32>
    %155 = vector.extract_strided_slice %104 {offsets = [3, 1, 0, 0], sizes = [19, 1, 8, 128], strides = [1, 1, 1, 1]} : vector<23x2x8x128xf32> to vector<19x1x8x128xf32>
    %156 = vector.shape_cast %155 : vector<19x1x8x128xf32> to vector<19x8x128xf32>
    %157 = vector.shape_cast %156 : vector<19x8x128xf32> to vector<152x128xf32>
    %c7_58 = arith.constant 7 : index
    %c0_59 = arith.constant 0 : index
    %c0_60 = arith.constant 0 : index
    %158 = vector.load %arg4[%c7_58, %c0_59, %c0_60] : memref<8x128x128xf32, #tpu.memory_space<vmem>>, vector<1x128x128xf32>
    %159 = vector.shape_cast %158 : vector<1x128x128xf32> to vector<128x128xf32>
    %cst_61 = arith.constant dense<0.000000e+00> : vector<152x128xf32>
    %160 = tpu.matmul %157, %159, %cst_61 {dimension_numbers = #tpu.dot_dimension_numbers<[1], [0], [0], [1], [0, 0, 1, 1], [], []>} : vector<152x128xf32>, vector<128x128xf32>, vector<152x128xf32> -> vector<152x128xf32>
    %161 = arith.addf %154, %160 : vector<152x128xf32>
    %162 = vector.shape_cast %161 : vector<152x128xf32> to vector<19x8x128xf32>
    %c0_62 = arith.constant 0 : index
    %c0_63 = arith.constant 0 : index
    %163 = vector.load %arg5[%c0_62, %c0_63] : memref<1x128xf32, #tpu.memory_space<vmem>>, vector<1x128xf32>
    %164 = vector.shape_cast %163 : vector<1x128xf32> to vector<1x1x128xf32>
    %165 = vector.broadcast %164 : vector<1x1x128xf32> to vector<19x8x128xf32>
    %166 = arith.addf %162, %165 : vector<19x8x128xf32>
    %cst_64 = arith.constant 0.000000e+00 : f32
    %167 = vector.broadcast %cst_64 : f32 to vector<19x8x128xf32>
    %168 = arith.maximumf %166, %167 : vector<19x8x128xf32>
    %cst_65 = arith.constant 0.000000e+00 : f32
    %169 = vector.broadcast %cst_65 : f32 to vector<112x128xf32>
    %170 = vector.extract_strided_slice %168 {offsets = [0, 0, 0], sizes = [14, 8, 128], strides = [1, 1, 1]} : vector<19x8x128xf32> to vector<14x8x128xf32>
    %171 = vector.shape_cast %170 : vector<14x8x128xf32> to vector<112x128xf32>
    %c0_66 = arith.constant 0 : index
    %c0_67 = arith.constant 0 : index
    %c0_68 = arith.constant 0 : index
    %172 = vector.load %arg6[%c0_66, %c0_67, %c0_68] : memref<6x128x128xf32, #tpu.memory_space<vmem>>, vector<1x128x128xf32>
    %173 = vector.shape_cast %172 : vector<1x128x128xf32> to vector<128x128xf32>
    %cst_69 = arith.constant dense<0.000000e+00> : vector<112x128xf32>
    %174 = tpu.matmul %171, %173, %cst_69 {dimension_numbers = #tpu.dot_dimension_numbers<[1], [0], [0], [1], [0, 0, 1, 1], [], []>} : vector<112x128xf32>, vector<128x128xf32>, vector<112x128xf32> -> vector<112x128xf32>
    %175 = arith.addf %169, %174 : vector<112x128xf32>
    %176 = vector.extract_strided_slice %168 {offsets = [1, 0, 0], sizes = [14, 8, 128], strides = [1, 1, 1]} : vector<19x8x128xf32> to vector<14x8x128xf32>
    %177 = vector.shape_cast %176 : vector<14x8x128xf32> to vector<112x128xf32>
    %c1_70 = arith.constant 1 : index
    %c0_71 = arith.constant 0 : index
    %c0_72 = arith.constant 0 : index
    %178 = vector.load %arg6[%c1_70, %c0_71, %c0_72] : memref<6x128x128xf32, #tpu.memory_space<vmem>>, vector<1x128x128xf32>
    %179 = vector.shape_cast %178 : vector<1x128x128xf32> to vector<128x128xf32>
    %cst_73 = arith.constant dense<0.000000e+00> : vector<112x128xf32>
    %180 = tpu.matmul %177, %179, %cst_73 {dimension_numbers = #tpu.dot_dimension_numbers<[1], [0], [0], [1], [0, 0, 1, 1], [], []>} : vector<112x128xf32>, vector<128x128xf32>, vector<112x128xf32> -> vector<112x128xf32>
    %181 = arith.addf %175, %180 : vector<112x128xf32>
    %182 = vector.extract_strided_slice %168 {offsets = [2, 0, 0], sizes = [14, 8, 128], strides = [1, 1, 1]} : vector<19x8x128xf32> to vector<14x8x128xf32>
    %183 = vector.shape_cast %182 : vector<14x8x128xf32> to vector<112x128xf32>
    %c2_74 = arith.constant 2 : index
    %c0_75 = arith.constant 0 : index
    %c0_76 = arith.constant 0 : index
    %184 = vector.load %arg6[%c2_74, %c0_75, %c0_76] : memref<6x128x128xf32, #tpu.memory_space<vmem>>, vector<1x128x128xf32>
    %185 = vector.shape_cast %184 : vector<1x128x128xf32> to vector<128x128xf32>
    %cst_77 = arith.constant dense<0.000000e+00> : vector<112x128xf32>
    %186 = tpu.matmul %183, %185, %cst_77 {dimension_numbers = #tpu.dot_dimension_numbers<[1], [0], [0], [1], [0, 0, 1, 1], [], []>} : vector<112x128xf32>, vector<128x128xf32>, vector<112x128xf32> -> vector<112x128xf32>
    %187 = arith.addf %181, %186 : vector<112x128xf32>
    %188 = vector.extract_strided_slice %168 {offsets = [3, 0, 0], sizes = [14, 8, 128], strides = [1, 1, 1]} : vector<19x8x128xf32> to vector<14x8x128xf32>
    %189 = vector.shape_cast %188 : vector<14x8x128xf32> to vector<112x128xf32>
    %c3_78 = arith.constant 3 : index
    %c0_79 = arith.constant 0 : index
    %c0_80 = arith.constant 0 : index
    %190 = vector.load %arg6[%c3_78, %c0_79, %c0_80] : memref<6x128x128xf32, #tpu.memory_space<vmem>>, vector<1x128x128xf32>
    %191 = vector.shape_cast %190 : vector<1x128x128xf32> to vector<128x128xf32>
    %cst_81 = arith.constant dense<0.000000e+00> : vector<112x128xf32>
    %192 = tpu.matmul %189, %191, %cst_81 {dimension_numbers = #tpu.dot_dimension_numbers<[1], [0], [0], [1], [0, 0, 1, 1], [], []>} : vector<112x128xf32>, vector<128x128xf32>, vector<112x128xf32> -> vector<112x128xf32>
    %193 = arith.addf %187, %192 : vector<112x128xf32>
    %194 = vector.extract_strided_slice %168 {offsets = [4, 0, 0], sizes = [14, 8, 128], strides = [1, 1, 1]} : vector<19x8x128xf32> to vector<14x8x128xf32>
    %195 = vector.shape_cast %194 : vector<14x8x128xf32> to vector<112x128xf32>
    %c4_82 = arith.constant 4 : index
    %c0_83 = arith.constant 0 : index
    %c0_84 = arith.constant 0 : index
    %196 = vector.load %arg6[%c4_82, %c0_83, %c0_84] : memref<6x128x128xf32, #tpu.memory_space<vmem>>, vector<1x128x128xf32>
    %197 = vector.shape_cast %196 : vector<1x128x128xf32> to vector<128x128xf32>
    %cst_85 = arith.constant dense<0.000000e+00> : vector<112x128xf32>
    %198 = tpu.matmul %195, %197, %cst_85 {dimension_numbers = #tpu.dot_dimension_numbers<[1], [0], [0], [1], [0, 0, 1, 1], [], []>} : vector<112x128xf32>, vector<128x128xf32>, vector<112x128xf32> -> vector<112x128xf32>
    %199 = arith.addf %193, %198 : vector<112x128xf32>
    %200 = vector.extract_strided_slice %168 {offsets = [5, 0, 0], sizes = [14, 8, 128], strides = [1, 1, 1]} : vector<19x8x128xf32> to vector<14x8x128xf32>
    %201 = vector.shape_cast %200 : vector<14x8x128xf32> to vector<112x128xf32>
    %c5_86 = arith.constant 5 : index
    %c0_87 = arith.constant 0 : index
    %c0_88 = arith.constant 0 : index
    %202 = vector.load %arg6[%c5_86, %c0_87, %c0_88] : memref<6x128x128xf32, #tpu.memory_space<vmem>>, vector<1x128x128xf32>
    %203 = vector.shape_cast %202 : vector<1x128x128xf32> to vector<128x128xf32>
    %cst_89 = arith.constant dense<0.000000e+00> : vector<112x128xf32>
    %204 = tpu.matmul %201, %203, %cst_89 {dimension_numbers = #tpu.dot_dimension_numbers<[1], [0], [0], [1], [0, 0, 1, 1], [], []>} : vector<112x128xf32>, vector<128x128xf32>, vector<112x128xf32> -> vector<112x128xf32>
    %205 = arith.addf %199, %204 : vector<112x128xf32>
    %206 = vector.shape_cast %205 : vector<112x128xf32> to vector<14x8x128xf32>
    %c0_90 = arith.constant 0 : index
    %c0_91 = arith.constant 0 : index
    %207 = vector.load %arg7[%c0_90, %c0_91] : memref<1x128xf32, #tpu.memory_space<vmem>>, vector<1x128xf32>
    %208 = vector.shape_cast %207 : vector<1x128xf32> to vector<1x1x128xf32>
    %209 = vector.broadcast %208 : vector<1x1x128xf32> to vector<14x8x128xf32>
    %210 = arith.addf %206, %209 : vector<14x8x128xf32>
    %cst_92 = arith.constant 0.000000e+00 : f32
    %211 = vector.broadcast %cst_92 : f32 to vector<14x8x128xf32>
    %212 = arith.maximumf %210, %211 : vector<14x8x128xf32>
    %cst_93 = arith.constant 0.000000e+00 : f32
    %213 = vector.broadcast %cst_93 : f32 to vector<80x128xf32>
    %214 = vector.extract_strided_slice %212 {offsets = [0, 0, 0], sizes = [10, 8, 128], strides = [1, 1, 1]} : vector<14x8x128xf32> to vector<10x8x128xf32>
    %215 = vector.shape_cast %214 : vector<10x8x128xf32> to vector<80x128xf32>
    %c0_94 = arith.constant 0 : index
    %c0_95 = arith.constant 0 : index
    %c0_96 = arith.constant 0 : index
    %216 = vector.load %arg8[%c0_94, %c0_95, %c0_96] : memref<5x128x128xf32, #tpu.memory_space<vmem>>, vector<1x128x128xf32>
    %217 = vector.shape_cast %216 : vector<1x128x128xf32> to vector<128x128xf32>
    %cst_97 = arith.constant dense<0.000000e+00> : vector<80x128xf32>
    %218 = tpu.matmul %215, %217, %cst_97 {dimension_numbers = #tpu.dot_dimension_numbers<[1], [0], [0], [1], [0, 0, 1, 1], [], []>} : vector<80x128xf32>, vector<128x128xf32>, vector<80x128xf32> -> vector<80x128xf32>
    %219 = arith.addf %213, %218 : vector<80x128xf32>
    %220 = vector.extract_strided_slice %212 {offsets = [1, 0, 0], sizes = [10, 8, 128], strides = [1, 1, 1]} : vector<14x8x128xf32> to vector<10x8x128xf32>
    %221 = vector.shape_cast %220 : vector<10x8x128xf32> to vector<80x128xf32>
    %c1_98 = arith.constant 1 : index
    %c0_99 = arith.constant 0 : index
    %c0_100 = arith.constant 0 : index
    %222 = vector.load %arg8[%c1_98, %c0_99, %c0_100] : memref<5x128x128xf32, #tpu.memory_space<vmem>>, vector<1x128x128xf32>
    %223 = vector.shape_cast %222 : vector<1x128x128xf32> to vector<128x128xf32>
    %cst_101 = arith.constant dense<0.000000e+00> : vector<80x128xf32>
    %224 = tpu.matmul %221, %223, %cst_101 {dimension_numbers = #tpu.dot_dimension_numbers<[1], [0], [0], [1], [0, 0, 1, 1], [], []>} : vector<80x128xf32>, vector<128x128xf32>, vector<80x128xf32> -> vector<80x128xf32>
    %225 = arith.addf %219, %224 : vector<80x128xf32>
    %226 = vector.extract_strided_slice %212 {offsets = [2, 0, 0], sizes = [10, 8, 128], strides = [1, 1, 1]} : vector<14x8x128xf32> to vector<10x8x128xf32>
    %227 = vector.shape_cast %226 : vector<10x8x128xf32> to vector<80x128xf32>
    %c2_102 = arith.constant 2 : index
    %c0_103 = arith.constant 0 : index
    %c0_104 = arith.constant 0 : index
    %228 = vector.load %arg8[%c2_102, %c0_103, %c0_104] : memref<5x128x128xf32, #tpu.memory_space<vmem>>, vector<1x128x128xf32>
    %229 = vector.shape_cast %228 : vector<1x128x128xf32> to vector<128x128xf32>
    %cst_105 = arith.constant dense<0.000000e+00> : vector<80x128xf32>
    %230 = tpu.matmul %227, %229, %cst_105 {dimension_numbers = #tpu.dot_dimension_numbers<[1], [0], [0], [1], [0, 0, 1, 1], [], []>} : vector<80x128xf32>, vector<128x128xf32>, vector<80x128xf32> -> vector<80x128xf32>
    %231 = arith.addf %225, %230 : vector<80x128xf32>
    %232 = vector.extract_strided_slice %212 {offsets = [3, 0, 0], sizes = [10, 8, 128], strides = [1, 1, 1]} : vector<14x8x128xf32> to vector<10x8x128xf32>
    %233 = vector.shape_cast %232 : vector<10x8x128xf32> to vector<80x128xf32>
    %c3_106 = arith.constant 3 : index
    %c0_107 = arith.constant 0 : index
    %c0_108 = arith.constant 0 : index
    %234 = vector.load %arg8[%c3_106, %c0_107, %c0_108] : memref<5x128x128xf32, #tpu.memory_space<vmem>>, vector<1x128x128xf32>
    %235 = vector.shape_cast %234 : vector<1x128x128xf32> to vector<128x128xf32>
    %cst_109 = arith.constant dense<0.000000e+00> : vector<80x128xf32>
    %236 = tpu.matmul %233, %235, %cst_109 {dimension_numbers = #tpu.dot_dimension_numbers<[1], [0], [0], [1], [0, 0, 1, 1], [], []>} : vector<80x128xf32>, vector<128x128xf32>, vector<80x128xf32> -> vector<80x128xf32>
    %237 = arith.addf %231, %236 : vector<80x128xf32>
    %238 = vector.extract_strided_slice %212 {offsets = [4, 0, 0], sizes = [10, 8, 128], strides = [1, 1, 1]} : vector<14x8x128xf32> to vector<10x8x128xf32>
    %239 = vector.shape_cast %238 : vector<10x8x128xf32> to vector<80x128xf32>
    %c4_110 = arith.constant 4 : index
    %c0_111 = arith.constant 0 : index
    %c0_112 = arith.constant 0 : index
    %240 = vector.load %arg8[%c4_110, %c0_111, %c0_112] : memref<5x128x128xf32, #tpu.memory_space<vmem>>, vector<1x128x128xf32>
    %241 = vector.shape_cast %240 : vector<1x128x128xf32> to vector<128x128xf32>
    %cst_113 = arith.constant dense<0.000000e+00> : vector<80x128xf32>
    %242 = tpu.matmul %239, %241, %cst_113 {dimension_numbers = #tpu.dot_dimension_numbers<[1], [0], [0], [1], [0, 0, 1, 1], [], []>} : vector<80x128xf32>, vector<128x128xf32>, vector<80x128xf32> -> vector<80x128xf32>
    %243 = arith.addf %237, %242 : vector<80x128xf32>
    %244 = vector.shape_cast %243 : vector<80x128xf32> to vector<10x8x128xf32>
    %c0_114 = arith.constant 0 : index
    %c0_115 = arith.constant 0 : index
    %245 = vector.load %arg9[%c0_114, %c0_115] : memref<1x128xf32, #tpu.memory_space<vmem>>, vector<1x128xf32>
    %246 = vector.shape_cast %245 : vector<1x128xf32> to vector<1x1x128xf32>
    %247 = vector.broadcast %246 : vector<1x1x128xf32> to vector<10x8x128xf32>
    %248 = arith.addf %244, %247 : vector<10x8x128xf32>
    %cst_116 = arith.constant 0.000000e+00 : f32
    %249 = vector.broadcast %cst_116 : f32 to vector<10x8x128xf32>
    %250 = arith.maximumf %248, %249 : vector<10x8x128xf32>
    %cst_117 = arith.constant 0.000000e+00 : f32
    %251 = vector.broadcast %cst_117 : f32 to vector<48x128xf32>
    %252 = vector.extract_strided_slice %250 {offsets = [0, 0, 0], sizes = [6, 8, 128], strides = [1, 1, 1]} : vector<10x8x128xf32> to vector<6x8x128xf32>
    %253 = vector.shape_cast %252 : vector<6x8x128xf32> to vector<48x128xf32>
    %c0_118 = arith.constant 0 : index
    %c0_119 = arith.constant 0 : index
    %c0_120 = arith.constant 0 : index
    %254 = vector.load %arg10[%c0_118, %c0_119, %c0_120] : memref<5x128x128xf32, #tpu.memory_space<vmem>>, vector<1x128x128xf32>
    %255 = vector.shape_cast %254 : vector<1x128x128xf32> to vector<128x128xf32>
    %cst_121 = arith.constant dense<0.000000e+00> : vector<48x128xf32>
    %256 = tpu.matmul %253, %255, %cst_121 {dimension_numbers = #tpu.dot_dimension_numbers<[1], [0], [0], [1], [0, 0, 1, 1], [], []>} : vector<48x128xf32>, vector<128x128xf32>, vector<48x128xf32> -> vector<48x128xf32>
    %257 = arith.addf %251, %256 : vector<48x128xf32>
    %258 = vector.extract_strided_slice %250 {offsets = [1, 0, 0], sizes = [6, 8, 128], strides = [1, 1, 1]} : vector<10x8x128xf32> to vector<6x8x128xf32>
    %259 = vector.shape_cast %258 : vector<6x8x128xf32> to vector<48x128xf32>
    %c1_122 = arith.constant 1 : index
    %c0_123 = arith.constant 0 : index
    %c0_124 = arith.constant 0 : index
    %260 = vector.load %arg10[%c1_122, %c0_123, %c0_124] : memref<5x128x128xf32, #tpu.memory_space<vmem>>, vector<1x128x128xf32>
    %261 = vector.shape_cast %260 : vector<1x128x128xf32> to vector<128x128xf32>
    %cst_125 = arith.constant dense<0.000000e+00> : vector<48x128xf32>
    %262 = tpu.matmul %259, %261, %cst_125 {dimension_numbers = #tpu.dot_dimension_numbers<[1], [0], [0], [1], [0, 0, 1, 1], [], []>} : vector<48x128xf32>, vector<128x128xf32>, vector<48x128xf32> -> vector<48x128xf32>
    %263 = arith.addf %257, %262 : vector<48x128xf32>
    %264 = vector.extract_strided_slice %250 {offsets = [2, 0, 0], sizes = [6, 8, 128], strides = [1, 1, 1]} : vector<10x8x128xf32> to vector<6x8x128xf32>
    %265 = vector.shape_cast %264 : vector<6x8x128xf32> to vector<48x128xf32>
    %c2_126 = arith.constant 2 : index
    %c0_127 = arith.constant 0 : index
    %c0_128 = arith.constant 0 : index
    %266 = vector.load %arg10[%c2_126, %c0_127, %c0_128] : memref<5x128x128xf32, #tpu.memory_space<vmem>>, vector<1x128x128xf32>
    %267 = vector.shape_cast %266 : vector<1x128x128xf32> to vector<128x128xf32>
    %cst_129 = arith.constant dense<0.000000e+00> : vector<48x128xf32>
    %268 = tpu.matmul %265, %267, %cst_129 {dimension_numbers = #tpu.dot_dimension_numbers<[1], [0], [0], [1], [0, 0, 1, 1], [], []>} : vector<48x128xf32>, vector<128x128xf32>, vector<48x128xf32> -> vector<48x128xf32>
    %269 = arith.addf %263, %268 : vector<48x128xf32>
    %270 = vector.extract_strided_slice %250 {offsets = [3, 0, 0], sizes = [6, 8, 128], strides = [1, 1, 1]} : vector<10x8x128xf32> to vector<6x8x128xf32>
    %271 = vector.shape_cast %270 : vector<6x8x128xf32> to vector<48x128xf32>
    %c3_130 = arith.constant 3 : index
    %c0_131 = arith.constant 0 : index
    %c0_132 = arith.constant 0 : index
    %272 = vector.load %arg10[%c3_130, %c0_131, %c0_132] : memref<5x128x128xf32, #tpu.memory_space<vmem>>, vector<1x128x128xf32>
    %273 = vector.shape_cast %272 : vector<1x128x128xf32> to vector<128x128xf32>
    %cst_133 = arith.constant dense<0.000000e+00> : vector<48x128xf32>
    %274 = tpu.matmul %271, %273, %cst_133 {dimension_numbers = #tpu.dot_dimension_numbers<[1], [0], [0], [1], [0, 0, 1, 1], [], []>} : vector<48x128xf32>, vector<128x128xf32>, vector<48x128xf32> -> vector<48x128xf32>
    %275 = arith.addf %269, %274 : vector<48x128xf32>
    %276 = vector.extract_strided_slice %250 {offsets = [4, 0, 0], sizes = [6, 8, 128], strides = [1, 1, 1]} : vector<10x8x128xf32> to vector<6x8x128xf32>
    %277 = vector.shape_cast %276 : vector<6x8x128xf32> to vector<48x128xf32>
    %c4_134 = arith.constant 4 : index
    %c0_135 = arith.constant 0 : index
    %c0_136 = arith.constant 0 : index
    %278 = vector.load %arg10[%c4_134, %c0_135, %c0_136] : memref<5x128x128xf32, #tpu.memory_space<vmem>>, vector<1x128x128xf32>
    %279 = vector.shape_cast %278 : vector<1x128x128xf32> to vector<128x128xf32>
    %cst_137 = arith.constant dense<0.000000e+00> : vector<48x128xf32>
    %280 = tpu.matmul %277, %279, %cst_137 {dimension_numbers = #tpu.dot_dimension_numbers<[1], [0], [0], [1], [0, 0, 1, 1], [], []>} : vector<48x128xf32>, vector<128x128xf32>, vector<48x128xf32> -> vector<48x128xf32>
    %281 = arith.addf %275, %280 : vector<48x128xf32>
    %282 = vector.shape_cast %281 : vector<48x128xf32> to vector<6x8x128xf32>
    %c0_138 = arith.constant 0 : index
    %c0_139 = arith.constant 0 : index
    %283 = vector.load %arg11[%c0_138, %c0_139] : memref<1x128xf32, #tpu.memory_space<vmem>>, vector<1x128xf32>
    %284 = vector.shape_cast %283 : vector<1x128xf32> to vector<1x1x128xf32>
    %285 = vector.broadcast %284 : vector<1x1x128xf32> to vector<6x8x128xf32>
    %286 = arith.addf %282, %285 : vector<6x8x128xf32>
    %cst_140 = arith.constant 0.000000e+00 : f32
    %287 = vector.broadcast %cst_140 : f32 to vector<6x8x128xf32>
    %288 = arith.maximumf %286, %287 : vector<6x8x128xf32>
    %cst_141 = arith.constant 0.000000e+00 : f32
    %289 = vector.broadcast %cst_141 : f32 to vector<8x1024xf32>
    %290 = vector.extract_strided_slice %288 {offsets = [0, 0, 0], sizes = [1, 8, 128], strides = [1, 1, 1]} : vector<6x8x128xf32> to vector<1x8x128xf32>
    %291 = vector.shape_cast %290 : vector<1x8x128xf32> to vector<8x128xf32>
    %c0_142 = arith.constant 0 : index
    %c0_143 = arith.constant 0 : index
    %c0_144 = arith.constant 0 : index
    %292 = vector.load %arg12[%c0_142, %c0_143, %c0_144] : memref<6x128x1024xf32, #tpu.memory_space<vmem>>, vector<1x128x1024xf32>
    %293 = vector.shape_cast %292 : vector<1x128x1024xf32> to vector<128x1024xf32>
    %cst_145 = arith.constant dense<0.000000e+00> : vector<8x1024xf32>
    %294 = tpu.matmul %291, %293, %cst_145 {dimension_numbers = #tpu.dot_dimension_numbers<[1], [0], [0], [1], [0, 0, 1, 1], [], []>} : vector<8x128xf32>, vector<128x1024xf32>, vector<8x1024xf32> -> vector<8x1024xf32>
    %295 = arith.addf %289, %294 : vector<8x1024xf32>
    %296 = vector.extract_strided_slice %288 {offsets = [1, 0, 0], sizes = [1, 8, 128], strides = [1, 1, 1]} : vector<6x8x128xf32> to vector<1x8x128xf32>
    %297 = vector.shape_cast %296 : vector<1x8x128xf32> to vector<8x128xf32>
    %c1_146 = arith.constant 1 : index
    %c0_147 = arith.constant 0 : index
    %c0_148 = arith.constant 0 : index
    %298 = vector.load %arg12[%c1_146, %c0_147, %c0_148] : memref<6x128x1024xf32, #tpu.memory_space<vmem>>, vector<1x128x1024xf32>
    %299 = vector.shape_cast %298 : vector<1x128x1024xf32> to vector<128x1024xf32>
    %cst_149 = arith.constant dense<0.000000e+00> : vector<8x1024xf32>
    %300 = tpu.matmul %297, %299, %cst_149 {dimension_numbers = #tpu.dot_dimension_numbers<[1], [0], [0], [1], [0, 0, 1, 1], [], []>} : vector<8x128xf32>, vector<128x1024xf32>, vector<8x1024xf32> -> vector<8x1024xf32>
    %301 = arith.addf %295, %300 : vector<8x1024xf32>
    %302 = vector.extract_strided_slice %288 {offsets = [2, 0, 0], sizes = [1, 8, 128], strides = [1, 1, 1]} : vector<6x8x128xf32> to vector<1x8x128xf32>
    %303 = vector.shape_cast %302 : vector<1x8x128xf32> to vector<8x128xf32>
    %c2_150 = arith.constant 2 : index
    %c0_151 = arith.constant 0 : index
    %c0_152 = arith.constant 0 : index
    %304 = vector.load %arg12[%c2_150, %c0_151, %c0_152] : memref<6x128x1024xf32, #tpu.memory_space<vmem>>, vector<1x128x1024xf32>
    %305 = vector.shape_cast %304 : vector<1x128x1024xf32> to vector<128x1024xf32>
    %cst_153 = arith.constant dense<0.000000e+00> : vector<8x1024xf32>
    %306 = tpu.matmul %303, %305, %cst_153 {dimension_numbers = #tpu.dot_dimension_numbers<[1], [0], [0], [1], [0, 0, 1, 1], [], []>} : vector<8x128xf32>, vector<128x1024xf32>, vector<8x1024xf32> -> vector<8x1024xf32>
    %307 = arith.addf %301, %306 : vector<8x1024xf32>
    %308 = vector.extract_strided_slice %288 {offsets = [3, 0, 0], sizes = [1, 8, 128], strides = [1, 1, 1]} : vector<6x8x128xf32> to vector<1x8x128xf32>
    %309 = vector.shape_cast %308 : vector<1x8x128xf32> to vector<8x128xf32>
    %c3_154 = arith.constant 3 : index
    %c0_155 = arith.constant 0 : index
    %c0_156 = arith.constant 0 : index
    %310 = vector.load %arg12[%c3_154, %c0_155, %c0_156] : memref<6x128x1024xf32, #tpu.memory_space<vmem>>, vector<1x128x1024xf32>
    %311 = vector.shape_cast %310 : vector<1x128x1024xf32> to vector<128x1024xf32>
    %cst_157 = arith.constant dense<0.000000e+00> : vector<8x1024xf32>
    %312 = tpu.matmul %309, %311, %cst_157 {dimension_numbers = #tpu.dot_dimension_numbers<[1], [0], [0], [1], [0, 0, 1, 1], [], []>} : vector<8x128xf32>, vector<128x1024xf32>, vector<8x1024xf32> -> vector<8x1024xf32>
    %313 = arith.addf %307, %312 : vector<8x1024xf32>
    %314 = vector.extract_strided_slice %288 {offsets = [4, 0, 0], sizes = [1, 8, 128], strides = [1, 1, 1]} : vector<6x8x128xf32> to vector<1x8x128xf32>
    %315 = vector.shape_cast %314 : vector<1x8x128xf32> to vector<8x128xf32>
    %c4_158 = arith.constant 4 : index
    %c0_159 = arith.constant 0 : index
    %c0_160 = arith.constant 0 : index
    %316 = vector.load %arg12[%c4_158, %c0_159, %c0_160] : memref<6x128x1024xf32, #tpu.memory_space<vmem>>, vector<1x128x1024xf32>
    %317 = vector.shape_cast %316 : vector<1x128x1024xf32> to vector<128x1024xf32>
    %cst_161 = arith.constant dense<0.000000e+00> : vector<8x1024xf32>
    %318 = tpu.matmul %315, %317, %cst_161 {dimension_numbers = #tpu.dot_dimension_numbers<[1], [0], [0], [1], [0, 0, 1, 1], [], []>} : vector<8x128xf32>, vector<128x1024xf32>, vector<8x1024xf32> -> vector<8x1024xf32>
    %319 = arith.addf %313, %318 : vector<8x1024xf32>
    %320 = vector.extract_strided_slice %288 {offsets = [5, 0, 0], sizes = [1, 8, 128], strides = [1, 1, 1]} : vector<6x8x128xf32> to vector<1x8x128xf32>
    %321 = vector.shape_cast %320 : vector<1x8x128xf32> to vector<8x128xf32>
    %c5_162 = arith.constant 5 : index
    %c0_163 = arith.constant 0 : index
    %c0_164 = arith.constant 0 : index
    %322 = vector.load %arg12[%c5_162, %c0_163, %c0_164] : memref<6x128x1024xf32, #tpu.memory_space<vmem>>, vector<1x128x1024xf32>
    %323 = vector.shape_cast %322 : vector<1x128x1024xf32> to vector<128x1024xf32>
    %cst_165 = arith.constant dense<0.000000e+00> : vector<8x1024xf32>
    %324 = tpu.matmul %321, %323, %cst_165 {dimension_numbers = #tpu.dot_dimension_numbers<[1], [0], [0], [1], [0, 0, 1, 1], [], []>} : vector<8x128xf32>, vector<128x1024xf32>, vector<8x1024xf32> -> vector<8x1024xf32>
    %325 = arith.addf %319, %324 : vector<8x1024xf32>
    %c0_166 = arith.constant 0 : index
    %c0_167 = arith.constant 0 : index
    %326 = vector.load %arg13[%c0_166, %c0_167] : memref<1x1024xf32, #tpu.memory_space<vmem>>, vector<1x1024xf32>
    %327 = vector.broadcast %326 : vector<1x1024xf32> to vector<8x1024xf32>
    %328 = arith.addf %325, %327 : vector<8x1024xf32>
    %cst_168 = arith.constant 0.000000e+00 : f32
    %329 = vector.broadcast %cst_168 : f32 to vector<8x1024xf32>
    %330 = arith.maximumf %328, %329 : vector<8x1024xf32>
    %c0_169 = arith.constant 0 : index
    %c0_170 = arith.constant 0 : index
    %331 = vector.load %arg14[%c0_169, %c0_170] : memref<1024x128xf32, #tpu.memory_space<vmem>>, vector<1024x128xf32>
    %cst_171 = arith.constant dense<0.000000e+00> : vector<8x128xf32>
    %332 = tpu.matmul %330, %331, %cst_171 {dimension_numbers = #tpu.dot_dimension_numbers<[1], [0], [0], [1], [0, 0, 1, 1], [], []>} : vector<8x1024xf32>, vector<1024x128xf32>, vector<8x128xf32> -> vector<8x128xf32>
    %c0_172 = arith.constant 0 : index
    %c0_173 = arith.constant 0 : index
    %333 = vector.load %arg15[%c0_172, %c0_173] : memref<1x128xf32, #tpu.memory_space<vmem>>, vector<1x128xf32>
    %334 = vector.broadcast %333 : vector<1x128xf32> to vector<8x128xf32>
    %335 = arith.addf %332, %334 : vector<8x128xf32>
    %c0_174 = arith.constant 0 : index
    %c0_175 = arith.constant 0 : index
    %c0_176 = arith.constant 0 : index
    %336 = vector.load %arg16[%c0_174, %c0_175, %c0_176] : memref<1x8x128xf32, #tpu.memory_space<vmem>>, vector<1x8x128xf32>
    %337 = vector.shape_cast %336 : vector<1x8x128xf32> to vector<8x128xf32>
    %338 = vector.shape_cast %335 : vector<8x128xf32> to vector<1x8x128xf32>
    tpu.vector_store %arg16[%c0_174, %c0_175, %c0_176], %338 {strides = array<i32>} : memref<1x8x128xf32, #tpu.memory_space<vmem>>, vector<1x8x128xf32>,
    return
  }
  func.func @transform_0(%arg0: i32) -> (i32, i32, i32, i32) {
    %c0_i32 = arith.constant 0 : i32
    %c0_i32_0 = arith.constant 0 : i32
    %c0_i32_1 = arith.constant 0 : i32
    %c0_i32_2 = arith.constant 0 : i32
    return %arg0, %c0_i32, %c0_i32_0, %c0_i32_1 : i32, i32, i32, i32
  }
  func.func @transform_1(%arg0: i32) -> (i32, i32, i32) {
    %c0_i32 = arith.constant 0 : i32
    %c0_i32_0 = arith.constant 0 : i32
    %c0_i32_1 = arith.constant 0 : i32
    %c0_i32_2 = arith.constant 0 : i32
    return %c0_i32, %c0_i32_0, %c0_i32_1 : i32, i32, i32
  }
  func.func @transform_2(%arg0: i32) -> (i32, i32) {
    %c0_i32 = arith.constant 0 : i32
    %c0_i32_0 = arith.constant 0 : i32
    %c0_i32_1 = arith.constant 0 : i32
    return %c0_i32, %c0_i32_0 : i32, i32
  }
  func.func @transform_3(%arg0: i32) -> (i32, i32, i32) {
    %c0_i32 = arith.constant 0 : i32
    %c0_i32_0 = arith.constant 0 : i32
    %c0_i32_1 = arith.constant 0 : i32
    %c0_i32_2 = arith.constant 0 : i32
    return %c0_i32, %c0_i32_0, %c0_i32_1 : i32, i32, i32
  }
  func.func @transform_4(%arg0: i32) -> (i32, i32) {
    %c0_i32 = arith.constant 0 : i32
    %c0_i32_0 = arith.constant 0 : i32
    %c0_i32_1 = arith.constant 0 : i32
    return %c0_i32, %c0_i32_0 : i32, i32
  }
  func.func @transform_5(%arg0: i32) -> (i32, i32, i32) {
    %c0_i32 = arith.constant 0 : i32
    %c0_i32_0 = arith.constant 0 : i32
    %c0_i32_1 = arith.constant 0 : i32
    %c0_i32_2 = arith.constant 0 : i32
    return %c0_i32, %c0_i32_0, %c0_i32_1 : i32, i32, i32
  }
  func.func @transform_6(%arg0: i32) -> (i32, i32) {
    %c0_i32 = arith.constant 0 : i32
    %c0_i32_0 = arith.constant 0 : i32
    %c0_i32_1 = arith.constant 0 : i32
    return %c0_i32, %c0_i32_0 : i32, i32
  }
  func.func @transform_7(%arg0: i32) -> (i32, i32, i32) {
    %c0_i32 = arith.constant 0 : i32
    %c0_i32_0 = arith.constant 0 : i32
    %c0_i32_1 = arith.constant 0 : i32
    %c0_i32_2 = arith.constant 0 : i32
    return %c0_i32, %c0_i32_0, %c0_i32_1 : i32, i32, i32
  }
  func.func @transform_8(%arg0: i32) -> (i32, i32) {
    %c0_i32 = arith.constant 0 : i32
    %c0_i32_0 = arith.constant 0 : i32
    %c0_i32_1 = arith.constant 0 : i32
    return %c0_i32, %c0_i32_0 : i32, i32
  }
  func.func @transform_9(%arg0: i32) -> (i32, i32, i32) {
    %c0_i32 = arith.constant 0 : i32
    %c0_i32_0 = arith.constant 0 : i32
    %c0_i32_1 = arith.constant 0 : i32
    %c0_i32_2 = arith.constant 0 : i32
    return %c0_i32, %c0_i32_0, %c0_i32_1 : i32, i32, i32
  }
  func.func @transform_10(%arg0: i32) -> (i32, i32) {
    %c0_i32 = arith.constant 0 : i32
    %c0_i32_0 = arith.constant 0 : i32
    %c0_i32_1 = arith.constant 0 : i32
    return %c0_i32, %c0_i32_0 : i32, i32
  }
  func.func @transform_11(%arg0: i32) -> (i32, i32, i32) {
    %c0_i32 = arith.constant 0 : i32
    %c0_i32_0 = arith.constant 0 : i32
    %c0_i32_1 = arith.constant 0 : i32
    %c0_i32_2 = arith.constant 0 : i32
    return %c0_i32, %c0_i32_0, %c0_i32_1 : i32, i32, i32
  }
  func.func @transform_12(%arg0: i32) -> (i32, i32) {
    %c0_i32 = arith.constant 0 : i32
    %c0_i32_0 = arith.constant 0 : i32
    %c0_i32_1 = arith.constant 0 : i32
    return %c0_i32, %c0_i32_0 : i32, i32
  }
  func.func @transform_13(%arg0: i32) -> (i32, i32) {
    %c0_i32 = arith.constant 0 : i32
    %c0_i32_0 = arith.constant 0 : i32
    %c0_i32_1 = arith.constant 0 : i32
    return %c0_i32, %c0_i32_0 : i32, i32
  }
  func.func @transform_14(%arg0: i32) -> (i32, i32) {
    %c0_i32 = arith.constant 0 : i32
    %c0_i32_0 = arith.constant 0 : i32
    %c0_i32_1 = arith.constant 0 : i32
    return %c0_i32, %c0_i32_0 : i32, i32
  }
  func.func @transform_15(%arg0: i32) -> (i32, i32, i32) {
    %c0_i32 = arith.constant 0 : i32
    %c0_i32_0 = arith.constant 0 : i32
    %c0_i32_1 = arith.constant 0 : i32
    return %arg0, %c0_i32, %c0_i32_0 : i32, i32, i32
  }
}

</mosaic_0001>

<bundles_post_ra>
// kernel: nilmtk_forward.1
= control target key start
LH: loop header
LB: loop body
LE: loop exit
PB: predicated region body
PF: predicated region fallthrough
CT: control target
= control target key end

     0   :  { %20 = vsyncpa [#allocation3], 0  ;;  %s14591_s0 = inlined_call_operand.vmem [shape: f32[1,99,8,1], index: 0, kind: input, shape index: {}]   ;;  %s14592_s1 = inlined_call_operand.hbm [shape: f32[10,1,128], index: 1, kind: input, shape index: {}]   ;;  %s14593_s2 = inlined_call_operand.hbm [shape: f32[1,128], index: 2, kind: input, shape index: {}]   ;;  %s14594_s3 = inlined_call_operand.hbm [shape: f32[8,128,128], index: 3, kind: input, shape index: {}]   ;;  %s14595_s4 = inlined_call_operand.hbm [shape: f32[1,128], index: 4, kind: input, shape index: {}]   ;;  %s14596_s5 = inlined_call_operand.hbm [shape: f32[6,128,128], index: 5, kind: input, shape index: {}]   ;;  %s14597_s6 = inlined_call_operand.hbm [shape: f32[1,128], index: 6, kind: input, shape index: {}]   ;;  %s14598_s7 = inlined_call_operand.hbm [shape: f32[5,128,128], index: 7, kind: input, shape index: {}]   ;;  %s14599_s8 = inlined_call_operand.hbm [shape: f32[1,128], index: 8, kind: input, shape index: {}]   ;;  %s14600_s9 = inlined_call_operand.hbm [shape: f32[5,128,128], index: 9, kind: input, shape index: {}]   ;;  %s14601_s10 = inlined_call_operand.hbm [shape: f32[1,128], index: 10, kind: input, shape index: {}]   ;;  %s14602_s11 = inlined_call_operand.hbm [shape: f32[6,128,1024], index: 11, kind: input, shape index: {}]   ;;  %s14603_s12 = inlined_call_operand.hbm [shape: f32[1,1024], index: 12, kind: input, shape index: {}]   ;;  %s14604_s13 = inlined_call_operand.hbm [shape: f32[1024,128], index: 13, kind: input, shape index: {}]   ;;  %s14605_s14 = inlined_call_operand.hbm [shape: f32[1,128], index: 14, kind: input, shape index: {}]   ;;  %s14606_s15 = inlined_call_operand.vmem [shape: f32[1,8,128], index: 15, kind: output, shape index: {}]  }
   0x1   :  { %21 = vsyncpa [#allocation5], 0 }
   0x2   :  { %22 = vsyncpa [#allocation8], 0 }
   0x3   :  { %23 = vsyncpa [#allocation11], 0 }
   0x4   :  { %24 = vsyncpa [#allocation14], 0 }
   0x5   :  { %25 = vsyncpa [#allocation17], 0 }
   0x6   :  { %26 = vsyncpa [#allocation20], 0 }
   0x7   :  { %27 = vsyncpa [#allocation23], 0  ;;  %s11411_s18 = smov [#allocation4]   ;;  %s11412_s20 = smov [#allocation7]  }
   0x8   :  { %s48_s19 = sshll.u32 %s11411_s18, 4  ;;  %s70_s21 = sshll.u32 %s11412_s20, 4  ;;  %s49_s19 = int_to_ptr.vmem [resolvable:$true] %s48_s19  ;;  %s71_s21 = int_to_ptr.vmem [resolvable:$true] %s70_s21 }
   0x9   :  { %s11123_s22 = scalar_lea.vmem %s49_s19, 16  ;;  %s11127_s23 = scalar_lea.vmem %s49_s19, 32 }
   0xa   :  { %p11124_p0 = scmp.ne.s32.totalorder %s49_s19, %s11123_s22  ;;  %p11128_p1 = scmp.lt.s32.totalorder %s49_s19, %s49_s19 }
   0xb   :  { %p11129_p2 = scmp.lt.s32.totalorder %s11127_s23, %s11123_s22 }
   0xd   :  { %p11130_p3 = por %p11129_p2, %p11128_p1 }
   0xf   :  { %p11131_p4 = pnand %p11130_p3, %p11124_p0 }
  0x11   :  { %11134 = shalt.err (!%p11131_p4)
}
  0x12   :  { %51 = dma.hbm_to_vmem [thread:$0]  %s14593_s2, 16, %s49_s19, [#allocation5]  }
  0x13   :  { %s11143_s26 = scalar_lea.vmem %s71_s21, 16  ;;  %s11147_s27 = scalar_lea.vmem %s71_s21, 32 }
  0x14   :  { %p11144_p5 = scmp.ne.s32.totalorder %s71_s21, %s11143_s26  ;;  %p11148_p6 = scmp.lt.s32.totalorder %s71_s21, %s71_s21 }
  0x15   :  { %p11149_p7 = scmp.lt.s32.totalorder %s11147_s27, %s11143_s26 }
  0x17   :  { %p11150_p8 = por %p11149_p7, %p11148_p6 }
  0x19   :  { %p11151_p9 = pnand %p11150_p8, %p11144_p5 }
  0x1b   :  { %11154 = shalt.err (!%p11151_p9)
}
  0x1c   :  { %73 = dma.hbm_to_vmem [thread:$0]  %s14595_s4, 16, %s71_s21, [#allocation8]  }
  0x1d   :  { %s11413_s30 = smov [#allocation10]   ;;  %s11414_s17 = smov [#allocation13]  }
  0x1e   :  { %s92_s16 = sshll.u32 %s11413_s30, 4  ;;  %s114_s18 = sshll.u32 %s11414_s17, 4  ;;  %s93_s16 = int_to_ptr.vmem [resolvable:$true] %s92_s16  ;;  %s115_s18 = int_to_ptr.vmem [resolvable:$true] %s114_s18 }
  0x1f   :  { %s11163_s20 = scalar_lea.vmem %s93_s16, 16  ;;  %s11167_s2 = scalar_lea.vmem %s93_s16, 32 }
  0x20   :  { %p11164_p10 = scmp.ne.s32.totalorder %s93_s16, %s11163_s20  ;;  %p11168_p11 = scmp.lt.s32.totalorder %s93_s16, %s93_s16 }
  0x21   :  { %p11169_p12 = scmp.lt.s32.totalorder %s11167_s2, %s11163_s20 }
  0x23   :  { %p11170_p13 = por %p11169_p12, %p11168_p11 }
  0x25   :  { %p11171_p0 = pnand %p11170_p13, %p11164_p10 }
  0x27   :  { %11174 = shalt.err (!%p11171_p0)
}
  0x28   :  { %95 = dma.hbm_to_vmem [thread:$0]  %s14597_s6, 16, %s93_s16, [#allocation11]  }
  0x29   :  { %s11183_s23 = scalar_lea.vmem %s115_s18, 16  ;;  %s11187_s4 = scalar_lea.vmem %s115_s18, 32 }
  0x2a   :  { %p11184_p1 = scmp.ne.s32.totalorder %s115_s18, %s11183_s23  ;;  %p11188_p2 = scmp.lt.s32.totalorder %s115_s18, %s115_s18 }
  0x2b   :  { %p11189_p3 = scmp.lt.s32.totalorder %s11187_s4, %s11183_s23 }
  0x2d   :  { %p11190_p4 = por %p11189_p3, %p11188_p2 }
  0x2f   :  { %p11191_p5 = pnand %p11190_p4, %p11184_p1 }
  0x31   :  { %11194 = shalt.err (!%p11191_p5)
}
  0x32   :  { %117 = dma.hbm_to_vmem [thread:$0]  %s14599_s8, 16, %s115_s18, [#allocation14]  }
  0x33   :  { %s11415_s25 = smov [#allocation16]   ;;  %s11416_s27 = smov [#allocation19]  }
  0x34   :  { %s136_s26 = sshll.u32 %s11415_s25, 4  ;;  %s158_s28 = sshll.u32 %s11416_s27, 4  ;;  %s137_s26 = int_to_ptr.vmem [resolvable:$true] %s136_s26  ;;  %s159_s28 = int_to_ptr.vmem [resolvable:$true] %s158_s28 }
  0x35   :  { %s11203_s29 = scalar_lea.vmem %s137_s26, 16  ;;  %s11207_s6 = scalar_lea.vmem %s137_s26, 32 }
  0x36   :  { %p11204_p6 = scmp.ne.s32.totalorder %s137_s26, %s11203_s29  ;;  %p11208_p7 = scmp.lt.s32.totalorder %s137_s26, %s137_s26 }
  0x37   :  { %p11209_p8 = scmp.lt.s32.totalorder %s11207_s6, %s11203_s29 }
  0x39   :  { %p11210_p9 = por %p11209_p8, %p11208_p7 }
  0x3b   :  { %p11211_p10 = pnand %p11210_p9, %p11204_p6 }
  0x3d   :  { %11214 = shalt.err (!%p11211_p10)
}
  0x3e   :  { %139 = dma.hbm_to_vmem [thread:$0]  %s14601_s10, 16, %s137_s26, [#allocation17]  }
  0x3f   :  { %s11223_s17 = scalar_lea.vmem %s159_s28, 128  ;;  %p11228_p12 = scmp.lt.s32.totalorder %s159_s28, %s159_s28 }
  0x40   :  { %p11224_p11 = scmp.ne.s32.totalorder %s159_s28, %s11223_s17  ;;  %p11229_p13 = scmp.lt.s32.totalorder %s11223_s17, %s11223_s17 }
  0x42   :  { %p11230_p0 = por %p11229_p13, %p11228_p12 }
  0x44   :  { %p11231_p1 = pnand %p11230_p0, %p11224_p11 }
  0x46   :  { %11234 = shalt.err (!%p11231_p1)
}
  0x47   :  { %161 = dma.hbm_to_vmem [thread:$0]  %s14603_s12, 128, %s159_s28, [#allocation20]  }
  0x48   :  { %s11417_s20 = smov [#allocation2]  }
  0x49   :  { %s35_s2 = sshll.u32 %s11417_s20, 4  ;;  %s36_s2 = int_to_ptr.vmem [resolvable:$true] %s35_s2 }
  0x4a   :  { %s11243_s19 = scalar_lea.vmem %s36_s2, 160  ;;  %p11248_p3 = scmp.lt.s32.totalorder %s36_s2, %s36_s2 }
  0x4b   :  { %p11244_p2 = scmp.ne.s32.totalorder %s36_s2, %s11243_s19  ;;  %p11249_p4 = scmp.lt.s32.totalorder %s11243_s19, %s11243_s19 }
  0x4d   :  { %p11250_p5 = por %p11249_p4, %p11248_p3 }
  0x4f   :  { %p11251_p6 = pnand %p11250_p5, %p11244_p2 }
  0x51   :  { %11254 = shalt.err (!%p11251_p6)
}
  0x52   :  { %s11418_s10 = smov 16   ;;  %s11419_s22 = smov 1  }
  0x53   :  { %41 = dma.hbm_to_vmem [thread:$0]  %s14592_s1, 160, %s36_s2, [#allocation3], %s11418_s10, %s11418_s10, %s11419_s22  }
  0x54   :  { %s11420_s21 = smov [#allocation6]  }
  0x55   :  { %s57_s24 = sshll.u32 %s11420_s21, 4  ;;  %s58_s24 = int_to_ptr.vmem [resolvable:$true] %s57_s24 }
  0x56   :  { %s11263_s12 = scalar_lea.vmem %s58_s24, 16384  ;;  %p11268_p8 = scmp.lt.s32.totalorder %s58_s24, %s58_s24 }
  0x57   :  { %p11264_p7 = scmp.ne.s32.totalorder %s58_s24, %s11263_s12  ;;  %p11269_p9 = scmp.lt.s32.totalorder %s11263_s12, %s11263_s12 }
  0x59   :  { %p11270_p10 = por %p11269_p9, %p11268_p8 }
  0x5b   :  { %p11271_p11 = pnand %p11270_p10, %p11264_p7 }
  0x5d   :  { %11274 = shalt.err (!%p11271_p11)
}
  0x5e   :  { %s11421_s25 = smov 128   ;;  %s11422_s26 = smov 8  }
  0x5f   :  { %63 = dma.hbm_to_vmem [thread:$0]  %s14594_s3, 16384, %s58_s24, [#allocation5], %s11421_s25, %s11421_s25, %s11422_s26  }
  0x60   :  { %s11423_s1 = smov [#allocation9]   ;;  %s11424_s6 = smov [#allocation12]  }
  0x61   :  { %s79_s29 = sshll.u32 %s11423_s1, 4  ;;  %s101_s30 = sshll.u32 %s11424_s6, 4  ;;  %s80_s29 = int_to_ptr.vmem [resolvable:$true] %s79_s29  ;;  %s102_s30 = int_to_ptr.vmem [resolvable:$true] %s101_s30 }
  0x62   :  { %s11283_s16 = scalar_lea.vmem %s80_s29, 12288  ;;  %p11288_p13 = scmp.lt.s32.totalorder %s80_s29, %s80_s29 }
  0x63   :  { %p11284_p12 = scmp.ne.s32.totalorder %s80_s29, %s11283_s16  ;;  %p11289_p0 = scmp.lt.s32.totalorder %s11283_s16, %s11283_s16 }
  0x65   :  { %p11290_p1 = por %p11289_p0, %p11288_p13 }
  0x67   :  { %p11291_p2 = pnand %p11290_p1, %p11284_p12 }
  0x69   :  { %11294 = shalt.err (!%p11291_p2)
}
  0x6a   :  { %85 = dma.hbm_to_vmem [thread:$0]  %s14596_s5, 12288, %s80_s29, [#allocation8], %s11421_s25, %s11421_s25, %s11422_s26  }
  0x6b   :  { %s11303_s3 = scalar_lea.vmem %s102_s30, 10240  ;;  %p11308_p4 = scmp.lt.s32.totalorder %s102_s30, %s102_s30 }
  0x6c   :  { %p11304_p3 = scmp.ne.s32.totalorder %s102_s30, %s11303_s3  ;;  %p11309_p5 = scmp.lt.s32.totalorder %s11303_s3, %s11303_s3 }
  0x6e   :  { %p11310_p6 = por %p11309_p5, %p11308_p4 }
  0x70   :  { %p11311_p7 = pnand %p11310_p6, %p11304_p3 }
  0x72   :  { %11314 = shalt.err (!%p11311_p7)
}
  0x73   :  { %107 = dma.hbm_to_vmem [thread:$0]  %s14598_s7, 10240, %s102_s30, [#allocation11], %s11421_s25, %s11421_s25, %s11422_s26  }
  0x74   :  { %s11425_s2 = smov [#allocation15]   ;;  %s11426_s10 = smov [#allocation18]  }
  0x75   :  { %s123_s19 = sshll.u32 %s11425_s2, 4  ;;  %s145_s22 = sshll.u32 %s11426_s10, 4  ;;  %s124_s19 = int_to_ptr.vmem [resolvable:$true] %s123_s19  ;;  %s146_s22 = int_to_ptr.vmem [resolvable:$true] %s145_s22 }
  0x76   :  { %s11323_s5 = scalar_lea.vmem %s124_s19, 10240  ;;  %p11328_p9 = scmp.lt.s32.totalorder %s124_s19, %s124_s19 }
  0x77   :  { %p11324_p8 = scmp.ne.s32.totalorder %s124_s19, %s11323_s5  ;;  %p11329_p10 = scmp.lt.s32.totalorder %s11323_s5, %s11323_s5 }
  0x79   :  { %p11330_p11 = por %p11329_p10, %p11328_p9 }
  0x7b   :  { %p11331_p12 = pnand %p11330_p11, %p11324_p8 }
  0x7d   :  { %11334 = shalt.err (!%p11331_p12)
}
  0x7e   :  { %129 = dma.hbm_to_vmem [thread:$0]  %s14600_s9, 10240, %s124_s19, [#allocation14], %s11421_s25, %s11421_s25, %s11422_s26  }
  0x7f   :  { %s11343_s7 = scalar_lea.vmem %s146_s22, 98304  ;;  %p11348_p0 = scmp.lt.s32.totalorder %s146_s22, %s146_s22 }
  0x80   :  { %p11344_p13 = scmp.ne.s32.totalorder %s146_s22, %s11343_s7  ;;  %p11349_p1 = scmp.lt.s32.totalorder %s11343_s7, %s11343_s7 }
  0x82   :  { %p11350_p2 = por %p11349_p1, %p11348_p0 }
  0x84   :  { %p11351_p3 = pnand %p11350_p2, %p11344_p13 }
  0x86   :  { %11354 = shalt.err (!%p11351_p3)
}
  0x87   :  { %s11427_s21 = smov 1024   ;;  %s11428_s24 = smov 64  }
  0x88   :  { %151 = dma.hbm_to_vmem [thread:$0]  %s14602_s11, 98304, %s146_s22, [#allocation17], %s11427_s21, %s11427_s21, %s11428_s24  }
  0x89   :  { %s11429_s28 = smov [#allocation21]   ;;  %s11430_s29 = smov [#allocation22]  }
  0x8a   :  { %s167_s1 = sshll.u32 %s11429_s28, 4  ;;  %s180_s6 = sshll.u32 %s11430_s29, 4  ;;  %s168_s1 = int_to_ptr.vmem [resolvable:$true] %s167_s1  ;;  %s181_s6 = int_to_ptr.vmem [resolvable:$true] %s180_s6 }
  0x8b   :  { %s11363_s9 = scalar_lea.vmem %s168_s1, 16384  ;;  %p11368_p5 = scmp.lt.s32.totalorder %s168_s1, %s168_s1 }
  0x8c   :  { %p11364_p4 = scmp.ne.s32.totalorder %s168_s1, %s11363_s9  ;;  %p11369_p6 = scmp.lt.s32.totalorder %s11363_s9, %s11363_s9 }
  0x8e   :  { %p11370_p7 = por %p11369_p6, %p11368_p5 }
  0x90   :  { %p11371_p8 = pnand %p11370_p7, %p11364_p4 }
  0x92   :  { %11374 = shalt.err (!%p11371_p8)
}
  0x93   :  { %173 = dma.hbm_to_vmem [thread:$0]  %s14604_s13, 16384, %s168_s1, [#allocation20], %s11421_s25, %s11421_s25, %s11422_s26  }
  0x94   :  { %s11383_s11 = scalar_lea.vmem %s181_s6, 16  ;;  %s11387_s17 = scalar_lea.vmem %s181_s6, 32 }
  0x95   :  { %p11384_p9 = scmp.ne.s32.totalorder %s181_s6, %s11383_s11  ;;  %p11388_p10 = scmp.lt.s32.totalorder %s181_s6, %s181_s6 }
  0x96   :  { %p11389_p11 = scmp.lt.s32.totalorder %s11387_s17, %s11383_s11 }
  0x98   :  { %p11390_p12 = por %p11389_p11, %p11388_p10 }
  0x9a   :  { %p11391_p13 = pnand %p11390_p12, %p11384_p9 }
  0x9c   :  { %11394 = shalt.err (!%p11391_p13)
}
  0x9d   :  { %183 = dma.hbm_to_vmem [thread:$0]  %s14605_s14, 16, %s181_s6, [#allocation23]  }
  0x9e   :  { %11395 = dma.done.wait [#allocation3], 160  }
  0x9f   :  { %11396 = vsyncadd [#allocation3], 4294967136 }
  0xa0   :  { %11397 = dma.done.wait [#allocation5], 16400  }
  0xa1   :  { %11398 = vsyncadd [#allocation5], 4294950896 }
  0xa2   :  { %11399 = dma.done.wait [#allocation8], 12304  }
  0xa3   :  { %11400 = vsyncadd [#allocation8], 4294954992 }
  0xa4   :  { %11401 = dma.done.wait [#allocation11], 10256  }
  0xa5   :  { %11402 = vsyncadd [#allocation11], 4294957040 }
  0xa6   :  { %11403 = dma.done.wait [#allocation14], 10256  }
  0xa7   :  { %11404 = vsyncadd [#allocation14], 4294957040 }
  0xa8   :  { %11405 = dma.done.wait [#allocation17], 98320  }
  0xa9   :  { %11406 = vsyncadd [#allocation17], 4294868976 }
  0xaa   :  { %11407 = dma.done.wait [#allocation20], 16512  }
  0xab   :  { %11408 = vsyncadd [#allocation20], 4294950784 }
  0xac   :  { %11409 = dma.done.wait [#allocation23], 16  }
  0xad   :  { %11410 = vsyncadd [#allocation23], 4294967280  ;;  %v11431_v0 = vmov 0   ;;  %v14609_v1 = vmov 0.0   ;;  %v228_v2 = vld [vmem:[%s14591_s0 + $0x10] sm:$0xff]  ;;  %v226_v3 = vld [vmem:[%s14591_s0] sm:$0xff] }
  0xae   :  { %11089 = vset.pattern.permute.xlu1 %v11431_v0  ;;  %11088 = vset.pattern.permute.xlu0 %v11431_v0  ;;  %v229_v4 = vld [vmem:[%s14591_s0 + $0x18] sm:$0xff]  ;;  %v230_v5 = vld [vmem:[%s14591_s0 + $0x20] sm:$0xff]  ;;  %v227_v6 = vld [vmem:[%s14591_s0 + $0x8] sm:$0xff]  ;;  %vm11433_vm0 = vmmov 0  }
  0xaf   :  { %9595 = vmatprep.subr.mxu0 %v14609_v1  ;;  %9684 = vmatprep.subr.mxu1 %v14609_v1  ;;  %v232_v7 = vld [vmem:[%s14591_s0 + $0x30] sm:$0xff]  ;;  %v231_v8 = vld [vmem:[%s14591_s0 + $0x28] sm:$0xff]  ;;  %v233_v9 = vld [vmem:[%s14591_s0 + $0x38] sm:$0xff] }
  0xb0   :  { %330 = vperm.xlu0 %11088, %v228_v2   ;;  %325 = vperm.xlu1 %11089, %v226_v3   ;;  %v234_v10 = vld [vmem:[%s14591_s0 + $0x40] sm:$0xff]  ;;  %v236_v11 = vld [vmem:[%s14591_s0 + $0x50] sm:$0xff]  ;;  %v235_v12 = vld [vmem:[%s14591_s0 + $0x48] sm:$0xff] }
  0xb1   :  { %v237_v13 = vld [vmem:[%s14591_s0 + $0x58] sm:$0xff]  ;;  %v238_v14 = vld [vmem:[%s14591_s0 + $0x60] sm:$0xff]  ;;  %v240_v15 = vld [vmem:[%s14591_s0 + $0x70] sm:$0xff]  ;;  %9627 = vmatprep.mubr.msk.f32.mxu0 %vm11433_vm0, %v14609_v1  ;;  %9716 = vmatprep.mubr.msk.f32.mxu1 %vm11433_vm0, %v14609_v1 }
  0xb2   :  { %v1888_v16 = vld [vmem:[#allocation6 + $0xf8] sm:$0xff]  ;;  %v1887_v18 = vld [vmem:[#allocation6 + $0xf0] sm:$0xff]  ;;  %v1886_v20 = vld [vmem:[#allocation6 + $0xe8] sm:$0xff] }
  0xb3   :  { %v1871_v17 = vld [vmem:[#allocation6 + $0x78] sm:$0xff]  ;;  %9596 = vmatpush3.msra.mxu0 %v1888_v16  ;;  %v1870_v19 = vld [vmem:[#allocation6 + $0x70] sm:$0xff]  ;;  %v1869_v21 = vld [vmem:[#allocation6 + $0x68] sm:$0xff] }
  0xb4   :  { %646 = vperm.xlu0 %11088, %v229_v4   ;;  %335 = vperm.xlu1 %11089, %v230_v5   ;;  %v239_v22 = vld [vmem:[%s14591_s0 + $0x68] sm:$0xff]  ;;  %v241_v23 = vld [vmem:[%s14591_s0 + $0x78] sm:$0xff]  ;;  %v242_v26 = vld [vmem:[%s14591_s0 + $0x80] sm:$0xff] }
  0xb5   :  { %9685 = vmatpush3.msra.mxu1 %v1871_v17  ;;  %9597 = vmatprep.subr.mxu0 %v14609_v1  ;;  %v1885_v24 = vld [vmem:[#allocation6 + $0xe0] sm:$0xff]  ;;  %v1884_v28 = vld [vmem:[#allocation6 + $0xd8] sm:$0xff]  ;;  %v1883_v30 = vld [vmem:[#allocation6 + $0xd0] sm:$0xff] }
  0xb6   :  { %9686 = vmatprep.subr.mxu1 %v14609_v1  ;;  %9598 = vmatpush3.msra.mxu0 %v1887_v18  ;;  %v1868_v25 = vld [vmem:[#allocation6 + $0x60] sm:$0xff]  ;;  %v1867_v29 = vld [vmem:[#allocation6 + $0x58] sm:$0xff]  ;;  %v1866_v31 = vld [vmem:[#allocation6 + $0x50] sm:$0xff] }
  0xb7   :  { %9687 = vmatpush3.msra.mxu1 %v1870_v19  ;;  %9599 = vmatprep.subr.mxu0 %v14609_v1  ;;  %v244_v27 = vld [vmem:[%s14591_s0 + $0x90] sm:$0xff]  ;;  %v243_v32 = vld [vmem:[%s14591_s0 + $0x88] sm:$0xff]  ;;  %v245_v33 = vld [vmem:[%s14591_s0 + $0x98] sm:$0xff] }
  0xb8   :  { %641 = vperm.xlu0 %11088, %v227_v6   ;;  %340 = vperm.xlu1 %11089, %v232_v7   ;;  %v1882_v34 = vld [vmem:[#allocation6 + $0xc8] sm:$0xff]  ;;  %v246_v36 = vld [vmem:[%s14591_s0 + $0xa0] sm:$0xff]  ;;  %v1881_v38 = vld [vmem:[#allocation6 + $0xc0] sm:$0xff] }
  0xb9   :  { %9688 = vmatprep.subr.mxu1 %v14609_v1  ;;  %9600 = vmatpush3.msra.mxu0 %v1886_v20  ;;  %v1865_v35 = vld [vmem:[#allocation6 + $0x48] sm:$0xff]  ;;  %v1864_v39 = vld [vmem:[#allocation6 + $0x40] sm:$0xff]  ;;  %v1880_v40 = vld [vmem:[#allocation6 + $0xb8] sm:$0xff] }
  0xba   :  { %9689 = vmatpush3.msra.mxu1 %v1869_v21  ;;  %9601 = vmatprep.subr.mxu0 %v14609_v1  ;;  %v248_v37 = vld [vmem:[%s14591_s0 + $0xb0] sm:$0xff]  ;;  %v1863_v41 = vld [vmem:[#allocation6 + $0x38] sm:$0xff]  ;;  %v249_v43 = vld [vmem:[%s14591_s0 + $0xb8] sm:$0xff] }
  0xbb   :  { %9690 = vmatprep.subr.mxu1 %v14609_v1  ;;  %9602 = vmatpush3.msra.mxu0 %v1885_v24  ;;  %v247_v42 = vld [vmem:[%s14591_s0 + $0xa8] sm:$0xff]  ;;  %v1879_v44 = vld [vmem:[#allocation6 + $0xb0] sm:$0xff]  ;;  %v252_v47 = vld [vmem:[%s14591_s0 + $0xd0] sm:$0xff] }
  0xbc   :  { %651 = vperm.xlu0 %11088, %v231_v8   ;;  %656 = vperm.xlu1 %11089, %v233_v9   ;;  %v1862_v45 = vld [vmem:[#allocation6 + $0x30] sm:$0xff]  ;;  %v1878_v48 = vld [vmem:[#allocation6 + $0xa8] sm:$0xff]  ;;  %v1877_v50 = vld [vmem:[#allocation6 + $0xa0] sm:$0xff] }
  0xbd   :  { %9691 = vmatpush3.msra.mxu1 %v1868_v25  ;;  %9603 = vmatprep.subr.mxu0 %v14609_v1  ;;  %v250_v46 = vld [vmem:[%s14591_s0 + $0xc0] sm:$0xff]  ;;  %v1861_v49 = vld [vmem:[#allocation6 + $0x28] sm:$0xff]  ;;  %v1860_v51 = vld [vmem:[#allocation6 + $0x20] sm:$0xff] }
  0xbe   :  { %9692 = vmatprep.subr.mxu1 %v14609_v1  ;;  %9604 = vmatpush3.msra.mxu0 %v1884_v28  ;;  %v251_v52 = vld [vmem:[%s14591_s0 + $0xc8] sm:$0xff]  ;;  %v253_v53 = vld [vmem:[%s14591_s0 + $0xd8] sm:$0xff]  ;;  %v254_v56 = vld [vmem:[%s14591_s0 + $0xe0] sm:$0xff] }
  0xbf   :  { %9693 = vmatpush3.msra.mxu1 %v1867_v29  ;;  %9605 = vmatprep.subr.mxu0 %v14609_v1  ;;  %v1876_v54 = vld [vmem:[#allocation6 + $0x98] sm:$0xff]  ;;  %v256_v57 = vld [vmem:[%s14591_s0 + $0xf0] sm:$0xff]  ;;  %v1875_v58 = vld [vmem:[#allocation6 + $0x90] sm:$0xff] }
  0xc0   :  { %345 = vperm.xlu0 %11088, %v234_v10   ;;  %350 = vperm.xlu1 %11089, %v236_v11   ;;  %v1859_v55 = vld [vmem:[#allocation6 + $0x18] sm:$0xff]  ;;  %v1858_v59 = vld [vmem:[#allocation6 + $0x10] sm:$0xff]  ;;  %v1874_v60 = vld [vmem:[#allocation6 + $0x88] sm:$0xff] }
  0xc1   :  { %9694 = vmatprep.subr.mxu1 %v14609_v1  ;;  %9606 = vmatpush3.msra.mxu0 %v1883_v30  ;;  %v1857_v61 = vld [vmem:[#allocation6 + $0x8] sm:$0xff]  ;;  %v255_v62 = vld [vmem:[%s14591_s0 + $0xe8] sm:$0xff]  ;;  %v258_v3 = vld [vmem:[%s14591_s0 + $0x100] sm:$0xff] }
  0xc2   :  { %9695 = vmatpush3.msra.mxu1 %v1866_v31  ;;  %9607 = vmatprep.subr.mxu0 %v14609_v1  ;;  %v257_v63 = vld [vmem:[%s14591_s0 + $0xf8] sm:$0xff]  ;;  %v1873_v0 = vld [vmem:[#allocation6 + $0x80] sm:$0xff]  ;;  %v262_v7 = vld [vmem:[%s14591_s0 + $0x120] sm:$0xff] }
  0xc3   :  { %9696 = vmatprep.subr.mxu1 %v14609_v1  ;;  %9608 = vmatpush3.msra.mxu0 %v1882_v34  ;;  %v1856_v2 = vld [vmem:[#allocation6] sm:$0xff]  ;;  %v261_v6 = vld [vmem:[%s14591_s0 + $0x118] sm:$0xff]  ;;  %v266_v11 = vld [vmem:[%s14591_s0 + $0x140] sm:$0xff] }
  0xc4   :  { %661 = vperm.xlu0 %11088, %v235_v12   ;;  %666 = vperm.xlu1 %11089, %v237_v13   ;;  %v260_v4 = vld [vmem:[%s14591_s0 + $0x110] sm:$0xff]  ;;  %v259_v5 = vld [vmem:[%s14591_s0 + $0x108] sm:$0xff]  ;;  %v265_v10 = vld [vmem:[%s14591_s0 + $0x138] sm:$0xff] }
  0xc5   :  { %9697 = vmatpush3.msra.mxu1 %v1865_v35  ;;  %9609 = vmatprep.subr.mxu0 %v14609_v1  ;;  %v264_v8 = vld [vmem:[%s14591_s0 + $0x130] sm:$0xff]  ;;  %v263_v9 = vld [vmem:[%s14591_s0 + $0x128] sm:$0xff]  ;;  %v273_v18 = vld [vmem:[%s14591_s0 + $0x178] sm:$0xff] }
  0xc6   :  { %9698 = vmatprep.subr.mxu1 %v14609_v1  ;;  %9610 = vmatpush3.msra.mxu0 %v1881_v38  ;;  %v268_v12 = vld [vmem:[%s14591_s0 + $0x150] sm:$0xff]  ;;  %v267_v13 = vld [vmem:[%s14591_s0 + $0x148] sm:$0xff]  ;;  %v274_v19 = vld [vmem:[%s14591_s0 + $0x180] sm:$0xff] }
  0xc7   :  { %9699 = vmatpush3.msra.mxu1 %v1864_v39  ;;  %9611 = vmatprep.subr.mxu0 %v14609_v1  ;;  %v272_v16 = vld [vmem:[%s14591_s0 + $0x170] sm:$0xff]  ;;  %v271_v17 = vld [vmem:[%s14591_s0 + $0x168] sm:$0xff]  ;;  %v285_v30 = vld [vmem:[%s14591_s0 + $0x1d8] sm:$0xff] }
  0xc8   :  { %355 = vperm.xlu0 %11088, %v238_v14   ;;  %360 = vperm.xlu1 %11089, %v240_v15   ;;  %v269_v14 = vld [vmem:[%s14591_s0 + $0x158] sm:$0xff]  ;;  %v270_v15 = vld [vmem:[%s14591_s0 + $0x160] sm:$0xff]  ;;  %v276_v20 = vld [vmem:[%s14591_s0 + $0x190] sm:$0xff] }
  0xc9   :  { %9700 = vmatprep.subr.mxu1 %v14609_v1  ;;  %9612 = vmatpush3.msra.mxu0 %v1880_v40  ;;  %v275_v21 = vld [vmem:[%s14591_s0 + $0x188] sm:$0xff]  ;;  %v280_v24 = vld [vmem:[%s14591_s0 + $0x1b0] sm:$0xff]  ;;  %v286_v31 = vld [vmem:[%s14591_s0 + $0x1e0] sm:$0xff] }
  0xca   :  { %9701 = vmatpush3.msra.mxu1 %v1863_v41  ;;  %9613 = vmatprep.subr.mxu0 %v14609_v1  ;;  %v279_v25 = vld [vmem:[%s14591_s0 + $0x1a8] sm:$0xff]  ;;  %v284_v28 = vld [vmem:[%s14591_s0 + $0x1d0] sm:$0xff]  ;;  %v289_v34 = vld [vmem:[%s14591_s0 + $0x1f8] sm:$0xff] }
  0xcb   :  { %9702 = vmatprep.subr.mxu1 %v14609_v1  ;;  %9614 = vmatpush3.msra.mxu0 %v1879_v44  ;;  %v283_v29 = vld [vmem:[%s14591_s0 + $0x1c8] sm:$0xff]  ;;  %v290_v38 = vld [vmem:[%s14591_s0 + $0x200] sm:$0xff]  ;;  %v292_v39 = vld [vmem:[%s14591_s0 + $0x210] sm:$0xff] }
  0xcc   :  { %671 = vperm.xlu0 %11088, %v239_v22   ;;  %676 = vperm.xlu1 %11089, %v241_v23   ;;  %v277_v22 = vld [vmem:[%s14591_s0 + $0x198] sm:$0xff]  ;;  %v278_v23 = vld [vmem:[%s14591_s0 + $0x1a0] sm:$0xff]  ;;  %v291_v44 = vld [vmem:[%s14591_s0 + $0x208] sm:$0xff] }
  0xcd   :  { %9703 = vmatpush3.msra.mxu1 %v1862_v45  ;;  %9615 = vmatprep.subr.mxu0 %v14609_v1  ;;  %v11809_v40 = vld [vmem:[#allocation2] ss:$0 sm:$0xff] }
  0xce   :  { %9704 = vmatprep.subr.mxu1 %v14609_v1  ;;  %9616 = vmatpush3.msra.mxu0 %v1878_v48 }
  0xcf   :  { %9705 = vmatpush3.msra.mxu1 %v1861_v49  ;;  %9617 = vmatprep.subr.mxu0 %v14609_v1 }
  0xd0   :  { %365 = vperm.xlu0 %11088, %v242_v26   ;;  %370 = vperm.xlu1 %11089, %v244_v27   ;;  %v281_v26 = vld [vmem:[%s14591_s0 + $0x1b8] sm:$0xff]  ;;  %v282_v27 = vld [vmem:[%s14591_s0 + $0x1c0] sm:$0xff] }
  0xd1   :  { %9706 = vmatprep.subr.mxu1 %v14609_v1  ;;  %9618 = vmatpush3.msra.mxu0 %v1877_v50 }
  0xd2   :  { %9707 = vmatpush3.msra.mxu1 %v1860_v51  ;;  %9619 = vmatprep.subr.mxu0 %v14609_v1  ;;  %v11822_v51 = vld [vmem:[#allocation2 + $0x3] ss:$0 sm:$0xff] }
  0xd3   :  { %9708 = vmatprep.subr.mxu1 %v14609_v1  ;;  %9620 = vmatpush3.msra.mxu0 %v1876_v54  ;;  %v294_v54 = vld [vmem:[%s14591_s0 + $0x220] sm:$0xff] }
  0xd4   :  { %681 = vperm.xlu0 %11088, %v243_v32   ;;  %686 = vperm.xlu1 %11089, %v245_v33   ;;  %v288_v32 = vld [vmem:[%s14591_s0 + $0x1f0] sm:$0xff]  ;;  %v287_v33 = vld [vmem:[%s14591_s0 + $0x1e8] sm:$0xff] }
  0xd5   :  { %9709 = vmatpush3.msra.mxu1 %v1859_v55  ;;  %9621 = vmatprep.subr.mxu0 %v14609_v1 }
  0xd6   :  { %9710 = vmatprep.subr.mxu1 %v14609_v1  ;;  %9622 = vmatpush3.msra.mxu0 %v1875_v58 }
  0xd7   :  { %9711 = vmatpush3.msra.mxu1 %v1858_v59  ;;  %9623 = vmatprep.subr.mxu0 %v14609_v1  ;;  %v296_v59 = vld [vmem:[%s14591_s0 + $0x230] sm:$0xff] }
  0xd8   :  { %375 = vperm.xlu0 %11088, %v246_v36   ;;  %380 = vperm.xlu1 %11089, %v248_v37   ;;  %v11801_v37 = vld [vmem:[#allocation2 + $0x1] ss:$0 sm:$0xff] }
  0xd9   :  { %9712 = vmatprep.subr.mxu1 %v14609_v1  ;;  %9624 = vmatpush3.msra.mxu0 %v1874_v60 }
  0xda   :  { %9713 = vmatpush3.msra.mxu1 %v1857_v61  ;;  %9625 = vmatprep.subr.mxu0 %v14609_v1 }
  0xdb   :  { %9714 = vmatprep.subr.mxu1 %v14609_v1  ;;  %9626 = vmatpush3.msra.mxu0 %v1873_v0 }
  0xdc   :  { %691 = vperm.xlu0 %11088, %v247_v42   ;;  %696 = vperm.xlu1 %11089, %v249_v43  }
  0xdd   :  { %9715 = vmatpush3.msra.mxu1 %v1856_v2  ;;  %9773 = vmatprep.subr.mxu0 %v14609_v1 }
  0xde   :  { %9862 = vmatprep.subr.mxu1 %v14609_v1 }
  0xe0   :  { %385 = vperm.xlu0 %11088, %v250_v46   ;;  %390 = vperm.xlu1 %11089, %v252_v47   ;;  %v293_v46 = vld [vmem:[%s14591_s0 + $0x218] sm:$0xff]  ;;  %v11819_v47 = vld [vmem:[#allocation2 + $0x2] ss:$0 sm:$0xff] }
  0xe4   :  { %701 = vperm.xlu0 %11088, %v251_v52   ;;  %706 = vperm.xlu1 %11089, %v253_v53  }
  0xe8   :  { %395 = vperm.xlu0 %11088, %v254_v56   ;;  %400 = vperm.xlu1 %11089, %v256_v57   ;;  %v11829_v56 = vld [vmem:[#allocation2 + $0x4] ss:$0 sm:$0xff] }
  0xec   :  { %711 = vperm.xlu0 %11088, %v255_v62   ;;  %716 = vperm.xlu1 %11089, %v257_v63  }
  0xf0   :  { %405 = vperm.xlu0 %11088, %v258_v3   ;;  %410 = vperm.xlu1 %11089, %v260_v4   ;;  %v11837_v3 = vld [vmem:[#allocation2 + $0x5] ss:$0 sm:$0xff] }
  0xf4   :  { %721 = vperm.xlu0 %11088, %v259_v5   ;;  %726 = vperm.xlu1 %11089, %v261_v6  }
  0xf8   :  { %415 = vperm.xlu0 %11088, %v262_v7   ;;  %420 = vperm.xlu1 %11089, %v264_v8  }
  0xfc   :  { %731 = vperm.xlu0 %11088, %v263_v9   ;;  %736 = vperm.xlu1 %11089, %v265_v10   ;;  %v295_v9 = vld [vmem:[%s14591_s0 + $0x228] sm:$0xff] }
 0x100   :  { %425 = vperm.xlu0 %11088, %v266_v11   ;;  %430 = vperm.xlu1 %11089, %v268_v12   ;;  %v11847_v11 = vld [vmem:[#allocation2 + $0x6] ss:$0 sm:$0xff] }
 0x104   :  { %741 = vperm.xlu0 %11088, %v267_v13   ;;  %746 = vperm.xlu1 %11089, %v269_v14  }
 0x108   :  { %435 = vperm.xlu0 %11088, %v270_v15   ;;  %440 = vperm.xlu1 %11089, %v272_v16   ;;  %v297_v15 = vld [vmem:[%s14591_s0 + $0x238] sm:$0xff] }
 0x10c   :  { %751 = vperm.xlu0 %11088, %v271_v17   ;;  %756 = vperm.xlu1 %11089, %v273_v18   ;;  %v11855_v18 = vld [vmem:[#allocation2 + $0x7] ss:$0 sm:$0xff] }
 0x110   :  { %445 = vperm.xlu0 %11088, %v274_v19   ;;  %450 = vperm.xlu1 %11089, %v276_v20  }
 0x114   :  { %761 = vperm.xlu0 %11088, %v275_v21   ;;  %766 = vperm.xlu1 %11089, %v277_v22  }
 0x118   :  { %455 = vperm.xlu0 %11088, %v278_v23   ;;  %460 = vperm.xlu1 %11089, %v280_v24  }
 0x11c   :  { %771 = vperm.xlu0 %11088, %v279_v25   ;;  %776 = vperm.xlu1 %11089, %v281_v26  }
 0x120   :  { %465 = vperm.xlu0 %11088, %v282_v27   ;;  %470 = vperm.xlu1 %11089, %v284_v28   ;;  %v11860_v27 = vld [vmem:[#allocation2 + $0x8] ss:$0 sm:$0xff] }
 0x124   :  { %781 = vperm.xlu0 %11088, %v283_v29   ;;  %786 = vperm.xlu1 %11089, %v285_v30   ;;  %v298_v29 = vld [vmem:[%s14591_s0 + $0x240] sm:$0xff] }
 0x128   :  { %475 = vperm.xlu0 %11088, %v286_v31   ;;  %480 = vperm.xlu1 %11089, %v288_v32  }
 0x12b   :  { %v331_v35 = vpop.permute.xlu0 %330  ;;  %v326_v36 = vpop.permute.xlu1 %325 }
 0x12c   :  { %791 = vperm.xlu0 %11088, %v287_v33   ;;  %796 = vperm.xlu1 %11089, %v289_v34   ;;  %v550_v45 = vmul.f32 %v11809_v40, %v331_v35  ;;  %v549_v50 = vmul.f32 %v11809_v40, %v326_v36  ;;  %v966_v55 = vmul.f32 %v11819_v47, %v331_v35  ;;  %v300_v34 = vld [vmem:[%s14591_s0 + $0x250] sm:$0xff] }
 0x12f   :  { %v647_v41 = vpop.permute.xlu0 %646  ;;  %v336_v42 = vpop.permute.xlu1 %335 }
 0x130   :  { %v866_v43 = vmul.f32 %v11801_v37, %v647_v41  ;;  %485 = vperm.xlu0 %11088, %v290_v38   ;;  %490 = vperm.xlu1 %11089, %v292_v39   ;;  %v967_v57 = vmul.f32 %v11819_v47, %v336_v42  ;;  %v1067_v60 = vmul.f32 %v11822_v51, %v647_v41 }
 0x131   :  { %v551_v61 = vmul.f32 %v11809_v40, %v336_v42  ;;  %v1168_v6 = vmul.f32 %v11829_v56, %v336_v42 }
 0x132   :  { %v910_v52 = vadd.f32 %v866_v43, %v550_v45 }
 0x133   :  { %v642_v48 = vpop.permute.xlu0 %641  ;;  %v341_v49 = vpop.permute.xlu1 %340 }
 0x134   :  { %v865_v53 = vmul.f32 %v11801_v37, %v642_v48  ;;  %801 = vperm.xlu0 %11088, %v291_v44   ;;  %806 = vperm.xlu1 %11089, %v293_v46   ;;  %v1011_v0 = vadd.f32 %v967_v57, %v910_v52  ;;  %v968_v7 = vmul.f32 %v11819_v47, %v341_v49 }
 0x135   :  { %v1169_v8 = vmul.f32 %v11829_v56, %v341_v49  ;;  %v552_v16 = vmul.f32 %v11809_v40, %v341_v49  ;;  %v1370_v25 = vmul.f32 %v11847_v11, %v341_v49 }
 0x136   :  { %v909_v58 = vadd.f32 %v865_v53, %v549_v50  ;;  %v299_v53 = vld [vmem:[%s14591_s0 + $0x248] sm:$0xff] }
 0x137   :  { %v652_v62 = vpop.permute.xlu0 %651  ;;  %v657_v63 = vpop.permute.xlu1 %656 }
 0x138   :  { %v1010_v2 = vadd.f32 %v966_v55, %v909_v58  ;;  %v867_v4 = vmul.f32 %v11801_v37, %v652_v62  ;;  %v1068_v5 = vmul.f32 %v11822_v51, %v652_v62  ;;  %495 = vperm.xlu0 %11088, %v294_v54   ;;  %500 = vperm.xlu1 %11089, %v296_v59   ;;  %v301_v59 = vld [vmem:[%s14591_s0 + $0x258] sm:$0xff] }
 0x139   :  { %v868_v14 = vmul.f32 %v11801_v37, %v657_v63  ;;  %v1269_v17 = vmul.f32 %v11837_v3, %v652_v62  ;;  %v1069_v24 = vmul.f32 %v11822_v51, %v657_v63  ;;  %v1270_v26 = vmul.f32 %v11837_v3, %v657_v63 }
 0x13a   :  { %v1111_v10 = vadd.f32 %v1067_v60, %v1010_v2  ;;  %v911_v12 = vadd.f32 %v867_v4, %v551_v61  ;;  %v1112_v13 = vadd.f32 %v1068_v5, %v1011_v0  ;;  %v1471_v33 = vmul.f32 %v11855_v18, %v657_v63 }
 0x13b   :  { %v346_v19 = vpop.permute.xlu0 %345  ;;  %v351_v20 = vpop.permute.xlu1 %350  ;;  %v912_v31 = vadd.f32 %v868_v14, %v552_v16 }
 0x13c   :  { %v1012_v21 = vadd.f32 %v968_v7, %v911_v12  ;;  %v1212_v22 = vadd.f32 %v1168_v6, %v1111_v10  ;;  %v1213_v23 = vadd.f32 %v1169_v8, %v1112_v13  ;;  %811 = vperm.xlu0 %11088, %v295_v9   ;;  %v969_v28 = vmul.f32 %v11819_v47, %v346_v19  ;;  %v302_v13 = vld [vmem:[%s14591_s0 + $0x260] sm:$0xff] }
 0x13d   :  { %816 = vperm.xlu1 %11089, %v297_v15   ;;  %v553_v36 = vmul.f32 %v11809_v40, %v346_v19  ;;  %v1170_v38 = vmul.f32 %v11829_v56, %v346_v19  ;;  %v1371_v39 = vmul.f32 %v11847_v11, %v346_v19  ;;  %v11878_v45 = vmul.f32 %v11860_v27, %v346_v19  ;;  %v303_v19 = vld [vmem:[%s14591_s0 + $0x268] sm:$0xff] }
 0x13e   :  { %v1313_v30 = vadd.f32 %v1269_v17, %v1212_v22  ;;  %v1113_v32 = vadd.f32 %v1069_v24, %v1012_v21  ;;  %v1314_v35 = vadd.f32 %v1270_v26, %v1213_v23  ;;  %v1013_v44 = vadd.f32 %v969_v28, %v912_v31 }
 0x13f   :  { %v11873_v41 = vpop.permute.xlu0 %661  ;;  %v11875_v42 = vpop.permute.xlu1 %666  ;;  %v554_v46 = vmul.f32 %v11809_v40, %v351_v20  ;;  %v970_v54 = vmul.f32 %v11819_v47, %v351_v20  ;;  %v1171_v55 = vmul.f32 %v11829_v56, %v351_v20  ;;  %v11893_v57 = vmul.f32 %v11847_v11, %v351_v20 }
 0x140   :  { %v1414_v43 = vadd.f32 %v1370_v25, %v1313_v30  ;;  %505 = vperm.xlu0 %11088, %v298_v29   ;;  %v1214_v48 = vadd.f32 %v1170_v38, %v1113_v32  ;;  %v869_v49 = vmul.f32 %v11801_v37, %v11873_v41  ;;  %v1070_v50 = vmul.f32 %v11822_v51, %v11873_v41 }
 0x141   :  { %v1271_v52 = vmul.f32 %v11837_v3, %v11873_v41  ;;  %510 = vperm.xlu1 %11089, %v300_v34   ;;  %v870_v58 = vmul.f32 %v11801_v37, %v11875_v42  ;;  %v1415_v60 = vadd.f32 %v1371_v39, %v1314_v35  ;;  %v11901_v61 = vmul.f32 %v11860_v27, %v351_v20  ;;  %v304_v35 = vld [vmem:[%s14591_s0 + $0x270] sm:$0xff] }
 0x142   :  { %v913_v62 = vadd.f32 %v869_v49, %v553_v36  ;;  %v1114_v63 = vadd.f32 %v1070_v50, %v1013_v44  ;;  %v11903_v4 = vadd.f32 %v1471_v33, %v1414_v43  ;;  %v1472_v5 = vmul.f32 %v11855_v18, %v11873_v41  ;;  %v305_v44 = vld [vmem:[%s14591_s0 + $0x278] sm:$0xff] }
 0x143   :  { %v356_v0 = vpop.permute.xlu0 %355  ;;  %v361_v2 = vpop.permute.xlu1 %360  ;;  %v1071_v6 = vmul.f32 %v11822_v51, %v11875_v42  ;;  %v11910_v8 = vadd.f32 %v1271_v52, %v1214_v48  ;;  %v1272_v12 = vmul.f32 %v11837_v3, %v11875_v42  ;;  %v914_v14 = vadd.f32 %v870_v58, %v554_v46  ;;  %v11954_v46 = vld [vmem:[#allocation2 + $0x9] ss:$0 sm:$0xff] }
 0x144   :  { %v971_v7 = vmul.f32 %v11819_v47, %v356_v0  ;;  %821 = vperm.xlu0 %11088, %v299_v53   ;;  %v1014_v9 = vadd.f32 %v970_v54, %v913_v62  ;;  %v1215_v10 = vadd.f32 %v1171_v55, %v1114_v63  ;;  %v11919_v15 = vmul.f32 %v11855_v18, %v11875_v42 }
 0x145   :  { %826 = vperm.xlu1 %11089, %v301_v59   ;;  %v555_v16 = vmul.f32 %v11809_v40, %v356_v0  ;;  %v1172_v17 = vmul.f32 %v11829_v56, %v356_v0  ;;  %v1373_v22 = vmul.f32 %v11847_v11, %v356_v0  ;;  %v11928_v23 = vmul.f32 %v11860_v27, %v356_v0 }
 0x146   :  { %v1115_v20 = vadd.f32 %v1071_v6, %v1014_v9  ;;  %v1316_v21 = vadd.f32 %v1272_v12, %v1215_v10  ;;  %v1015_v26 = vadd.f32 %v971_v7, %v914_v14  ;;  %v556_v28 = vmul.f32 %v11809_v40, %v361_v2  ;;  %v307_v12 = vld [vmem:[%s14591_s0 + $0x288] sm:$0xff] }
 0x147   :  { %v11930_v24 = vpop.permute.xlu0 %671  ;;  %v11932_v25 = vpop.permute.xlu1 %676  ;;  %v972_v32 = vmul.f32 %v11819_v47, %v361_v2  ;;  %v1173_v36 = vmul.f32 %v11829_v56, %v361_v2  ;;  %v11949_v38 = vmul.f32 %v11847_v11, %v361_v2  ;;  %v11959_v49 = vmul.f32 %v11860_v27, %v361_v2 }
 0x148   :  { %v871_v29 = vmul.f32 %v11801_v37, %v11930_v24  ;;  %v1072_v30 = vmul.f32 %v11822_v51, %v11930_v24  ;;  %515 = vperm.xlu0 %11088, %v302_v13   ;;  %v1216_v31 = vadd.f32 %v1172_v17, %v1115_v20  ;;  %v1273_v33 = vmul.f32 %v11837_v3, %v11930_v24 }
 0x149   :  { %v872_v34 = vmul.f32 %v11801_v37, %v11932_v25  ;;  %831 = vperm.xlu1 %11089, %v303_v19   ;;  %v11956_v48 = vadd.f32 %v1373_v22, %v1316_v21  ;;  %v11963_v50 = vmul.f32 %v11855_v18, %v11930_v24  ;;  %v1516_v54 = vadd.f32 %v1472_v5, %v1415_v60  ;;  %v306_v5 = vld [vmem:[%s14591_s0 + $0x280] sm:$0xff]  ;;  %v11996_v22 = vld [vmem:[#allocation4] ss:$0 sm:$0xff] }
 0x14a   :  { %v915_v39 = vadd.f32 %v871_v29, %v555_v16  ;;  %v1116_v43 = vadd.f32 %v1072_v30, %v1015_v26  ;;  %v1073_v58 = vmul.f32 %v11822_v51, %v11932_v25  ;;  %v1274_v59 = vmul.f32 %v11837_v3, %v11932_v25 }
 0x14b   :  { %v366_v52 = vpop.permute.xlu0 %365  ;;  %v371_v53 = vpop.permute.xlu1 %370  ;;  %v11970_v63 = vadd.f32 %v1273_v33, %v1216_v31  ;;  %v916_v0 = vadd.f32 %v872_v34, %v556_v28  ;;  %v11974_v2 = vmul.f32 %v11855_v18, %v11932_v25  ;;  %v1674_v60 = vmul.f32 %v11954_v46, %v11875_v42  ;;  %v309_v34 = vld [vmem:[%s14591_s0 + $0x298] sm:$0xff] }
 0x14c   :  { %v1016_v55 = vadd.f32 %v972_v32, %v915_v39  ;;  %v973_v62 = vmul.f32 %v11819_v47, %v366_v52  ;;  %520 = vperm.xlu0 %11088, %v304_v35   ;;  %v1217_v6 = vadd.f32 %v1173_v36, %v1116_v43  ;;  %v557_v9 = vmul.f32 %v11809_v40, %v366_v52  ;;  %v308_v32 = vld [vmem:[%s14591_s0 + $0x290] sm:$0xff] }
 0x14d   :  { %836 = vperm.xlu1 %11089, %v305_v44   ;;  %v1174_v10 = vmul.f32 %v11829_v56, %v366_v52  ;;  %v1375_v13 = vmul.f32 %v11847_v11, %v366_v52  ;;  %v11988_v14 = vmul.f32 %v11860_v27, %v366_v52  ;;  %v558_v42 = vmul.f32 %v11809_v40, %v371_v53 }
 0x14e   :  { %v1117_v7 = vadd.f32 %v1073_v58, %v1016_v55  ;;  %v1617_v16 = vadd.f32 %v11901_v61, %v1516_v54  ;;  %v1017_v20 = vadd.f32 %v973_v62, %v916_v0  ;;  %v1616_v26 = vadd.f32 %v11878_v45, %v11903_v4 }
 0x14f   :  { %v11992_v17 = vpop.permute.xlu0 %681  ;;  %v11994_v19 = vpop.permute.xlu1 %686  ;;  %v1673_v28 = vmul.f32 %v11954_v46, %v11873_v41  ;;  %v1318_v45 = vadd.f32 %v1274_v59, %v1217_v6  ;;  %v974_v4 = vmul.f32 %v11819_v47, %v371_v53  ;;  %v1175_v41 = vmul.f32 %v11829_v56, %v371_v53 }
 0x150   :  { %v1218_v21 = vadd.f32 %v1174_v10, %v1117_v7  ;;  %525 = vperm.xlu0 %11088, %v306_v5   ;;  %v1718_v29 = vadd.f32 %v1674_v60, %v1617_v16  ;;  %v873_v30 = vmul.f32 %v11801_v37, %v11992_v17  ;;  %v1074_v61 = vmul.f32 %v11822_v51, %v11992_v17 }
 0x151   :  { %v1275_v31 = vmul.f32 %v11837_v3, %v11992_v17  ;;  %841 = vperm.xlu1 %11089, %v307_v12   ;;  %v1717_v33 = vadd.f32 %v1673_v28, %v1616_v26  ;;  %v1376_v54 = vmul.f32 %v11847_v11, %v371_v53  ;;  %v12021_v55 = vmul.f32 %v11860_v27, %v371_v53  ;;  %v310_v26 = vld [vmem:[%s14591_s0 + $0x2a0] sm:$0xff] }
 0x152   :  { %v1769_v35 = vadd.f32 %v11996_v22, %v1718_v29  ;;  %v917_v36 = vadd.f32 %v873_v30, %v557_v9  ;;  %v1118_v39 = vadd.f32 %v1074_v61, %v1017_v20  ;;  %v874_v59 = vmul.f32 %v11801_v37, %v11994_v19  ;;  %v311_v30 = vld [vmem:[%s14591_s0 + $0x2a8] sm:$0xff] }
 0x153   :  { %v1319_v43 = vadd.f32 %v1275_v31, %v1218_v21  ;;  %v376_v44 = vpop.permute.xlu0 %375  ;;  %v12017_v52 = vpop.permute.xlu1 %380  ;;  %v1768_v58 = vadd.f32 %v11996_v22, %v1717_v33  ;;  %v1075_v5 = vmul.f32 %v11822_v51, %v11994_v19  ;;  %v12028_v6 = vadd.f32 %v1375_v13, %v1318_v45 }
 0x154   :  { %530 = vperm.xlu0 %11088, %v308_v32   ;;  %v1813_v62 = vmax.f32 %v1769_v35, 0.0  ;;  %v1018_v0 = vadd.f32 %v974_v4, %v917_v36  ;;  %v1219_v60 = vadd.f32 %v1175_v41, %v1118_v39  ;;  %v1416_v53 = vadd.f32 %v11893_v57, %v11910_v8  ;;  %v2225_v32 = vld [vmem:[#allocation6 + $0x178] sm:$0xff] }
 0x155   :  { %846 = vperm.xlu1 %11089, %v309_v34   ;;  %v1812_v7 = vmax.f32 %v1768_v58, 0.0  ;;  %v1420_v9 = vadd.f32 %v1376_v54, %v1319_v43  ;;  %v12034_v10 = vmul.f32 %v11855_v18, %v11992_v17  ;;  %v1276_v16 = vmul.f32 %v11837_v3, %v11994_v19  ;;  %v2421_v41 = vld [vmem:[#allocation6 + $0x1f8] sm:$0xff] }
 0x156   :  { %9628 = vmatmul.mubr.f32.vlgmr.msra.gmra.mxu0 %v1813_v62  ;;  %v1119_v12 = vadd.f32 %v1075_v5, %v1018_v0  ;;  %v975_v20 = vmul.f32 %v11819_v47, %v376_v44  ;;  %v918_v57 = vadd.f32 %v874_v59, %v558_v42  ;;  %v1477_v8 = vmul.f32 %v11855_v18, %v11994_v19 }
 0x157   :  { %v12039_v21 = vpop.permute.xlu0 %691  ;;  %v12041_v13 = vpop.permute.xlu1 %696  ;;  %9717 = vmatmul.mubr.f32.vlgmr.msra.gmra.mxu1 %v1812_v7  ;;  %v1517_v28 = vadd.f32 %v11919_v15, %v1416_v53  ;;  %v1675_v29 = vmul.f32 %v11954_v46, %v11930_v24  ;;  %v1320_v61 = vadd.f32 %v1276_v16, %v1219_v60  ;;  %v559_v31 = vmul.f32 %v11809_v40, %v376_v44 }
 0x158   :  { %9719 = vmatprep.mubr.msk.f32.mxu1 %vm11433_vm0, %v14609_v1  ;;  %v1176_v42 = vmul.f32 %v11829_v56, %v376_v44  ;;  %9630 = vmatprep.mubr.msk.f32.mxu0 %vm11433_vm0, %v14609_v1  ;;  %v1521_v15 = vadd.f32 %v1477_v8, %v1420_v9  ;;  %v1377_v24 = vmul.f32 %v11847_v11, %v376_v44 }
 0x159   :  { %v1618_v45 = vadd.f32 %v11928_v23, %v1517_v28  ;;  %v1578_v4 = vmul.f32 %v11860_v27, %v376_v44  ;;  %535 = vperm.xlu0 %11088, %v310_v26   ;;  %v1019_v33 = vadd.f32 %v975_v20, %v918_v57  ;;  %v560_v35 = vmul.f32 %v11809_v40, %v12017_v52  ;;  %v312_v23 = vld [vmem:[%s14591_s0 + $0x2b0] sm:$0xff] }
 0x15a   :  { %v1220_v34 = vadd.f32 %v1176_v42, %v1119_v12  ;;  %v1518_v36 = vadd.f32 %v11963_v50, %v11956_v48  ;;  %851 = vperm.xlu1 %11089, %v311_v30   ;;  %v976_v54 = vmul.f32 %v11819_v47, %v12017_v52  ;;  %v875_v58 = vmul.f32 %v11801_v37, %v12039_v21  ;;  %v313_v48 = vld [vmem:[%s14591_s0 + $0x2b8] sm:$0xff] }
 0x15b   :  { %v12067_v39 = vpop.permute.xlu0 %385  ;;  %v12069_v43 = vpop.permute.xlu1 %390  ;;  %v1719_v44 = vadd.f32 %v1675_v29, %v1618_v45  ;;  %v1076_v59 = vmul.f32 %v11822_v51, %v12039_v21  ;;  %9774 = vmatpush3.msra.mxu0 %v2225_v32  ;;  %v1421_v50 = vadd.f32 %v1377_v24, %v1320_v61  ;;  %v1676_v0 = vmul.f32 %v11954_v46, %v11932_v25  ;;  %v2224_v12 = vld [vmem:[#allocation6 + $0x170] sm:$0xff]  ;;  %v315_v45 = vld [vmem:[%s14591_s0 + $0x2c8] sm:$0xff] }
 0x15c   :  { %v1619_v62 = vadd.f32 %v11959_v49, %v1518_v36  ;;  %v1277_v60 = vmul.f32 %v11837_v3, %v12039_v21  ;;  %9863 = vmatpush3.msra.mxu1 %v2421_v41  ;;  %v919_v7 = vadd.f32 %v875_v58, %v559_v31  ;;  %v1478_v53 = vmul.f32 %v11855_v18, %v12039_v21  ;;  %v314_v61 = vld [vmem:[%s14591_s0 + $0x2c0] sm:$0xff] }
 0x15d   :  { %v12089_v5 = vadd.f32 %v11996_v22, %v1719_v44  ;;  %v1120_v9 = vadd.f32 %v1076_v59, %v1019_v33  ;;  %540 = vperm.xlu0 %11088, %v312_v23   ;;  %v1177_v49 = vmul.f32 %v11829_v56, %v12017_v52  ;;  %v1378_v25 = vmul.f32 %v11847_v11, %v12017_v52  ;;  %v316_v59 = vld [vmem:[%s14591_s0 + $0x2d0] sm:$0xff] }
 0x15e   :  { %v1720_v16 = vadd.f32 %v1676_v0, %v1619_v62  ;;  %v1321_v20 = vadd.f32 %v1277_v60, %v1220_v34  ;;  %856 = vperm.xlu1 %11089, %v313_v48   ;;  %v12102_v28 = vadd.f32 %v1578_v4, %v1521_v15  ;;  %v1020_v29 = vadd.f32 %v976_v54, %v919_v7 }
 0x15f   :  { %v12097_v26 = vpop.permute.xlu0 %701  ;;  %v12099_v57 = vpop.permute.xlu1 %706  ;;  %v14607_v8 = vmax.f32 %v12089_v5, 0.0  ;;  %v876_v30 = vmul.f32 %v11801_v37, %v12041_v13  ;;  %9775 = vmatprep.subr.mxu0 %v14609_v1  ;;  %9864 = vmatprep.subr.mxu1 %v14609_v1  ;;  %v1221_v42 = vadd.f32 %v1177_v49, %v1120_v9  ;;  %v1077_v15 = vmul.f32 %v11822_v51, %v12041_v13 }
 0x160   :  { %v12112_v31 = vadd.f32 %v11996_v22, %v1720_v16  ;;  %v1422_v32 = vadd.f32 %v1378_v25, %v1321_v20  ;;  %9776 = vmatpush3.msra.mxu0 %v2224_v12  ;;  %v12123_v24 = vmul.f32 %v11860_v27, %v12017_v52  ;;  %v12125_v4 = vadd.f32 %v1478_v53, %v1421_v50 }
 0x161   :  { %9720 = vmatmul.mubr.f32.gmra.mxu1 %v14607_v8  ;;  %v12129_v41 = vmul.f32 %v11954_v46, %v12039_v21  ;;  %v1418_v33 = vadd.f32 %v11949_v38, %v11970_v63  ;;  %v1121_v36 = vadd.f32 %v1077_v15, %v1020_v29  ;;  %v1278_v23 = vmul.f32 %v11837_v3, %v12041_v13  ;;  %v2223_v15 = vld [vmem:[#allocation6 + $0x168] sm:$0xff] }
 0x162   :  { %v14608_v34 = vmax.f32 %v12112_v31, 0.0  ;;  %9722 = vmatprep.mubr.msk.f32.mxu1 %vm11433_vm0, %v14609_v1  ;;  %v1479_v52 = vmul.f32 %v11855_v18, %v12041_v13  ;;  %957 = vperm.xlu0 %11088, %v314_v61   ;;  %v920_v54 = vadd.f32 %v876_v30, %v560_v35  ;;  %v1677_v63 = vmul.f32 %v11954_v46, %v11992_v17  ;;  %v317_v17 = vld [vmem:[%s14591_s0 + $0x2d8] sm:$0xff]  ;;  %v318_v30 = vld [vmem:[%s14591_s0 + $0x2e0] sm:$0xff] }
 0x163   :  { %v12140_v44 = vpop.permute.xlu0 %395  ;;  %v12142_v21 = vpop.permute.xlu1 %400  ;;  %v1519_v38 = vadd.f32 %v11974_v2, %v1418_v33  ;;  %v977_v58 = vmul.f32 %v11819_v47, %v12067_v39  ;;  %1058 = vperm.xlu1 %11089, %v315_v45   ;;  %v1322_v48 = vadd.f32 %v1278_v23, %v1221_v42  ;;  %v12156_v35 = vmul.f32 %v11954_v46, %v12041_v13  ;;  %v2420_v13 = vld [vmem:[#allocation6 + $0x1f0] sm:$0xff] }
 0x164   :  { %9631 = vmatmul.mubr.f32.gmra.mxu0 %v14608_v34  ;;  %v1523_v50 = vadd.f32 %v1479_v52, %v1422_v32  ;;  %v1178_v2 = vmul.f32 %v11829_v56, %v12067_v39  ;;  %v561_v0 = vmul.f32 %v11809_v40, %v12067_v39  ;;  %v1379_v60 = vmul.f32 %v11847_v11, %v12067_v39  ;;  %v319_v32 = vld [vmem:[%s14591_s0 + $0x2e8] sm:$0xff] }
 0x165   :  { %v1620_v62 = vadd.f32 %v11988_v14, %v1519_v38  ;;  %v1580_v7 = vmul.f32 %v11860_v27, %v12067_v39  ;;  %9633 = vmatprep.mubr.msk.f32.mxu0 %vm11433_vm0, %v14609_v1  ;;  %v562_v53 = vmul.f32 %v11809_v40, %v12069_v43  ;;  %v978_v14 = vmul.f32 %v11819_v47, %v12069_v43 }
 0x166   :  { %v1222_v9 = vadd.f32 %v1178_v2, %v1121_v36  ;;  %v1520_v12 = vadd.f32 %v12034_v10, %v12028_v6  ;;  %1159 = vperm.xlu0 %11088, %v316_v59   ;;  %v1021_v16 = vadd.f32 %v977_v58, %v920_v54  ;;  %v877_v20 = vmul.f32 %v11801_v37, %v12097_v26 }
 0x167   :  { %v12178_v49 = vpop.permute.xlu0 %711  ;;  %v12180_v25 = vpop.permute.xlu1 %716  ;;  %v1721_v39 = vadd.f32 %v1677_v63, %v1620_v62  ;;  %v1078_v29 = vmul.f32 %v11822_v51, %v12097_v26  ;;  %1260 = vperm.xlu1 %11089, %v317_v17   ;;  %v1179_v6 = vmul.f32 %v11829_v56, %v12069_v43  ;;  %v1678_v61 = vmul.f32 %v11954_v46, %v11994_v19  ;;  %v320_v17 = vld [vmem:[%s14591_s0 + $0x2f0] sm:$0xff] }
 0x168   :  { %v1621_v10 = vadd.f32 %v12021_v55, %v1520_v12  ;;  %v1279_v42 = vmul.f32 %v11837_v3, %v12097_v26  ;;  %9865 = vmatpush3.msra.mxu1 %v2420_v13  ;;  %v1423_v33 = vadd.f32 %v1379_v60, %v1322_v48  ;;  %v921_v36 = vadd.f32 %v877_v20, %v561_v0 }
 0x169   :  { %v1772_v45 = vadd.f32 %v11996_v22, %v1721_v39  ;;  %v1122_v23 = vadd.f32 %v1078_v29, %v1021_v16  ;;  %9777 = vmatprep.subr.mxu0 %v14609_v1  ;;  %v1380_v55 = vmul.f32 %v11847_v11, %v12069_v43  ;;  %v1480_v54 = vmul.f32 %v11855_v18, %v12097_v26 }
 0x16a   :  { %v1722_v19 = vadd.f32 %v1678_v61, %v1621_v10  ;;  %v1323_v52 = vadd.f32 %v1279_v42, %v1222_v9  ;;  %1361 = vperm.xlu0 %11088, %v318_v30   ;;  %v1022_v59 = vadd.f32 %v978_v14, %v921_v36  ;;  %v878_v48 = vmul.f32 %v11801_v37, %v12099_v57  ;;  %v321_v9 = vld [vmem:[%s14591_s0 + $0x2f8] sm:$0xff] }
 0x16b   :  { %v12205_v38 = vpop.permute.xlu0 %405  ;;  %v12207_v63 = vpop.permute.xlu1 %410  ;;  %v12209_v58 = vmax.f32 %v1772_v45, 0.0  ;;  %v1079_v2 = vmul.f32 %v11822_v51, %v12099_v57  ;;  %1462 = vperm.xlu1 %11089, %v319_v32   ;;  %9778 = vmatpush3.msra.mxu0 %v2223_v15  ;;  %v12218_v62 = vadd.f32 %v1580_v7, %v1523_v50  ;;  %v1223_v60 = vadd.f32 %v1179_v6, %v1122_v23 }
 0x16c   :  { %v1773_v0 = vadd.f32 %v11996_v22, %v1722_v19  ;;  %v1424_v13 = vadd.f32 %v1380_v55, %v1323_v52  ;;  %9866 = vmatprep.subr.mxu1 %v14609_v1  ;;  %v12228_v14 = vmul.f32 %v11860_v27, %v12069_v43  ;;  %v12232_v50 = vmul.f32 %v11954_v46, %v12097_v26 }
 0x16d   :  { %9723 = vmatmul.mubr.f32.gmra.mxu1 %v12209_v58  ;;  %v1123_v7 = vadd.f32 %v1079_v2, %v1022_v59  ;;  %v1723_v12 = vadd.f32 %v12129_v41, %v12102_v28  ;;  %v1280_v16 = vmul.f32 %v11837_v3, %v12099_v57  ;;  %v1481_v43 = vmul.f32 %v11855_v18, %v12099_v57  ;;  %v2419_v28 = vld [vmem:[#allocation6 + $0x1e8] sm:$0xff] }
 0x16e   :  { %v12236_v39 = vmax.f32 %v1773_v0, 0.0  ;;  %9725 = vmatprep.mubr.msk.f32.mxu1 %vm11433_vm0, %v14609_v1  ;;  %v979_v20 = vmul.f32 %v11819_v47, %v12140_v44  ;;  %1563 = vperm.xlu0 %11088, %v320_v17   ;;  %v12250_v41 = vadd.f32 %v1480_v54, %v1423_v33  ;;  %v922_v30 = vadd.f32 %v878_v48, %v562_v53 }
 0x16f   :  { %v12246_v26 = vpop.permute.xlu0 %721  ;;  %v12248_v29 = vpop.permute.xlu1 %726  ;;  %v1774_v6 = vadd.f32 %v11996_v22, %v1723_v12  ;;  %v1180_v10 = vmul.f32 %v11829_v56, %v12140_v44  ;;  %1664 = vperm.xlu1 %11089, %v321_v9   ;;  %v1324_v61 = vadd.f32 %v1280_v16, %v1223_v60  ;;  %v1525_v42 = vadd.f32 %v1481_v43, %v1424_v13  ;;  %v2418_v13 = vld [vmem:[#allocation6 + $0x1e0] sm:$0xff] }
 0x170   :  { %9634 = vmatmul.mubr.f32.gmra.mxu0 %v12236_v39  ;;  %v12258_v32 = vmul.f32 %v11954_v46, %v12099_v57  ;;  %v563_v15 = vmul.f32 %v11809_v40, %v12140_v44  ;;  %v1381_v33 = vmul.f32 %v11847_v11, %v12140_v44  ;;  %v1582_v36 = vmul.f32 %v11860_v27, %v12140_v44  ;;  %v2222_v44 = vld [vmem:[#allocation6 + $0x160] sm:$0xff] }
 0x171   :  { %v12262_v45 = vmax.f32 %v1774_v6, 0.0  ;;  %v1224_v53 = vadd.f32 %v1180_v10, %v1123_v7  ;;  %9636 = vmatprep.mubr.msk.f32.mxu0 %vm11433_vm0, %v14609_v1  ;;  %9867 = vmatpush3.msra.mxu1 %v2419_v28  ;;  %v1023_v23 = vadd.f32 %v979_v20, %v922_v30  ;;  %v564_v57 = vmul.f32 %v11809_v40, %v12142_v21  ;;  %v2221_v10 = vld [vmem:[#allocation6 + $0x158] sm:$0xff] }
 0x172   :  { %v1623_v55 = vadd.f32 %v12123_v24, %v12125_v4  ;;  %v879_v19 = vmul.f32 %v11801_v37, %v12178_v49  ;;  %9779 = vmatprep.subr.mxu0 %v14609_v1  ;;  %v980_v59 = vmul.f32 %v11819_v47, %v12142_v21  ;;  %v1181_v48 = vmul.f32 %v11829_v56, %v12142_v21 }
 0x173   :  { %v12276_v52 = vpop.permute.xlu0 %415  ;;  %v12278_v54 = vpop.permute.xlu1 %420  ;;  %9726 = vmatmul.mubr.f32.gmra.mxu1 %v12262_v45  ;;  %v1080_v24 = vmul.f32 %v11822_v51, %v12178_v49  ;;  %v1281_v4 = vmul.f32 %v11837_v3, %v12178_v49  ;;  %v1425_v2 = vadd.f32 %v1381_v33, %v1324_v61  ;;  %v12290_v17 = vadd.f32 %v1582_v36, %v1525_v42 }
 0x174   :  { %v1724_v0 = vadd.f32 %v12156_v35, %v1623_v55  ;;  %v923_v60 = vadd.f32 %v879_v19, %v563_v15  ;;  %9728 = vmatprep.mubr.msk.f32.mxu1 %vm11433_vm0, %v14609_v1  ;;  %v1382_v9 = vmul.f32 %v11847_v11, %v12142_v21  ;;  %v1482_v16 = vmul.f32 %v11855_v18, %v12178_v49 }
 0x175   :  { %v1124_v7 = vadd.f32 %v1080_v24, %v1023_v23  ;;  %v1325_v12 = vadd.f32 %v1281_v4, %v1224_v53  ;;  %9780 = vmatpush3.msra.mxu0 %v2222_v44  ;;  %v880_v35 = vmul.f32 %v11801_v37, %v12180_v25  ;;  %v1081_v28 = vmul.f32 %v11822_v51, %v12180_v25 }
 0x176   :  { %v1775_v43 = vadd.f32 %v11996_v22, %v1724_v0  ;;  %v1024_v20 = vadd.f32 %v980_v59, %v923_v60  ;;  %9868 = vmatprep.subr.mxu1 %v14609_v1  ;;  %v12311_v61 = vmul.f32 %v11860_v27, %v12142_v21  ;;  %v1725_v53 = vadd.f32 %v12232_v50, %v12218_v62  ;;  %v2417_v21 = vld [vmem:[#allocation6 + $0x1d8] sm:$0xff] }
 0x177   :  { %v12304_v30 = vpop.permute.xlu0 %731  ;;  %v12306_v6 = vpop.permute.xlu1 %736  ;;  %v1225_v42 = vadd.f32 %v1181_v48, %v1124_v7  ;;  %v1426_v15 = vadd.f32 %v1382_v9, %v1325_v12  ;;  %9869 = vmatpush3.msra.mxu1 %v2418_v13  ;;  %v1282_v23 = vmul.f32 %v11837_v3, %v12180_v25  ;;  %v981_v55 = vmul.f32 %v11819_v47, %v12205_v38 }
 0x178   :  { %v12315_v33 = vmax.f32 %v1775_v43, 0.0  ;;  %v1125_v36 = vadd.f32 %v1081_v28, %v1024_v20  ;;  %9781 = vmatprep.subr.mxu0 %v14609_v1  ;;  %9870 = vmatprep.subr.mxu1 %v14609_v1  ;;  %v1683_v19 = vmul.f32 %v11954_v46, %v12178_v49  ;;  %v1483_v62 = vmul.f32 %v11855_v18, %v12180_v25 }
 0x179   :  { %v1776_v50 = vadd.f32 %v11996_v22, %v1725_v53  ;;  %v1182_v44 = vmul.f32 %v11829_v56, %v12205_v38  ;;  %9782 = vmatpush3.msra.mxu0 %v2221_v10  ;;  %v12331_v59 = vadd.f32 %v1482_v16, %v1425_v2  ;;  %v924_v48 = vadd.f32 %v880_v35, %v564_v57  ;;  %v2220_v16 = vld [vmem:[#allocation6 + $0x150] sm:$0xff] }
 0x17a   :  { %9637 = vmatmul.mubr.f32.gmra.mxu0 %v12315_v33  ;;  %v1326_v24 = vadd.f32 %v1282_v23, %v1225_v42  ;;  %v12335_v4 = vmul.f32 %v11954_v46, %v12180_v25  ;;  %v1527_v60 = vadd.f32 %v1483_v62, %v1426_v15  ;;  %v565_v9 = vmul.f32 %v11809_v40, %v12205_v38  ;;  %v2416_v53 = vld [vmem:[#allocation6 + $0x1d0] sm:$0xff] }
 0x17b   :  { %v12337_v49 = vpop.permute.xlu0 %425  ;;  %v12339_v0 = vpop.permute.xlu1 %430  ;;  %v12341_v13 = vmax.f32 %v1776_v50, 0.0  ;;  %v1226_v7 = vadd.f32 %v1182_v44, %v1125_v36  ;;  %9639 = vmatprep.mubr.msk.f32.mxu0 %vm11433_vm0, %v14609_v1  ;;  %9871 = vmatpush3.msra.mxu1 %v2417_v21  ;;  %v1025_v57 = vadd.f32 %v981_v55, %v924_v48  ;;  %v1383_v25 = vmul.f32 %v11847_v11, %v12205_v38 }
 0x17c   :  { %v1584_v2 = vmul.f32 %v11860_v27, %v12205_v38  ;;  %v566_v12 = vmul.f32 %v11809_v40, %v12207_v63  ;;  %9783 = vmatprep.subr.mxu0 %v14609_v1  ;;  %v1625_v43 = vadd.f32 %v12228_v14, %v12250_v41  ;;  %v881_v20 = vmul.f32 %v11801_v37, %v12246_v26 }
 0x17d   :  { %9729 = vmatmul.mubr.f32.gmra.mxu1 %v12341_v13  ;;  %v1082_v35 = vmul.f32 %v11822_v51, %v12246_v26  ;;  %v1283_v38 = vmul.f32 %v11837_v3, %v12246_v26  ;;  %v1427_v28 = vadd.f32 %v1383_v25, %v1326_v24  ;;  %v982_v10 = vmul.f32 %v11819_v47, %v12207_v63  ;;  %v2219_v24 = vld [vmem:[#allocation6 + $0x148] sm:$0xff] }
 0x17e   :  { %v1183_v42 = vmul.f32 %v11829_v56, %v12207_v63  ;;  %v1384_v15 = vmul.f32 %v11847_v11, %v12207_v63  ;;  %9731 = vmatprep.mubr.msk.f32.mxu1 %vm11433_vm0, %v14609_v1  ;;  %v1726_v36 = vadd.f32 %v12258_v32, %v1625_v43  ;;  %v925_v23 = vadd.f32 %v881_v20, %v565_v9 }
 0x17f   :  { %v12371_v14 = vpop.permute.xlu0 %741  ;;  %v12373_v41 = vpop.permute.xlu1 %746  ;;  %v1126_v55 = vadd.f32 %v1082_v35, %v1025_v57  ;;  %v1327_v21 = vadd.f32 %v1283_v38, %v1226_v7  ;;  %9784 = vmatpush3.msra.mxu0 %v2220_v16  ;;  %v12376_v62 = vadd.f32 %v1584_v2, %v1527_v60  ;;  %v1484_v50 = vmul.f32 %v11855_v18, %v12246_v26  ;;  %v2415_v60 = vld [vmem:[#allocation6 + $0x1c8] sm:$0xff] }
 0x180   :  { %v882_v44 = vmul.f32 %v11801_v37, %v12248_v29  ;;  %v1083_v48 = vmul.f32 %v11822_v51, %v12248_v29  ;;  %9872 = vmatprep.subr.mxu1 %v14609_v1  ;;  %v1777_v32 = vadd.f32 %v11996_v22, %v1726_v36  ;;  %v1026_v9 = vadd.f32 %v982_v10, %v925_v23 }
 0x181   :  { %v1227_v57 = vadd.f32 %v1183_v42, %v1126_v55  ;;  %v1428_v7 = vadd.f32 %v1384_v15, %v1327_v21  ;;  %9873 = vmatpush3.msra.mxu1 %v2416_v53  ;;  %v12388_v25 = vmul.f32 %v11860_v27, %v12207_v63  ;;  %v12392_v2 = vmul.f32 %v11954_v46, %v12246_v26  ;;  %v2218_v53 = vld [vmem:[#allocation6 + $0x140] sm:$0xff] }
 0x182   :  { %v1727_v16 = vadd.f32 %v1683_v19, %v12290_v17  ;;  %v983_v43 = vmul.f32 %v11819_v47, %v12276_v52  ;;  %9785 = vmatprep.subr.mxu0 %v14609_v1  ;;  %v12400_v35 = vmax.f32 %v1777_v32, 0.0  ;;  %v1127_v38 = vadd.f32 %v1083_v48, %v1026_v9  ;;  %9874 = vmatprep.subr.mxu1 %v14609_v1 }
 0x183   :  { %v12397_v20 = vpop.permute.xlu0 %435  ;;  %v1284_v63 = vmul.f32 %v11837_v3, %v12248_v29  ;;  %v1485_v10 = vmul.f32 %v11855_v18, %v12248_v29  ;;  %9786 = vmatpush3.msra.mxu0 %v2219_v24  ;;  %v12407_v26 = vadd.f32 %v1484_v50, %v1427_v28  ;;  %v926_v17 = vadd.f32 %v882_v44, %v566_v12  ;;  %v12412_v15 = vpop.permute.xlu1 %440 }
 0x184   :  { %v1778_v19 = vadd.f32 %v11996_v22, %v1727_v16  ;;  %v1184_v42 = vmul.f32 %v11829_v56, %v12276_v52  ;;  %9875 = vmatpush3.msra.mxu1 %v2415_v60  ;;  %9640 = vmatmul.mubr.f32.gmra.mxu0 %v12400_v35  ;;  %v12417_v55 = vmul.f32 %v11954_v46, %v12248_v29 }
 0x185   :  { %v1328_v36 = vadd.f32 %v1284_v63, %v1227_v57  ;;  %v1529_v23 = vadd.f32 %v1485_v10, %v1428_v7  ;;  %v567_v12 = vmul.f32 %v11809_v40, %v12276_v52  ;;  %v1027_v21 = vadd.f32 %v983_v43, %v926_v17  ;;  %9642 = vmatprep.mubr.msk.f32.mxu0 %vm11433_vm0, %v14609_v1  ;;  %v2217_v63 = vld [vmem:[#allocation6 + $0x138] sm:$0xff] }
 0x186   :  { %v12421_v28 = vmax.f32 %v1778_v19, 0.0  ;;  %v1228_v50 = vadd.f32 %v1184_v42, %v1127_v38  ;;  %v1385_v44 = vmul.f32 %v11847_v11, %v12276_v52  ;;  %9787 = vmatprep.subr.mxu0 %v14609_v1  ;;  %v1586_v48 = vmul.f32 %v11860_v27, %v12276_v52  ;;  %9876 = vmatprep.subr.mxu1 %v14609_v1  ;;  %v12464_v19 = vld [vmem:[#allocation2 + $0x3] ss:$0 sm:$0xff] }
 0x187   :  { %v568_v29 = vmul.f32 %v11809_v40, %v12278_v54  ;;  %v1627_v24 = vadd.f32 %v12311_v61, %v12331_v59  ;;  %v883_v32 = vmul.f32 %v11801_v37, %v12304_v30  ;;  %9788 = vmatpush3.msra.mxu0 %v2218_v53  ;;  %v984_v9 = vmul.f32 %v11819_v47, %v12278_v54  ;;  %v12445_v7 = vpop.permute.xlu0 %751  ;;  %v2414_v61 = vld [vmem:[#allocation6 + $0x1c0] sm:$0xff]  ;;  %v12456_v38 = vpop.permute.xlu1 %756  ;;  %v2413_v53 = vld [vmem:[#allocation6 + $0x1b8] sm:$0xff] }
 0x188   :  { %9732 = vmatmul.mubr.f32.gmra.mxu1 %v12421_v28  ;;  %v1185_v57 = vmul.f32 %v11829_v56, %v12278_v54  ;;  %v1084_v52 = vmul.f32 %v11822_v51, %v12304_v30  ;;  %v1285_v40 = vmul.f32 %v11837_v3, %v12304_v30  ;;  %v1429_v59 = vadd.f32 %v1385_v44, %v1328_v36 }
 0x189   :  { %v1386_v37 = vmul.f32 %v11847_v11, %v12278_v54  ;;  %v1728_v60 = vadd.f32 %v12335_v4, %v1627_v24  ;;  %v927_v16 = vadd.f32 %v883_v32, %v567_v12  ;;  %9734 = vmatprep.mubr.msk.f32.mxu1 %vm11433_vm0, %v14609_v1  ;;  %v12452_v47 = vadd.f32 %v1586_v48, %v1529_v23  ;;  %v12460_v4 = vld [vmem:[#allocation2 + $0x1] ss:$0 sm:$0xff]  ;;  %v12479_v24 = vld [vmem:[#allocation2 + $0x2] ss:$0 sm:$0xff] }
 0x18a   :  { %v1128_v56 = vadd.f32 %v1084_v52, %v1027_v21  ;;  %v1329_v51 = vadd.f32 %v1285_v40, %v1228_v50  ;;  %v1486_v43 = vmul.f32 %v11855_v18, %v12304_v30  ;;  %v884_v17 = vmul.f32 %v12460_v4, %v12306_v6  ;;  %9877 = vmatpush3.msra.mxu1 %v2414_v61  ;;  %v2216_v52 = vld [vmem:[#allocation6 + $0x130] sm:$0xff] }
 0x18b   :  { %v1779_v11 = vadd.f32 %v11996_v22, %v1728_v60  ;;  %v1028_v10 = vadd.f32 %v984_v9, %v927_v16  ;;  %v1085_v42 = vmul.f32 %v12464_v19, %v12306_v6  ;;  %v12470_v36 = vmul.f32 %v11860_v27, %v12278_v54  ;;  %9789 = vmatprep.subr.mxu0 %v14609_v1  ;;  %v12489_v9 = vld [vmem:[#allocation2 + $0x4] ss:$0 sm:$0xff]  ;;  %v12504_v16 = vld [vmem:[#allocation2] ss:$0 sm:$0xff] }
 0x18c   :  { %v1229_v23 = vadd.f32 %v1185_v57, %v1128_v56  ;;  %v1430_v12 = vadd.f32 %v1386_v37, %v1329_v51  ;;  %v1729_v21 = vadd.f32 %v12392_v2, %v12376_v62  ;;  %v1286_v48 = vmul.f32 %v11837_v3, %v12306_v6  ;;  %9790 = vmatpush3.msra.mxu0 %v2217_v63  ;;  %v12493_v57 = vpop.permute.xlu0 %445 }
 0x18d   :  { %v12475_v50 = vmax.f32 %v1779_v11, 0.0  ;;  %v1129_v44 = vadd.f32 %v1085_v42, %v1028_v10  ;;  %v985_v32 = vmul.f32 %v12479_v24, %v12337_v49  ;;  %9878 = vmatprep.subr.mxu1 %v14609_v1  ;;  %v1687_v54 = vmul.f32 %v11954_v46, %v12304_v30  ;;  %9791 = vmatprep.subr.mxu0 %v14609_v1 }
 0x18e   :  { %v1487_v62 = vmul.f32 %v11855_v18, %v12306_v6  ;;  %v1780_v2 = vadd.f32 %v11996_v22, %v1729_v21  ;;  %v1186_v3 = vmul.f32 %v12489_v9, %v12337_v49  ;;  %9879 = vmatpush3.msra.mxu1 %v2413_v53  ;;  %v12496_v40 = vadd.f32 %v1486_v43, %v1429_v59  ;;  %v12510_v59 = vpop.permute.xlu1 %450  ;;  %v12513_v43 = vld [vmem:[#allocation2 + $0x6] ss:$0 sm:$0xff]  ;;  %v12528_v53 = vld [vmem:[#allocation2 + $0x5] ss:$0 sm:$0xff] }
 0x18f   :  { %9643 = vmatmul.mubr.f32.gmra.mxu0 %v12475_v50  ;;  %v928_v61 = vadd.f32 %v884_v17, %v568_v29  ;;  %v1330_v30 = vadd.f32 %v1286_v48, %v1229_v23  ;;  %v12500_v18 = vmul.f32 %v11954_v46, %v12306_v6  ;;  %v569_v56 = vmul.f32 %v12504_v16, %v12337_v49 }
 0x190   :  { %v1531_v37 = vadd.f32 %v1487_v62, %v1430_v12  ;;  %v12502_v60 = vmax.f32 %v1780_v2, 0.0  ;;  %v1230_v51 = vadd.f32 %v1186_v3, %v1129_v44  ;;  %9645 = vmatprep.mubr.msk.f32.mxu0 %vm11433_vm0, %v14609_v1  ;;  %v1387_v6 = vmul.f32 %v12513_v43, %v12337_v49  ;;  %9792 = vmatpush3.msra.mxu0 %v2216_v52  ;;  %v12541_v62 = vpop.permute.xlu0 %761  ;;  %v2215_v2 = vld [vmem:[#allocation6 + $0x128] sm:$0xff]  ;;  %v12546_v52 = vld [vmem:[#allocation2 + $0x7] ss:$0 sm:$0xff] }
 0x191   :  { %v1029_v29 = vadd.f32 %v985_v32, %v928_v61  ;;  %v1588_v63 = vmul.f32 %v11860_v27, %v12337_v49  ;;  %v570_v11 = vmul.f32 %v12504_v16, %v12339_v0  ;;  %v1629_v10 = vadd.f32 %v12388_v25, %v12407_v26  ;;  %v2412_v49 = vld [vmem:[#allocation6 + $0x1b0] sm:$0xff]  ;;  %9880 = vmatprep.subr.mxu1 %v14609_v1 }
 0x192   :  { %9735 = vmatmul.mubr.f32.gmra.mxu1 %v12502_v60  ;;  %v885_v17 = vmul.f32 %v12460_v4, %v12371_v14  ;;  %v1086_v42 = vmul.f32 %v12464_v19, %v12371_v14  ;;  %v1287_v27 = vmul.f32 %v12528_v53, %v12371_v14  ;;  %v1431_v23 = vadd.f32 %v1387_v6, %v1330_v30 }
 0x193   :  { %v986_v12 = vmul.f32 %v12479_v24, %v12339_v0  ;;  %v1187_v21 = vmul.f32 %v12489_v9, %v12339_v0  ;;  %v1388_v25 = vmul.f32 %v12513_v43, %v12339_v0  ;;  %9737 = vmatprep.mubr.msk.f32.mxu1 %vm11433_vm0, %v14609_v1  ;;  %v1730_v26 = vadd.f32 %v12417_v55, %v1629_v10  ;;  %v12555_v10 = vpop.permute.xlu1 %766 }
 0x194   :  { %v929_v44 = vadd.f32 %v885_v17, %v569_v56  ;;  %v1130_v48 = vadd.f32 %v1086_v42, %v1029_v29  ;;  %v1331_v32 = vadd.f32 %v1287_v27, %v1230_v51  ;;  %v12544_v3 = vadd.f32 %v1588_v63, %v1531_v37  ;;  %9881 = vmatpush3.msra.mxu1 %v2412_v49  ;;  %v2411_v37 = vld [vmem:[#allocation6 + $0x1a8] sm:$0xff]  ;;  %v12558_v63 = vld [vmem:[#allocation2 + $0x8] ss:$0 sm:$0xff] }
 0x195   :  { %v1488_v61 = vmul.f32 %v12546_v52, %v12371_v14  ;;  %v886_v30 = vmul.f32 %v12460_v4, %v12373_v41  ;;  %v1087_v55 = vmul.f32 %v12464_v19, %v12373_v41  ;;  %v1781_v56 = vadd.f32 %v11996_v22, %v1730_v26  ;;  %9793 = vmatprep.subr.mxu0 %v14609_v1 }
 0x196   :  { %v1030_v51 = vadd.f32 %v986_v12, %v929_v44  ;;  %v1231_v29 = vadd.f32 %v1187_v21, %v1130_v48  ;;  %v1432_v6 = vadd.f32 %v1388_v25, %v1331_v32  ;;  %v12562_v17 = vmul.f32 %v12558_v63, %v12339_v0  ;;  %9794 = vmatpush3.msra.mxu0 %v2215_v2  ;;  %v2214_v0 = vld [vmem:[#allocation6 + $0x120] sm:$0xff] }
 0x197   :  { %v1689_v42 = vmul.f32 %v11954_v46, %v12371_v14  ;;  %v1731_v27 = vadd.f32 %v1687_v54, %v12452_v47  ;;  %v987_v49 = vmul.f32 %v12479_v24, %v12397_v20  ;;  %v12569_v12 = vmax.f32 %v1781_v56, 0.0  ;;  %9882 = vmatprep.subr.mxu1 %v14609_v1  ;;  %9795 = vmatprep.subr.mxu0 %v14609_v1 }
 0x198   :  { %v1131_v21 = vadd.f32 %v1087_v55, %v1030_v51  ;;  %v1288_v25 = vmul.f32 %v12528_v53, %v12373_v41  ;;  %v1489_v26 = vmul.f32 %v12546_v52, %v12373_v41  ;;  %v12577_v14 = vadd.f32 %v1488_v61, %v1431_v23  ;;  %9883 = vmatpush3.msra.mxu1 %v2411_v37  ;;  %v12589_v23 = vpop.permute.xlu0 %455  ;;  %v2410_v37 = vld [vmem:[#allocation6 + $0x1a0] sm:$0xff] }
 0x199   :  { %v930_v47 = vadd.f32 %v886_v30, %v570_v11  ;;  %v1782_v54 = vadd.f32 %v11996_v22, %v1731_v27  ;;  %v1188_v44 = vmul.f32 %v12489_v9, %v12397_v20  ;;  %9646 = vmatmul.mubr.f32.gmra.mxu0 %v12569_v12  ;;  %v12585_v2 = vmul.f32 %v11954_v46, %v12373_v41 }
 0x19a   :  { %v1332_v48 = vadd.f32 %v1288_v25, %v1231_v29  ;;  %v1533_v32 = vadd.f32 %v1489_v26, %v1432_v6  ;;  %v571_v55 = vmul.f32 %v12504_v16, %v12397_v20  ;;  %v1389_v56 = vmul.f32 %v12513_v43, %v12397_v20  ;;  %9648 = vmatprep.mubr.msk.f32.mxu0 %vm11433_vm0, %v14609_v1  ;;  %v12605_v6 = vpop.permute.xlu1 %460 }
 0x19b   :  { %v12591_v11 = vmax.f32 %v1782_v54, 0.0  ;;  %v1031_v61 = vadd.f32 %v987_v49, %v930_v47  ;;  %v1232_v30 = vadd.f32 %v1188_v44, %v1131_v21  ;;  %9796 = vmatpush3.msra.mxu0 %v2214_v0  ;;  %v1590_v46 = vmul.f32 %v12558_v63, %v12397_v20  ;;  %9884 = vmatprep.subr.mxu1 %v14609_v1  ;;  %v2213_v0 = vld [vmem:[#allocation6 + $0x118] sm:$0xff] }
 0x19c   :  { %v572_v41 = vmul.f32 %v12504_v16, %v12412_v15  ;;  %v1631_v51 = vadd.f32 %v12470_v36, %v12496_v40  ;;  %v887_v29 = vmul.f32 %v12460_v4, %v12445_v7  ;;  %v988_v27 = vmul.f32 %v12479_v24, %v12412_v15  ;;  %9885 = vmatpush3.msra.mxu1 %v2410_v37 }
 0x19d   :  { %14636 = vst [vmem:[#allocation32_spill] sm:$0xff] %v12591_v11  ;;  %9738 = vmatmul.mubr.f32.gmra.mxu1 %v12591_v11  ;;  %v1189_v20 = vmul.f32 %v12489_v9, %v12412_v15  ;;  %v1088_v49 = vmul.f32 %v12464_v19, %v12445_v7  ;;  %v1289_v36 = vmul.f32 %v12528_v53, %v12445_v7  ;;  %v2407_v11 = vld [vmem:[#allocation6 + $0x188] sm:$0xff] }
 0x19e   :  { %v1433_v40 = vadd.f32 %v1389_v56, %v1332_v48  ;;  %v1390_v21 = vmul.f32 %v12513_v43, %v12412_v15  ;;  %v1732_v25 = vadd.f32 %v12500_v18, %v1631_v51  ;;  %v931_v26 = vadd.f32 %v887_v29, %v571_v55  ;;  %9740 = vmatprep.mubr.msk.f32.mxu1 %vm11433_vm0, %v14609_v1  ;;  %v12631_v55 = vpop.permute.xlu0 %771 }
 0x19f   :  { %v12622_v47 = vadd.f32 %v1590_v46, %v1533_v32  ;;  %v1132_v54 = vadd.f32 %v1088_v49, %v1031_v61  ;;  %v1333_v44 = vadd.f32 %v1289_v36, %v1232_v30  ;;  %v1490_v8 = vmul.f32 %v12546_v52, %v12445_v7  ;;  %9797 = vmatprep.subr.mxu0 %v14609_v1  ;;  %v2409_v32 = vld [vmem:[#allocation6 + $0x198] sm:$0xff]  ;;  %v12645_v36 = vpop.permute.xlu1 %776 }
 0x1a0   :  { %v1783_v48 = vadd.f32 %v11996_v22, %v1732_v25  ;;  %v1032_v56 = vadd.f32 %v988_v27, %v931_v26  ;;  %v888_v34 = vmul.f32 %v12460_v4, %v12456_v38  ;;  %v1089_v18 = vmul.f32 %v12464_v19, %v12456_v38  ;;  %9798 = vmatpush3.msra.mxu0 %v2213_v0 }
 0x1a1   :  { %v12636_v61 = vmul.f32 %v12558_v63, %v12412_v15  ;;  %v1233_v30 = vadd.f32 %v1189_v20, %v1132_v54  ;;  %v1434_v46 = vadd.f32 %v1390_v21, %v1333_v44  ;;  %v1733_v51 = vadd.f32 %v1689_v42, %v12544_v3  ;;  %9886 = vmatprep.subr.mxu1 %v14609_v1  ;;  %v2212_v15 = vld [vmem:[#allocation6 + $0x110] sm:$0xff]  ;;  %v12649_v20 = vld [vmem:[#allocation2 + $0x9] ss:$0 sm:$0xff] }
 0x1a2   :  { %v12639_v29 = vmax.f32 %v1783_v48, 0.0  ;;  %v1133_v37 = vadd.f32 %v1089_v18, %v1032_v56  ;;  %v1290_v27 = vmul.f32 %v12528_v53, %v12456_v38  ;;  %v989_v49 = vmul.f32 %v12479_v24, %v12493_v57  ;;  %9799 = vmatprep.subr.mxu0 %v14609_v1  ;;  %9887 = vmatpush3.msra.mxu1 %v2409_v32 }
 0x1a3   :  { %v1691_v3 = vmul.f32 %v12649_v20, %v12445_v7  ;;  %v1491_v42 = vmul.f32 %v12546_v52, %v12456_v38  ;;  %v1784_v21 = vadd.f32 %v11996_v22, %v1733_v51  ;;  %v1190_v25 = vmul.f32 %v12489_v9, %v12493_v57  ;;  %9800 = vmatpush3.msra.mxu0 %v2212_v15 }
 0x1a4   :  { %14637 = vst [vmem:[#allocation33_spill] sm:$0xff] %v12639_v29  ;;  %9649 = vmatmul.mubr.f32.gmra.mxu0 %v12639_v29  ;;  %v12659_v26 = vadd.f32 %v1490_v8, %v1433_v40  ;;  %v932_v0 = vadd.f32 %v888_v34, %v572_v41  ;;  %v1334_v54 = vadd.f32 %v1290_v27, %v1233_v30  ;;  %v12677_v41 = vpop.permute.xlu0 %465  ;;  %v2408_v40 = vld [vmem:[#allocation6 + $0x190] sm:$0xff]  ;;  %v12709_v29 = vld [vmem:[#allocation4] ss:$0 sm:$0xff] }
 0x1a5   :  { %v12663_v44 = vmul.f32 %v12649_v20, %v12456_v38  ;;  %v1535_v7 = vadd.f32 %v1491_v42, %v1434_v46  ;;  %v12665_v48 = vmax.f32 %v1784_v21, 0.0  ;;  %v573_v22 = vmul.f32 %v12504_v16, %v12493_v57  ;;  %9651 = vmatprep.mubr.msk.f32.mxu0 %vm11433_vm0, %v14609_v1  ;;  %9888 = vmatprep.subr.mxu1 %v14609_v1 }
 0x1a6   :  { %v1234_v56 = vadd.f32 %v1190_v25, %v1133_v37  ;;  %v1033_v18 = vadd.f32 %v989_v49, %v932_v0  ;;  %v1391_v8 = vmul.f32 %v12513_v43, %v12493_v57  ;;  %v1592_v34 = vmul.f32 %v12558_v63, %v12493_v57  ;;  %9889 = vmatpush3.msra.mxu1 %v2408_v40 }
 0x1a7   :  { %14638 = vst [vmem:[#allocation34_spill] sm:$0xff] %v12665_v48  ;;  %v574_v38 = vmul.f32 %v12504_v16, %v12510_v59  ;;  %9741 = vmatmul.mubr.f32.gmra.mxu1 %v12665_v48  ;;  %v1633_v32 = vadd.f32 %v12562_v17, %v12577_v14  ;;  %v889_v30 = vmul.f32 %v12460_v4, %v12541_v62  ;;  %v12697_v17 = vpop.permute.xlu1 %470  ;;  %v2211_v14 = vld [vmem:[#allocation6 + $0x108] sm:$0xff]  ;;  %v14639_v48 = vmov 0.0  }
 0x1a8   :  { %v1090_v46 = vmul.f32 %v12464_v19, %v12541_v62  ;;  %v1291_v57 = vmul.f32 %v12528_v53, %v12541_v62  ;;  %v1435_v51 = vadd.f32 %v1391_v8, %v1334_v54  ;;  %v990_v37 = vmul.f32 %v12479_v24, %v12510_v59  ;;  %9743 = vmatprep.mubr.msk.f32.mxu1 %vm11433_vm0, %v14609_v1 }
 0x1a9   :  { %v1191_v27 = vmul.f32 %v12489_v9, %v12510_v59  ;;  %v1392_v49 = vmul.f32 %v12513_v43, %v12510_v59  ;;  %v1734_v15 = vadd.f32 %v12585_v2, %v1633_v32  ;;  %v933_v42 = vadd.f32 %v889_v30, %v573_v22  ;;  %9801 = vmatprep.subr.mxu0 %v14639_v48 }
 0x1aa   :  { %v1134_v21 = vadd.f32 %v1090_v46, %v1033_v18  ;;  %v1335_v25 = vadd.f32 %v1291_v57, %v1234_v56  ;;  %v12700_v0 = vadd.f32 %v1592_v34, %v1535_v7  ;;  %v1492_v54 = vmul.f32 %v12546_v52, %v12541_v62  ;;  %9802 = vmatpush3.msra.mxu0 %v2211_v14  ;;  %v2210_v18 = vld [vmem:[#allocation6 + $0x100] sm:$0xff]  ;;  %v12721_v46 = vpop.permute.xlu0 %781 }
 0x1ab   :  { %v890_v8 = vmul.f32 %v12460_v4, %v12555_v10  ;;  %v1091_v1 = vmul.f32 %v12464_v19, %v12555_v10  ;;  %v1785_v2 = vadd.f32 %v12709_v29, %v1734_v15  ;;  %v1034_v22 = vadd.f32 %v990_v37, %v933_v42  ;;  %9890 = vmatprep.subr.mxu1 %v14639_v48  ;;  %v12736_v14 = vpop.permute.xlu1 %786 }
 0x1ac   :  { %v1235_v56 = vadd.f32 %v1191_v27, %v1134_v21  ;;  %v1436_v7 = vadd.f32 %v1392_v49, %v1335_v25  ;;  %v12714_v34 = vmul.f32 %v12558_v63, %v12510_v59  ;;  %v1693_v40 = vmul.f32 %v12649_v20, %v12541_v62  ;;  %9891 = vmatpush3.msra.mxu1 %v2407_v11 }
 0x1ad   :  { %v1735_v32 = vadd.f32 %v1691_v3, %v12622_v47  ;;  %v991_v30 = vmul.f32 %v12479_v24, %v12589_v23  ;;  %v12724_v57 = vmax.f32 %v1785_v2, 0.0  ;;  %v1135_v37 = vadd.f32 %v1091_v1, %v1034_v22  ;;  %9803 = vmatprep.subr.mxu0 %v14639_v48  ;;  %v2406_v1 = vld [vmem:[#allocation6 + $0x180] sm:$0xff]  ;;  %9892 = vmatprep.subr.mxu1 %v14639_v48 }
 0x1ae   :  { %v1292_v27 = vmul.f32 %v12528_v53, %v12555_v10  ;;  %v1493_v59 = vmul.f32 %v12546_v52, %v12555_v10  ;;  %v12731_v62 = vadd.f32 %v1492_v54, %v1435_v51  ;;  %v934_v47 = vadd.f32 %v890_v8, %v574_v38  ;;  %9804 = vmatpush3.msra.mxu0 %v2210_v18 }
 0x1af   :  { %v1786_v3 = vadd.f32 %v12709_v29, %v1735_v32  ;;  %v1192_v49 = vmul.f32 %v12489_v9, %v12589_v23  ;;  %9652 = vmatmul.mubr.f32.gmra.mxu0 %v12724_v57  ;;  %v12741_v11 = vmul.f32 %v12649_v20, %v12555_v10  ;;  %v575_v38 = vmul.f32 %v12504_v16, %v12589_v23  ;;  %v12769_v32 = vpop.permute.xlu0 %475 }
 0x1b0   :  { %v1336_v15 = vadd.f32 %v1292_v27, %v1235_v56  ;;  %v1537_v42 = vadd.f32 %v1493_v59, %v1436_v7  ;;  %v1035_v21 = vadd.f32 %v991_v30, %v934_v47  ;;  %v1393_v54 = vmul.f32 %v12513_v43, %v12589_v23  ;;  %9654 = vmatprep.mubr.msk.f32.mxu0 %vm11433_vm0, %v14639_v48 }
 0x1b1   :  { %v12745_v51 = vmax.f32 %v1786_v3, 0.0  ;;  %v1236_v25 = vadd.f32 %v1192_v49, %v1135_v37  ;;  %v1594_v8 = vmul.f32 %v12558_v63, %v12589_v23  ;;  %v576_v10 = vmul.f32 %v12504_v16, %v12605_v6  ;;  %9893 = vmatpush3.msra.mxu1 %v2406_v1  ;;  %v12780_v49 = vpop.permute.xlu1 %480  ;;  %9951 = vmatprep.subr.mxu0 %v14639_v48 }
 0x1b2   :  { %v1635_v2 = vadd.f32 %v12636_v61, %v12659_v26  ;;  %v891_v22 = vmul.f32 %v12460_v4, %v12631_v55  ;;  %v992_v56 = vmul.f32 %v12479_v24, %v12605_v6  ;;  %v1193_v7 = vmul.f32 %v12489_v9, %v12605_v6  ;;  %10040 = vmatprep.subr.mxu1 %v14639_v48 }
 0x1b3   :  { %14640 = vst [vmem:[#allocation35_spill] sm:$0xff] %v12745_v51  ;;  %9744 = vmatmul.mubr.f32.gmra.mxu1 %v12745_v51  ;;  %v1092_v23 = vmul.f32 %v12464_v19, %v12631_v55  ;;  %v1293_v18 = vmul.f32 %v12528_v53, %v12631_v55  ;;  %v1437_v61 = vadd.f32 %v1393_v54, %v1336_v15 }
 0x1b4   :  { %v1394_v26 = vmul.f32 %v12513_v43, %v12605_v6  ;;  %v1736_v30 = vadd.f32 %v12663_v44, %v1635_v2  ;;  %v935_v37 = vadd.f32 %v891_v22, %v575_v38  ;;  %9746 = vmatprep.mubr.msk.f32.mxu1 %vm11433_vm0, %v14639_v48  ;;  %v12776_v27 = vadd.f32 %v1594_v8, %v1537_v42 }
 0x1b5   :  { %v1136_v59 = vadd.f32 %v1092_v23, %v1035_v21  ;;  %v1337_v47 = vadd.f32 %v1293_v18, %v1236_v25  ;;  %v1494_v3 = vmul.f32 %v12546_v52, %v12631_v55  ;;  %v892_v44 = vmul.f32 %v12460_v4, %v12645_v36 }
 0x1b6   :  { %v1787_v1 = vadd.f32 %v12709_v29, %v1736_v30  ;;  %v1036_v15 = vadd.f32 %v992_v56, %v935_v37  ;;  %v1093_v38 = vmul.f32 %v12464_v19, %v12645_v36  ;;  %v12791_v42 = vmul.f32 %v12558_v63, %v12605_v6 }
 0x1b7   :  { %v1237_v21 = vadd.f32 %v1193_v7, %v1136_v59  ;;  %v1438_v25 = vadd.f32 %v1394_v26, %v1337_v47  ;;  %v1737_v54 = vadd.f32 %v1693_v40, %v12700_v0  ;;  %v1294_v22 = vmul.f32 %v12528_v53, %v12645_v36  ;;  %v12807_v40 = vpop.permute.xlu0 %791 }
 0x1b8   :  { %v12794_v8 = vmax.f32 %v1787_v1, 0.0  ;;  %v1137_v2 = vadd.f32 %v1093_v38, %v1036_v15  ;;  %v993_v56 = vmul.f32 %v12479_v24, %v12677_v41  ;;  %v1695_v23 = vmul.f32 %v12649_v20, %v12631_v55  ;;  %v12822_v15 = vpop.permute.xlu1 %796 }
 0x1b9   :  { %v1495_v6 = vmul.f32 %v12546_v52, %v12645_v36  ;;  %v1788_v7 = vadd.f32 %v12709_v29, %v1737_v54  ;;  %v1194_v0 = vmul.f32 %v12489_v9, %v12677_v41  ;;  %v12810_v18 = vadd.f32 %v1494_v3, %v1437_v61 }
 0x1ba   :  { %14641 = vst [vmem:[#allocation36_spill] sm:$0xff] %v12794_v8  ;;  %9655 = vmatmul.mubr.f32.gmra.mxu0 %v12794_v8  ;;  %v936_v26 = vadd.f32 %v892_v44, %v576_v10  ;;  %v1338_v30 = vadd.f32 %v1294_v22, %v1237_v21  ;;  %v12814_v37 = vmul.f32 %v12649_v20, %v12645_v36 }
 0x1bb   :  { %v1539_v55 = vadd.f32 %v1495_v6, %v1438_v25  ;;  %v12816_v59 = vmax.f32 %v1788_v7, 0.0  ;;  %v577_v47 = vmul.f32 %v12504_v16, %v12677_v41  ;;  %v1238_v1 = vadd.f32 %v1194_v0, %v1137_v2  ;;  %9657 = vmatprep.mubr.msk.f32.mxu0 %vm11433_vm0, %v14639_v48  ;;  %v12848_v7 = vpop.permute.xlu0 %485 }
 0x1bc   :  { %v1037_v61 = vadd.f32 %v993_v56, %v936_v26  ;;  %v1395_v10 = vmul.f32 %v12513_v43, %v12677_v41  ;;  %v1596_v36 = vmul.f32 %v12558_v63, %v12677_v41  ;;  %v578_v3 = vmul.f32 %v12504_v16, %v12697_v17 }
 0x1bd   :  { %14642 = vst [vmem:[#allocation37_spill] sm:$0xff] %v12816_v59  ;;  %9747 = vmatmul.mubr.f32.gmra.mxu1 %v12816_v59  ;;  %v1637_v44 = vadd.f32 %v12714_v34, %v12731_v62  ;;  %v893_v38 = vmul.f32 %v12460_v4, %v12721_v46  ;;  %v1094_v21 = vmul.f32 %v12464_v19, %v12721_v46 }
 0x1be   :  { %v1295_v25 = vmul.f32 %v12528_v53, %v12721_v46  ;;  %v1439_v54 = vadd.f32 %v1395_v10, %v1338_v30  ;;  %v994_v41 = vmul.f32 %v12479_v24, %v12697_v17  ;;  %v1195_v2 = vmul.f32 %v12489_v9, %v12697_v17  ;;  %9749 = vmatprep.mubr.msk.f32.mxu1 %vm11433_vm0, %v14639_v48 }
 0x1bf   :  { %v1396_v22 = vmul.f32 %v12513_v43, %v12697_v17  ;;  %v1738_v34 = vadd.f32 %v12741_v11, %v1637_v44  ;;  %v937_v62 = vadd.f32 %v893_v38, %v577_v47  ;;  %v1138_v56 = vadd.f32 %v1094_v21, %v1037_v61  ;;  %v12857_v47 = vpop.permute.xlu1 %490 }
 0x1c0   :  { %v1339_v6 = vadd.f32 %v1295_v25, %v1238_v1  ;;  %v1640_v0 = vadd.f32 %v1596_v36, %v1539_v55  ;;  %v1496_v26 = vmul.f32 %v12546_v52, %v12721_v46  ;;  %v894_v30 = vmul.f32 %v12460_v4, %v12736_v14 }
 0x1c1   :  { %v1095_v10 = vmul.f32 %v12464_v19, %v12736_v14  ;;  %v1789_v59 = vadd.f32 %v12709_v29, %v1738_v34  ;;  %v1038_v51 = vadd.f32 %v994_v41, %v937_v62  ;;  %v1239_v8 = vadd.f32 %v1195_v2, %v1138_v56 }
 0x1c2   :  { %v1440_v11 = vadd.f32 %v1396_v22, %v1339_v6  ;;  %v12861_v1 = vmul.f32 %v12558_v63, %v12697_v17  ;;  %v1697_v55 = vmul.f32 %v12649_v20, %v12721_v46  ;;  %v1739_v61 = vadd.f32 %v1695_v23, %v12776_v27  ;;  %v12886_v22 = vpop.permute.xlu0 %801 }
 0x1c3   :  { %v995_v36 = vmul.f32 %v12479_v24, %v12769_v32  ;;  %v12868_v44 = vmax.f32 %v1789_v59, 0.0  ;;  %v1139_v38 = vadd.f32 %v1095_v10, %v1038_v51  ;;  %v1296_v21 = vmul.f32 %v12528_v53, %v12736_v14 }
 0x1c4   :  { %v1497_v25 = vmul.f32 %v12546_v52, %v12736_v14  ;;  %v12874_v41 = vadd.f32 %v1496_v26, %v1439_v54  ;;  %v938_v17 = vadd.f32 %v894_v30, %v578_v3  ;;  %v1790_v2 = vadd.f32 %v12709_v29, %v1739_v61  ;;  %v12902_v26 = vpop.permute.xlu1 %806 }
 0x1c5   :  { %14643 = vst [vmem:[#allocation38_spill] sm:$0xff] %v12868_v44  ;;  %v1196_v46 = vmul.f32 %v12489_v9, %v12769_v32  ;;  %9658 = vmatmul.mubr.f32.gmra.mxu0 %v12868_v44  ;;  %v1340_v27 = vadd.f32 %v1296_v21, %v1239_v8  ;;  %v12882_v51 = vmul.f32 %v12649_v20, %v12736_v14 }
 0x1c6   :  { %v1541_v23 = vadd.f32 %v1497_v25, %v1440_v11  ;;  %v579_v59 = vmul.f32 %v12504_v16, %v12769_v32  ;;  %v12888_v54 = vmax.f32 %v1790_v2, 0.0  ;;  %v1039_v3 = vadd.f32 %v995_v36, %v938_v17  ;;  %9660 = vmatprep.mubr.msk.f32.mxu0 %vm11433_vm0, %v14639_v48 }
 0x1c7   :  { %v1240_v34 = vadd.f32 %v1196_v46, %v1139_v38  ;;  %v1397_v62 = vmul.f32 %v12513_v43, %v12769_v32  ;;  %v1598_v8 = vmul.f32 %v12558_v63, %v12769_v32  ;;  %v580_v14 = vmul.f32 %v12504_v16, %v12780_v49 }
 0x1c8   :  { %14644 = vst [vmem:[#allocation39_spill] sm:$0xff] %v12888_v54  ;;  %v1639_v56 = vadd.f32 %v12791_v42, %v12810_v18  ;;  %v895_v6 = vmul.f32 %v12460_v4, %v12807_v40  ;;  %9750 = vmatmul.mubr.f32.gmra.mxu1 %v12888_v54  ;;  %v996_v30 = vmul.f32 %v12479_v24, %v12780_v49 }
 0x1c9   :  { %v1197_v10 = vmul.f32 %v12489_v9, %v12780_v49  ;;  %v1096_v32 = vmul.f32 %v12464_v19, %v12807_v40  ;;  %v1297_v11 = vmul.f32 %v12528_v53, %v12807_v40  ;;  %v1441_v42 = vadd.f32 %v1397_v62, %v1340_v27  ;;  %9752 = vmatprep.mubr.msk.f32.mxu1 %vm11433_vm0, %v14639_v48 }
 0x1ca   :  { %v1398_v18 = vmul.f32 %v12513_v43, %v12780_v49  ;;  %v1740_v61 = vadd.f32 %v12814_v37, %v1639_v56  ;;  %v939_v36 = vadd.f32 %v895_v6, %v579_v59  ;;  %v1642_v38 = vadd.f32 %v1598_v8, %v1541_v23  ;;  %v12925_v37 = vpop.permute.xlu0 %495 }
 0x1cb   :  { %v1140_v21 = vadd.f32 %v1096_v32, %v1039_v3  ;;  %v1341_v25 = vadd.f32 %v1297_v11, %v1240_v34  ;;  %v1498_v17 = vmul.f32 %v12546_v52, %v12807_v40  ;;  %v896_v27 = vmul.f32 %v12460_v4, %v12822_v15  ;;  %v12937_v32 = vpop.permute.xlu1 %500 }
 0x1cc   :  { %v1791_v2 = vadd.f32 %v12709_v29, %v1740_v61  ;;  %v1040_v46 = vadd.f32 %v996_v30, %v939_v36  ;;  %v1097_v62 = vmul.f32 %v12464_v19, %v12822_v15  ;;  %v12929_v59 = vmul.f32 %v12558_v63, %v12780_v49 }
 0x1cd   :  { %v1241_v23 = vadd.f32 %v1197_v10, %v1140_v21  ;;  %v1442_v3 = vadd.f32 %v1398_v18, %v1341_v25  ;;  %v1741_v34 = vadd.f32 %v1697_v55, %v1640_v0  ;;  %v1298_v6 = vmul.f32 %v12528_v53, %v12822_v15 }
 0x1ce   :  { %v12931_v8 = vmax.f32 %v1791_v2, 0.0  ;;  %v1141_v56 = vadd.f32 %v1097_v62, %v1040_v46  ;;  %v997_v30 = vmul.f32 %v12479_v24, %v12848_v7  ;;  %v1699_v11 = vmul.f32 %v12649_v20, %v12807_v40 }
 0x1cf   :  { %v1499_v49 = vmul.f32 %v12546_v52, %v12822_v15  ;;  %v1792_v10 = vadd.f32 %v12709_v29, %v1741_v34  ;;  %v1198_v0 = vmul.f32 %v12489_v9, %v12848_v7  ;;  %v12947_v55 = vadd.f32 %v1498_v17, %v1441_v42  ;;  %v12965_v17 = vpop.permute.xlu0 %811 }
 0x1d0   :  { %14645 = vst [vmem:[#allocation40_spill] sm:$0xff] %v12931_v8  ;;  %9661 = vmatmul.mubr.f32.gmra.mxu0 %v12931_v8  ;;  %v940_v18 = vadd.f32 %v896_v27, %v580_v14  ;;  %v1342_v61 = vadd.f32 %v1298_v6, %v1241_v23  ;;  %v12951_v36 = vmul.f32 %v12649_v20, %v12822_v15 }
 0x1d1   :  { %v1543_v21 = vadd.f32 %v1499_v49, %v1442_v3  ;;  %v12953_v40 = vmax.f32 %v1792_v10, 0.0  ;;  %v581_v25 = vmul.f32 %v12504_v16, %v12848_v7  ;;  %v1242_v2 = vadd.f32 %v1198_v0, %v1141_v56  ;;  %9663 = vmatprep.mubr.msk.f32.mxu0 %vm11433_vm0, %v14639_v48 }
 0x1d2   :  { %v1041_v46 = vadd.f32 %v997_v30, %v940_v18  ;;  %v1399_v42 = vmul.f32 %v12513_v43, %v12848_v7  ;;  %v1600_v14 = vmul.f32 %v12558_v63, %v12848_v7  ;;  %v582_v15 = vmul.f32 %v12504_v16, %v12857_v47 }
 0x1d3   :  { %14646 = vst [vmem:[#allocation41_spill] sm:$0xff] %v12953_v40  ;;  %9753 = vmatmul.mubr.f32.gmra.mxu1 %v12953_v40  ;;  %v1641_v27 = vadd.f32 %v12861_v1, %v12874_v41  ;;  %v897_v62 = vmul.f32 %v12460_v4, %v12886_v22  ;;  %v1098_v23 = vmul.f32 %v12464_v19, %v12886_v22  ;;  %v12984_v1 = vpop.permute.xlu1 %816 }
 0x1d4   :  { %v1299_v3 = vmul.f32 %v12528_v53, %v12886_v22  ;;  %v1443_v7 = vadd.f32 %v1399_v42, %v1342_v61  ;;  %v998_v34 = vmul.f32 %v12479_v24, %v12857_v47  ;;  %v1199_v56 = vmul.f32 %v12489_v9, %v12857_v47  ;;  %9755 = vmatprep.mubr.msk.f32.mxu1 %vm11433_vm0, %v14639_v48 }
 0x1d5   :  { %v1400_v6 = vmul.f32 %v12513_v43, %v12857_v47  ;;  %v1742_v41 = vadd.f32 %v12882_v51, %v1641_v27  ;;  %v941_v30 = vadd.f32 %v897_v62, %v581_v25  ;;  %v1142_v49 = vadd.f32 %v1098_v23, %v1041_v46  ;;  %v13002_v46 = vpop.permute.xlu0 %505 }
 0x1d6   :  { %v1343_v10 = vadd.f32 %v1299_v3, %v1242_v2  ;;  %v1644_v0 = vadd.f32 %v1600_v14, %v1543_v21  ;;  %v1500_v18 = vmul.f32 %v12546_v52, %v12886_v22  ;;  %v898_v61 = vmul.f32 %v12460_v4, %v12902_v26 }
 0x1d7   :  { %v1099_v42 = vmul.f32 %v12464_v19, %v12902_v26  ;;  %v1793_v40 = vadd.f32 %v12709_v29, %v1742_v41  ;;  %v1042_v54 = vadd.f32 %v998_v34, %v941_v30  ;;  %v1243_v8 = vadd.f32 %v1199_v56, %v1142_v49 }
 0x1d8   :  { %v1444_v44 = vadd.f32 %v1400_v6, %v1343_v10  ;;  %v12996_v51 = vmul.f32 %v12558_v63, %v12857_v47  ;;  %v1701_v21 = vmul.f32 %v12649_v20, %v12886_v22  ;;  %v1743_v25 = vadd.f32 %v1699_v11, %v1642_v38  ;;  %v13015_v11 = vpop.permute.xlu1 %510 }
 0x1d9   :  { %v999_v2 = vmul.f32 %v12479_v24, %v12925_v37  ;;  %v13004_v14 = vmax.f32 %v1793_v40, 0.0  ;;  %v1143_v27 = vadd.f32 %v1099_v42, %v1042_v54  ;;  %v1300_v62 = vmul.f32 %v12528_v53, %v12902_v26 }
 0x1da   :  { %v1501_v23 = vmul.f32 %v12546_v52, %v12902_v26  ;;  %v13010_v47 = vadd.f32 %v1500_v18, %v1443_v7  ;;  %v942_v3 = vadd.f32 %v898_v61, %v582_v15  ;;  %v1794_v22 = vadd.f32 %v12709_v29, %v1743_v25  ;;  %v13047_v61 = vpop.permute.xlu0 %821 }
 0x1db   :  { %v1200_v38 = vmul.f32 %v12489_v9, %v12925_v37  ;;  %9664 = vmatmul.mubr.f32.gmra.mxu0 %v13004_v14  ;;  %v1344_v40 = vadd.f32 %v1300_v62, %v1243_v8  ;;  %v13020_v34 = vmul.f32 %v12649_v20, %v12902_v26  ;;  %v583_v7 = vmul.f32 %v12504_v16, %v12925_v37 }
 0x1dc   :  { %v1545_v54 = vadd.f32 %v1501_v23, %v1444_v44  ;;  %v13024_v56 = vmax.f32 %v1794_v22, 0.0  ;;  %v1043_v15 = vadd.f32 %v999_v2, %v942_v3  ;;  %v1401_v41 = vmul.f32 %v12513_v43, %v12925_v37  ;;  %9666 = vmatprep.mubr.msk.f32.mxu0 %vm11433_vm0, %v14639_v48  ;;  %v13058_v3 = vpop.permute.xlu1 %826 }
 0x1dd   :  { %v1244_v6 = vadd.f32 %v1200_v38, %v1143_v27  ;;  %v1602_v44 = vmul.f32 %v12558_v63, %v12925_v37  ;;  %v584_v26 = vmul.f32 %v12504_v16, %v12937_v32  ;;  %v1643_v8 = vadd.f32 %v12929_v59, %v12947_v55 }
 0x1de   :  { %v899_v30 = vmul.f32 %v12460_v4, %v12965_v17  ;;  %9756 = vmatmul.mubr.f32.gmra.mxu1 %v13024_v56  ;;  %v1000_v49 = vmul.f32 %v12479_v24, %v12937_v32  ;;  %v1201_v10 = vmul.f32 %v12489_v9, %v12937_v32  ;;  %v1100_v37 = vmul.f32 %v12464_v19, %v12965_v17 }
 0x1df   :  { %v1301_v18 = vmul.f32 %v12528_v53, %v12965_v17  ;;  %v1445_v59 = vadd.f32 %v1401_v41, %v1344_v40  ;;  %v1402_v55 = vmul.f32 %v12513_v43, %v12937_v32  ;;  %v1744_v42 = vadd.f32 %v12951_v36, %v1643_v8  ;;  %9758 = vmatprep.mubr.msk.f32.mxu1 %vm11433_vm0, %v14639_v48 }
 0x1e0   :  { %v943_v25 = vadd.f32 %v899_v30, %v583_v7  ;;  %v13054_v2 = vadd.f32 %v1602_v44, %v1545_v54  ;;  %v1144_v27 = vadd.f32 %v1100_v37, %v1043_v15  ;;  %v1502_v23 = vmul.f32 %v12546_v52, %v12965_v17 }
 0x1e1   :  { %v1345_v62 = vadd.f32 %v1301_v18, %v1244_v6  ;;  %v1795_v22 = vadd.f32 %v12709_v29, %v1744_v42  ;;  %v900_v40 = vmul.f32 %v12460_v4, %v12984_v1  ;;  %v1101_v36 = vmul.f32 %v12464_v19, %v12984_v1 }
 0x1e2   :  { %v1044_v38 = vadd.f32 %v1000_v49, %v943_v25  ;;  %v13067_v54 = vmul.f32 %v12558_v63, %v12937_v32  ;;  %v1245_v7 = vadd.f32 %v1201_v10, %v1144_v27  ;;  %v1745_v6 = vadd.f32 %v1701_v21, %v1644_v0  ;;  %v13082_v21 = vpop.permute.xlu0 %515 }
 0x1e3   :  { %v1446_v15 = vadd.f32 %v1402_v55, %v1345_v62  ;;  %v13069_v41 = vmax.f32 %v1795_v22, 0.0  ;;  %v1302_v8 = vmul.f32 %v12528_v53, %v12984_v1  ;;  %v1001_v30 = vmul.f32 %v12479_v24, %v13002_v46  ;;  %v13097_v22 = vpop.permute.xlu1 %831 }
 0x1e4   :  { %v1145_v44 = vadd.f32 %v1101_v36, %v1044_v38  ;;  %v1703_v49 = vmul.f32 %v12649_v20, %v12965_v17  ;;  %v1503_v37 = vmul.f32 %v12546_v52, %v12984_v1  ;;  %v1796_v32 = vadd.f32 %v12709_v29, %v1745_v6 }
 0x1e5   :  { %v1202_v0 = vmul.f32 %v12489_v9, %v13002_v46  ;;  %9667 = vmatmul.mubr.f32.gmra.mxu0 %v13069_v41  ;;  %v13085_v10 = vadd.f32 %v1502_v23, %v1445_v59  ;;  %v944_v18 = vadd.f32 %v900_v40, %v584_v26  ;;  %v1346_v55 = vadd.f32 %v1302_v8, %v1245_v7 }
 0x1e6   :  { %v13089_v42 = vmul.f32 %v12649_v20, %v12984_v1  ;;  %v1547_v17 = vadd.f32 %v1503_v37, %v1446_v15  ;;  %v13091_v25 = vmax.f32 %v1796_v32, 0.0  ;;  %v585_v27 = vmul.f32 %v12504_v16, %v13002_v46  ;;  %9669 = vmatprep.mubr.msk.f32.mxu0 %vm11433_vm0, %v14639_v48  ;;  %v13123_v37 = vpop.permute.xlu0 %520 }
 0x1e7   :  { %v1246_v62 = vadd.f32 %v1202_v0, %v1145_v44  ;;  %v1045_v59 = vadd.f32 %v1001_v30, %v944_v18  ;;  %v1403_v26 = vmul.f32 %v12513_v43, %v13002_v46  ;;  %v1604_v1 = vmul.f32 %v12558_v63, %v13002_v46 }
 0x1e8   :  { %v586_v23 = vmul.f32 %v12504_v16, %v13015_v11  ;;  %9759 = vmatmul.mubr.f32.gmra.mxu1 %v13091_v25  ;;  %v1645_v38 = vadd.f32 %v12996_v51, %v13010_v47  ;;  %v901_v40 = vmul.f32 %v12460_v4, %v13047_v61  ;;  %v1102_v36 = vmul.f32 %v12464_v19, %v13047_v61 }
 0x1e9   :  { %v1303_v7 = vmul.f32 %v12528_v53, %v13047_v61  ;;  %v1447_v15 = vadd.f32 %v1403_v26, %v1346_v55  ;;  %v1002_v46 = vmul.f32 %v12479_v24, %v13015_v11  ;;  %v1203_v6 = vmul.f32 %v12489_v9, %v13015_v11  ;;  %9761 = vmatprep.mubr.msk.f32.mxu1 %vm11433_vm0, %v14639_v48 }
 0x1ea   :  { %v902_v51 = vmul.f32 %v12460_v4, %v13058_v3  ;;  %v1746_v47 = vadd.f32 %v13020_v34, %v1645_v38  ;;  %v945_v44 = vadd.f32 %v901_v40, %v585_v27  ;;  %v1146_v8 = vadd.f32 %v1102_v36, %v1045_v59 }
 0x1eb   :  { %v1347_v30 = vadd.f32 %v1303_v7, %v1246_v62  ;;  %v13125_v32 = vadd.f32 %v1604_v1, %v1547_v17  ;;  %v1404_v0 = vmul.f32 %v12513_v43, %v13015_v11  ;;  %v1504_v18 = vmul.f32 %v12546_v52, %v13047_v61  ;;  %v13136_v62 = vpop.permute.xlu1 %836 }
 0x1ec   :  { %v1103_v55 = vmul.f32 %v12464_v19, %v13058_v3  ;;  %v1797_v4 = vadd.f32 %v12709_v29, %v1746_v47  ;;  %v1046_v26 = vadd.f32 %v1002_v46, %v945_v44  ;;  %v1247_v34 = vadd.f32 %v1203_v6, %v1146_v8  ;;  %v13161_v44 = vld [vmem:[#allocation2 + $0x3] ss:$0 sm:$0xff] }
 0x1ed   :  { %v1304_v27 = vmul.f32 %v12528_v53, %v13058_v3  ;;  %v1448_v17 = vadd.f32 %v1404_v0, %v1347_v30  ;;  %v946_v59 = vadd.f32 %v902_v51, %v586_v23  ;;  %v1747_v1 = vadd.f32 %v1703_v49, %v13054_v2  ;;  %v13157_v49 = vld [vmem:[#allocation2 + $0x1] ss:$0 sm:$0xff] }
 0x1ee   :  { %v1003_v38 = vmul.f32 %v12479_v24, %v13082_v21  ;;  %v13141_v40 = vmax.f32 %v1797_v4, 0.0  ;;  %v1147_v36 = vadd.f32 %v1103_v55, %v1046_v26  ;;  %v587_v7 = vmul.f32 %v12504_v16, %v13082_v21 }
 0x1ef   :  { %v1348_v19 = vadd.f32 %v1304_v27, %v1247_v34  ;;  %v1505_v46 = vmul.f32 %v12546_v52, %v13058_v3  ;;  %v1798_v6 = vadd.f32 %v12709_v29, %v1747_v1  ;;  %v1204_v23 = vmul.f32 %v12489_v9, %v13082_v21  ;;  %v13165_v9 = vpop.permute.xlu0 %525  ;;  %v13175_v27 = vpop.permute.xlu1 %841 }
 0x1f0   :  { %v1047_v47 = vadd.f32 %v1003_v38, %v946_v59  ;;  %v13152_v2 = vmul.f32 %v12558_v63, %v13015_v11  ;;  %9670 = vmatmul.mubr.f32.gmra.mxu0 %v13141_v40  ;;  %v1405_v24 = vmul.f32 %v12513_v43, %v13082_v21  ;;  %v903_v51 = vmul.f32 %v13157_v49, %v13097_v22  ;;  %v13192_v38 = vld [vmem:[#allocation2 + $0x2] ss:$0 sm:$0xff] }
 0x1f1   :  { %v1104_v8 = vmul.f32 %v13161_v44, %v13097_v22  ;;  %v1705_v11 = vmul.f32 %v12649_v20, %v13047_v61  ;;  %v1549_v30 = vadd.f32 %v1505_v46, %v1448_v17  ;;  %v13169_v0 = vmax.f32 %v1798_v6, 0.0  ;;  %9672 = vmatprep.mubr.msk.f32.mxu0 %vm11433_vm0, %v14639_v48 }
 0x1f2   :  { %v1248_v55 = vadd.f32 %v1204_v23, %v1147_v36  ;;  %v13173_v43 = vadd.f32 %v1504_v18, %v1447_v15  ;;  %v1449_v4 = vadd.f32 %v1405_v24, %v1348_v19  ;;  %v947_v26 = vadd.f32 %v903_v51, %v587_v7  ;;  %v13196_v36 = vld [vmem:[#allocation2 + $0x4] ss:$0 sm:$0xff]  ;;  %v13210_v24 = vld [vmem:[#allocation2 + $0x6] ss:$0 sm:$0xff] }
 0x1f3   :  { %14647 = vst [vmem:[#allocation42_spill] sm:$0xff] %v13169_v0  ;;  %v1148_v34 = vadd.f32 %v1104_v8, %v1047_v47  ;;  %9762 = vmatmul.mubr.f32.gmra.mxu1 %v13169_v0  ;;  %v1606_v59 = vmul.f32 %v12558_v63, %v13082_v21  ;;  %v1305_v61 = vmul.f32 %v12528_v53, %v13097_v22  ;;  %v531_v47 = vpop.permute.xlu0 %530 }
 0x1f4   :  { %v1647_v17 = vadd.f32 %v13067_v54, %v13085_v10  ;;  %v588_v15 = vmul.f32 %v12504_v16, %v13123_v37  ;;  %v13188_v18 = vmul.f32 %v12649_v20, %v13058_v3  ;;  %v1506_v1 = vmul.f32 %v12546_v52, %v13097_v22  ;;  %9764 = vmatprep.mubr.msk.f32.mxu1 %vm11433_vm0, %v14639_v48 }
 0x1f5   :  { %v1004_v21 = vmul.f32 %v13192_v38, %v13123_v37  ;;  %v1205_v54 = vmul.f32 %v13196_v36, %v13123_v37  ;;  %v13202_v16 = vadd.f32 %v1606_v59, %v1549_v30  ;;  %v1349_v3 = vadd.f32 %v1305_v61, %v1248_v55  ;;  %v13223_v59 = vpop.permute.xlu1 %846 }
 0x1f6   :  { %v1748_v10 = vadd.f32 %v13089_v42, %v1647_v17  ;;  %v904_v52 = vmul.f32 %v13157_v49, %v13136_v62  ;;  %v1550_v19 = vadd.f32 %v1506_v1, %v1449_v4  ;;  %v1105_v6 = vmul.f32 %v13161_v44, %v13136_v62 }
 0x1f7   :  { %v1048_v7 = vadd.f32 %v1004_v21, %v947_v26  ;;  %v1249_v46 = vadd.f32 %v1205_v54, %v1148_v34  ;;  %v1406_v51 = vmul.f32 %v13210_v24, %v13123_v37  ;;  %v1306_v42 = vmul.f32 %v12528_v53, %v13136_v62  ;;  %v13219_v26 = vld [vmem:[#allocation2] ss:$0 sm:$0xff] }
 0x1f8   :  { %v1799_v23 = vadd.f32 %v12709_v29, %v1748_v10  ;;  %v948_v8 = vadd.f32 %v904_v52, %v588_v15  ;;  %v1607_v30 = vmul.f32 %v12558_v63, %v13123_v37  ;;  %v1749_v4 = vadd.f32 %v1705_v11, %v13125_v32  ;;  %v13239_v10 = vld [vmem:[#allocation2 + $0x5] ss:$0 sm:$0xff] }
 0x1f9   :  { %v1149_v55 = vadd.f32 %v1105_v6, %v1048_v7  ;;  %v589_v34 = vmul.f32 %v13219_v26, %v13165_v9  ;;  %v1350_v17 = vadd.f32 %v1306_v42, %v1249_v46  ;;  %v1005_v15 = vmul.f32 %v13192_v38, %v13165_v9 }
 0x1fa   :  { %v13225_v61 = vmax.f32 %v1799_v23, 0.0  ;;  %v1206_v53 = vmul.f32 %v13196_v36, %v13165_v9  ;;  %v1450_v63 = vadd.f32 %v1406_v51, %v1349_v3  ;;  %v1800_v37 = vadd.f32 %v12709_v29, %v1749_v4  ;;  %v13249_v23 = vpop.permute.xlu0 %535  ;;  %v13251_v51 = vld [vmem:[#allocation2 + $0x7] ss:$0 sm:$0xff] }
 0x1fb   :  { %v1407_v32 = vmul.f32 %v13210_v24, %v13165_v9  ;;  %v905_v11 = vmul.f32 %v13157_v49, %v13175_v27  ;;  %v1049_v1 = vadd.f32 %v1005_v15, %v948_v8  ;;  %v1106_v54 = vmul.f32 %v13161_v44, %v13175_v27  ;;  %v13261_v15 = vpop.permute.xlu1 %851 }
 0x1fc   :  { %9673 = vmatmul.mubr.f32.gmra.mxu0 %v13225_v61  ;;  %v1250_v21 = vadd.f32 %v1206_v53, %v1149_v55  ;;  %v1307_v3 = vmul.f32 %v13239_v10, %v13175_v27  ;;  %v1707_v52 = vmul.f32 %v12649_v20, %v13097_v22  ;;  %v1651_v7 = vadd.f32 %v1607_v30, %v1550_v19 }
 0x1fd   :  { %v13245_v46 = vmax.f32 %v1800_v37, 0.0  ;;  %9675 = vmatprep.mubr.msk.f32.mxu0 %vm11433_vm0, %v14639_v48  ;;  %v949_v6 = vadd.f32 %v905_v11, %v589_v34  ;;  %v1507_v8 = vmul.f32 %v13251_v51, %v13136_v62  ;;  %v1451_v42 = vadd.f32 %v1407_v32, %v1350_v17 }
 0x1fe   :  { %v1150_v55 = vadd.f32 %v1106_v54, %v1049_v1  ;;  %v1351_v4 = vadd.f32 %v1307_v3, %v1250_v21  ;;  %v1649_v22 = vadd.f32 %v13152_v2, %v13173_v43  ;;  %v590_v19 = vmul.f32 %v13219_v26, %v531_v47  ;;  %v13273_v21 = vld [vmem:[#allocation2 + $0x8] ss:$0 sm:$0xff] }
 0x1ff   :  { %14648 = vst [vmem:[#allocation43_spill] sm:$0xff] %v13245_v46  ;;  %9765 = vmatmul.mubr.f32.gmra.mxu1 %v13245_v46  ;;  %v1006_v30 = vmul.f32 %v13192_v38, %v531_v47  ;;  %v1207_v34 = vmul.f32 %v13196_v36, %v531_v47  ;;  %v1551_v53 = vadd.f32 %v1507_v8, %v1450_v63 }
 0x200   :  { %v1508_v37 = vmul.f32 %v13251_v51, %v13175_v27  ;;  %v1408_v17 = vmul.f32 %v13210_v24, %v531_v47  ;;  %9767 = vmatprep.mubr.msk.f32.mxu1 %vm11433_vm0, %v14639_v48  ;;  %v906_v2 = vmul.f32 %v13157_v49, %v13223_v59  ;;  %v1750_v43 = vadd.f32 %v13188_v18, %v1649_v22 }
 0x201   :  { %v1050_v32 = vadd.f32 %v1006_v30, %v949_v6  ;;  %v1251_v11 = vadd.f32 %v1207_v34, %v1150_v55  ;;  %v1107_v1 = vmul.f32 %v13161_v44, %v13223_v59  ;;  %v1608_v63 = vmul.f32 %v13273_v21, %v13165_v9  ;;  %v13283_v55 = vpop.permute.xlu0 %540 }
 0x202   :  { %v13277_v54 = vadd.f32 %v1408_v17, %v1351_v4  ;;  %v950_v3 = vadd.f32 %v906_v2, %v590_v19  ;;  %v1308_v8 = vmul.f32 %v13239_v10, %v13223_v59  ;;  %v1552_v46 = vadd.f32 %v1508_v37, %v1451_v42  ;;  %v13298_v37 = vpop.permute.xlu1 %856 }
 0x203   :  { %v1801_v0 = vadd.f32 %v12709_v29, %v1750_v43  ;;  %v1609_v18 = vmul.f32 %v13273_v21, %v531_v47  ;;  %v1151_v6 = vadd.f32 %v1107_v1, %v1050_v32  ;;  %v1751_v30 = vadd.f32 %v1707_v52, %v13202_v16 }
 0x204   :  { %v13285_v22 = vadd.f32 %v1308_v8, %v1251_v11  ;;  %v591_v9 = vmul.f32 %v13219_v26, %v13249_v23  ;;  %v1007_v4 = vmul.f32 %v13192_v38, %v13249_v23  ;;  %v1708_v42 = vmul.f32 %v12649_v20, %v13136_v62 }
 0x205   :  { %v1652_v19 = vadd.f32 %v1608_v63, %v1551_v53  ;;  %v13294_v34 = vmax.f32 %v1801_v0, 0.0  ;;  %v1208_v47 = vmul.f32 %v13196_v36, %v13249_v23  ;;  %v1802_v17 = vadd.f32 %v12709_v29, %v1751_v30 }
 0x206   :  { %v1051_v16 = vadd.f32 %v1007_v4, %v950_v3  ;;  %v907_v52 = vmul.f32 %v13157_v49, %v13261_v15  ;;  %v1108_v2 = vmul.f32 %v13161_v44, %v13261_v15  ;;  %v1709_v62 = vmul.f32 %v12649_v20, %v13175_v27 }
 0x207   :  { %9676 = vmatmul.mubr.f32.gmra.mxu0 %v13294_v34  ;;  %v1653_v0 = vadd.f32 %v1609_v18, %v1552_v46  ;;  %v1252_v53 = vadd.f32 %v1208_v47, %v1151_v6  ;;  %v1309_v43 = vmul.f32 %v13239_v10, %v13261_v15  ;;  %v13310_v32 = vmax.f32 %v1802_v17, 0.0  ;;  %v13320_v18 = vpop.permute.xlu0 %957  ;;  %v13336_v47 = vpop.permute.xlu1 %1058 }
 0x208   :  { %9678 = vmatprep.mubr.msk.f32.mxu0 %vm11433_vm0, %v14639_v48  ;;  %v951_v11 = vadd.f32 %v907_v52, %v591_v9  ;;  %v1152_v1 = vadd.f32 %v1108_v2, %v1051_v16  ;;  %v1752_v63 = vadd.f32 %v1708_v42, %v1651_v7  ;;  %v592_v8 = vmul.f32 %v13219_v26, %v13283_v55 }
 0x209   :  { %v1353_v3 = vadd.f32 %v1309_v43, %v1252_v53  ;;  %v1008_v27 = vmul.f32 %v13192_v38, %v13283_v55  ;;  %v1209_v46 = vmul.f32 %v13196_v36, %v13283_v55  ;;  %v1710_v6 = vmul.f32 %v12649_v20, %v13223_v59  ;;  %9768 = vmatmul.mubr.f32.gmra.mxu1 %v13310_v32 }
 0x20a   :  { %v1803_v30 = vadd.f32 %v12709_v29, %v1752_v63  ;;  %v1410_v7 = vmul.f32 %v13210_v24, %v13283_v55  ;;  %v908_v26 = vmul.f32 %v13157_v49, %v13298_v37  ;;  %9770 = vmatprep.mubr.msk.f32.mxu1 %vm11433_vm0, %v14639_v48  ;;  %v1109_v42 = vmul.f32 %v13161_v44, %v13298_v37 }
 0x20b   :  { %v1052_v9 = vadd.f32 %v1008_v27, %v951_v11  ;;  %v1253_v4 = vadd.f32 %v1209_v46, %v1152_v1  ;;  %v1310_v20 = vmul.f32 %v13239_v10, %v13298_v37  ;;  %v1511_v52 = vmul.f32 %v13251_v51, %v13298_v37 }
 0x20c   :  { %v13338_v17 = vmax.f32 %v1803_v30, 0.0  ;;  %v1454_v16 = vadd.f32 %v1410_v7, %v1353_v3  ;;  %v1753_v49 = vadd.f32 %v1709_v62, %v1652_v19  ;;  %v1754_v2 = vadd.f32 %v1710_v6, %v1653_v0  ;;  %v13355_v3 = vpop.permute.xlu0 %1159  ;;  %v13365_v7 = vpop.permute.xlu1 %1260 }
 0x20d   :  { %v952_v53 = vadd.f32 %v908_v26, %v592_v8  ;;  %v1009_v43 = vmul.f32 %v13192_v38, %v13320_v18  ;;  %v1153_v11 = vadd.f32 %v1109_v42, %v1052_v9  ;;  %v1210_v63 = vmul.f32 %v13196_v36, %v13320_v18 }
 0x20e   :  { %9679 = vmatmul.mubr.f32.gmra.mxu0 %v13338_v17  ;;  %v1804_v1 = vadd.f32 %v12709_v29, %v1753_v49  ;;  %v13348_v27 = vadd.f32 %v1310_v20, %v1253_v4  ;;  %v1805_v19 = vadd.f32 %v12709_v29, %v1754_v2  ;;  %v13353_v0 = vadd.f32 %v1511_v52, %v1454_v16  ;;  %v2617_v20 = vld [vmem:[#allocation6 + $0x278] sm:$0xff] }
 0x20f   :  { %9681 = vmatprep.mubr.msk.f32.mxu0 %vm11433_vm0, %v14639_v48  ;;  %v1053_v62 = vadd.f32 %v1009_v43, %v952_v53  ;;  %v1254_v8 = vadd.f32 %v1210_v63, %v1153_v11  ;;  %v1110_v46 = vmul.f32 %v13161_v44, %v13336_v47  ;;  %v1311_v30 = vmul.f32 %v13239_v10, %v13336_v47  ;;  %v2813_v52 = vld [vmem:[#allocation6 + $0x2f8] sm:$0xff] }
 0x210   :  { %v13357_v38 = vmax.f32 %v1804_v1, 0.0  ;;  %v13361_v6 = vmax.f32 %v1805_v19, 0.0  ;;  %v1211_v26 = vmul.f32 %v13196_v36, %v13355_v3  ;;  %v1412_v9 = vmul.f32 %v13210_v24, %v13355_v3 }
 0x211   :  { %v1154_v29 = vadd.f32 %v1110_v46, %v1053_v62  ;;  %v1355_v44 = vadd.f32 %v1311_v30, %v1254_v8  ;;  %v1312_v42 = vmul.f32 %v13239_v10, %v13365_v7  ;;  %v1513_v36 = vmul.f32 %v13251_v51, %v13365_v7  ;;  %v2616_v10 = vld [vmem:[#allocation6 + $0x270] sm:$0xff]  ;;  %v2614_v46 = vld [vmem:[#allocation6 + $0x260] sm:$0xff] }
 0x212   :  { %9771 = vmatmul.mubr.f32.gmra.mxu1 %v13357_v38  ;;  %9682 = vmatmul.mubr.f32.gmra.mxu0 %v13361_v6  ;;  %v14649_v49 = vmax.f32 %v12112_v31, 0.0  ;;  %v14650_v53 = vmax.f32 %v12089_v5, 0.0  ;;  %v1509_v11 = vmul.f32 %v13251_v51, %v13223_v59  ;;  %v2812_v5 = vld [vmem:[#allocation6 + $0x2f0] sm:$0xff]  ;;  %v2615_v59 = vld [vmem:[#allocation6 + $0x268] sm:$0xff]  ;;  %v2810_v30 = vld [vmem:[#allocation6 + $0x2e0] sm:$0xff] }
 0x213   :  { %9894 = vmatprep.mubr.msk.f32.mxu1 %vm11433_vm0, %v14639_v48  ;;  %9805 = vmatprep.mubr.msk.f32.mxu0 %vm11433_vm0, %v14639_v48  ;;  %v1255_v4 = vadd.f32 %v1211_v26, %v1154_v29  ;;  %v1456_v16 = vadd.f32 %v1412_v9, %v1355_v44  ;;  %v2613_v29 = vld [vmem:[#allocation6 + $0x258] sm:$0xff] }
 0x214   :  { %v13398_v63 = vadd.f32 %v1509_v11, %v13277_v54  ;;  %v2811_v54 = vld [vmem:[#allocation6 + $0x2e8] sm:$0xff]  ;;  %v2809_v9 = vld [vmem:[#allocation6 + $0x2d8] sm:$0xff]  ;;  %v2610_v11 = vld [vmem:[#allocation6 + $0x240] sm:$0xff] }
 0x215   :  { %v13383_v2 = vadd.f32 %v1312_v42, %v1255_v4  ;;  %v13389_v43 = vadd.f32 %v1513_v36, %v1456_v16  ;;  %v2612_v4 = vld [vmem:[#allocation6 + $0x250] sm:$0xff] }
 0x216   :  { %9895 = vmatmul.mubr.f32.vlgmr.msra.gmra.mxu1 %v14649_v49  ;;  %9806 = vmatmul.mubr.f32.vlgmr.msra.gmra.mxu0 %v14650_v53  ;;  %v1955_v31 = vpop.f32.mrf.mxu0  ;;  %v2808_v36 = vld [vmem:[#allocation6 + $0x2d0] sm:$0xff]  ;;  %v14652_v49 = vld [vmem:[#allocation33_spill] sm:$0xff]  ;;  %v2807_v53 = vld [vmem:[#allocation6 + $0x2c8] sm:$0xff] }
 0x217   :  { %9897 = vmatprep.mubr.msk.f32.mxu1 %vm11433_vm0, %v14639_v48  ;;  %14651 = vst [vmem:[#allocation44_spill] sm:$0xff] %v13389_v43  ;;  %9952 = vmatpush3.msra.mxu0 %v2617_v20  ;;  %v2115_v1 = vpop.f32.mrf.mxu1  ;;  %v14663_v43 = vld [vmem:[#allocation42_spill] sm:$0xff] }
 0x218   :  { %10041 = vmatpush3.msra.mxu1 %v2813_v52  ;;  %9808 = vmatprep.mubr.msk.f32.mxu0 %vm11433_vm0, %v14639_v48  ;;  %v13403_v19 = vadd.f32 %v2115_v1, %v1955_v31  ;;  %v9629_v62 = vpop.f32.mrf.mxu0  ;;  %v2611_v52 = vld [vmem:[#allocation6 + $0x248] sm:$0xff] }
 0x219   :  { %9953 = vmatprep.subr.mxu0 %v14639_v48  ;;  %10042 = vmatprep.subr.mxu1 %v14639_v48  ;;  %v9718_v8 = vpop.f32.mrf.mxu1  ;;  %v2609_v62 = vld [vmem:[#allocation6 + $0x238] sm:$0xff] }
 0x21a   :  { %9898 = vmatmul.mubr.f32.gmra.mxu1 %v12236_v39  ;;  %9954 = vmatpush3.msra.mxu0 %v2616_v10  ;;  %v14653_v10 = vld [vmem:[#allocation32_spill] sm:$0xff] }
 0x21b   :  { %9809 = vmatmul.mubr.f32.gmra.mxu0 %v12209_v58  ;;  %9900 = vmatprep.mubr.msk.f32.mxu1 %vm11433_vm0, %v14639_v48 }
 0x21c   :  { %9811 = vmatprep.mubr.msk.f32.mxu0 %vm11433_vm0, %v14639_v48  ;;  %10043 = vmatpush3.msra.mxu1 %v2812_v5  ;;  %v2806_v5 = vld [vmem:[#allocation6 + $0x2c0] sm:$0xff] }
 0x21d   :  { %9955 = vmatprep.subr.mxu0 %v14639_v48  ;;  %10044 = vmatprep.subr.mxu1 %v14639_v48 }
 0x21e   :  { %9901 = vmatmul.mubr.f32.gmra.mxu1 %v12315_v33  ;;  %9956 = vmatpush3.msra.mxu0 %v2615_v59  ;;  %v14654_v59 = vld [vmem:[#allocation34_spill] sm:$0xff] }
 0x21f   :  { %9812 = vmatmul.mubr.f32.gmra.mxu0 %v12262_v45  ;;  %9903 = vmatprep.mubr.msk.f32.mxu1 %vm11433_vm0, %v14639_v48 }
 0x220   :  { %9814 = vmatprep.mubr.msk.f32.mxu0 %vm11433_vm0, %v14639_v48  ;;  %10045 = vmatpush3.msra.mxu1 %v2811_v54 }
 0x221   :  { %9957 = vmatprep.subr.mxu0 %v14639_v48  ;;  %10046 = vmatprep.subr.mxu1 %v14639_v48  ;;  %v2120_v26 = vpop.f32.mrf.mxu1 }
 0x222   :  { %9904 = vmatmul.mubr.f32.gmra.mxu1 %v12400_v35  ;;  %9958 = vmatpush3.msra.mxu0 %v2614_v46 }
 0x223   :  { %9815 = vmatmul.mubr.f32.gmra.mxu0 %v12341_v13  ;;  %9906 = vmatprep.mubr.msk.f32.mxu1 %vm11433_vm0, %v14639_v48  ;;  %v9721_v44 = vpop.f32.mrf.mxu1 }
 0x224   :  { %9817 = vmatprep.mubr.msk.f32.mxu0 %vm11433_vm0, %v14639_v48  ;;  %10047 = vmatpush3.msra.mxu1 %v2810_v30  ;;  %v1960_v42 = vpop.f32.mrf.mxu0  ;;  %v14655_v30 = vld [vmem:[#allocation36_spill] sm:$0xff] }
 0x225   :  { %9959 = vmatprep.subr.mxu0 %v14639_v48  ;;  %10048 = vmatprep.subr.mxu1 %v14639_v48  ;;  %v13432_v20 = vadd.f32 %v2120_v26, %v1960_v42  ;;  %v2608_v44 = vld [vmem:[#allocation6 + $0x230] sm:$0xff]  ;;  %v14657_v42 = vld [vmem:[#allocation38_spill] sm:$0xff] }
 0x226   :  { %9907 = vmatmul.mubr.f32.gmra.mxu1 %v12475_v50  ;;  %9960 = vmatpush3.msra.mxu0 %v2613_v29  ;;  %v9632_v16 = vpop.f32.mrf.mxu0  ;;  %v2805_v29 = vld [vmem:[#allocation6 + $0x2b8] sm:$0xff] }
 0x227   :  { %9818 = vmatmul.mubr.f32.gmra.mxu0 %v12421_v28  ;;  %9909 = vmatprep.mubr.msk.f32.mxu1 %vm11433_vm0, %v14639_v48  ;;  %v2804_v16 = vld [vmem:[#allocation6 + $0x2b0] sm:$0xff] }
 0x228   :  { %9820 = vmatprep.mubr.msk.f32.mxu0 %vm11433_vm0, %v14639_v48  ;;  %10049 = vmatpush3.msra.mxu1 %v2809_v9  ;;  %v14656_v9 = vld [vmem:[#allocation35_spill] sm:$0xff] }
 0x229   :  { %9961 = vmatprep.subr.mxu0 %v14639_v48  ;;  %10050 = vmatprep.subr.mxu1 %v14639_v48 }
 0x22a   :  { %9910 = vmatmul.mubr.f32.gmra.mxu1 %v12569_v12  ;;  %9962 = vmatpush3.msra.mxu0 %v2612_v4 }
 0x22b   :  { %9821 = vmatmul.mubr.f32.gmra.mxu0 %v12502_v60  ;;  %9912 = vmatprep.mubr.msk.f32.mxu1 %vm11433_vm0, %v14639_v48 }
 0x22c   :  { %9823 = vmatprep.mubr.msk.f32.mxu0 %vm11433_vm0, %v14639_v48  ;;  %10051 = vmatpush3.msra.mxu1 %v2808_v36  ;;  %v14658_v36 = vld [vmem:[#allocation37_spill] sm:$0xff] }
 0x22d   :  { %9963 = vmatprep.subr.mxu0 %v14639_v48  ;;  %10052 = vmatprep.subr.mxu1 %v14639_v48  ;;  %v2125_v31 = vpop.f32.mrf.mxu1 }
 0x22e   :  { %9913 = vmatmul.mubr.f32.gmra.mxu1 %v14652_v49  ;;  %9964 = vmatpush3.msra.mxu0 %v2611_v52  ;;  %v2607_v52 = vld [vmem:[#allocation6 + $0x228] sm:$0xff] }
 0x22f   :  { %9824 = vmatmul.mubr.f32.gmra.mxu0 %v14653_v10  ;;  %9915 = vmatprep.mubr.msk.f32.mxu1 %vm11433_vm0, %v14639_v48  ;;  %v9724_v1 = vpop.f32.mrf.mxu1 }
 0x230   :  { %9826 = vmatprep.mubr.msk.f32.mxu0 %vm11433_vm0, %v14639_v48  ;;  %10053 = vmatpush3.msra.mxu1 %v2807_v53  ;;  %v1965_v8 = vpop.f32.mrf.mxu0  ;;  %v14660_v1 = vld [vmem:[#allocation39_spill] sm:$0xff] }
 0x231   :  { %9965 = vmatprep.subr.mxu0 %v14639_v48  ;;  %10054 = vmatprep.subr.mxu1 %v14639_v48  ;;  %v13458_v54 = vadd.f32 %v2125_v31, %v1965_v8  ;;  %v2803_v31 = vld [vmem:[#allocation6 + $0x2a8] sm:$0xff] }
 0x232   :  { %9916 = vmatmul.mubr.f32.gmra.mxu1 %v12724_v57  ;;  %9966 = vmatpush3.msra.mxu0 %v2610_v11  ;;  %v9635_v46 = vpop.f32.mrf.mxu0  ;;  %v14659_v11 = vld [vmem:[#allocation40_spill] sm:$0xff] }
 0x233   :  { %9827 = vmatmul.mubr.f32.gmra.mxu0 %v14654_v59  ;;  %9918 = vmatprep.mubr.msk.f32.mxu1 %vm11433_vm0, %v14639_v48  ;;  %v2130_v26 = vpop.f32.mrf.mxu1 }
 0x234   :  { %9829 = vmatprep.mubr.msk.f32.mxu0 %vm11433_vm0, %v14639_v48  ;;  %10055 = vmatpush3.msra.mxu1 %v2806_v5 }
 0x235   :  { %9967 = vmatprep.subr.mxu0 %v14639_v48  ;;  %10056 = vmatprep.subr.mxu1 %v14639_v48  ;;  %v9727_v4 = vpop.f32.mrf.mxu1 }
 0x236   :  { %9919 = vmatmul.mubr.f32.gmra.mxu1 %v14655_v30  ;;  %9968 = vmatpush3.msra.mxu0 %v2609_v62  ;;  %v2606_v62 = vld [vmem:[#allocation6 + $0x220] sm:$0xff]  ;;  %v2605_v4 = vld [vmem:[#allocation6 + $0x218] sm:$0xff] }
 0x237   :  { %9830 = vmatmul.mubr.f32.gmra.mxu0 %v14656_v9  ;;  %9921 = vmatprep.mubr.msk.f32.mxu1 %vm11433_vm0, %v14639_v48 }
 0x238   :  { %9832 = vmatprep.mubr.msk.f32.mxu0 %vm11433_vm0, %v14639_v48  ;;  %10057 = vmatpush3.msra.mxu1 %v2805_v29  ;;  %v2802_v29 = vld [vmem:[#allocation6 + $0x2a0] sm:$0xff] }
 0x239   :  { %9969 = vmatprep.subr.mxu0 %v14639_v48  ;;  %10058 = vmatprep.subr.mxu1 %v14639_v48 }
 0x23a   :  { %9922 = vmatmul.mubr.f32.gmra.mxu1 %v14657_v42  ;;  %9970 = vmatpush3.msra.mxu0 %v2608_v44  ;;  %v1970_v53 = vpop.f32.mrf.mxu0  ;;  %v14661_v44 = vld [vmem:[#allocation41_spill] sm:$0xff] }
 0x23b   :  { %9833 = vmatmul.mubr.f32.gmra.mxu0 %v14658_v36  ;;  %9924 = vmatprep.mubr.msk.f32.mxu1 %vm11433_vm0, %v14639_v48  ;;  %v13478_v5 = vadd.f32 %v2130_v26, %v1970_v53  ;;  %v2604_v53 = vld [vmem:[#allocation6 + $0x210] sm:$0xff] }
 0x23c   :  { %9835 = vmatprep.mubr.msk.f32.mxu0 %vm11433_vm0, %v14639_v48  ;;  %10059 = vmatpush3.msra.mxu1 %v2804_v16  ;;  %v9638_v8 = vpop.f32.mrf.mxu0  ;;  %v1409_v16 = vmul.f32 %v13210_v24, %v13249_v23 }
 0x23d   :  { %9971 = vmatprep.subr.mxu0 %v14639_v48  ;;  %10060 = vmatprep.subr.mxu1 %v14639_v48  ;;  %v2135_v46 = vpop.f32.mrf.mxu1 }
 0x23e   :  { %9925 = vmatmul.mubr.f32.gmra.mxu1 %v14659_v11  ;;  %9972 = vmatpush3.msra.mxu0 %v2607_v52  ;;  %v2801_v52 = vld [vmem:[#allocation6 + $0x298] sm:$0xff] }
 0x23f   :  { %9836 = vmatmul.mubr.f32.gmra.mxu0 %v14660_v1  ;;  %9927 = vmatprep.mubr.msk.f32.mxu1 %vm11433_vm0, %v14639_v48  ;;  %v9730_v26 = vpop.f32.mrf.mxu1 }
 0x240   :  { %9838 = vmatprep.mubr.msk.f32.mxu0 %vm11433_vm0, %v14639_v48  ;;  %10061 = vmatpush3.msra.mxu1 %v2803_v31  ;;  %v1453_v31 = vadd.f32 %v1409_v16, %v13285_v22  ;;  %v2800_v26 = vld [vmem:[#allocation6 + $0x290] sm:$0xff]  ;;  %v2603_v22 = vld [vmem:[#allocation6 + $0x208] sm:$0xff] }
 0x241   :  { %9973 = vmatprep.subr.mxu0 %v14639_v48  ;;  %10062 = vmatprep.subr.mxu1 %v14639_v48 }
 0x242   :  { %9928 = vmatmul.mubr.f32.gmra.mxu1 %v13004_v14  ;;  %9974 = vmatpush3.msra.mxu0 %v2606_v62 }
 0x243   :  { %9839 = vmatmul.mubr.f32.gmra.mxu0 %v14661_v44  ;;  %9930 = vmatprep.mubr.msk.f32.mxu1 %vm11433_vm0, %v14639_v48 }
 0x244   :  { %9841 = vmatprep.mubr.msk.f32.mxu0 %vm11433_vm0, %v14639_v48  ;;  %10063 = vmatpush3.msra.mxu1 %v2802_v29  ;;  %v1975_v62 = vpop.f32.mrf.mxu0  ;;  %v1510_v29 = vmul.f32 %v13251_v51, %v13261_v15 }
 0x245   :  { %9975 = vmatprep.subr.mxu0 %v14639_v48  ;;  %10064 = vmatprep.subr.mxu1 %v14639_v48  ;;  %v13506_v8 = vadd.f32 %v2135_v46, %v1975_v62 }
 0x246   :  { %9931 = vmatmul.mubr.f32.gmra.mxu1 %v13069_v41  ;;  %9976 = vmatpush3.msra.mxu0 %v2605_v4  ;;  %v9641_v4 = vpop.f32.mrf.mxu0  ;;  %v1554_v46 = vadd.f32 %v1510_v29, %v1453_v31  ;;  %v13532_v29 = vld [vmem:[#allocation2 + $0x9] ss:$0 sm:$0xff] }
 0x247   :  { %9842 = vmatmul.mubr.f32.gmra.mxu0 %v13024_v56  ;;  %9933 = vmatprep.mubr.msk.f32.mxu1 %vm11433_vm0, %v14639_v48  ;;  %14662 = vst [vmem:[#allocation33_spill] sm:$0xff] %v13506_v8  ;;  %v2799_v4 = vld [vmem:[#allocation6 + $0x288] sm:$0xff] }
 0x248   :  { %9844 = vmatprep.mubr.msk.f32.mxu0 %vm11433_vm0, %v14639_v48  ;;  %10065 = vmatpush3.msra.mxu1 %v2801_v52  ;;  %v2140_v16 = vpop.f32.mrf.mxu1  ;;  %v1611_v52 = vmul.f32 %v13273_v21, %v13283_v55  ;;  %v2602_v55 = vld [vmem:[#allocation6 + $0x200] sm:$0xff]  ;;  %v14664_v8 = vld [vmem:[#allocation43_spill] sm:$0xff] }
 0x249   :  { %9977 = vmatprep.subr.mxu0 %v14639_v48  ;;  %10066 = vmatprep.subr.mxu1 %v14639_v48 }
 0x24a   :  { %9934 = vmatmul.mubr.f32.gmra.mxu1 %v13141_v40  ;;  %9978 = vmatpush3.msra.mxu0 %v2604_v53  ;;  %v1610_v53 = vmul.f32 %v13273_v21, %v13249_v23  ;;  %v9733_v62 = vpop.f32.mrf.mxu1  ;;  %v1655_v23 = vadd.f32 %v1611_v52, %v1554_v46  ;;  %v1711_v52 = vmul.f32 %v13532_v29, %v13261_v15 }
 0x24b   :  { %9845 = vmatmul.mubr.f32.gmra.mxu0 %v13091_v25  ;;  %9936 = vmatprep.mubr.msk.f32.mxu1 %vm11433_vm0, %v14639_v48 }
 0x24c   :  { %9847 = vmatprep.mubr.msk.f32.mxu0 %vm11433_vm0, %v14639_v48  ;;  %10067 = vmatpush3.msra.mxu1 %v2800_v26  ;;  %v1654_v31 = vadd.f32 %v1610_v53, %v13398_v63  ;;  %v1712_v26 = vmul.f32 %v13532_v29, %v13298_v37 }
 0x24d   :  { %9979 = vmatprep.subr.mxu0 %v14639_v48  ;;  %10068 = vmatprep.subr.mxu1 %v14639_v48 }
 0x24e   :  { %9937 = vmatmul.mubr.f32.gmra.mxu1 %v13225_v61  ;;  %9980 = vmatpush3.msra.mxu0 %v2603_v22  ;;  %v2798_v22 = vld [vmem:[#allocation6 + $0x280] sm:$0xff]  ;;  %v1756_v63 = vadd.f32 %v1712_v26, %v1655_v23  ;;  %v1755_v53 = vadd.f32 %v1711_v52, %v1654_v31 }
 0x24f   :  { %9848 = vmatmul.mubr.f32.gmra.mxu0 %v14663_v43  ;;  %9939 = vmatprep.mubr.msk.f32.mxu1 %vm11433_vm0, %v14639_v48  ;;  %v1980_v62 = vpop.f32.mrf.mxu0 }
 0x250   :  { %9850 = vmatprep.mubr.msk.f32.mxu0 %vm11433_vm0, %v14639_v48  ;;  %10069 = vmatpush3.msra.mxu1 %v2799_v4  ;;  %v13541_v46 = vadd.f32 %v2140_v16, %v1980_v62  ;;  %v13554_v16 = vld [vmem:[#allocation4] ss:$0 sm:$0xff] }
 0x251   :  { %9981 = vmatprep.subr.mxu0 %v14639_v48  ;;  %10070 = vmatprep.subr.mxu1 %v14639_v48  ;;  %v9644_v37 = vpop.f32.mrf.mxu0  ;;  %v1806_v23 = vadd.f32 %v13554_v16, %v1755_v53  ;;  %v3205_v53 = vld [vmem:[#allocation6 + $0x3f8] sm:$0xff] }
 0x252   :  { %9940 = vmatmul.mubr.f32.gmra.mxu1 %v13294_v34  ;;  %9982 = vmatpush3.msra.mxu0 %v2602_v55  ;;  %v2145_v4 = vpop.f32.mrf.mxu1  ;;  %v1807_v55 = vadd.f32 %v13554_v16, %v1756_v63  ;;  %v3009_v37 = vld [vmem:[#allocation6 + $0x378] sm:$0xff] }
 0x253   :  { %9851 = vmatmul.mubr.f32.gmra.mxu0 %v14664_v8  ;;  %9942 = vmatprep.mubr.msk.f32.mxu1 %vm11433_vm0, %v14639_v48  ;;  %v13566_v26 = vmax.f32 %v1806_v23, 0.0 }
 0x254   :  { %9853 = vmatprep.mubr.msk.f32.mxu0 %vm11433_vm0, %v14639_v48  ;;  %10071 = vmatpush3.msra.mxu1 %v2798_v22  ;;  %v9736_v15 = vpop.f32.mrf.mxu1  ;;  %v13562_v31 = vmax.f32 %v1807_v55, 0.0  ;;  %v3204_v55 = vld [vmem:[#allocation6 + $0x3f0] sm:$0xff] }
 0x255   :  { %10129 = vmatprep.subr.mxu0 %v14639_v48  ;;  %10218 = vmatprep.subr.mxu1 %v14639_v48 }
 0x256   :  { %9943 = vmatmul.mubr.f32.gmra.mxu1 %v13338_v17 }
 0x257   :  { %9854 = vmatmul.mubr.f32.gmra.mxu0 %v13310_v32  ;;  %9945 = vmatprep.mubr.msk.f32.mxu1 %vm11433_vm0, %v14639_v48 }
 0x258   :  { %9856 = vmatprep.mubr.msk.f32.mxu0 %vm11433_vm0, %v14639_v48 }
 0x259   :  { %v1985_v22 = vpop.f32.mrf.mxu0 }
 0x25a   :  { %9946 = vmatmul.mubr.f32.gmra.mxu1 %v13361_v6  ;;  %v13569_v62 = vadd.f32 %v2145_v4, %v1985_v22  ;;  %v3008_v4 = vld [vmem:[#allocation6 + $0x370] sm:$0xff] }
 0x25b   :  { %9857 = vmatmul.mubr.f32.gmra.mxu0 %v13357_v38  ;;  %9948 = vmatprep.mubr.msk.f32.mxu1 %vm11433_vm0, %v14639_v48  ;;  %v9647_v52 = vpop.f32.mrf.mxu0 }
 0x25c   :  { %9859 = vmatprep.mubr.msk.f32.mxu0 %vm11433_vm0, %v14639_v48  ;;  %v3203_v52 = vld [vmem:[#allocation6 + $0x3e8] sm:$0xff] }
 0x25d   :  { %v2150_v63 = vpop.f32.mrf.mxu1 }
 0x25e   :  { %9949 = vmatmul.mubr.f32.gmra.mxu1 %v13562_v31 }
 0x25f   :  { %9860 = vmatmul.mubr.f32.gmra.mxu0 %v13566_v26  ;;  %10072 = vmatprep.mubr.msk.f32.mxu1 %vm11433_vm0, %v14639_v48  ;;  %v9739_v15 = vpop.f32.mrf.mxu1 }
 0x260   :  { %9983 = vmatprep.mubr.msk.f32.mxu0 %vm11433_vm0, %v14639_v48  ;;  %v3202_v15 = vld [vmem:[#allocation6 + $0x3e0] sm:$0xff] }
 0x262   :  { %10073 = vmatmul.mubr.f32.vlgmr.msra.gmra.mxu1 %v12236_v39 }
 0x263   :  { %9984 = vmatmul.mubr.f32.vlgmr.msra.gmra.mxu0 %v12209_v58  ;;  %10075 = vmatprep.mubr.msk.f32.mxu1 %vm11433_vm0, %v14639_v48  ;;  %v3007_v58 = vld [vmem:[#allocation6 + $0x368] sm:$0xff] }
 0x264   :  { %10130 = vmatpush3.msra.mxu0 %v3009_v37  ;;  %10219 = vmatpush3.msra.mxu1 %v3205_v53  ;;  %v1990_v39 = vpop.f32.mrf.mxu0  ;;  %v3006_v53 = vld [vmem:[#allocation6 + $0x360] sm:$0xff] }
 0x265   :  { %9986 = vmatprep.mubr.msk.f32.mxu0 %vm11433_vm0, %v14639_v48  ;;  %10131 = vmatprep.subr.mxu0 %v14639_v48  ;;  %v13590_v23 = vadd.f32 %v2150_v63, %v1990_v39  ;;  %v3004_v39 = vld [vmem:[#allocation6 + $0x350] sm:$0xff] }
 0x266   :  { %10076 = vmatmul.mubr.f32.gmra.mxu1 %v12315_v33  ;;  %10132 = vmatpush3.msra.mxu0 %v3008_v4  ;;  %v9650_v22 = vpop.f32.mrf.mxu0  ;;  %v3005_v4 = vld [vmem:[#allocation6 + $0x358] sm:$0xff] }
 0x267   :  { %9987 = vmatmul.mubr.f32.gmra.mxu0 %v12262_v45  ;;  %10078 = vmatprep.mubr.msk.f32.mxu1 %vm11433_vm0, %v14639_v48  ;;  %v2155_v37 = vpop.f32.mrf.mxu1 }
 0x268   :  { %10220 = vmatprep.subr.mxu1 %v14639_v48  ;;  %9989 = vmatprep.mubr.msk.f32.mxu0 %vm11433_vm0, %v14639_v48 }
 0x269   :  { %10221 = vmatpush3.msra.mxu1 %v3204_v55  ;;  %10133 = vmatprep.subr.mxu0 %v14639_v48  ;;  %v9742_v63 = vpop.f32.mrf.mxu1  ;;  %v3201_v55 = vld [vmem:[#allocation6 + $0x3d8] sm:$0xff] }
 0x26a   :  { %10079 = vmatmul.mubr.f32.gmra.mxu1 %v12400_v35  ;;  %10134 = vmatpush3.msra.mxu0 %v3007_v58  ;;  %v3200_v63 = vld [vmem:[#allocation6 + $0x3d0] sm:$0xff] }
 0x26b   :  { %9990 = vmatmul.mubr.f32.gmra.mxu0 %v12341_v13  ;;  %10081 = vmatprep.mubr.msk.f32.mxu1 %vm11433_vm0, %v14639_v48 }
 0x26c   :  { %9992 = vmatprep.mubr.msk.f32.mxu0 %vm11433_vm0, %v14639_v48  ;;  %10222 = vmatprep.subr.mxu1 %v14639_v48 }
 0x26d   :  { %10223 = vmatpush3.msra.mxu1 %v3203_v52  ;;  %10135 = vmatprep.subr.mxu0 %v14639_v48 }
 0x26e   :  { %10082 = vmatmul.mubr.f32.gmra.mxu1 %v12475_v50  ;;  %10136 = vmatpush3.msra.mxu0 %v3006_v53 }
 0x26f   :  { %9993 = vmatmul.mubr.f32.gmra.mxu0 %v12421_v28  ;;  %10084 = vmatprep.mubr.msk.f32.mxu1 %vm11433_vm0, %v14639_v48  ;;  %v1995_v58 = vpop.f32.mrf.mxu0 }
 0x270   :  { %9995 = vmatprep.mubr.msk.f32.mxu0 %vm11433_vm0, %v14639_v48  ;;  %10224 = vmatprep.subr.mxu1 %v14639_v48  ;;  %v13613_v22 = vadd.f32 %v2155_v37, %v1995_v58  ;;  %v3003_v37 = vld [vmem:[#allocation6 + $0x348] sm:$0xff] }
 0x271   :  { %10225 = vmatpush3.msra.mxu1 %v3202_v15  ;;  %10137 = vmatprep.subr.mxu0 %v14639_v48  ;;  %v9653_v52 = vpop.f32.mrf.mxu0 }
 0x272   :  { %10085 = vmatmul.mubr.f32.gmra.mxu1 %v12569_v12  ;;  %10138 = vmatpush3.msra.mxu0 %v3005_v4  ;;  %v3199_v4 = vld [vmem:[#allocation6 + $0x3c8] sm:$0xff]  ;;  %v3198_v52 = vld [vmem:[#allocation6 + $0x3c0] sm:$0xff] }
 0x273   :  { %9996 = vmatmul.mubr.f32.gmra.mxu0 %v12502_v60  ;;  %10087 = vmatprep.mubr.msk.f32.mxu1 %vm11433_vm0, %v14639_v48  ;;  %v2160_v53 = vpop.f32.mrf.mxu1 }
 0x274   :  { %9998 = vmatprep.mubr.msk.f32.mxu0 %vm11433_vm0, %v14639_v48  ;;  %10226 = vmatprep.subr.mxu1 %v14639_v48 }
 0x275   :  { %10227 = vmatpush3.msra.mxu1 %v3201_v55  ;;  %10139 = vmatprep.subr.mxu0 %v14639_v48  ;;  %v9745_v15 = vpop.f32.mrf.mxu1  ;;  %v3002_v55 = vld [vmem:[#allocation6 + $0x340] sm:$0xff] }
 0x276   :  { %10088 = vmatmul.mubr.f32.gmra.mxu1 %v14652_v49  ;;  %10140 = vmatpush3.msra.mxu0 %v3004_v39 }
 0x277   :  { %9999 = vmatmul.mubr.f32.gmra.mxu0 %v14653_v10  ;;  %10090 = vmatprep.mubr.msk.f32.mxu1 %vm11433_vm0, %v14639_v48 }
 0x278   :  { %10001 = vmatprep.mubr.msk.f32.mxu0 %vm11433_vm0, %v14639_v48  ;;  %10228 = vmatprep.subr.mxu1 %v14639_v48 }
 0x279   :  { %10229 = vmatpush3.msra.mxu1 %v3200_v63  ;;  %10141 = vmatprep.subr.mxu0 %v14639_v48 }
 0x27a   :  { %10091 = vmatmul.mubr.f32.gmra.mxu1 %v12724_v57  ;;  %10142 = vmatpush3.msra.mxu0 %v3003_v37  ;;  %v2000_v58 = vpop.f32.mrf.mxu0  ;;  %v3001_v37 = vld [vmem:[#allocation6 + $0x338] sm:$0xff] }
 0x27b   :  { %10002 = vmatmul.mubr.f32.gmra.mxu0 %v14654_v59  ;;  %10093 = vmatprep.mubr.msk.f32.mxu1 %vm11433_vm0, %v14639_v48  ;;  %v13635_v39 = vadd.f32 %v2160_v53, %v2000_v58  ;;  %v3196_v58 = vld [vmem:[#allocation6 + $0x3b0] sm:$0xff] }
 0x27c   :  { %10004 = vmatprep.mubr.msk.f32.mxu0 %vm11433_vm0, %v14639_v48  ;;  %10230 = vmatprep.subr.mxu1 %v14639_v48  ;;  %v9656_v63 = vpop.f32.mrf.mxu0 }
 0x27d   :  { %10231 = vmatpush3.msra.mxu1 %v3199_v4  ;;  %10143 = vmatprep.subr.mxu0 %v14639_v48  ;;  %14665 = vst [vmem:[#allocation32_spill] sm:$0xff] %v13635_v39  ;;  %v2165_v15 = vpop.f32.mrf.mxu1  ;;  %v3197_v4 = vld [vmem:[#allocation6 + $0x3b8] sm:$0xff]  ;;  %v2998_v39 = vld [vmem:[#allocation6 + $0x320] sm:$0xff] }
 0x27e   :  { %10094 = vmatmul.mubr.f32.gmra.mxu1 %v14655_v30  ;;  %10144 = vmatpush3.msra.mxu0 %v3002_v55  ;;  %v3000_v55 = vld [vmem:[#allocation6 + $0x330] sm:$0xff] }
 0x27f   :  { %10005 = vmatmul.mubr.f32.gmra.mxu0 %v14656_v9  ;;  %10096 = vmatprep.mubr.msk.f32.mxu1 %vm11433_vm0, %v14639_v48  ;;  %v9748_v53 = vpop.f32.mrf.mxu1 }
 0x280   :  { %10007 = vmatprep.mubr.msk.f32.mxu0 %vm11433_vm0, %v14639_v48  ;;  %10232 = vmatprep.subr.mxu1 %v14639_v48 }
 0x281   :  { %10233 = vmatpush3.msra.mxu1 %v3198_v52  ;;  %10145 = vmatprep.subr.mxu0 %v14639_v48  ;;  %v2999_v52 = vld [vmem:[#allocation6 + $0x328] sm:$0xff] }
 0x282   :  { %10097 = vmatmul.mubr.f32.gmra.mxu1 %v14657_v42  ;;  %10146 = vmatpush3.msra.mxu0 %v3001_v37 }
 0x283   :  { %10008 = vmatmul.mubr.f32.gmra.mxu0 %v14658_v36  ;;  %10099 = vmatprep.mubr.msk.f32.mxu1 %vm11433_vm0, %v14639_v48 }
 0x284   :  { %10010 = vmatprep.mubr.msk.f32.mxu0 %vm11433_vm0, %v14639_v48  ;;  %10234 = vmatprep.subr.mxu1 %v14639_v48 }
 0x285   :  { %10235 = vmatpush3.msra.mxu1 %v3197_v4  ;;  %10147 = vmatprep.subr.mxu0 %v14639_v48  ;;  %v2005_v63 = vpop.f32.mrf.mxu0  ;;  %v3195_v4 = vld [vmem:[#allocation6 + $0x3a8] sm:$0xff] }
 0x286   :  { %10100 = vmatmul.mubr.f32.gmra.mxu1 %v14659_v11  ;;  %10148 = vmatpush3.msra.mxu0 %v3000_v55  ;;  %v13660_v37 = vadd.f32 %v2165_v15, %v2005_v63  ;;  %v1411_v63 = vmul.f32 %v13210_v24, %v13320_v18 }
 0x287   :  { %10011 = vmatmul.mubr.f32.gmra.mxu0 %v14660_v1  ;;  %10102 = vmatprep.mubr.msk.f32.mxu1 %vm11433_vm0, %v14639_v48  ;;  %v9659_v53 = vpop.f32.mrf.mxu0 }
 0x288   :  { %10013 = vmatprep.mubr.msk.f32.mxu0 %vm11433_vm0, %v14639_v48  ;;  %10236 = vmatprep.subr.mxu1 %v14639_v48  ;;  %14666 = vst [vmem:[#allocation34_spill] sm:$0xff] %v13660_v37  ;;  %v2170_v55 = vpop.f32.mrf.mxu1  ;;  %v1455_v37 = vadd.f32 %v1411_v63, %v13348_v27  ;;  %v2995_v27 = vld [vmem:[#allocation6 + $0x308] sm:$0xff] }
 0x289   :  { %10237 = vmatpush3.msra.mxu1 %v3196_v58  ;;  %10149 = vmatprep.subr.mxu0 %v14639_v48  ;;  %v3194_v58 = vld [vmem:[#allocation6 + $0x3a0] sm:$0xff] }
 0x28a   :  { %10103 = vmatmul.mubr.f32.gmra.mxu1 %v13004_v14  ;;  %10150 = vmatpush3.msra.mxu0 %v2999_v52  ;;  %v9751_v15 = vpop.f32.mrf.mxu1  ;;  %v2997_v52 = vld [vmem:[#allocation6 + $0x318] sm:$0xff] }
 0x28b   :  { %10014 = vmatmul.mubr.f32.gmra.mxu0 %v14661_v44  ;;  %10105 = vmatprep.mubr.msk.f32.mxu1 %vm11433_vm0, %v14639_v48  ;;  %v2996_v15 = vld [vmem:[#allocation6 + $0x310] sm:$0xff] }
 0x28c   :  { %10016 = vmatprep.mubr.msk.f32.mxu0 %vm11433_vm0, %v14639_v48  ;;  %10238 = vmatprep.subr.mxu1 %v14639_v48 }
 0x28d   :  { %10239 = vmatpush3.msra.mxu1 %v3195_v4  ;;  %10151 = vmatprep.subr.mxu0 %v14639_v48  ;;  %v3193_v4 = vld [vmem:[#allocation6 + $0x398] sm:$0xff] }
 0x28e   :  { %10106 = vmatmul.mubr.f32.gmra.mxu1 %v13069_v41  ;;  %10152 = vmatpush3.msra.mxu0 %v2998_v39 }
 0x28f   :  { %10017 = vmatmul.mubr.f32.gmra.mxu0 %v13024_v56  ;;  %10108 = vmatprep.mubr.msk.f32.mxu1 %vm11433_vm0, %v14639_v48 }
 0x290   :  { %10019 = vmatprep.mubr.msk.f32.mxu0 %vm11433_vm0, %v14639_v48  ;;  %10240 = vmatprep.subr.mxu1 %v14639_v48  ;;  %v2010_v53 = vpop.f32.mrf.mxu0 }
 0x291   :  { %10241 = vmatpush3.msra.mxu1 %v3194_v58  ;;  %10153 = vmatprep.subr.mxu0 %v14639_v48  ;;  %v13682_v39 = vadd.f32 %v2170_v55, %v2010_v53  ;;  %v1512_v55 = vmul.f32 %v13251_v51, %v13336_v47  ;;  %v3192_v53 = vld [vmem:[#allocation6 + $0x390] sm:$0xff]  ;;  %v1612_v51 = vmul.f32 %v13273_v21, %v13320_v18 }
 0x292   :  { %10109 = vmatmul.mubr.f32.gmra.mxu1 %v13141_v40  ;;  %10154 = vmatpush3.msra.mxu0 %v2997_v52  ;;  %v9662_v24 = vpop.f32.mrf.mxu0 }
 0x293   :  { %10020 = vmatmul.mubr.f32.gmra.mxu0 %v13091_v25  ;;  %10111 = vmatprep.mubr.msk.f32.mxu1 %vm11433_vm0, %v14639_v48  ;;  %v2175_v58 = vpop.f32.mrf.mxu1  ;;  %v1556_v63 = vadd.f32 %v1512_v55, %v1455_v37  ;;  %v3191_v24 = vld [vmem:[#allocation6 + $0x388] sm:$0xff]  ;;  %v1714_v55 = vmul.f32 %v13532_v29, %v13365_v7 }
 0x294   :  { %10022 = vmatprep.mubr.msk.f32.mxu0 %vm11433_vm0, %v14639_v48  ;;  %10242 = vmatprep.subr.mxu1 %v14639_v48 }
 0x295   :  { %10243 = vmatpush3.msra.mxu1 %v3193_v4  ;;  %10155 = vmatprep.subr.mxu0 %v14639_v48  ;;  %v9754_v52 = vpop.f32.mrf.mxu1  ;;  %v1613_v4 = vmul.f32 %v13273_v21, %v13355_v3  ;;  %v2994_v3 = vld [vmem:[#allocation6 + $0x300] sm:$0xff]  ;;  %v1656_v21 = vadd.f32 %v1612_v51, %v13353_v0 }
 0x296   :  { %10112 = vmatmul.mubr.f32.gmra.mxu1 %v13225_v61  ;;  %10156 = vmatpush3.msra.mxu0 %v2996_v15 }
 0x297   :  { %10023 = vmatmul.mubr.f32.gmra.mxu0 %v14663_v43  ;;  %10114 = vmatprep.mubr.msk.f32.mxu1 %vm11433_vm0, %v14639_v48  ;;  %v1657_v37 = vadd.f32 %v1613_v4, %v1556_v63 }
 0x298   :  { %10025 = vmatprep.mubr.msk.f32.mxu0 %vm11433_vm0, %v14639_v48  ;;  %10244 = vmatprep.subr.mxu1 %v14639_v48 }
 0x299   :  { %10245 = vmatpush3.msra.mxu1 %v3192_v53  ;;  %10157 = vmatprep.subr.mxu0 %v14639_v48  ;;  %v3190_v53 = vld [vmem:[#allocation6 + $0x380] sm:$0xff] }
 0x29a   :  { %10115 = vmatmul.mubr.f32.gmra.mxu1 %v13294_v34  ;;  %10158 = vmatpush3.msra.mxu0 %v2995_v27  ;;  %v1713_v27 = vmul.f32 %v13532_v29, %v13336_v47 }
 0x29b   :  { %10026 = vmatmul.mubr.f32.gmra.mxu0 %v14664_v8  ;;  %10117 = vmatprep.mubr.msk.f32.mxu1 %vm11433_vm0, %v14639_v48  ;;  %v2015_v15 = vpop.f32.mrf.mxu0 }
 0x29c   :  { %10028 = vmatprep.mubr.msk.f32.mxu0 %vm11433_vm0, %v14639_v48  ;;  %10246 = vmatprep.subr.mxu1 %v14639_v48  ;;  %v13714_v18 = vadd.f32 %v2175_v58, %v2015_v15  ;;  %v1758_v58 = vadd.f32 %v1714_v55, %v1657_v37  ;;  %v1757_v7 = vadd.f32 %v1713_v27, %v1656_v21 }
 0x29d   :  { %10247 = vmatpush3.msra.mxu1 %v3191_v24  ;;  %10159 = vmatprep.subr.mxu0 %v14639_v48  ;;  %v9665_v52 = vpop.f32.mrf.mxu0 }
 0x29e   :  { %10118 = vmatmul.mubr.f32.gmra.mxu1 %v13338_v17  ;;  %10160 = vmatpush3.msra.mxu0 %v2994_v3  ;;  %v2180_v0 = vpop.f32.mrf.mxu1  ;;  %v13733_v47 = vadd.f32 %v13554_v16, %v1758_v58  ;;  %v13738_v4 = vadd.f32 %v13554_v16, %v1757_v7 }
 0x29f   :  { %10029 = vmatmul.mubr.f32.gmra.mxu0 %v13310_v32  ;;  %10120 = vmatprep.mubr.msk.f32.mxu1 %vm11433_vm0, %v14639_v48 }
 0x2a0   :  { %10031 = vmatprep.mubr.msk.f32.mxu0 %vm11433_vm0, %v14639_v48  ;;  %10248 = vmatprep.subr.mxu1 %v14639_v48  ;;  %v9757_v63 = vpop.f32.mrf.mxu1  ;;  %v1853_v3 = vmax.f32 %v13733_v47, 0.0  ;;  %v1852_v15 = vmax.f32 %v13738_v4, 0.0 }
 0x2a1   :  { %10249 = vmatpush3.msra.mxu1 %v3190_v53 }
 0x2a2   :  { %10121 = vmatmul.mubr.f32.gmra.mxu1 %v13361_v6 }
 0x2a3   :  { %10032 = vmatmul.mubr.f32.gmra.mxu0 %v13357_v38  ;;  %10123 = vmatprep.mubr.msk.f32.mxu1 %vm11433_vm0, %v14639_v48 }
 0x2a4   :  { %10034 = vmatprep.mubr.msk.f32.mxu0 %vm11433_vm0, %v14639_v48 }
 0x2a5   :  { %v2020_v51 = vpop.f32.mrf.mxu0 }
 0x2a6   :  { %10124 = vmatmul.mubr.f32.gmra.mxu1 %v13562_v31  ;;  %v13744_v24 = vadd.f32 %v2180_v0, %v2020_v51  ;;  %v3445_v0 = vld [vmem:[#allocation9 + $0x78] sm:$0xff]  ;;  %v3460_v51 = vld [vmem:[#allocation9 + $0xe8] sm:$0xff] }
 0x2a7   :  { %10035 = vmatmul.mubr.f32.gmra.mxu0 %v13566_v26  ;;  %10126 = vmatprep.mubr.msk.f32.mxu1 %vm11433_vm0, %v14639_v48  ;;  %v9668_v37 = vpop.f32.mrf.mxu0 }
 0x2a8   :  { %10037 = vmatprep.mubr.msk.f32.mxu0 %vm11433_vm0, %v14639_v48  ;;  %v2185_v21 = vpop.f32.mrf.mxu1  ;;  %10360 = vmatprep.subr.mxu1 %v3445_v0 }
 0x2aa   :  { %10127 = vmatmul.mubr.f32.gmra.mxu1 %v1853_v3  ;;  %v9760_v55 = vpop.f32.mrf.mxu1 }
 0x2ab   :  { %10038 = vmatmul.mubr.f32.gmra.mxu0 %v1852_v15  ;;  %10250 = vmatprep.mubr.msk.f32.mxu1 %vm11433_vm0, %v14639_v48 }
 0x2ac   :  { %10161 = vmatprep.mubr.msk.f32.mxu0 %vm11433_vm0, %v14639_v48 }
 0x2ae   :  { %10251 = vmatmul.mubr.f32.vlgmr.msra.gmra.mxu1 %v12315_v33 }
 0x2af   :  { %10162 = vmatmul.mubr.f32.vlgmr.msra.gmra.mxu0 %v12262_v45  ;;  %10253 = vmatprep.mubr.msk.f32.mxu1 %vm11433_vm0, %v14639_v48 }
 0x2b0   :  { %10164 = vmatprep.mubr.msk.f32.mxu0 %vm11433_vm0, %v14639_v48  ;;  %v2025_v52 = vpop.f32.mrf.mxu0  ;;  %10361 = vmatpush3.msra.mxu1 %v3445_v0 }
 0x2b1   :  { %v13765_v53 = vadd.f32 %v2185_v21, %v2025_v52  ;;  %v3443_v21 = vld [vmem:[#allocation9 + $0x68] sm:$0xff] }
 0x2b2   :  { %10254 = vmatmul.mubr.f32.gmra.mxu1 %v12400_v35  ;;  %v9671_v27 = vpop.f32.mrf.mxu0 }
 0x2b3   :  { %10165 = vmatmul.mubr.f32.gmra.mxu0 %v12341_v13  ;;  %10256 = vmatprep.mubr.msk.f32.mxu1 %vm11433_vm0, %v14639_v48  ;;  %v2190_v45 = vpop.f32.mrf.mxu1 }
 0x2b4   :  { %10167 = vmatprep.mubr.msk.f32.mxu0 %vm11433_vm0, %v14639_v48 }
 0x2b5   :  { %v9763_v33 = vpop.f32.mrf.mxu1 }
 0x2b6   :  { %10257 = vmatmul.mubr.f32.gmra.mxu1 %v12475_v50  ;;  %v3442_v33 = vld [vmem:[#allocation9 + $0x60] sm:$0xff] }
 0x2b7   :  { %10168 = vmatmul.mubr.f32.gmra.mxu0 %v12421_v28  ;;  %10259 = vmatprep.mubr.msk.f32.mxu1 %vm11433_vm0, %v14639_v48 }
 0x2b8   :  { %10170 = vmatprep.mubr.msk.f32.mxu0 %vm11433_vm0, %v14639_v48 }
 0x2ba   :  { %10260 = vmatmul.mubr.f32.gmra.mxu1 %v12569_v12 }
 0x2bb   :  { %10171 = vmatmul.mubr.f32.gmra.mxu0 %v12502_v60  ;;  %10262 = vmatprep.mubr.msk.f32.mxu1 %vm11433_vm0, %v14639_v48 }
 0x2bc   :  { %v2030_v13 = vpop.f32.mrf.mxu0  ;;  %10173 = vmatprep.mubr.msk.f32.mxu0 %vm11433_vm0, %v14639_v48 }
 0x2bd   :  { %v13784_v35 = vadd.f32 %v2190_v45, %v2030_v13  ;;  %v1362_v13 = vpop.permute.xlu0 %1361 }
 0x2be   :  { %10263 = vmatmul.mubr.f32.gmra.mxu1 %v14652_v49  ;;  %v9674_v28 = vpop.f32.mrf.mxu0 }
 0x2bf   :  { %10174 = vmatmul.mubr.f32.gmra.mxu0 %v14653_v10  ;;  %10265 = vmatprep.mubr.msk.f32.mxu1 %vm11433_vm0, %v14639_v48  ;;  %v2195_v50 = vpop.f32.mrf.mxu1 }
 0x2c0   :  { %10176 = vmatprep.mubr.msk.f32.mxu0 %vm11433_vm0, %v14639_v48 }
 0x2c1   :  { %v9766_v60 = vpop.f32.mrf.mxu1 }
 0x2c2   :  { %10266 = vmatmul.mubr.f32.gmra.mxu1 %v12724_v57  ;;  %v3462_v57 = vld [vmem:[#allocation9 + $0xf8] sm:$0xff] }
 0x2c3   :  { %10177 = vmatmul.mubr.f32.gmra.mxu0 %v14654_v59  ;;  %10268 = vmatprep.mubr.msk.f32.mxu1 %vm11433_vm0, %v14639_v48 }
 0x2c4   :  { %10179 = vmatprep.mubr.msk.f32.mxu0 %vm11433_vm0, %v14639_v48  ;;  %10307 = vmatprep.subr.mxu0 %v3462_v57 }
 0x2c5   :  { %10308 = vmatpush3.msra.mxu0 %v3462_v57 }
 0x2c6   :  { %10269 = vmatmul.mubr.f32.gmra.mxu1 %v14655_v30 }
 0x2c7   :  { %v2035_v12 = vpop.f32.mrf.mxu0  ;;  %10180 = vmatmul.mubr.f32.gmra.mxu0 %v14656_v9  ;;  %10271 = vmatprep.mubr.msk.f32.mxu1 %vm11433_vm0, %v14639_v48  ;;  %v3461_v9 = vld [vmem:[#allocation9 + $0xf0] sm:$0xff] }
 0x2c8   :  { %v13802_v49 = vadd.f32 %v2195_v50, %v2035_v12  ;;  %10182 = vmatprep.mubr.msk.f32.mxu0 %vm11433_vm0, %v14639_v48  ;;  %10309 = vmatprep.subr.mxu0 %v3461_v9 }
 0x2c9   :  { %v9677_v10 = vpop.f32.mrf.mxu0  ;;  %v2200_v59 = vpop.f32.mrf.mxu1  ;;  %10310 = vmatpush3.msra.mxu0 %v3461_v9 }
 0x2ca   :  { %10272 = vmatmul.mubr.f32.gmra.mxu1 %v14657_v42  ;;  %v3444_v42 = vld [vmem:[#allocation9 + $0x70] sm:$0xff]  ;;  %10311 = vmatprep.subr.mxu0 %v3460_v51 }
 0x2cb   :  { %10183 = vmatmul.mubr.f32.gmra.mxu0 %v14658_v36  ;;  %10274 = vmatprep.mubr.msk.f32.mxu1 %vm11433_vm0, %v14639_v48  ;;  %v9769_v30 = vpop.f32.mrf.mxu1 }
 0x2cc   :  { %10185 = vmatprep.mubr.msk.f32.mxu0 %vm11433_vm0, %v14639_v48  ;;  %10362 = vmatprep.subr.mxu1 %v3444_v42  ;;  %v1463_v30 = vpop.permute.xlu1 %1462 }
 0x2cd   :  { %10363 = vmatpush3.msra.mxu1 %v3444_v42  ;;  %10312 = vmatpush3.msra.mxu0 %v3460_v51  ;;  %v11113_v51 = vld [vmem:[#allocation2 + $0x7] ss:$0 sm:$0xff] }
 0x2ce   :  { %v2040_v58 = vpop.f32.mrf.mxu0  ;;  %10275 = vmatmul.mubr.f32.gmra.mxu1 %v14659_v11  ;;  %10364 = vmatprep.subr.mxu1 %v3443_v21 }
 0x2cf   :  { %v13813_v7 = vadd.f32 %v2200_v59, %v2040_v58  ;;  %10186 = vmatmul.mubr.f32.gmra.mxu0 %v14660_v1  ;;  %10277 = vmatprep.mubr.msk.f32.mxu1 %vm11433_vm0, %v14639_v48 }
 0x2d0   :  { %v9680_v36 = vpop.f32.mrf.mxu0  ;;  %10188 = vmatprep.mubr.msk.f32.mxu0 %vm11433_vm0, %v14639_v48  ;;  %10365 = vmatpush3.msra.mxu1 %v3443_v21 }
 0x2d1   :  { %10366 = vmatprep.subr.mxu1 %v3442_v33  ;;  %v1564_v36 = vpop.permute.xlu0 %1563 }
 0x2d2   :  { %v2205_v63 = vpop.f32.mrf.mxu1  ;;  %10278 = vmatmul.mubr.f32.gmra.mxu1 %v13004_v14  ;;  %v2045_v11 = vpop.f32.mrf.mxu0  ;;  %v3459_v14 = vld [vmem:[#allocation9 + $0xe0] sm:$0xff] }
 0x2d3   :  { %10189 = vmatmul.mubr.f32.gmra.mxu0 %v14661_v44  ;;  %10280 = vmatprep.mubr.msk.f32.mxu1 %vm11433_vm0, %v14639_v48  ;;  %v13824_v1 = vadd.f32 %v2205_v63, %v2045_v11  ;;  %v1514_v11 = vmul.f32 %v11113_v51, %v1463_v30 }
 0x2d4   :  { %v9772_v37 = vpop.f32.mrf.mxu1  ;;  %10191 = vmatprep.mubr.msk.f32.mxu0 %vm11433_vm0, %v14639_v48  ;;  %v9683_v55 = vpop.f32.mrf.mxu0  ;;  %10313 = vmatprep.subr.mxu0 %v3459_v14 }
 0x2d5   :  { %10314 = vmatpush3.msra.mxu0 %v3459_v14  ;;  %10367 = vmatpush3.msra.mxu1 %v3442_v33  ;;  %v11114_v55 = vld [vmem:[#allocation2 + $0x8] ss:$0 sm:$0xff] }
 0x2d6   :  { %v2488_v52 = vpop.f32.mrf.mxu1  ;;  %10281 = vmatmul.mubr.f32.gmra.mxu1 %v13069_v41  ;;  %v2292_v27 = vpop.f32.mrf.mxu0 }
 0x2d7   :  { %10192 = vmatmul.mubr.f32.gmra.mxu0 %v13024_v56  ;;  %10283 = vmatprep.mubr.msk.f32.mxu1 %vm11433_vm0, %v14639_v48  ;;  %v2386_v44 = vadd.f32 %v2292_v27, %v13403_v19  ;;  %v3458_v56 = vld [vmem:[#allocation9 + $0xd8] sm:$0xff] }
 0x2d8   :  { %v9896_v45 = vpop.f32.mrf.mxu1  ;;  %10194 = vmatprep.mubr.msk.f32.mxu0 %vm11433_vm0, %v14639_v48  ;;  %v9807_v28 = vpop.f32.mrf.mxu0  ;;  %v11112_v19 = vld [vmem:[#allocation2 + $0x6] ss:$0 sm:$0xff]  ;;  %10315 = vmatprep.subr.mxu0 %v3458_v56 }
 0x2d9   :  { %v13836_v50 = vadd.f32 %v2488_v52, %v2386_v44  ;;  %v1413_v12 = vmul.f32 %v11112_v19, %v1362_v13  ;;  %10316 = vmatpush3.msra.mxu0 %v3458_v56  ;;  %v1615_v52 = vmul.f32 %v11114_v55, %v1564_v36  ;;  %v1614_v44 = vmul.f32 %v11114_v55, %v1362_v13  ;;  %v3439_v28 = vld [vmem:[#allocation9 + $0x48] sm:$0xff]  ;;  %v3453_v55 = vld [vmem:[#allocation9 + $0xb0] sm:$0xff] }
 0x2da   :  { %v2493_v41 = vpop.f32.mrf.mxu1  ;;  %10284 = vmatmul.mubr.f32.gmra.mxu1 %v13141_v40  ;;  %v3441_v40 = vld [vmem:[#allocation9 + $0x58] sm:$0xff] }
 0x2db   :  { %v2297_v60 = vpop.f32.mrf.mxu0  ;;  %10195 = vmatmul.mubr.f32.gmra.mxu0 %v13091_v25  ;;  %10286 = vmatprep.mubr.msk.f32.mxu1 %vm11433_vm0, %v14639_v48 }
 0x2dc   :  { %v2387_v57 = vadd.f32 %v2297_v60, %v13432_v20  ;;  %v9899_v10 = vpop.f32.mrf.mxu1  ;;  %10197 = vmatprep.mubr.msk.f32.mxu0 %vm11433_vm0, %v14639_v48  ;;  %10368 = vmatprep.subr.mxu1 %v3441_v40  ;;  %v1457_v20 = vadd.f32 %v1413_v12, %v13383_v2  ;;  %v3440_v2 = vld [vmem:[#allocation9 + $0x50] sm:$0xff]  ;;  %v14667_v60 = vld [vmem:[#allocation33_spill] sm:$0xff] }
 0x2dd   :  { %v9810_v59 = vpop.f32.mrf.mxu0  ;;  %10369 = vmatpush3.msra.mxu1 %v3441_v40 }
 0x2de   :  { %v2498_v0 = vpop.f32.mrf.mxu1  ;;  %10287 = vmatmul.mubr.f32.gmra.mxu1 %v13225_v61  ;;  %v13845_v25 = vadd.f32 %v2493_v41, %v2387_v57  ;;  %v3457_v61 = vld [vmem:[#allocation9 + $0xd0] sm:$0xff]  ;;  %10370 = vmatprep.subr.mxu1 %v3440_v2  ;;  %v1665_v41 = vpop.permute.xlu1 %1664  ;;  %v3455_v59 = vld [vmem:[#allocation9 + $0xc0] sm:$0xff] }
 0x2df   :  { %v2302_v9 = vpop.f32.mrf.mxu0  ;;  %10198 = vmatmul.mubr.f32.gmra.mxu0 %v14663_v43  ;;  %10289 = vmatprep.mubr.msk.f32.mxu1 %vm11433_vm0, %v14639_v48  ;;  %v1716_v10 = vmul.f32 %v13532_v29, %v1665_v41 }
 0x2e0   :  { %v2388_v58 = vadd.f32 %v2302_v9, %v13458_v54  ;;  %v9902_v42 = vpop.f32.mrf.mxu1  ;;  %10200 = vmatprep.mubr.msk.f32.mxu0 %vm11433_vm0, %v14639_v48  ;;  %10317 = vmatprep.subr.mxu0 %v3457_v61  ;;  %v1558_v54 = vadd.f32 %v1514_v11, %v1457_v20  ;;  %v1715_v9 = vmul.f32 %v13532_v29, %v1463_v30  ;;  %v3454_v30 = vld [vmem:[#allocation9 + $0xb8] sm:$0xff] }
 0x2e1   :  { %v9813_v63 = vpop.f32.mrf.mxu0  ;;  %10318 = vmatpush3.msra.mxu0 %v3457_v61  ;;  %10371 = vmatpush3.msra.mxu1 %v3440_v2 }
 0x2e2   :  { %v2503_v37 = vpop.f32.mrf.mxu1  ;;  %10290 = vmatmul.mubr.f32.gmra.mxu1 %v13294_v34  ;;  %v13855_v43 = vadd.f32 %v2498_v0, %v2388_v58  ;;  %v3456_v34 = vld [vmem:[#allocation9 + $0xc8] sm:$0xff]  ;;  %10372 = vmatprep.subr.mxu1 %v3439_v28  ;;  %v3438_v0 = vld [vmem:[#allocation9 + $0x40] sm:$0xff] }
 0x2e3   :  { %v2307_v21 = vpop.f32.mrf.mxu0  ;;  %10201 = vmatmul.mubr.f32.gmra.mxu0 %v14664_v8  ;;  %10292 = vmatprep.mubr.msk.f32.mxu1 %vm11433_vm0, %v14639_v48 }
 0x2e4   :  { %v2389_v14 = vadd.f32 %v2307_v21, %v13478_v5  ;;  %v9905_v27 = vpop.f32.mrf.mxu1  ;;  %10203 = vmatprep.mubr.msk.f32.mxu0 %vm11433_vm0, %v14639_v48  ;;  %10319 = vmatprep.subr.mxu0 %v3456_v34  ;;  %v1659_v5 = vadd.f32 %v1615_v52, %v1558_v54  ;;  %v3436_v54 = vld [vmem:[#allocation9 + $0x30] sm:$0xff] }
 0x2e5   :  { %v9816_v45 = vpop.f32.mrf.mxu0  ;;  %10320 = vmatpush3.msra.mxu0 %v3456_v34  ;;  %10373 = vmatpush3.msra.mxu1 %v3439_v28  ;;  %v3435_v27 = vld [vmem:[#allocation9 + $0x28] sm:$0xff] }
 0x2e6   :  { %v2508_v33 = vpop.f32.mrf.mxu1  ;;  %10293 = vmatmul.mubr.f32.gmra.mxu1 %v13338_v17  ;;  %v13864_v8 = vadd.f32 %v2503_v37, %v2389_v14  ;;  %v14668_v17 = vld [vmem:[#allocation44_spill] sm:$0xff]  ;;  %v1760_v58 = vadd.f32 %v1716_v10, %v1659_v5  ;;  %10321 = vmatprep.subr.mxu0 %v3455_v59  ;;  %v3451_v45 = vld [vmem:[#allocation9 + $0xa0] sm:$0xff] }
 0x2e7   :  { %v2312_v56 = vpop.f32.mrf.mxu0  ;;  %10204 = vmatmul.mubr.f32.gmra.mxu0 %v13310_v32  ;;  %10295 = vmatprep.mubr.msk.f32.mxu1 %vm11433_vm0, %v14639_v48  ;;  %v1658_v12 = vadd.f32 %v1614_v44, %v14668_v17  ;;  %v14669_v17 = vld [vmem:[#allocation32_spill] sm:$0xff] }
 0x2e8   :  { %v2390_v13 = vadd.f32 %v2312_v56, %v14667_v60  ;;  %v9908_v19 = vpop.f32.mrf.mxu1  ;;  %10206 = vmatprep.mubr.msk.f32.mxu0 %vm11433_vm0, %v14639_v48  ;;  %10322 = vmatpush3.msra.mxu0 %v3455_v59  ;;  %v3433_v56 = vld [vmem:[#allocation9 + $0x18] sm:$0xff] }
 0x2e9   :  { %v9819_v57 = vpop.f32.mrf.mxu0  ;;  %10374 = vmatprep.subr.mxu1 %v3438_v0  ;;  %10323 = vmatprep.subr.mxu0 %v3454_v30  ;;  %v3432_v19 = vld [vmem:[#allocation9 + $0x10] sm:$0xff]  ;;  %v3450_v59 = vld [vmem:[#allocation9 + $0x98] sm:$0xff] }
 0x2ea   :  { %v2513_v40 = vpop.f32.mrf.mxu1  ;;  %10296 = vmatmul.mubr.f32.gmra.mxu1 %v13361_v6  ;;  %v13875_v32 = vadd.f32 %v2508_v33, %v2390_v13  ;;  %v1759_v6 = vadd.f32 %v1715_v9, %v1658_v12  ;;  %10324 = vmatpush3.msra.mxu0 %v3454_v30  ;;  %v3449_v9 = vld [vmem:[#allocation9 + $0x90] sm:$0xff]  ;;  %v3448_v30 = vld [vmem:[#allocation9 + $0x88] sm:$0xff] }
 0x2eb   :  { %v2317_v20 = vpop.f32.mrf.mxu0  ;;  %10207 = vmatmul.mubr.f32.gmra.mxu0 %v13357_v38  ;;  %10298 = vmatprep.mubr.msk.f32.mxu1 %vm11433_vm0, %v14639_v48  ;;  %v3437_v38 = vld [vmem:[#allocation9 + $0x38] sm:$0xff] }
 0x2ec   :  { %v2391_v42 = vadd.f32 %v2317_v20, %v13541_v46  ;;  %v9911_v61 = vpop.f32.mrf.mxu1  ;;  %10209 = vmatprep.mubr.msk.f32.mxu0 %vm11433_vm0, %v14639_v48  ;;  %v1811_v46 = vadd.f32 %v13554_v16, %v1760_v58  ;;  %10375 = vmatpush3.msra.mxu1 %v3438_v0  ;;  %v3431_v0 = vld [vmem:[#allocation9 + $0x8] sm:$0xff]  ;;  %v3430_v58 = vld [vmem:[#allocation9] sm:$0xff] }
 0x2ed   :  { %v9822_v36 = vpop.f32.mrf.mxu0  ;;  %10376 = vmatprep.subr.mxu1 %v3437_v38  ;;  %10325 = vmatprep.subr.mxu0 %v3453_v55 }
 0x2ee   :  { %v2518_v63 = vpop.f32.mrf.mxu1  ;;  %10299 = vmatmul.mubr.f32.gmra.mxu1 %v13562_v31  ;;  %v13885_v29 = vadd.f32 %v2513_v40, %v2391_v42  ;;  %v1810_v31 = vadd.f32 %v13554_v16, %v1759_v6  ;;  %v1855_v16 = vmax.f32 %v1811_v46, 0.0  ;;  %10326 = vmatpush3.msra.mxu0 %v3453_v55  ;;  %v14670_v42 = vld [vmem:[#allocation34_spill] sm:$0xff] }
 0x2ef   :  { %v2322_v51 = vpop.f32.mrf.mxu0  ;;  %10210 = vmatmul.mubr.f32.gmra.mxu0 %v13566_v26  ;;  %10301 = vmatprep.mubr.msk.f32.mxu1 %vm11433_vm0, %v14639_v48 }
 0x2f0   :  { %v2392_v11 = vadd.f32 %v2322_v51, %v13569_v62  ;;  %v9914_v37 = vpop.f32.mrf.mxu1  ;;  %10212 = vmatprep.mubr.msk.f32.mxu0 %vm11433_vm0, %v14639_v48  ;;  %10377 = vmatpush3.msra.mxu1 %v3437_v38  ;;  %v1854_v47 = vmax.f32 %v1810_v31, 0.0  ;;  %v3447_v51 = vld [vmem:[#allocation9 + $0x80] sm:$0xff] }
 0x2f1   :  { %v9825_v2 = vpop.f32.mrf.mxu0  ;;  %10378 = vmatprep.subr.mxu1 %v3436_v54 }
 0x2f2   :  { %v2523_v21 = vpop.f32.mrf.mxu1  ;;  %10302 = vmatmul.mubr.f32.gmra.mxu1 %v1853_v3  ;;  %v13897_v26 = vadd.f32 %v2518_v63, %v2392_v11 }
 0x2f3   :  { %v2327_v62 = vpop.f32.mrf.mxu0  ;;  %10213 = vmatmul.mubr.f32.gmra.mxu0 %v1852_v15  ;;  %10304 = vmatprep.mubr.msk.f32.mxu1 %vm11433_vm0, %v14639_v48  ;;  %v3452_v15 = vld [vmem:[#allocation9 + $0xa8] sm:$0xff] }
 0x2f4   :  { %v2393_v52 = vadd.f32 %v2327_v62, %v13590_v23  ;;  %v9917_v14 = vpop.f32.mrf.mxu1  ;;  %10215 = vmatprep.mubr.msk.f32.mxu0 %vm11433_vm0, %v14639_v48  ;;  %10379 = vmatpush3.msra.mxu1 %v3436_v54  ;;  %v3434_v23 = vld [vmem:[#allocation9 + $0x20] sm:$0xff] }
 0x2f5   :  { %v9828_v3 = vpop.f32.mrf.mxu0  ;;  %10380 = vmatprep.subr.mxu1 %v3435_v27  ;;  %10327 = vmatprep.subr.mxu0 %v3452_v15 }
 0x2f6   :  { %v2528_v34 = vpop.f32.mrf.mxu1  ;;  %10305 = vmatmul.mubr.f32.gmra.mxu1 %v1855_v16  ;;  %v13906_v4 = vadd.f32 %v2523_v21, %v2393_v52  ;;  %10328 = vmatpush3.msra.mxu0 %v3452_v15 }
 0x2f7   :  { %v2332_v44 = vpop.f32.mrf.mxu0  ;;  %10216 = vmatmul.mubr.f32.gmra.mxu0 %v1854_v47  ;;  %10381 = vmatpush3.msra.mxu1 %v3435_v27 }
 0x2f8   :  { %v2394_v33 = vadd.f32 %v2332_v44, %v13613_v22  ;;  %v9920_v28 = vpop.f32.mrf.mxu1  ;;  %10382 = vmatprep.subr.mxu1 %v3434_v23  ;;  %10329 = vmatprep.subr.mxu0 %v3451_v45 }
 0x2f9   :  { %v9831_v41 = vpop.f32.mrf.mxu0  ;;  %10383 = vmatpush3.msra.mxu1 %v3434_v23  ;;  %10330 = vmatpush3.msra.mxu0 %v3451_v45 }
 0x2fa   :  { %v2533_v5 = vpop.f32.mrf.mxu1  ;;  %v13909_v60 = vadd.f32 %v2528_v34, %v2394_v33  ;;  %10384 = vmatprep.subr.mxu1 %v3433_v56  ;;  %10331 = vmatprep.subr.mxu0 %v3450_v59 }
 0x2fb   :  { %v2337_v13 = vpop.f32.mrf.mxu0  ;;  %10385 = vmatpush3.msra.mxu1 %v3433_v56  ;;  %10332 = vmatpush3.msra.mxu0 %v3450_v59 }
 0x2fc   :  { %v2395_v12 = vadd.f32 %v2337_v13, %v14669_v17  ;;  %v9923_v57 = vpop.f32.mrf.mxu1  ;;  %10386 = vmatprep.subr.mxu1 %v3432_v19  ;;  %10333 = vmatprep.subr.mxu0 %v3449_v9  ;;  %v13932_v17 = vld [vmem:[#allocation9 + $0x1f8] sm:$0xff] }
 0x2fd   :  { %v9834_v22 = vpop.f32.mrf.mxu0  ;;  %10387 = vmatpush3.msra.mxu1 %v3432_v19  ;;  %10334 = vmatpush3.msra.mxu0 %v3449_v9 }
 0x2fe   :  { %v2538_v10 = vpop.f32.mrf.mxu1  ;;  %v13912_v40 = vadd.f32 %v2533_v5, %v2395_v12  ;;  %10388 = vmatprep.subr.mxu1 %v3431_v0  ;;  %10335 = vmatprep.subr.mxu0 %v3448_v30 }
 0x2ff   :  { %v2342_v20 = vpop.f32.mrf.mxu0  ;;  %10389 = vmatpush3.msra.mxu1 %v3431_v0  ;;  %10336 = vmatpush3.msra.mxu0 %v3448_v30  ;;  %v13938_v0 = vld [vmem:[#allocation9 + $0x178] sm:$0xff] }
 0x300   :  { %v2396_v61 = vadd.f32 %v2342_v20, %v14670_v42  ;;  %v9926_v6 = vpop.f32.mrf.mxu1  ;;  %10390 = vmatprep.subr.mxu1 %v3430_v58  ;;  %10337 = vmatprep.subr.mxu0 %v3447_v51 }
 0x301   :  { %v9837_v36 = vpop.f32.mrf.mxu0  ;;  %10391 = vmatpush3.msra.mxu1 %v3430_v58  ;;  %10338 = vmatpush3.msra.mxu0 %v3447_v51 }
 0x302   :  { %v2543_v63 = vpop.f32.mrf.mxu1  ;;  %v13915_v38 = vadd.f32 %v2538_v10, %v2396_v61  ;;  %10466 = vmatprep.subr.mxu1 %v13932_v17  ;;  %10413 = vmatprep.subr.mxu0 %v13938_v0 }
 0x303   :  { %v2347_v46 = vpop.f32.mrf.mxu0 }
 0x304   :  { %v2397_v11 = vadd.f32 %v2347_v46, %v13682_v39  ;;  %v9929_v37 = vpop.f32.mrf.mxu1 }
 0x305   :  { %v9840_v31 = vpop.f32.mrf.mxu0 }
 0x306   :  { %v2548_v2 = vpop.f32.mrf.mxu1  ;;  %v13918_v21 = vadd.f32 %v2543_v63, %v2397_v11 }
 0x307   :  { %v2352_v54 = vpop.f32.mrf.mxu0 }
 0x308   :  { %v2398_v55 = vadd.f32 %v2352_v54, %v13714_v18  ;;  %v9932_v62 = vpop.f32.mrf.mxu1 }
 0x309   :  { %v9843_v16 = vpop.f32.mrf.mxu0 }
 0x30a   :  { %v2553_v52 = vpop.f32.mrf.mxu1  ;;  %v13921_v14 = vadd.f32 %v2548_v2, %v2398_v55 }
 0x30b   :  { %v2357_v47 = vpop.f32.mrf.mxu0 }
 0x30c   :  { %v2399_v3 = vadd.f32 %v2357_v47, %v13744_v24  ;;  %v9935_v39 = vpop.f32.mrf.mxu1 }
 0x30d   :  { %v9846_v27 = vpop.f32.mrf.mxu0 }
 0x30e   :  { %v2558_v34 = vpop.f32.mrf.mxu1  ;;  %v13924_v15 = vadd.f32 %v2553_v52, %v2399_v3 }
 0x30f   :  { %v2362_v44 = vpop.f32.mrf.mxu0 }
 0x310   :  { %v2400_v23 = vadd.f32 %v2362_v44, %v13765_v53  ;;  %v9938_v45 = vpop.f32.mrf.mxu1 }
 0x311   :  { %v9849_v33 = vpop.f32.mrf.mxu0 }
 0x312   :  { %v2563_v28 = vpop.f32.mrf.mxu1  ;;  %v13927_v18 = vadd.f32 %v2558_v34, %v2400_v23 }
 0x313   :  { %v2367_v41 = vpop.f32.mrf.mxu0 }
 0x314   :  { %v2401_v56 = vadd.f32 %v2367_v41, %v13784_v35  ;;  %v9941_v5 = vpop.f32.mrf.mxu1 }
 0x315   :  { %v9852_v13 = vpop.f32.mrf.mxu0 }
 0x316   :  { %v2568_v19 = vpop.f32.mrf.mxu1  ;;  %v13930_v24 = vadd.f32 %v2563_v28, %v2401_v56 }
 0x317   :  { %v2372_v12 = vpop.f32.mrf.mxu0 }
 0x318   :  { %v2402_v53 = vadd.f32 %v2372_v12, %v13802_v49  ;;  %v9944_v57 = vpop.f32.mrf.mxu1 }
 0x319   :  { %v9855_v22 = vpop.f32.mrf.mxu0 }
 0x31a   :  { %v2573_v10 = vpop.f32.mrf.mxu1  ;;  %v13936_v59 = vadd.f32 %v2568_v19, %v2402_v53 }
 0x31b   :  { %v2377_v35 = vpop.f32.mrf.mxu0 }
 0x31c   :  { %v2403_v9 = vadd.f32 %v2377_v35, %v13813_v7  ;;  %v9947_v20 = vpop.f32.mrf.mxu1 }
 0x31d   :  { %v9858_v58 = vpop.f32.mrf.mxu0 }
 0x31e   :  { %v2578_v42 = vpop.f32.mrf.mxu1  ;;  %v13942_v61 = vadd.f32 %v2573_v10, %v2403_v9 }
 0x31f   :  { %v2382_v6 = vpop.f32.mrf.mxu0 }
 0x320   :  { %v2404_v49 = vadd.f32 %v2382_v6, %v13824_v1  ;;  %v9950_v36 = vpop.f32.mrf.mxu1 }
 0x321   :  { %v9861_v63 = vpop.f32.mrf.mxu0 }
 0x322   :  { %v2880_v30 = vpop.f32.mrf.mxu1  ;;  %v13945_v51 = vadd.f32 %v2578_v42, %v2404_v49 }
 0x323   :  { %v2684_v46 = vpop.f32.mrf.mxu0 }
 0x324   :  { %v2778_v11 = vadd.f32 %v2684_v46, %v13836_v50  ;;  %v10074_v37 = vpop.f32.mrf.mxu1 }
 0x325   :  { %v9985_v31 = vpop.f32.mrf.mxu0 }
 0x326   :  { %v2885_v2 = vpop.f32.mrf.mxu1  ;;  %v13948_v7 = vadd.f32 %v2880_v30, %v2778_v11 }
 0x327   :  { %v2689_v54 = vpop.f32.mrf.mxu0 }
 0x328   :  { %v2779_v55 = vadd.f32 %v2689_v54, %v13845_v25  ;;  %v10077_v62 = vpop.f32.mrf.mxu1 }
 0x329   :  { %v9988_v16 = vpop.f32.mrf.mxu0 }
 0x32a   :  { %v2890_v52 = vpop.f32.mrf.mxu1  ;;  %v13951_v1 = vadd.f32 %v2885_v2, %v2779_v55 }
 0x32b   :  { %v2694_v47 = vpop.f32.mrf.mxu0 }
 0x32c   :  { %v2780_v3 = vadd.f32 %v2694_v47, %v13855_v43  ;;  %v10080_v39 = vpop.f32.mrf.mxu1 }
 0x32d   :  { %v9991_v27 = vpop.f32.mrf.mxu0 }
 0x32e   :  { %v2895_v34 = vpop.f32.mrf.mxu1  ;;  %v13954_v50 = vadd.f32 %v2890_v52, %v2780_v3 }
 0x32f   :  { %v2699_v44 = vpop.f32.mrf.mxu0 }
 0x330   :  { %v2781_v23 = vadd.f32 %v2699_v44, %v13864_v8  ;;  %v10083_v45 = vpop.f32.mrf.mxu1 }
 0x331   :  { %v9994_v33 = vpop.f32.mrf.mxu0 }
 0x332   :  { %v2900_v28 = vpop.f32.mrf.mxu1  ;;  %v13957_v25 = vadd.f32 %v2895_v34, %v2781_v23 }
 0x333   :  { %v2704_v41 = vpop.f32.mrf.mxu0 }
 0x334   :  { %v2782_v56 = vadd.f32 %v2704_v41, %v13875_v32  ;;  %v10086_v5 = vpop.f32.mrf.mxu1 }
 0x335   :  { %v9997_v13 = vpop.f32.mrf.mxu0 }
 0x336   :  { %v2905_v19 = vpop.f32.mrf.mxu1  ;;  %v13960_v43 = vadd.f32 %v2900_v28, %v2782_v56 }
 0x337   :  { %v2709_v12 = vpop.f32.mrf.mxu0 }
 0x338   :  { %v2783_v53 = vadd.f32 %v2709_v12, %v13885_v29  ;;  %v10089_v57 = vpop.f32.mrf.mxu1 }
 0x339   :  { %v10000_v22 = vpop.f32.mrf.mxu0 }
 0x33a   :  { %v2910_v10 = vpop.f32.mrf.mxu1  ;;  %v13963_v8 = vadd.f32 %v2905_v19, %v2783_v53 }
 0x33b   :  { %v2714_v35 = vpop.f32.mrf.mxu0 }
 0x33c   :  { %v2784_v9 = vadd.f32 %v2714_v35, %v13897_v26  ;;  %v10092_v20 = vpop.f32.mrf.mxu1 }
 0x33d   :  { %v10003_v58 = vpop.f32.mrf.mxu0 }
 0x33e   :  { %v2915_v42 = vpop.f32.mrf.mxu1  ;;  %v13966_v32 = vadd.f32 %v2910_v10, %v2784_v9 }
 0x33f   :  { %v2719_v6 = vpop.f32.mrf.mxu0 }
 0x340   :  { %v2785_v49 = vadd.f32 %v2719_v6, %v13906_v4  ;;  %v10095_v36 = vpop.f32.mrf.mxu1 }
 0x341   :  { %v10006_v63 = vpop.f32.mrf.mxu0 }
 0x342   :  { %v2920_v30 = vpop.f32.mrf.mxu1  ;;  %v13969_v29 = vadd.f32 %v2915_v42, %v2785_v49 }
 0x343   :  { %v2724_v46 = vpop.f32.mrf.mxu0 }
 0x344   :  { %v2786_v11 = vadd.f32 %v2724_v46, %v13909_v60  ;;  %v10098_v37 = vpop.f32.mrf.mxu1 }
 0x345   :  { %v10009_v31 = vpop.f32.mrf.mxu0 }
 0x346   :  { %v2925_v2 = vpop.f32.mrf.mxu1  ;;  %v13972_v26 = vadd.f32 %v2920_v30, %v2786_v11 }
 0x347   :  { %v2729_v54 = vpop.f32.mrf.mxu0 }
 0x348   :  { %v2787_v55 = vadd.f32 %v2729_v54, %v13912_v40  ;;  %v10101_v62 = vpop.f32.mrf.mxu1 }
 0x349   :  { %v10012_v16 = vpop.f32.mrf.mxu0 }
 0x34a   :  { %v2930_v52 = vpop.f32.mrf.mxu1  ;;  %v13975_v4 = vadd.f32 %v2925_v2, %v2787_v55 }
 0x34b   :  { %v2734_v47 = vpop.f32.mrf.mxu0 }
 0x34c   :  { %v2788_v3 = vadd.f32 %v2734_v47, %v13915_v38  ;;  %v10104_v39 = vpop.f32.mrf.mxu1 }
 0x34d   :  { %v10015_v27 = vpop.f32.mrf.mxu0 }
 0x34e   :  { %v2935_v34 = vpop.f32.mrf.mxu1  ;;  %v13978_v60 = vadd.f32 %v2930_v52, %v2788_v3 }
 0x34f   :  { %v2739_v44 = vpop.f32.mrf.mxu0 }
 0x350   :  { %v2789_v23 = vadd.f32 %v2739_v44, %v13918_v21  ;;  %v10107_v45 = vpop.f32.mrf.mxu1 }
 0x351   :  { %v10018_v33 = vpop.f32.mrf.mxu0 }
 0x352   :  { %v2940_v28 = vpop.f32.mrf.mxu1  ;;  %v13981_v40 = vadd.f32 %v2935_v34, %v2789_v23 }
 0x353   :  { %v2744_v41 = vpop.f32.mrf.mxu0 }
 0x354   :  { %v2790_v56 = vadd.f32 %v2744_v41, %v13921_v14  ;;  %v10110_v5 = vpop.f32.mrf.mxu1 }
 0x355   :  { %v10021_v13 = vpop.f32.mrf.mxu0 }
 0x356   :  { %v2945_v19 = vpop.f32.mrf.mxu1  ;;  %v13984_v38 = vadd.f32 %v2940_v28, %v2790_v56  ;;  %v14005_v28 = vld [vmem:[#allocation7] ss:$0 sm:$0xff] }
 0x357   :  { %v2749_v12 = vpop.f32.mrf.mxu0 }
 0x358   :  { %v2791_v53 = vadd.f32 %v2749_v12, %v13924_v15  ;;  %v10113_v57 = vpop.f32.mrf.mxu1 }
 0x359   :  { %v10024_v22 = vpop.f32.mrf.mxu0 }
 0x35a   :  { %v2950_v10 = vpop.f32.mrf.mxu1  ;;  %v13987_v21 = vadd.f32 %v2945_v19, %v2791_v53 }
 0x35b   :  { %v2754_v35 = vpop.f32.mrf.mxu0 }
 0x35c   :  { %v2792_v9 = vadd.f32 %v2754_v35, %v13927_v18  ;;  %v10116_v20 = vpop.f32.mrf.mxu1 }
 0x35d   :  { %v10027_v58 = vpop.f32.mrf.mxu0 }
 0x35e   :  { %v2955_v42 = vpop.f32.mrf.mxu1  ;;  %v13990_v14 = vadd.f32 %v2950_v10, %v2792_v9 }
 0x35f   :  { %v2759_v6 = vpop.f32.mrf.mxu0 }
 0x360   :  { %v2793_v49 = vadd.f32 %v2759_v6, %v13930_v24  ;;  %v10119_v36 = vpop.f32.mrf.mxu1 }
 0x361   :  { %v10030_v63 = vpop.f32.mrf.mxu0 }
 0x362   :  { %v2960_v30 = vpop.f32.mrf.mxu1  ;;  %v13993_v15 = vadd.f32 %v2955_v42, %v2793_v49 }
 0x363   :  { %v2764_v46 = vpop.f32.mrf.mxu0 }
 0x364   :  { %v2794_v11 = vadd.f32 %v2764_v46, %v13936_v59  ;;  %v10122_v37 = vpop.f32.mrf.mxu1 }
 0x365   :  { %v10033_v31 = vpop.f32.mrf.mxu0  ;;  %v3913_v37 = vld [vmem:[#allocation9 + $0x1e8] sm:$0xff] }
 0x366   :  { %v2965_v2 = vpop.f32.mrf.mxu1  ;;  %v13996_v18 = vadd.f32 %v2960_v30, %v2794_v11 }
 0x367   :  { %v2769_v54 = vpop.f32.mrf.mxu0 }
 0x368   :  { %v2795_v55 = vadd.f32 %v2769_v54, %v13942_v61  ;;  %v10125_v62 = vpop.f32.mrf.mxu1 }
 0x369   :  { %v10036_v16 = vpop.f32.mrf.mxu0  ;;  %v3912_v62 = vld [vmem:[#allocation9 + $0x1e0] sm:$0xff] }
 0x36a   :  { %v2970_v52 = vpop.f32.mrf.mxu1  ;;  %v13999_v24 = vadd.f32 %v2965_v2, %v2795_v55  ;;  %v3748_v2 = vld [vmem:[#allocation9 + $0x170] sm:$0xff] }
 0x36b   :  { %v2774_v47 = vpop.f32.mrf.mxu0 }
 0x36c   :  { %v2796_v3 = vadd.f32 %v2774_v47, %v13945_v51  ;;  %v10128_v39 = vpop.f32.mrf.mxu1 }
 0x36d   :  { %v10039_v27 = vpop.f32.mrf.mxu0 }
 0x36e   :  { %v3272_v34 = vpop.f32.mrf.mxu1  ;;  %v14002_v59 = vadd.f32 %v2970_v52, %v2796_v3  ;;  %v3747_v3 = vld [vmem:[#allocation9 + $0x168] sm:$0xff] }
 0x36f   :  { %v3076_v44 = vpop.f32.mrf.mxu0 }
 0x370   :  { %v3170_v23 = vadd.f32 %v3076_v44, %v13948_v7  ;;  %v10252_v45 = vpop.f32.mrf.mxu1 }
 0x371   :  { %v10163_v33 = vpop.f32.mrf.mxu0 }
 0x372   :  { %v3366_v61 = vadd.f32 %v3272_v34, %v3170_v23  ;;  %v3277_v41 = vpop.f32.mrf.mxu1 }
 0x373   :  { %v3081_v56 = vpop.f32.mrf.mxu0 }
 0x374   :  { %v3171_v5 = vadd.f32 %v3081_v56, %v13951_v1  ;;  %v10255_v13 = vpop.f32.mrf.mxu1  ;;  %v3392_v51 = vadd.f32 %v14005_v28, %v3366_v61  ;;  %v3914_v1 = vld [vmem:[#allocation9 + $0x1f0] sm:$0xff] }
 0x375   :  { %v10166_v19 = vpop.f32.mrf.mxu0 }
 0x376   :  { %v3367_v12 = vadd.f32 %v3277_v41, %v3171_v5  ;;  %v3282_v53 = vpop.f32.mrf.mxu1  ;;  %v3411_v57 = vmax.f32 %v3392_v51, 0.0  ;;  %v3910_v41 = vld [vmem:[#allocation9 + $0x1d0] sm:$0xff]  ;;  %v3909_v19 = vld [vmem:[#allocation9 + $0x1c8] sm:$0xff] }
 0x377   :  { %v3086_v22 = vpop.f32.mrf.mxu0 }
 0x378   :  { %v3172_v10 = vadd.f32 %v3086_v22, %v13954_v50  ;;  %v10258_v7 = vpop.f32.mrf.mxu1  ;;  %10392 = vmatprep.mubr.f32.mxu1 %v3411_v57  ;;  %v3393_v35 = vadd.f32 %v14005_v28, %v3367_v12 }
 0x379   :  { %v10169_v9 = vpop.f32.mrf.mxu0 }
 0x37a   :  { %v3368_v20 = vadd.f32 %v3282_v53, %v3172_v10  ;;  %v3287_v58 = vpop.f32.mrf.mxu1  ;;  %v3412_v42 = vmax.f32 %v3393_v35, 0.0  ;;  %v3744_v10 = vld [vmem:[#allocation9 + $0x150] sm:$0xff] }
 0x37b   :  { %v3091_v6 = vpop.f32.mrf.mxu0 }
 0x37c   :  { %v3394_v49 = vadd.f32 %v14005_v28, %v3368_v20  ;;  %v3173_v36 = vadd.f32 %v3091_v6, %v13957_v25  ;;  %v10261_v63 = vpop.f32.mrf.mxu1  ;;  %10339 = vmatprep.mubr.f32.mxu0 %v3412_v42  ;;  %10393 = vmatmul.mubr.f32.vlgmr.msra.gmra.mxu1 %v3412_v42 }
 0x37d   :  { %v10172_v30 = vpop.f32.mrf.mxu0  ;;  %10467 = vmatpush3.msra.mxu1 %v13932_v17 }
 0x37e   :  { %v14014_v50 = vmax.f32 %v3394_v49, 0.0  ;;  %v3369_v46 = vadd.f32 %v3287_v58, %v3173_v36  ;;  %v3292_v11 = vpop.f32.mrf.mxu1  ;;  %10468 = vmatprep.subr.mxu1 %v3914_v1  ;;  %v3743_v58 = vld [vmem:[#allocation9 + $0x148] sm:$0xff]  ;;  %v3907_v36 = vld [vmem:[#allocation9 + $0x1b8] sm:$0xff] }
 0x37f   :  { %v3096_v31 = vpop.f32.mrf.mxu0  ;;  %10469 = vmatpush3.msra.mxu1 %v3914_v1 }
 0x380   :  { %v3395_v54 = vadd.f32 %v14005_v28, %v3369_v46  ;;  %v3174_v55 = vadd.f32 %v3096_v31, %v13960_v43  ;;  %v10264_v25 = vpop.f32.mrf.mxu1  ;;  %10340 = vmatmul.mubr.f32.vlgmr.msra.gmra.mxu0 %v14014_v50  ;;  %10395 = vmatprep.mubr.f32.mxu1 %v14014_v50  ;;  %v3911_v43 = vld [vmem:[#allocation9 + $0x1d8] sm:$0xff] }
 0x381   :  { %v10175_v17 = vpop.f32.mrf.mxu0  ;;  %10470 = vmatprep.subr.mxu1 %v3913_v37  ;;  %10414 = vmatpush3.msra.mxu0 %v13938_v0  ;;  %v3746_v0 = vld [vmem:[#allocation9 + $0x160] sm:$0xff]  ;;  %v3741_v25 = vld [vmem:[#allocation9 + $0x138] sm:$0xff] }
 0x382   :  { %v14021_v16 = vmax.f32 %v3395_v54, 0.0  ;;  %v3370_v52 = vadd.f32 %v3292_v11, %v3174_v55  ;;  %v3297_v47 = vpop.f32.mrf.mxu1  ;;  %10471 = vmatpush3.msra.mxu1 %v3913_v37  ;;  %10415 = vmatprep.subr.mxu0 %v3748_v2  ;;  %v3906_v37 = vld [vmem:[#allocation9 + $0x1b0] sm:$0xff] }
 0x383   :  { %v3101_v39 = vpop.f32.mrf.mxu0  ;;  %10472 = vmatprep.subr.mxu1 %v3912_v62  ;;  %10416 = vmatpush3.msra.mxu0 %v3748_v2 }
 0x384   :  { %v3396_v27 = vadd.f32 %v14005_v28, %v3370_v52  ;;  %v3175_v34 = vadd.f32 %v3101_v39, %v13963_v8  ;;  %v10267_v44 = vpop.f32.mrf.mxu1  ;;  %10342 = vmatprep.mubr.f32.mxu0 %v14021_v16  ;;  %10396 = vmatmul.mubr.f32.gmra.mxu1 %v14021_v16  ;;  %v3745_v8 = vld [vmem:[#allocation9 + $0x158] sm:$0xff] }
 0x385   :  { %v10178_v23 = vpop.f32.mrf.mxu0  ;;  %10473 = vmatpush3.msra.mxu1 %v3912_v62  ;;  %10417 = vmatprep.subr.mxu0 %v3747_v3  ;;  %v3904_v44 = vld [vmem:[#allocation9 + $0x1a0] sm:$0xff] }
 0x386   :  { %v14027_v45 = vmax.f32 %v3396_v27, 0.0  ;;  %v3371_v33 = vadd.f32 %v3297_v47, %v3175_v34  ;;  %v3302_v61 = vpop.f32.mrf.mxu1  ;;  %10474 = vmatprep.subr.mxu1 %v3911_v43  ;;  %10418 = vmatpush3.msra.mxu0 %v3747_v3  ;;  %v3740_v3 = vld [vmem:[#allocation9 + $0x130] sm:$0xff] }
 0x387   :  { %v3106_v56 = vpop.f32.mrf.mxu0  ;;  %10475 = vmatpush3.msra.mxu1 %v3911_v43  ;;  %10419 = vmatprep.subr.mxu0 %v3746_v0 }
 0x388   :  { %v3397_v5 = vadd.f32 %v14005_v28, %v3371_v33  ;;  %v3176_v13 = vadd.f32 %v3106_v56, %v13966_v32  ;;  %v10270_v51 = vpop.f32.mrf.mxu1  ;;  %10343 = vmatmul.mubr.f32.gmra.mxu0 %v14027_v45  ;;  %10398 = vmatprep.mubr.f32.mxu1 %v14027_v45  ;;  %v3908_v32 = vld [vmem:[#allocation9 + $0x1c0] sm:$0xff] }
 0x389   :  { %v10181_v12 = vpop.f32.mrf.mxu0  ;;  %10476 = vmatprep.subr.mxu1 %v3910_v41  ;;  %10420 = vmatpush3.msra.mxu0 %v3746_v0  ;;  %v3738_v51 = vld [vmem:[#allocation9 + $0x120] sm:$0xff] }
 0x38a   :  { %v14033_v53 = vmax.f32 %v3397_v5, 0.0  ;;  %v3372_v57 = vadd.f32 %v3302_v61, %v3176_v13  ;;  %v3307_v22 = vpop.f32.mrf.mxu1  ;;  %10477 = vmatpush3.msra.mxu1 %v3910_v41  ;;  %10421 = vmatprep.subr.mxu0 %v3745_v8  ;;  %v3903_v41 = vld [vmem:[#allocation9 + $0x198] sm:$0xff] }
 0x38b   :  { %v3111_v7 = vpop.f32.mrf.mxu0  ;;  %10478 = vmatprep.subr.mxu1 %v3909_v19  ;;  %10422 = vmatpush3.msra.mxu0 %v3745_v8 }
 0x38c   :  { %v3398_v35 = vadd.f32 %v14005_v28, %v3372_v57  ;;  %v3177_v9 = vadd.f32 %v3111_v7, %v13969_v29  ;;  %v10273_v20 = vpop.f32.mrf.mxu1  ;;  %10345 = vmatprep.mubr.f32.mxu0 %v14033_v53  ;;  %10399 = vmatmul.mubr.f32.gmra.mxu1 %v14033_v53  ;;  %v3742_v29 = vld [vmem:[#allocation9 + $0x140] sm:$0xff] }
 0x38d   :  { %v10184_v42 = vpop.f32.mrf.mxu0  ;;  %10479 = vmatpush3.msra.mxu1 %v3909_v19  ;;  %10423 = vmatprep.subr.mxu0 %v3744_v10  ;;  %v3901_v20 = vld [vmem:[#allocation9 + $0x188] sm:$0xff] }
 0x38e   :  { %v14039_v6 = vmax.f32 %v3398_v35, 0.0  ;;  %v3373_v1 = vadd.f32 %v3307_v22, %v3177_v9  ;;  %v3312_v49 = vpop.f32.mrf.mxu1  ;;  %10480 = vmatprep.subr.mxu1 %v3908_v32  ;;  %10424 = vmatpush3.msra.mxu0 %v3744_v10  ;;  %v3737_v10 = vld [vmem:[#allocation9 + $0x118] sm:$0xff] }
 0x38f   :  { %v3116_v63 = vpop.f32.mrf.mxu0  ;;  %10481 = vmatpush3.msra.mxu1 %v3908_v32  ;;  %10425 = vmatprep.subr.mxu0 %v3743_v58 }
 0x390   :  { %v3399_v30 = vadd.f32 %v14005_v28, %v3373_v1  ;;  %v3178_v46 = vadd.f32 %v3116_v63, %v13972_v26  ;;  %v10276_v11 = vpop.f32.mrf.mxu1  ;;  %10346 = vmatmul.mubr.f32.gmra.mxu0 %v14039_v6  ;;  %10401 = vmatprep.mubr.f32.mxu1 %v14039_v6  ;;  %v3905_v26 = vld [vmem:[#allocation9 + $0x1a8] sm:$0xff] }
 0x391   :  { %v10187_v31 = vpop.f32.mrf.mxu0  ;;  %10482 = vmatprep.subr.mxu1 %v3907_v36  ;;  %10426 = vmatpush3.msra.mxu0 %v3743_v58  ;;  %v3735_v11 = vld [vmem:[#allocation9 + $0x108] sm:$0xff] }
 0x392   :  { %v14045_v2 = vmax.f32 %v3399_v30, 0.0  ;;  %v3374_v54 = vadd.f32 %v3312_v49, %v3178_v46  ;;  %v3317_v55 = vpop.f32.mrf.mxu1  ;;  %10483 = vmatpush3.msra.mxu1 %v3907_v36  ;;  %10427 = vmatprep.subr.mxu0 %v3742_v29  ;;  %v3900_v36 = vld [vmem:[#allocation9 + $0x180] sm:$0xff] }
 0x393   :  { %v3121_v62 = vpop.f32.mrf.mxu0  ;;  %10484 = vmatprep.subr.mxu1 %v3906_v37  ;;  %10428 = vmatpush3.msra.mxu0 %v3742_v29 }
 0x394   :  { %v3400_v17 = vadd.f32 %v14005_v28, %v3374_v54  ;;  %v3179_v52 = vadd.f32 %v3121_v62, %v13975_v4  ;;  %v10279_v47 = vpop.f32.mrf.mxu1  ;;  %10348 = vmatprep.mubr.f32.mxu0 %v14045_v2  ;;  %10402 = vmatmul.mubr.f32.gmra.mxu1 %v14045_v2  ;;  %v3739_v4 = vld [vmem:[#allocation9 + $0x128] sm:$0xff] }
 0x395   :  { %v10190_v39 = vpop.f32.mrf.mxu0  ;;  %10485 = vmatpush3.msra.mxu1 %v3906_v37  ;;  %10429 = vmatprep.subr.mxu0 %v3741_v25 }
 0x396   :  { %v14051_v43 = vmax.f32 %v3400_v17, 0.0  ;;  %v3375_v27 = vadd.f32 %v3317_v55, %v3179_v52  ;;  %v3322_v34 = vpop.f32.mrf.mxu1  ;;  %10486 = vmatprep.subr.mxu1 %v3905_v26  ;;  %10430 = vmatpush3.msra.mxu0 %v3741_v25  ;;  %v3734_v25 = vld [vmem:[#allocation9 + $0x100] sm:$0xff] }
 0x397   :  { %v3126_v0 = vpop.f32.mrf.mxu0  ;;  %10487 = vmatpush3.msra.mxu1 %v3905_v26  ;;  %10431 = vmatprep.subr.mxu0 %v3740_v3 }
 0x398   :  { %v3401_v23 = vadd.f32 %v14005_v28, %v3375_v27  ;;  %v3180_v33 = vadd.f32 %v3126_v0, %v13978_v60  ;;  %v10282_v61 = vpop.f32.mrf.mxu1  ;;  %10349 = vmatmul.mubr.f32.gmra.mxu0 %v14051_v43  ;;  %10404 = vmatprep.mubr.f32.mxu1 %v14051_v43  ;;  %v3902_v60 = vld [vmem:[#allocation9 + $0x190] sm:$0xff] }
 0x399   :  { %v10193_v56 = vpop.f32.mrf.mxu0  ;;  %10488 = vmatprep.subr.mxu1 %v3904_v44  ;;  %10432 = vmatpush3.msra.mxu0 %v3740_v3  ;;  %v4081_v3 = vld [vmem:[#allocation9 + $0x278] sm:$0xff] }
 0x39a   :  { %v14057_v8 = vmax.f32 %v3401_v23, 0.0  ;;  %v3376_v5 = vadd.f32 %v3322_v34, %v3180_v33  ;;  %v3327_v13 = vpop.f32.mrf.mxu1  ;;  %10489 = vmatpush3.msra.mxu1 %v3904_v44  ;;  %10433 = vmatprep.subr.mxu0 %v3739_v4 }
 0x39b   :  { %v3131_v19 = vpop.f32.mrf.mxu0  ;;  %10490 = vmatprep.subr.mxu1 %v3903_v41  ;;  %10434 = vmatpush3.msra.mxu0 %v3739_v4 }
 0x39c   :  { %v3402_v12 = vadd.f32 %v14005_v28, %v3376_v5  ;;  %v3181_v57 = vadd.f32 %v3131_v19, %v13981_v40  ;;  %v10285_v22 = vpop.f32.mrf.mxu1  ;;  %10351 = vmatprep.mubr.f32.mxu0 %v14057_v8  ;;  %10405 = vmatmul.mubr.f32.gmra.mxu1 %v14057_v8  ;;  %v3736_v40 = vld [vmem:[#allocation9 + $0x110] sm:$0xff] }
 0x39d   :  { %v10196_v7 = vpop.f32.mrf.mxu0  ;;  %10491 = vmatpush3.msra.mxu1 %v3903_v41  ;;  %10435 = vmatprep.subr.mxu0 %v3738_v51 }
 0x39e   :  { %v14063_v32 = vmax.f32 %v3402_v12, 0.0  ;;  %v3377_v35 = vadd.f32 %v3327_v13, %v3181_v57  ;;  %v3332_v9 = vpop.f32.mrf.mxu1  ;;  %10492 = vmatprep.subr.mxu1 %v3902_v60  ;;  %10436 = vmatpush3.msra.mxu0 %v3738_v51  ;;  %v4246_v13 = vld [vmem:[#allocation9 + $0x2f0] sm:$0xff] }
 0x39f   :  { %v3136_v58 = vpop.f32.mrf.mxu0  ;;  %10493 = vmatpush3.msra.mxu1 %v3902_v60  ;;  %10437 = vmatprep.subr.mxu0 %v3737_v10  ;;  %v4245_v60 = vld [vmem:[#allocation9 + $0x2e8] sm:$0xff] }
 0x3a0   :  { %v3403_v42 = vadd.f32 %v14005_v28, %v3377_v35  ;;  %v3182_v1 = vadd.f32 %v3136_v58, %v13984_v38  ;;  %v10288_v49 = vpop.f32.mrf.mxu1  ;;  %10352 = vmatmul.mubr.f32.gmra.mxu0 %v14063_v32  ;;  %10407 = vmatprep.mubr.f32.mxu1 %v14063_v32  ;;  %v4247_v38 = vld [vmem:[#allocation9 + $0x2f8] sm:$0xff]  ;;  %v4244_v35 = vld [vmem:[#allocation9 + $0x2e0] sm:$0xff] }
 0x3a1   :  { %v10199_v63 = vpop.f32.mrf.mxu0  ;;  %10494 = vmatprep.subr.mxu1 %v3901_v20  ;;  %10438 = vmatpush3.msra.mxu0 %v3737_v10  ;;  %v4080_v10 = vld [vmem:[#allocation9 + $0x270] sm:$0xff]  ;;  %v4243_v58 = vld [vmem:[#allocation9 + $0x2d8] sm:$0xff] }
 0x3a2   :  { %v14069_v29 = vmax.f32 %v3403_v42, 0.0  ;;  %v3378_v30 = vadd.f32 %v3332_v9, %v3182_v1  ;;  %v3337_v46 = vpop.f32.mrf.mxu1  ;;  %10495 = vmatpush3.msra.mxu1 %v3901_v20  ;;  %10439 = vmatprep.subr.mxu0 %v3736_v40  ;;  %v4079_v9 = vld [vmem:[#allocation9 + $0x268] sm:$0xff]  ;;  %v4078_v42 = vld [vmem:[#allocation9 + $0x260] sm:$0xff]  ;;  %v4242_v1 = vld [vmem:[#allocation9 + $0x2d0] sm:$0xff] }
 0x3a3   :  { %v3141_v37 = vpop.f32.mrf.mxu0  ;;  %10496 = vmatprep.subr.mxu1 %v3900_v36  ;;  %10440 = vmatpush3.msra.mxu0 %v3736_v40  ;;  %v4077_v49 = vld [vmem:[#allocation9 + $0x258] sm:$0xff]  ;;  %v4076_v63 = vld [vmem:[#allocation9 + $0x250] sm:$0xff] }
 0x3a4   :  { %v3404_v31 = vadd.f32 %v14005_v28, %v3378_v30  ;;  %v3183_v54 = vadd.f32 %v3141_v37, %v13987_v21  ;;  %v10291_v55 = vpop.f32.mrf.mxu1  ;;  %10354 = vmatprep.mubr.f32.mxu0 %v14069_v29  ;;  %10408 = vmatmul.mubr.f32.gmra.mxu1 %v14069_v29  ;;  %v4239_v37 = vld [vmem:[#allocation9 + $0x2b8] sm:$0xff] }
 0x3a5   :  { %v10202_v62 = vpop.f32.mrf.mxu0  ;;  %10497 = vmatpush3.msra.mxu1 %v3900_v36  ;;  %10441 = vmatprep.subr.mxu0 %v3735_v11  ;;  %v4241_v36 = vld [vmem:[#allocation9 + $0x2c8] sm:$0xff]  ;;  %v4073_v55 = vld [vmem:[#allocation9 + $0x238] sm:$0xff] }
 0x3a6   :  { %v14075_v26 = vmax.f32 %v3404_v31, 0.0  ;;  %v3379_v17 = vadd.f32 %v3337_v46, %v3183_v54  ;;  %v3342_v52 = vpop.f32.mrf.mxu1  ;;  %10572 = vmatprep.subr.mxu1 %v4247_v38  ;;  %10442 = vmatpush3.msra.mxu0 %v3735_v11  ;;  %v4240_v46 = vld [vmem:[#allocation9 + $0x2c0] sm:$0xff]  ;;  %v4075_v11 = vld [vmem:[#allocation9 + $0x248] sm:$0xff]  ;;  %v4238_v54 = vld [vmem:[#allocation9 + $0x2b0] sm:$0xff] }
 0x3a7   :  { %v3146_v47 = vpop.f32.mrf.mxu0  ;;  %10443 = vmatprep.subr.mxu0 %v3734_v25 }
 0x3a8   :  { %v3405_v21 = vadd.f32 %v14005_v28, %v3379_v17  ;;  %v3184_v39 = vadd.f32 %v3146_v47, %v13990_v14  ;;  %v10294_v27 = vpop.f32.mrf.mxu1  ;;  %10355 = vmatmul.mubr.f32.gmra.mxu0 %v14075_v26  ;;  %10410 = vmatprep.mubr.f32.mxu1 %v14075_v26  ;;  %v4072_v17 = vld [vmem:[#allocation9 + $0x230] sm:$0xff] }
 0x3a9   :  { %v10205_v34 = vpop.f32.mrf.mxu0  ;;  %10444 = vmatpush3.msra.mxu0 %v3734_v25 }
 0x3aa   :  { %v14081_v44 = vmax.f32 %v3405_v21, 0.0  ;;  %v3380_v0 = vadd.f32 %v3342_v52, %v3184_v39  ;;  %v14083_v4 = vpop.f32.mrf.mxu1  ;;  %10519 = vmatprep.subr.mxu0 %v4081_v3  ;;  %v4071_v21 = vld [vmem:[#allocation9 + $0x228] sm:$0xff]  ;;  %v4235_v39 = vld [vmem:[#allocation9 + $0x298] sm:$0xff]  ;;  %v4070_v34 = vld [vmem:[#allocation9 + $0x220] sm:$0xff] }
 0x3ab   :  { %v14085_v23 = vpop.f32.mrf.mxu0 }
 0x3ac   :  { %v3406_v33 = vadd.f32 %v14005_v28, %v3380_v0  ;;  %v10297_v61 = vpop.f32.mrf.mxu1  ;;  %10357 = vmatprep.mubr.f32.mxu0 %v14081_v44  ;;  %10411 = vmatmul.mubr.f32.gmra.mxu1 %v14081_v44  ;;  %v3185_v30 = vadd.f32 %v14085_v23, %v13993_v15  ;;  %v4074_v15 = vld [vmem:[#allocation9 + $0x240] sm:$0xff]  ;;  %v4234_v0 = vld [vmem:[#allocation9 + $0x290] sm:$0xff]  ;;  %v4233_v23 = vld [vmem:[#allocation9 + $0x288] sm:$0xff] }
 0x3ad   :  { %v10208_v14 = vpop.f32.mrf.mxu0  ;;  %10498 = vmatprep.mubr.f32.mxu1 %v14021_v16  ;;  %v4232_v61 = vld [vmem:[#allocation9 + $0x280] sm:$0xff] }
 0x3ae   :  { %v14091_v41 = vmax.f32 %v3406_v33, 0.0  ;;  %v14093_v56 = vpop.f32.mrf.mxu1  ;;  %v4068_v33 = vld [vmem:[#allocation9 + $0x210] sm:$0xff]  ;;  %v4067_v14 = vld [vmem:[#allocation9 + $0x208] sm:$0xff] }
 0x3af   :  { %v14095_v5 = vpop.f32.mrf.mxu0 }
 0x3b0   :  { %v10300_v51 = vpop.f32.mrf.mxu1  ;;  %10358 = vmatmul.mubr.f32.gmra.mxu0 %v14091_v41  ;;  %10499 = vmatmul.mubr.f32.vlgmr.msra.gmra.mxu1 %v14027_v45  ;;  %v3186_v31 = vadd.f32 %v14095_v5, %v13996_v18  ;;  %v4237_v18 = vld [vmem:[#allocation9 + $0x2a8] sm:$0xff] }
 0x3b1   :  { %10573 = vmatpush3.msra.mxu1 %v4247_v38  ;;  %v10211_v19 = vpop.f32.mrf.mxu0  ;;  %10445 = vmatprep.mubr.f32.mxu0 %v14014_v50  ;;  %v3381_v38 = vadd.f32 %v14083_v4, %v3185_v30  ;;  %v4069_v4 = vld [vmem:[#allocation9 + $0x218] sm:$0xff]  ;;  %v4461_v51 = vld [vmem:[#allocation12 + $0xe0] sm:$0xff] }
 0x3b2   :  { %v14100_v12 = vpop.f32.mrf.mxu1  ;;  %10501 = vmatprep.mubr.f32.mxu1 %v14033_v53  ;;  %10574 = vmatprep.subr.mxu1 %v4246_v13  ;;  %v3382_v62 = vadd.f32 %v14093_v56, %v3186_v31  ;;  %v4066_v56 = vld [vmem:[#allocation9 + $0x200] sm:$0xff]  ;;  %v4442_v19 = vld [vmem:[#allocation12 + $0x50] sm:$0xff] }
 0x3b3   :  { %10575 = vmatpush3.msra.mxu1 %v4246_v13  ;;  %v14103_v57 = vpop.f32.mrf.mxu0  ;;  %v3407_v25 = vadd.f32 %v14005_v28, %v3381_v38  ;;  %v4443_v13 = vld [vmem:[#allocation12 + $0x58] sm:$0xff]  ;;  %v4451_v30 = vld [vmem:[#allocation12 + $0x90] sm:$0xff]  ;;  %v4449_v38 = vld [vmem:[#allocation12 + $0x80] sm:$0xff] }
 0x3b4   :  { %v10303_v22 = vpop.f32.mrf.mxu1  ;;  %10576 = vmatprep.subr.mxu1 %v4245_v60  ;;  %10446 = vmatmul.mubr.f32.vlgmr.msra.gmra.mxu0 %v14021_v16  ;;  %v3408_v47 = vadd.f32 %v14005_v28, %v3382_v62  ;;  %v14181_v31 = vld [vmem:[#allocation12 + $0x178] sm:$0xff] }
 0x3b5   :  { %10502 = vmatmul.mubr.f32.gmra.mxu1 %v14039_v6  ;;  %10520 = vmatpush3.msra.mxu0 %v4081_v3  ;;  %v10214_v7 = vpop.f32.mrf.mxu0  ;;  %v14133_v52 = vmax.f32 %v3407_v25, 0.0  ;;  %v4236_v3 = vld [vmem:[#allocation9 + $0x2a0] sm:$0xff] }
 0x3b6   :  { %10577 = vmatpush3.msra.mxu1 %v4245_v60  ;;  %v14107_v50 = vpop.f32.mrf.mxu1  ;;  %10448 = vmatprep.mubr.f32.mxu0 %v14027_v45  ;;  %v14139_v27 = vmax.f32 %v3408_v47, 0.0  ;;  %v4460_v60 = vld [vmem:[#allocation12 + $0xd8] sm:$0xff]  ;;  %v4440_v22 = vld [vmem:[#allocation12 + $0x40] sm:$0xff] }
 0x3b7   :  { %10504 = vmatprep.mubr.f32.mxu1 %v14045_v2  ;;  %10521 = vmatprep.subr.mxu0 %v4080_v10  ;;  %v14111_v20 = vpop.f32.mrf.mxu0  ;;  %v4439_v7 = vld [vmem:[#allocation12 + $0x38] sm:$0xff] }
 0x3b8   :  { %10578 = vmatprep.subr.mxu1 %v4244_v35  ;;  %10522 = vmatpush3.msra.mxu0 %v4080_v10  ;;  %v10306_v16 = vpop.f32.mrf.mxu1  ;;  %v4458_v10 = vld [vmem:[#allocation12 + $0xc8] sm:$0xff] }
 0x3b9   :  { %10579 = vmatpush3.msra.mxu1 %v4244_v35  ;;  %10523 = vmatprep.subr.mxu0 %v4079_v9  ;;  %v10217_v40 = vpop.f32.mrf.mxu0  ;;  %v4457_v35 = vld [vmem:[#allocation12 + $0xc0] sm:$0xff] }
 0x3ba   :  { %10580 = vmatprep.subr.mxu1 %v4243_v58  ;;  %10449 = vmatmul.mubr.f32.gmra.mxu0 %v14033_v53  ;;  %v4436_v16 = vld [vmem:[#allocation12 + $0x20] sm:$0xff]  ;;  %v4454_v40 = vld [vmem:[#allocation12 + $0xa8] sm:$0xff] }
 0x3bb   :  { %10505 = vmatmul.mubr.f32.gmra.mxu1 %v14051_v43  ;;  %10524 = vmatpush3.msra.mxu0 %v4079_v9  ;;  %v4456_v9 = vld [vmem:[#allocation12 + $0xb8] sm:$0xff] }
 0x3bc   :  { %10581 = vmatpush3.msra.mxu1 %v4243_v58  ;;  %10451 = vmatprep.mubr.f32.mxu0 %v14039_v6  ;;  %v4455_v58 = vld [vmem:[#allocation12 + $0xb0] sm:$0xff] }
 0x3bd   :  { %10507 = vmatprep.mubr.f32.mxu1 %v14057_v8  ;;  %10525 = vmatprep.subr.mxu0 %v4078_v42 }
 0x3be   :  { %10582 = vmatprep.subr.mxu1 %v4242_v1  ;;  %10526 = vmatpush3.msra.mxu0 %v4078_v42  ;;  %v4435_v42 = vld [vmem:[#allocation12 + $0x18] sm:$0xff] }
 0x3bf   :  { %10583 = vmatpush3.msra.mxu1 %v4242_v1  ;;  %10527 = vmatprep.subr.mxu0 %v4077_v49  ;;  %v4453_v1 = vld [vmem:[#allocation12 + $0xa0] sm:$0xff] }
 0x3c0   :  { %10584 = vmatprep.subr.mxu1 %v4241_v36  ;;  %10452 = vmatmul.mubr.f32.gmra.mxu0 %v14045_v2 }
 0x3c1   :  { %10508 = vmatmul.mubr.f32.gmra.mxu1 %v14063_v32  ;;  %10528 = vmatpush3.msra.mxu0 %v4077_v49  ;;  %v4434_v49 = vld [vmem:[#allocation12 + $0x10] sm:$0xff] }
 0x3c2   :  { %10585 = vmatpush3.msra.mxu1 %v4241_v36  ;;  %10454 = vmatprep.mubr.f32.mxu0 %v14051_v43  ;;  %v4452_v36 = vld [vmem:[#allocation12 + $0x98] sm:$0xff] }
 0x3c3   :  { %10510 = vmatprep.mubr.f32.mxu1 %v14069_v29  ;;  %10529 = vmatprep.subr.mxu0 %v4076_v63 }
 0x3c4   :  { %10586 = vmatprep.subr.mxu1 %v4240_v46  ;;  %10530 = vmatpush3.msra.mxu0 %v4076_v63  ;;  %v4433_v63 = vld [vmem:[#allocation12 + $0x8] sm:$0xff] }
 0x3c5   :  { %10587 = vmatpush3.msra.mxu1 %v4240_v46  ;;  %10531 = vmatprep.subr.mxu0 %v4075_v11  ;;  %v4432_v46 = vld [vmem:[#allocation12] sm:$0xff] }
 0x3c6   :  { %10588 = vmatprep.subr.mxu1 %v4239_v37  ;;  %10455 = vmatmul.mubr.f32.gmra.mxu0 %v14057_v8 }
 0x3c7   :  { %10511 = vmatmul.mubr.f32.gmra.mxu1 %v14075_v26  ;;  %10532 = vmatpush3.msra.mxu0 %v4075_v11  ;;  %v4450_v11 = vld [vmem:[#allocation12 + $0x88] sm:$0xff] }
 0x3c8   :  { %10589 = vmatpush3.msra.mxu1 %v4239_v37  ;;  %10457 = vmatprep.mubr.f32.mxu0 %v14063_v32  ;;  %v14178_v37 = vld [vmem:[#allocation12 + $0x1f8] sm:$0xff] }
 0x3c9   :  { %10513 = vmatprep.mubr.f32.mxu1 %v14081_v44  ;;  %10533 = vmatprep.subr.mxu0 %v4074_v15 }
 0x3ca   :  { %10590 = vmatprep.subr.mxu1 %v4238_v54  ;;  %10534 = vmatpush3.msra.mxu0 %v4074_v15 }
 0x3cb   :  { %10591 = vmatpush3.msra.mxu1 %v4238_v54  ;;  %10535 = vmatprep.subr.mxu0 %v4073_v55 }
 0x3cc   :  { %10592 = vmatprep.subr.mxu1 %v4237_v18  ;;  %10458 = vmatmul.mubr.f32.gmra.mxu0 %v14069_v29 }
 0x3cd   :  { %10514 = vmatmul.mubr.f32.gmra.mxu1 %v14091_v41  ;;  %10536 = vmatpush3.msra.mxu0 %v4073_v55 }
 0x3ce   :  { %10593 = vmatpush3.msra.mxu1 %v4237_v18  ;;  %10460 = vmatprep.mubr.f32.mxu0 %v14075_v26 }
 0x3cf   :  { %10516 = vmatprep.mubr.f32.mxu1 %v14133_v52  ;;  %10537 = vmatprep.subr.mxu0 %v4072_v17 }
 0x3d0   :  { %10594 = vmatprep.subr.mxu1 %v4236_v3  ;;  %10538 = vmatpush3.msra.mxu0 %v4072_v17 }
 0x3d1   :  { %10595 = vmatpush3.msra.mxu1 %v4236_v3  ;;  %10539 = vmatprep.subr.mxu0 %v4071_v21 }
 0x3d2   :  { %10596 = vmatprep.subr.mxu1 %v4235_v39  ;;  %10461 = vmatmul.mubr.f32.gmra.mxu0 %v14081_v44 }
 0x3d3   :  { %10517 = vmatmul.mubr.f32.gmra.mxu1 %v14139_v27  ;;  %10540 = vmatpush3.msra.mxu0 %v4071_v21 }
 0x3d4   :  { %10597 = vmatpush3.msra.mxu1 %v4235_v39  ;;  %10463 = vmatprep.mubr.f32.mxu0 %v14091_v41 }
 0x3d5   :  { %10541 = vmatprep.subr.mxu0 %v4070_v34  ;;  %10598 = vmatprep.subr.mxu1 %v4234_v0 }
 0x3d6   :  { %10604 = vmatprep.mubr.f32.mxu1 %v14033_v53  ;;  %10542 = vmatpush3.msra.mxu0 %v4070_v34 }
 0x3d7   :  { %10599 = vmatpush3.msra.mxu1 %v4234_v0  ;;  %10543 = vmatprep.subr.mxu0 %v4069_v4 }
 0x3d8   :  { %10600 = vmatprep.subr.mxu1 %v4233_v23  ;;  %10464 = vmatmul.mubr.f32.gmra.mxu0 %v14133_v52 }
 0x3d9   :  { %10544 = vmatpush3.msra.mxu0 %v4069_v4  ;;  %10601 = vmatpush3.msra.mxu1 %v4233_v23 }
 0x3da   :  { %10545 = vmatprep.subr.mxu0 %v4068_v33  ;;  %10551 = vmatprep.mubr.f32.mxu0 %v14027_v45  ;;  %v3187_v45 = vadd.f32 %v14103_v57, %v13999_v24  ;;  %v4459_v57 = vld [vmem:[#allocation12 + $0xd0] sm:$0xff] }
 0x3db   :  { %10602 = vmatprep.subr.mxu1 %v4232_v61  ;;  %10546 = vmatpush3.msra.mxu0 %v4068_v33 }
 0x3dc   :  { %10603 = vmatpush3.msra.mxu1 %v4232_v61  ;;  %10547 = vmatprep.subr.mxu0 %v4067_v14  ;;  %v3383_v5 = vadd.f32 %v14100_v12, %v3187_v45  ;;  %v4441_v12 = vld [vmem:[#allocation12 + $0x48] sm:$0xff] }
 0x3dd   :  { %10605 = vmatmul.mubr.f32.vlgmr.msra.gmra.mxu1 %v14039_v6  ;;  %10548 = vmatpush3.msra.mxu0 %v4067_v14 }
 0x3de   :  { %10607 = vmatprep.mubr.f32.mxu1 %v14045_v2  ;;  %10549 = vmatprep.subr.mxu0 %v4066_v56 }
 0x3df   :  { %10550 = vmatpush3.msra.mxu0 %v4066_v56 }
 0x3e0   :  { %10552 = vmatmul.mubr.f32.vlgmr.msra.gmra.mxu0 %v14033_v53  ;;  %v3188_v53 = vadd.f32 %v14111_v20, %v14002_v59  ;;  %v4437_v20 = vld [vmem:[#allocation12 + $0x28] sm:$0xff] }
 0x3e1   :  { %10608 = vmatmul.mubr.f32.gmra.mxu1 %v14051_v43  ;;  %10554 = vmatprep.mubr.f32.mxu0 %v14039_v6  ;;  %v3409_v6 = vadd.f32 %v14005_v28, %v3383_v5 }
 0x3e2   :  { %10610 = vmatprep.mubr.f32.mxu1 %v14057_v8  ;;  %v3384_v24 = vadd.f32 %v14107_v50, %v3188_v53  ;;  %v4438_v50 = vld [vmem:[#allocation12 + $0x30] sm:$0xff] }
 0x3e4   :  { %10555 = vmatmul.mubr.f32.gmra.mxu0 %v14045_v2  ;;  %v3410_v59 = vadd.f32 %v14005_v28, %v3384_v24  ;;  %v3428_v2 = vmax.f32 %v3409_v6, 0.0  ;;  %v4464_v28 = vld [vmem:[#allocation12 + $0xf8] sm:$0xff] }
 0x3e5   :  { %10611 = vmatmul.mubr.f32.gmra.mxu1 %v14063_v32  ;;  %10557 = vmatprep.mubr.f32.mxu0 %v14051_v43 }
 0x3e6   :  { %10613 = vmatprep.mubr.f32.mxu1 %v14069_v29  ;;  %v3429_v43 = vmax.f32 %v3410_v59, 0.0  ;;  %10625 = vmatprep.subr.mxu0 %v4464_v28 }
 0x3e7   :  { %10626 = vmatpush3.msra.mxu0 %v4464_v28 }
 0x3e8   :  { %10558 = vmatmul.mubr.f32.gmra.mxu0 %v14057_v8  ;;  %v4447_v8 = vld [vmem:[#allocation12 + $0x78] sm:$0xff] }
 0x3e9   :  { %10614 = vmatmul.mubr.f32.gmra.mxu1 %v14075_v26  ;;  %10560 = vmatprep.mubr.f32.mxu0 %v14063_v32  ;;  %v4446_v32 = vld [vmem:[#allocation12 + $0x70] sm:$0xff] }
 0x3ea   :  { %10616 = vmatprep.mubr.f32.mxu1 %v14081_v44  ;;  %10672 = vmatprep.subr.mxu1 %v4447_v8 }
 0x3eb   :  { %10673 = vmatpush3.msra.mxu1 %v4447_v8 }
 0x3ec   :  { %10561 = vmatmul.mubr.f32.gmra.mxu0 %v14069_v29  ;;  %10674 = vmatprep.subr.mxu1 %v4446_v32  ;;  %v4445_v29 = vld [vmem:[#allocation12 + $0x68] sm:$0xff] }
 0x3ed   :  { %10617 = vmatmul.mubr.f32.gmra.mxu1 %v14091_v41  ;;  %10563 = vmatprep.mubr.f32.mxu0 %v14075_v26  ;;  %v4463_v26 = vld [vmem:[#allocation12 + $0xf0] sm:$0xff] }
 0x3ee   :  { %10619 = vmatprep.mubr.f32.mxu1 %v14133_v52  ;;  %10675 = vmatpush3.msra.mxu1 %v4446_v32 }
 0x3ef   :  { %10676 = vmatprep.subr.mxu1 %v4445_v29  ;;  %10627 = vmatprep.subr.mxu0 %v4463_v26 }
 0x3f0   :  { %10564 = vmatmul.mubr.f32.gmra.mxu0 %v14081_v44  ;;  %10677 = vmatpush3.msra.mxu1 %v4445_v29  ;;  %v4444_v44 = vld [vmem:[#allocation12 + $0x60] sm:$0xff] }
 0x3f1   :  { %10620 = vmatmul.mubr.f32.gmra.mxu1 %v14139_v27  ;;  %10566 = vmatprep.mubr.f32.mxu0 %v14091_v41  ;;  %v4462_v41 = vld [vmem:[#allocation12 + $0xe8] sm:$0xff] }
 0x3f2   :  { %10622 = vmatprep.mubr.f32.mxu1 %v3428_v2  ;;  %10628 = vmatpush3.msra.mxu0 %v4463_v26 }
 0x3f3   :  { %10678 = vmatprep.subr.mxu1 %v4444_v44  ;;  %10629 = vmatprep.subr.mxu0 %v4462_v41 }
 0x3f4   :  { %10567 = vmatmul.mubr.f32.gmra.mxu0 %v14133_v52  ;;  %10679 = vmatpush3.msra.mxu1 %v4444_v44 }
 0x3f5   :  { %10623 = vmatmul.mubr.f32.gmra.mxu1 %v3429_v43  ;;  %10569 = vmatprep.mubr.f32.mxu0 %v14139_v27 }
 0x3f6   :  { %10630 = vmatpush3.msra.mxu0 %v4462_v41  ;;  %10680 = vmatprep.subr.mxu1 %v4443_v13 }
 0x3f7   :  { %10631 = vmatprep.subr.mxu0 %v4461_v51  ;;  %10681 = vmatpush3.msra.mxu1 %v4443_v13 }
 0x3f8   :  { %10570 = vmatmul.mubr.f32.gmra.mxu0 %v3428_v2  ;;  %10682 = vmatprep.subr.mxu1 %v4442_v19 }
 0x3f9   :  { %10632 = vmatpush3.msra.mxu0 %v4461_v51  ;;  %10683 = vmatpush3.msra.mxu1 %v4442_v19 }
 0x3fa   :  { %10633 = vmatprep.subr.mxu0 %v4460_v60  ;;  %10684 = vmatprep.subr.mxu1 %v4441_v12 }
 0x3fb   :  { %10634 = vmatpush3.msra.mxu0 %v4460_v60  ;;  %10685 = vmatpush3.msra.mxu1 %v4441_v12 }
 0x3fc   :  { %10635 = vmatprep.subr.mxu0 %v4459_v57  ;;  %10686 = vmatprep.subr.mxu1 %v4440_v22 }
 0x3fd   :  { %10636 = vmatpush3.msra.mxu0 %v4459_v57  ;;  %10687 = vmatpush3.msra.mxu1 %v4440_v22 }
 0x3fe   :  { %10637 = vmatprep.subr.mxu0 %v4458_v10  ;;  %10688 = vmatprep.subr.mxu1 %v4439_v7 }
 0x3ff   :  { %10638 = vmatpush3.msra.mxu0 %v4458_v10  ;;  %10689 = vmatpush3.msra.mxu1 %v4439_v7 }
 0x400   :  { %10639 = vmatprep.subr.mxu0 %v4457_v35  ;;  %10690 = vmatprep.subr.mxu1 %v4438_v50 }
 0x401   :  { %10640 = vmatpush3.msra.mxu0 %v4457_v35  ;;  %10691 = vmatpush3.msra.mxu1 %v4438_v50 }
 0x402   :  { %10641 = vmatprep.subr.mxu0 %v4456_v9  ;;  %10692 = vmatprep.subr.mxu1 %v4437_v20 }
 0x403   :  { %10642 = vmatpush3.msra.mxu0 %v4456_v9  ;;  %10693 = vmatpush3.msra.mxu1 %v4437_v20 }
 0x404   :  { %10643 = vmatprep.subr.mxu0 %v4455_v58  ;;  %10694 = vmatprep.subr.mxu1 %v4436_v16 }
 0x405   :  { %10644 = vmatpush3.msra.mxu0 %v4455_v58  ;;  %10695 = vmatpush3.msra.mxu1 %v4436_v16 }
 0x406   :  { %10645 = vmatprep.subr.mxu0 %v4454_v40  ;;  %10696 = vmatprep.subr.mxu1 %v4435_v42 }
 0x407   :  { %10646 = vmatpush3.msra.mxu0 %v4454_v40  ;;  %10697 = vmatpush3.msra.mxu1 %v4435_v42 }
 0x408   :  { %10647 = vmatprep.subr.mxu0 %v4453_v1  ;;  %10698 = vmatprep.subr.mxu1 %v4434_v49 }
 0x409   :  { %10648 = vmatpush3.msra.mxu0 %v4453_v1  ;;  %10699 = vmatpush3.msra.mxu1 %v4434_v49 }
 0x40a   :  { %10649 = vmatprep.subr.mxu0 %v4452_v36  ;;  %10700 = vmatprep.subr.mxu1 %v4433_v63 }
 0x40b   :  { %10650 = vmatpush3.msra.mxu0 %v4452_v36  ;;  %10701 = vmatpush3.msra.mxu1 %v4433_v63 }
 0x40c   :  { %10651 = vmatprep.subr.mxu0 %v4451_v30  ;;  %10702 = vmatprep.subr.mxu1 %v4432_v46 }
 0x40d   :  { %10652 = vmatpush3.msra.mxu0 %v4451_v30  ;;  %10703 = vmatpush3.msra.mxu1 %v4432_v46 }
 0x40e   :  { %10653 = vmatprep.subr.mxu0 %v4450_v11  ;;  %10766 = vmatprep.subr.mxu1 %v14178_v37 }
 0x40f   :  { %10654 = vmatpush3.msra.mxu0 %v4450_v11 }
 0x410   :  { %10655 = vmatprep.subr.mxu0 %v4449_v38 }
 0x411   :  { %10656 = vmatpush3.msra.mxu0 %v4449_v38 }
 0x412   :  { %10719 = vmatprep.subr.mxu0 %v14181_v31 }
 0x43c   :  { %v10394_v15 = vpop.f32.mrf.mxu1 }
 0x43e   :  { %v3664_v55 = vpop.f32.mrf.mxu1 }
 0x440   :  { %v10341_v54 = vpop.f32.mrf.mxu0 }
 0x441   :  { %v3670_v30 = vadd.f32 %v10394_v15, %v10341_v54 }
 0x442   :  { %v3529_v25 = vpop.f32.mrf.mxu0 }
 0x443   :  { %v3665_v11 = vadd.f32 %v3664_v55, %v3529_v25 }
 0x444   :  { %v10397_v62 = vpop.f32.mrf.mxu1 }
 0x446   :  { %v3674_v17 = vpop.f32.mrf.mxu1 }
 0x448   :  { %v10344_v18 = vpop.f32.mrf.mxu0 }
 0x44a   :  { %v3539_v52 = vpop.f32.mrf.mxu0 }
 0x44c   :  { %v14184_v47 = vpop.f32.mrf.mxu1 }
 0x44e   :  { %v14186_v21 = vpop.f32.mrf.mxu1 }
 0x450   :  { %v10347_v3 = vpop.f32.mrf.mxu0 }
 0x452   :  { %v14188_v39 = vpop.f32.mrf.mxu0 }
 0x454   :  { %v14190_v27 = vpop.f32.mrf.mxu1 }
 0x456   :  { %v14194_v0 = vpop.f32.mrf.mxu1 }
 0x458   :  { %v14192_v34 = vpop.f32.mrf.mxu0 }
 0x45a   :  { %v14196_v4 = vpop.f32.mrf.mxu0 }
 0x45c   :  { %v14198_v23 = vpop.f32.mrf.mxu1 }
 0x45e   :  { %v14202_v61 = vpop.f32.mrf.mxu1 }
 0x460   :  { %v14200_v33 = vpop.f32.mrf.mxu0 }
 0x462   :  { %v14204_v14 = vpop.f32.mrf.mxu0 }
 0x464   :  { %v10409_v56 = vpop.f32.mrf.mxu1 }
 0x466   :  { %v14208_v5 = vpop.f32.mrf.mxu1 }
 0x468   :  { %v10356_v45 = vpop.f32.mrf.mxu0 }
 0x469   :  { %v14206_v53 = vadd.f32 %v10409_v56, %v10356_v45 }
 0x46a   :  { %v14210_v6 = vpop.f32.mrf.mxu0 }
 0x46b   :  { %14671 = vst [vmem:[#allocation36_spill] sm:$0xff] %v14206_v53  ;;  %v3690_v53 = vadd.f32 %v14184_v47, %v10347_v3 }
 0x46c   :  { %v10412_v24 = vpop.f32.mrf.mxu1 }
 0x46e   :  { %v3724_v59 = vpop.f32.mrf.mxu1 }
 0x470   :  { %v10359_v2 = vpop.f32.mrf.mxu0  ;;  %v10500_v43 = vpop.f32.mrf.mxu1 }
 0x471   :  { %v3730_v8 = vadd.f32 %v10412_v24, %v10359_v2  ;;  %v3680_v24 = vadd.f32 %v10397_v62, %v10344_v18  ;;  %v3685_v62 = vadd.f32 %v14186_v21, %v14188_v39 }
 0x472   :  { %v3589_v32 = vpop.f32.mrf.mxu0  ;;  %v3982_v28 = vpop.f32.mrf.mxu1 }
 0x473   :  { %v14212_v29 = vadd.f32 %v3724_v59, %v3589_v32  ;;  %v3675_v32 = vadd.f32 %v3674_v17, %v3539_v52 }
 0x474   :  { %v10447_v26 = vpop.f32.mrf.mxu0 }
 0x475   :  { %14672 = vst [vmem:[#allocation35_spill] sm:$0xff] %v14212_v29  ;;  %v10503_v44 = vpop.f32.mrf.mxu1  ;;  %v3886_v38 = vadd.f32 %v10447_v26, %v3670_v30 }
 0x476   :  { %v3816_v41 = vpop.f32.mrf.mxu0 }
 0x477   :  { %v3992_v13 = vpop.f32.mrf.mxu1  ;;  %v3885_v59 = vadd.f32 %v3816_v41, %v3665_v11 }
 0x479   :  { %v4051_v25 = vadd.f32 %v3982_v28, %v3885_v59  ;;  %v3695_v28 = vadd.f32 %v14194_v0, %v14196_v4  ;;  %v3705_v0 = vadd.f32 %v14202_v61, %v14204_v14 }
 0x47a   :  { %v10450_v51 = vpop.f32.mrf.mxu0 }
 0x47b   :  { %v10506_v19 = vpop.f32.mrf.mxu1 }
 0x47c   :  { %v3826_v60 = vpop.f32.mrf.mxu0 }
 0x47d   :  { %v14214_v12 = vpop.f32.mrf.mxu1 }
 0x480   :  { %v10453_v57 = vpop.f32.mrf.mxu0 }
 0x481   :  { %v14216_v22 = vpop.f32.mrf.mxu1 }
 0x482   :  { %v3836_v10 = vpop.f32.mrf.mxu0 }
 0x483   :  { %v14218_v7 = vpop.f32.mrf.mxu1 }
 0x486   :  { %v10456_v35 = vpop.f32.mrf.mxu0 }
 0x487   :  { %v14220_v50 = vpop.f32.mrf.mxu1 }
 0x488   :  { %v3846_v9 = vpop.f32.mrf.mxu0 }
 0x489   :  { %v14222_v20 = vpop.f32.mrf.mxu1 }
 0x48c   :  { %v14224_v58 = vpop.f32.mrf.mxu0 }
 0x48d   :  { %v14228_v40 = vpop.f32.mrf.mxu1 }
 0x48e   :  { %v14226_v16 = vpop.f32.mrf.mxu0  ;;  %14673 = vst [vmem:[#allocation38_spill] sm:$0xff] %v14228_v40  ;;  %v3888_v40 = vadd.f32 %v10450_v51, %v3680_v24 }
 0x48f   :  { %v14232_v1 = vpop.f32.mrf.mxu1 }
 0x490   :  { %14675 = vst [vmem:[#allocation40_spill] sm:$0xff] %v14232_v1  ;;  %v3887_v1 = vadd.f32 %v3826_v60, %v3675_v32  ;;  %v4054_v41 = vadd.f32 %v10503_v44, %v3888_v40 }
 0x492   :  { %v14230_v42 = vpop.f32.mrf.mxu0 }
 0x493   :  { %14674 = vst [vmem:[#allocation37_spill] sm:$0xff] %v14230_v42  ;;  %v10518_v36 = vpop.f32.mrf.mxu1  ;;  %v4052_v42 = vadd.f32 %v10500_v43, %v3886_v38  ;;  %v4053_v43 = vadd.f32 %v3992_v13, %v3887_v1 }
 0x494   :  { %v14234_v49 = vpop.f32.mrf.mxu0 }
 0x495   :  { %v14236_v56 = vpop.f32.mrf.mxu1 }
 0x498   :  { %v10465_v63 = vpop.f32.mrf.mxu0 }
 0x499   :  { %v3898_v46 = vadd.f32 %v10465_v63, %v3730_v8  ;;  %v3890_v8 = vadd.f32 %v10453_v57, %v3690_v53  ;;  %v3889_v63 = vadd.f32 %v3836_v10, %v3685_v62  ;;  %v3700_v53 = vadd.f32 %v14190_v27, %v14192_v34 }
 0x49a   :  { %v14240_v48 = vpop.f32.mrf.mxu0 }
 0x49b   :  { %v14238_v45 = vadd.f32 %v10518_v36, %v3898_v46  ;;  %v14243_v36 = vld [vmem:[#allocation10] ss:$0 sm:$0xff]  ;;  %v4056_v21 = vadd.f32 %v10506_v19, %v3890_v8  ;;  %v3892_v10 = vadd.f32 %v10456_v35, %v3700_v53  ;;  %v4055_v27 = vadd.f32 %v14214_v12, %v3889_v63  ;;  %v4852_v35 = vld [vmem:[#allocation12 + $0x1f0] sm:$0xff]  ;;  %v4709_v63 = vld [vmem:[#allocation12 + $0x168] sm:$0xff] }
 0x49d   :  { %v10606_v2 = vpop.f32.mrf.mxu1  ;;  %v4058_v32 = vadd.f32 %v14216_v22, %v3892_v10  ;;  %v4848_v10 = vld [vmem:[#allocation12 + $0x1d0] sm:$0xff] }
 0x49f   :  { %v4314_v29 = vpop.f32.mrf.mxu1 }
 0x4a0   :  { %v10553_v15 = vpop.f32.mrf.mxu0 }
 0x4a1   :  { %v4218_v54 = vadd.f32 %v10553_v15, %v4052_v42  ;;  %v10609_v55 = vpop.f32.mrf.mxu1 }
 0x4a2   :  { %v4148_v26 = vpop.f32.mrf.mxu0 }
 0x4a3   :  { %v4384_v18 = vadd.f32 %v10606_v2, %v4218_v54  ;;  %v4217_v17 = vadd.f32 %v4148_v26, %v4051_v25  ;;  %v4324_v52 = vpop.f32.mrf.mxu1  ;;  %v3893_v54 = vadd.f32 %v14226_v16, %v3705_v0  ;;  %v4710_v16 = vld [vmem:[#allocation12 + $0x170] sm:$0xff] }
 0x4a4   :  { %v10556_v51 = vpop.f32.mrf.mxu0 }
 0x4a5   :  { %v4383_v47 = vadd.f32 %v4314_v29, %v4217_v17  ;;  %v4220_v3 = vadd.f32 %v10556_v51, %v4054_v41  ;;  %v10612_v60 = vpop.f32.mrf.mxu1  ;;  %v4405_v42 = vadd.f32 %v14243_v36, %v4384_v18  ;;  %v3891_v29 = vadd.f32 %v3846_v9, %v3695_v28  ;;  %v4850_v51 = vld [vmem:[#allocation12 + $0x1e0] sm:$0xff] }
 0x4a6   :  { %v4158_v57 = vpop.f32.mrf.mxu0  ;;  %v3710_v9 = vadd.f32 %v14198_v23, %v14200_v33  ;;  %v4851_v23 = vld [vmem:[#allocation12 + $0x1e8] sm:$0xff]  ;;  %v3715_v17 = vadd.f32 %v14208_v5, %v14210_v6 }
 0x4a7   :  { %v4386_v39 = vadd.f32 %v10609_v55, %v4220_v3  ;;  %v4219_v30 = vadd.f32 %v4158_v57, %v4053_v43  ;;  %v4334_v46 = vpop.f32.mrf.mxu1  ;;  %v4419_v44 = vmax.f32 %v4405_v42, 0.0  ;;  %v4404_v13 = vadd.f32 %v14243_v36, %v4383_v47  ;;  %v4708_v57 = vld [vmem:[#allocation12 + $0x160] sm:$0xff] }
 0x4a8   :  { %v10559_v40 = vpop.f32.mrf.mxu0  ;;  %v4057_v12 = vadd.f32 %v14218_v7, %v3891_v29  ;;  %v3894_v8 = vadd.f32 %v14224_v58, %v3710_v9  ;;  %v4059_v43 = vadd.f32 %v14222_v20, %v3893_v54  ;;  %v3895_v47 = vadd.f32 %v14234_v49, %v3715_v17  ;;  %v4849_v20 = vld [vmem:[#allocation12 + $0x1d8] sm:$0xff]  ;;  %v4846_v9 = vld [vmem:[#allocation12 + $0x1c0] sm:$0xff] }
 0x4a9   :  { %v4385_v1 = vadd.f32 %v4324_v52, %v4219_v30  ;;  %v4222_v11 = vadd.f32 %v10559_v40, %v4056_v21  ;;  %v10615_v38 = vpop.f32.mrf.mxu1  ;;  %10657 = vmatprep.mubr.f32.mxu0 %v4419_v44  ;;  %v4418_v34 = vmax.f32 %v4404_v13, 0.0  ;;  %v4407_v4 = vadd.f32 %v14243_v36, %v4386_v39  ;;  %v14676_v39 = vld [vmem:[#allocation40_spill] sm:$0xff]  ;;  %v4707_v29 = vld [vmem:[#allocation12 + $0x158] sm:$0xff] }
 0x4aa   :  { %v4168_v24 = vpop.f32.mrf.mxu0  ;;  %v4060_v5 = vadd.f32 %v14220_v50, %v3894_v8  ;;  %v4061_v30 = vadd.f32 %v14676_v39, %v3895_v47  ;;  %v4703_v8 = vld [vmem:[#allocation12 + $0x138] sm:$0xff]  ;;  %v4696_v47 = vld [vmem:[#allocation12 + $0x100] sm:$0xff] }
 0x4ab   :  { %v4406_v19 = vadd.f32 %v14243_v36, %v4385_v1  ;;  %v4221_v59 = vadd.f32 %v4168_v24, %v4055_v27  ;;  %v4344_v2 = vpop.f32.mrf.mxu1  ;;  %10704 = vmatprep.mubr.f32.mxu1 %v4418_v34  ;;  %v4388_v14 = vadd.f32 %v10612_v60, %v4222_v11  ;;  %v14267_v33 = vmax.f32 %v4407_v4, 0.0  ;;  %v4847_v24 = vld [vmem:[#allocation12 + $0x1c8] sm:$0xff]  ;;  %v4699_v17 = vld [vmem:[#allocation12 + $0x118] sm:$0xff] }
 0x4ac   :  { %v10562_v15 = vpop.f32.mrf.mxu0  ;;  %10705 = vmatmul.mubr.f32.vlgmr.msra.gmra.mxu1 %v4419_v44 }
 0x4ad   :  { %v14263_v61 = vmax.f32 %v4406_v19, 0.0  ;;  %v4387_v55 = vadd.f32 %v4334_v46, %v4221_v59  ;;  %v10618_v25 = vpop.f32.mrf.mxu1  ;;  %10767 = vmatpush3.msra.mxu1 %v14178_v37  ;;  %v4224_v62 = vadd.f32 %v10562_v15, %v4058_v32  ;;  %v4409_v58 = vadd.f32 %v14243_v36, %v4388_v14  ;;  %v4706_v19 = vld [vmem:[#allocation12 + $0x150] sm:$0xff]  ;;  %v4705_v32 = vld [vmem:[#allocation12 + $0x148] sm:$0xff]  ;;  %v4704_v14 = vld [vmem:[#allocation12 + $0x140] sm:$0xff] }
 0x4ae   :  { %10768 = vmatprep.subr.mxu1 %v4852_v35  ;;  %v4178_v26 = vpop.f32.mrf.mxu0 }
 0x4af   :  { %v4408_v22 = vadd.f32 %v14243_v36, %v4387_v55  ;;  %v4223_v7 = vadd.f32 %v4178_v26, %v4057_v12  ;;  %v4354_v18 = vpop.f32.mrf.mxu1  ;;  %10769 = vmatpush3.msra.mxu1 %v4852_v35  ;;  %10658 = vmatmul.mubr.f32.vlgmr.msra.gmra.mxu0 %v14263_v61  ;;  %v4390_v3 = vadd.f32 %v10615_v38, %v4224_v62  ;;  %v14288_v49 = vmax.f32 %v4409_v58, 0.0  ;;  %v4845_v12 = vld [vmem:[#allocation12 + $0x1b8] sm:$0xff]  ;;  %v4844_v55 = vld [vmem:[#allocation12 + $0x1b0] sm:$0xff]  ;;  %v4843_v26 = vld [vmem:[#allocation12 + $0x1a8] sm:$0xff] }
 0x4b0   :  { %10707 = vmatprep.mubr.f32.mxu1 %v14263_v61  ;;  %10720 = vmatpush3.msra.mxu0 %v14181_v31  ;;  %v10565_v37 = vpop.f32.mrf.mxu0  ;;  %v4701_v62 = vld [vmem:[#allocation12 + $0x128] sm:$0xff]  ;;  %v4698_v58 = vld [vmem:[#allocation12 + $0x110] sm:$0xff] }
 0x4b1   :  { %v14276_v52 = vmax.f32 %v4408_v22, 0.0  ;;  %v4389_v41 = vadd.f32 %v4344_v2, %v4223_v7  ;;  %10770 = vmatprep.subr.mxu1 %v4851_v23  ;;  %10660 = vmatprep.mubr.f32.mxu0 %v14267_v33  ;;  %v14282_v6 = vpop.f32.mrf.mxu1  ;;  %v4226_v50 = vadd.f32 %v10565_v37, %v4060_v5  ;;  %v4411_v44 = vadd.f32 %v14243_v36, %v4390_v3  ;;  %v4842_v22 = vld [vmem:[#allocation12 + $0x1a0] sm:$0xff]  ;;  %v4841_v7 = vld [vmem:[#allocation12 + $0x198] sm:$0xff]  ;;  %v4839_v37 = vld [vmem:[#allocation12 + $0x188] sm:$0xff] }
 0x4b2   :  { %10708 = vmatmul.mubr.f32.gmra.mxu1 %v14267_v33  ;;  %10721 = vmatprep.subr.mxu0 %v4710_v16  ;;  %v4188_v31 = vpop.f32.mrf.mxu0  ;;  %v14679_v5 = vld [vmem:[#allocation35_spill] sm:$0xff]  ;;  %v14680_v3 = vld [vmem:[#allocation38_spill] sm:$0xff] }
 0x4b3   :  { %v4410_v60 = vadd.f32 %v14243_v36, %v4389_v41  ;;  %10771 = vmatpush3.msra.mxu1 %v4851_v23  ;;  %10722 = vmatpush3.msra.mxu0 %v4710_v16  ;;  %v4225_v42 = vadd.f32 %v4188_v31, %v4059_v43  ;;  %v4364_v21 = vpop.f32.mrf.mxu1  ;;  %v4392_v11 = vadd.f32 %v10618_v25, %v4226_v50  ;;  %v14300_v0 = vmax.f32 %v4411_v44, 0.0  ;;  %v4702_v23 = vld [vmem:[#allocation12 + $0x130] sm:$0xff]  ;;  %v4838_v43 = vld [vmem:[#allocation12 + $0x180] sm:$0xff] }
 0x4b4   :  { %10772 = vmatprep.subr.mxu1 %v4850_v51  ;;  %10723 = vmatprep.subr.mxu0 %v4709_v63  ;;  %v14286_v53 = vpop.f32.mrf.mxu0  ;;  %v4840_v16 = vld [vmem:[#allocation12 + $0x190] sm:$0xff]  ;;  %v3897_v31 = vadd.f32 %v14240_v48, %v14679_v5  ;;  %v5165_v5 = vld [vmem:[#allocation15 + $0x80] sm:$0xff] }
 0x4b5   :  { %v4391_v28 = vadd.f32 %v4354_v18, %v4225_v42  ;;  %10773 = vmatpush3.msra.mxu1 %v4850_v51  ;;  %10661 = vmatmul.mubr.f32.gmra.mxu0 %v14276_v52  ;;  %v14294_v13 = vmax.f32 %v4410_v60, 0.0  ;;  %v10624_v34 = vpop.f32.mrf.mxu1  ;;  %v4413_v2 = vadd.f32 %v14243_v36, %v4392_v11  ;;  %v4700_v18 = vld [vmem:[#allocation12 + $0x120] sm:$0xff]  ;;  %v14678_v41 = vld [vmem:[#allocation37_spill] sm:$0xff] }
 0x4b6   :  { %10710 = vmatprep.mubr.f32.mxu1 %v14276_v52  ;;  %10724 = vmatpush3.msra.mxu0 %v4709_v63  ;;  %v4198_v46 = vpop.f32.mrf.mxu0  ;;  %v4697_v63 = vld [vmem:[#allocation12 + $0x108] sm:$0xff]  ;;  %v4995_v42 = vld [vmem:[#allocation12 + $0x278] sm:$0xff]  ;;  %v4994_v48 = vld [vmem:[#allocation12 + $0x270] sm:$0xff] }
 0x4b7   :  { %10774 = vmatprep.subr.mxu1 %v4849_v20  ;;  %10663 = vmatprep.mubr.f32.mxu0 %v14288_v49  ;;  %v4227_v40 = vadd.f32 %v4198_v46, %v4061_v30  ;;  %v4412_v38 = vadd.f32 %v14243_v36, %v4391_v28  ;;  %v14313_v54 = vmax.f32 %v4413_v2, 0.0  ;;  %v4063_v28 = vadd.f32 %v14236_v56, %v3897_v31  ;;  %v4374_v39 = vpop.f32.mrf.mxu1  ;;  %v4992_v56 = vld [vmem:[#allocation12 + $0x260] sm:$0xff]  ;;  %v4986_v11 = vld [vmem:[#allocation12 + $0x230] sm:$0xff] }
 0x4b8   :  { %10711 = vmatmul.mubr.f32.gmra.mxu1 %v14288_v49  ;;  %10725 = vmatprep.subr.mxu0 %v4708_v57  ;;  %v10571_v1 = vpop.f32.mrf.mxu0  ;;  %v5162_v2 = vld [vmem:[#allocation15 + $0x70] sm:$0xff]  ;;  %v14360_v31 = vld [vmem:[#allocation15 + $0x178] sm:$0xff] }
 0x4b9   :  { %10775 = vmatpush3.msra.mxu1 %v4849_v20  ;;  %10726 = vmatpush3.msra.mxu0 %v4708_v57  ;;  %v4230_v27 = vadd.f32 %v10571_v1, %v14238_v45  ;;  %v4393_v59 = vadd.f32 %v4364_v21, %v4227_v40  ;;  %v14305_v35 = vmax.f32 %v4412_v38, 0.0  ;;  %v4988_v1 = vld [vmem:[#allocation12 + $0x240] sm:$0xff]  ;;  %v4985_v38 = vld [vmem:[#allocation12 + $0x228] sm:$0xff] }
 0x4ba   :  { %10776 = vmatprep.subr.mxu1 %v4848_v10  ;;  %10727 = vmatprep.subr.mxu0 %v4707_v29  ;;  %v4208_v50 = vpop.f32.mrf.mxu0 }
 0x4bb   :  { %10777 = vmatpush3.msra.mxu1 %v4848_v10  ;;  %10664 = vmatmul.mubr.f32.gmra.mxu0 %v14294_v13  ;;  %v4396_v4 = vadd.f32 %v10624_v34, %v4230_v27  ;;  %v4414_v15 = vadd.f32 %v14243_v36, %v4393_v59  ;;  %v4229_v21 = vadd.f32 %v4208_v50, %v4063_v28  ;;  %v4990_v10 = vld [vmem:[#allocation12 + $0x250] sm:$0xff]  ;;  %v4984_v27 = vld [vmem:[#allocation12 + $0x220] sm:$0xff]  ;;  %v4983_v34 = vld [vmem:[#allocation12 + $0x218] sm:$0xff] }
 0x4bc   :  { %10713 = vmatprep.mubr.f32.mxu1 %v14294_v13  ;;  %10728 = vmatpush3.msra.mxu0 %v4707_v29  ;;  %v4989_v29 = vld [vmem:[#allocation12 + $0x248] sm:$0xff]  ;;  %v5163_v59 = vld [vmem:[#allocation15 + $0x78] sm:$0xff] }
 0x4bd   :  { %10778 = vmatprep.subr.mxu1 %v4847_v24  ;;  %v14308_v45 = vadd.f32 %v14243_v36, %v4396_v4  ;;  %10666 = vmatprep.mubr.f32.mxu0 %v14300_v0  ;;  %v14318_v25 = vmax.f32 %v4414_v15, 0.0  ;;  %v4981_v4 = vld [vmem:[#allocation12 + $0x208] sm:$0xff]  ;;  %v5158_v15 = vld [vmem:[#allocation15 + $0x50] sm:$0xff] }
 0x4be   :  { %10714 = vmatmul.mubr.f32.gmra.mxu1 %v14300_v0  ;;  %10729 = vmatprep.subr.mxu0 %v4706_v19 }
 0x4bf   :  { %10779 = vmatpush3.msra.mxu1 %v4847_v24  ;;  %10730 = vmatpush3.msra.mxu0 %v4706_v19  ;;  %v4982_v24 = vld [vmem:[#allocation12 + $0x210] sm:$0xff]  ;;  %v4980_v19 = vld [vmem:[#allocation12 + $0x200] sm:$0xff] }
 0x4c0   :  { %10780 = vmatprep.subr.mxu1 %v4846_v9  ;;  %10731 = vmatprep.subr.mxu0 %v4705_v32 }
 0x4c1   :  { %10781 = vmatpush3.msra.mxu1 %v4846_v9  ;;  %10667 = vmatmul.mubr.f32.gmra.mxu0 %v14305_v35  ;;  %v5178_v9 = vld [vmem:[#allocation15 + $0xe8] sm:$0xff] }
 0x4c2   :  { %10716 = vmatprep.mubr.f32.mxu1 %v14305_v35  ;;  %10732 = vmatpush3.msra.mxu0 %v4705_v32  ;;  %v5177_v32 = vld [vmem:[#allocation15 + $0xe0] sm:$0xff] }
 0x4c3   :  { %10782 = vmatprep.subr.mxu1 %v4845_v12  ;;  %10669 = vmatprep.mubr.f32.mxu0 %v14313_v54 }
 0x4c4   :  { %10717 = vmatmul.mubr.f32.gmra.mxu1 %v14313_v54  ;;  %10733 = vmatprep.subr.mxu0 %v4704_v14 }
 0x4c5   :  { %10783 = vmatpush3.msra.mxu1 %v4845_v12  ;;  %10734 = vmatpush3.msra.mxu0 %v4704_v14  ;;  %v5176_v12 = vld [vmem:[#allocation15 + $0xd8] sm:$0xff]  ;;  %v5175_v14 = vld [vmem:[#allocation15 + $0xd0] sm:$0xff] }
 0x4c6   :  { %10784 = vmatprep.subr.mxu1 %v4844_v55  ;;  %10798 = vmatprep.mubr.f32.mxu1 %v14267_v33 }
 0x4c7   :  { %10735 = vmatprep.subr.mxu0 %v4703_v8  ;;  %10785 = vmatpush3.msra.mxu1 %v4844_v55  ;;  %v5156_v55 = vld [vmem:[#allocation15 + $0x40] sm:$0xff] }
 0x4c8   :  { %10670 = vmatmul.mubr.f32.gmra.mxu0 %v14318_v25  ;;  %10786 = vmatprep.subr.mxu1 %v4843_v26 }
 0x4c9   :  { %10736 = vmatpush3.msra.mxu0 %v4703_v8  ;;  %10751 = vmatprep.mubr.f32.mxu0 %v14263_v61  ;;  %v14677_v61 = vld [vmem:[#allocation36_spill] sm:$0xff]  ;;  %v5155_v8 = vld [vmem:[#allocation15 + $0x38] sm:$0xff] }
 0x4ca   :  { %10737 = vmatprep.subr.mxu0 %v4702_v23  ;;  %10787 = vmatpush3.msra.mxu1 %v4843_v26  ;;  %v3896_v51 = vadd.f32 %v14678_v41, %v14677_v61  ;;  %v5173_v26 = vld [vmem:[#allocation15 + $0xc0] sm:$0xff]  ;;  %v5168_v61 = vld [vmem:[#allocation15 + $0x98] sm:$0xff]  ;;  %v5149_v41 = vld [vmem:[#allocation15 + $0x8] sm:$0xff] }
 0x4cb   :  { %10738 = vmatpush3.msra.mxu0 %v4702_v23  ;;  %10788 = vmatprep.subr.mxu1 %v4842_v22  ;;  %v5154_v23 = vld [vmem:[#allocation15 + $0x30] sm:$0xff] }
 0x4cc   :  { %10739 = vmatprep.subr.mxu0 %v4701_v62  ;;  %10789 = vmatpush3.msra.mxu1 %v4842_v22  ;;  %v4062_v60 = vadd.f32 %v14680_v3, %v3896_v51  ;;  %v5172_v22 = vld [vmem:[#allocation15 + $0xb8] sm:$0xff]  ;;  %v5167_v51 = vld [vmem:[#allocation15 + $0x90] sm:$0xff] }
 0x4cd   :  { %10740 = vmatpush3.msra.mxu0 %v4701_v62  ;;  %10790 = vmatprep.subr.mxu1 %v4841_v7  ;;  %v5153_v62 = vld [vmem:[#allocation15 + $0x28] sm:$0xff] }
 0x4ce   :  { %10741 = vmatprep.subr.mxu0 %v4700_v18  ;;  %10791 = vmatpush3.msra.mxu1 %v4841_v7  ;;  %v4228_v20 = vadd.f32 %v14286_v53, %v4062_v60  ;;  %v4993_v53 = vld [vmem:[#allocation12 + $0x268] sm:$0xff]  ;;  %v5171_v7 = vld [vmem:[#allocation15 + $0xb0] sm:$0xff] }
 0x4cf   :  { %10742 = vmatpush3.msra.mxu0 %v4700_v18  ;;  %10792 = vmatprep.subr.mxu1 %v4840_v16  ;;  %v5152_v18 = vld [vmem:[#allocation15 + $0x20] sm:$0xff] }
 0x4d0   :  { %10743 = vmatprep.subr.mxu0 %v4699_v17  ;;  %10793 = vmatpush3.msra.mxu1 %v4840_v16  ;;  %v4394_v57 = vadd.f32 %v14282_v6, %v4228_v20  ;;  %v4991_v6 = vld [vmem:[#allocation12 + $0x258] sm:$0xff]  ;;  %v5170_v16 = vld [vmem:[#allocation15 + $0xa8] sm:$0xff] }
 0x4d1   :  { %10744 = vmatpush3.msra.mxu0 %v4699_v17  ;;  %10794 = vmatprep.subr.mxu1 %v4839_v37  ;;  %v5151_v17 = vld [vmem:[#allocation15 + $0x18] sm:$0xff] }
 0x4d2   :  { %10745 = vmatprep.subr.mxu0 %v4698_v58  ;;  %10795 = vmatpush3.msra.mxu1 %v4839_v37  ;;  %v4415_v30 = vadd.f32 %v14243_v36, %v4394_v57  ;;  %v5169_v37 = vld [vmem:[#allocation15 + $0xa0] sm:$0xff] }
 0x4d3   :  { %10746 = vmatpush3.msra.mxu0 %v4698_v58  ;;  %10796 = vmatprep.subr.mxu1 %v4838_v43  ;;  %v5150_v58 = vld [vmem:[#allocation15 + $0x10] sm:$0xff] }
 0x4d4   :  { %10747 = vmatprep.subr.mxu0 %v4697_v63  ;;  %10797 = vmatpush3.msra.mxu1 %v4838_v43  ;;  %v4429_v44 = vmax.f32 %v4415_v30, 0.0  ;;  %v5148_v43 = vld [vmem:[#allocation15] sm:$0xff] }
 0x4d5   :  { %10748 = vmatpush3.msra.mxu0 %v4697_v63  ;;  %10799 = vmatmul.mubr.f32.vlgmr.msra.gmra.mxu1 %v14276_v52  ;;  %v5166_v63 = vld [vmem:[#allocation15 + $0x88] sm:$0xff] }
 0x4d6   :  { %10749 = vmatprep.subr.mxu0 %v4696_v47  ;;  %10801 = vmatprep.mubr.f32.mxu1 %v14288_v49 }
 0x4d7   :  { %10750 = vmatpush3.msra.mxu0 %v4696_v47  ;;  %v14357_v47 = vld [vmem:[#allocation15 + $0x1f8] sm:$0xff] }
 0x4d8   :  { %10752 = vmatmul.mubr.f32.vlgmr.msra.gmra.mxu0 %v14267_v33  ;;  %10813 = vmatprep.subr.mxu0 %v4995_v42  ;;  %v4395_v33 = vadd.f32 %v4374_v39, %v4229_v21 }
 0x4d9   :  { %10754 = vmatprep.mubr.f32.mxu0 %v14276_v52  ;;  %10802 = vmatmul.mubr.f32.gmra.mxu1 %v14294_v13 }
 0x4da   :  { %10814 = vmatpush3.msra.mxu0 %v4995_v42  ;;  %10804 = vmatprep.mubr.f32.mxu1 %v14300_v0  ;;  %v4416_v46 = vadd.f32 %v14243_v36, %v4395_v33  ;;  %v4987_v36 = vld [vmem:[#allocation12 + $0x238] sm:$0xff] }
 0x4db   :  { %10815 = vmatprep.subr.mxu0 %v4994_v48 }
 0x4dc   :  { %10816 = vmatpush3.msra.mxu0 %v4994_v48  ;;  %v4430_v40 = vmax.f32 %v4416_v46, 0.0 }
 0x4dd   :  { %10755 = vmatmul.mubr.f32.gmra.mxu0 %v14288_v49  ;;  %10817 = vmatprep.subr.mxu0 %v4993_v53 }
 0x4de   :  { %10757 = vmatprep.mubr.f32.mxu0 %v14294_v13  ;;  %10805 = vmatmul.mubr.f32.gmra.mxu1 %v14305_v35 }
 0x4df   :  { %10818 = vmatpush3.msra.mxu0 %v4993_v53  ;;  %10807 = vmatprep.mubr.f32.mxu1 %v14313_v54 }
 0x4e0   :  { %10819 = vmatprep.subr.mxu0 %v4992_v56 }
 0x4e1   :  { %10820 = vmatpush3.msra.mxu0 %v4992_v56 }
 0x4e2   :  { %10758 = vmatmul.mubr.f32.gmra.mxu0 %v14300_v0  ;;  %10821 = vmatprep.subr.mxu0 %v4991_v6 }
 0x4e3   :  { %10760 = vmatprep.mubr.f32.mxu0 %v14305_v35  ;;  %10808 = vmatmul.mubr.f32.gmra.mxu1 %v14318_v25 }
 0x4e4   :  { %10822 = vmatpush3.msra.mxu0 %v4991_v6  ;;  %10810 = vmatprep.mubr.f32.mxu1 %v4429_v44 }
 0x4e5   :  { %10823 = vmatprep.subr.mxu0 %v4990_v10 }
 0x4e6   :  { %10824 = vmatpush3.msra.mxu0 %v4990_v10 }
 0x4e7   :  { %10761 = vmatmul.mubr.f32.gmra.mxu0 %v14313_v54  ;;  %10825 = vmatprep.subr.mxu0 %v4989_v29 }
 0x4e8   :  { %10763 = vmatprep.mubr.f32.mxu0 %v14318_v25  ;;  %10811 = vmatmul.mubr.f32.gmra.mxu1 %v4430_v40 }
 0x4e9   :  { %10826 = vmatpush3.msra.mxu0 %v4989_v29 }
 0x4ea   :  { %10827 = vmatprep.subr.mxu0 %v4988_v1 }
 0x4eb   :  { %10828 = vmatpush3.msra.mxu0 %v4988_v1 }
 0x4ec   :  { %10764 = vmatmul.mubr.f32.gmra.mxu0 %v4429_v44  ;;  %10829 = vmatprep.subr.mxu0 %v4987_v36 }
 0x4ed   :  { %10830 = vmatpush3.msra.mxu0 %v4987_v36  ;;  %10845 = vmatprep.mubr.f32.mxu0 %v14276_v52  ;;  %v4431_v52 = vmax.f32 %v14308_v45, 0.0  ;;  %v5159_v45 = vld [vmem:[#allocation15 + $0x58] sm:$0xff] }
 0x4ee   :  { %10831 = vmatprep.subr.mxu0 %v4986_v11 }
 0x4ef   :  { %10832 = vmatpush3.msra.mxu0 %v4986_v11 }
 0x4f0   :  { %10833 = vmatprep.subr.mxu0 %v4985_v38 }
 0x4f1   :  { %10834 = vmatpush3.msra.mxu0 %v4985_v38 }
 0x4f2   :  { %10835 = vmatprep.subr.mxu0 %v4984_v27 }
 0x4f3   :  { %10836 = vmatpush3.msra.mxu0 %v4984_v27 }
 0x4f4   :  { %10837 = vmatprep.subr.mxu0 %v4983_v34 }
 0x4f5   :  { %10838 = vmatpush3.msra.mxu0 %v4983_v34 }
 0x4f6   :  { %10839 = vmatprep.subr.mxu0 %v4982_v24 }
 0x4f7   :  { %10840 = vmatpush3.msra.mxu0 %v4982_v24 }
 0x4f8   :  { %10841 = vmatprep.subr.mxu0 %v4981_v4 }
 0x4f9   :  { %10842 = vmatpush3.msra.mxu0 %v4981_v4 }
 0x4fa   :  { %10843 = vmatprep.subr.mxu0 %v4980_v19 }
 0x4fb   :  { %10844 = vmatpush3.msra.mxu0 %v4980_v19 }
 0x4fc   :  { %10846 = vmatmul.mubr.f32.vlgmr.msra.gmra.mxu0 %v14288_v49  ;;  %10901 = vmatprep.subr.mxu0 %v5163_v59  ;;  %v5180_v49 = vld [vmem:[#allocation15 + $0xf8] sm:$0xff] }
 0x4fd   :  { %10848 = vmatprep.mubr.f32.mxu0 %v14294_v13  ;;  %10902 = vmatpush3.msra.mxu0 %v5163_v59  ;;  %v5161_v13 = vld [vmem:[#allocation15 + $0x68] sm:$0xff] }
 0x4fe   :  { %10903 = vmatprep.subr.mxu0 %v5162_v2  ;;  %10860 = vmatprep.subr.mxu1 %v5180_v49 }
 0x4ff   :  { %10904 = vmatpush3.msra.mxu0 %v5162_v2  ;;  %10861 = vmatpush3.msra.mxu1 %v5180_v49 }
 0x500   :  { %10849 = vmatmul.mubr.f32.gmra.mxu0 %v14300_v0  ;;  %10905 = vmatprep.subr.mxu0 %v5161_v13  ;;  %v5179_v0 = vld [vmem:[#allocation15 + $0xf0] sm:$0xff] }
 0x501   :  { %10851 = vmatprep.mubr.f32.mxu0 %v14305_v35  ;;  %10862 = vmatprep.subr.mxu1 %v5179_v0  ;;  %v5160_v35 = vld [vmem:[#allocation15 + $0x60] sm:$0xff] }
 0x502   :  { %10906 = vmatpush3.msra.mxu0 %v5161_v13  ;;  %10863 = vmatpush3.msra.mxu1 %v5179_v0 }
 0x503   :  { %10907 = vmatprep.subr.mxu0 %v5160_v35  ;;  %10864 = vmatprep.subr.mxu1 %v5178_v9 }
 0x504   :  { %10852 = vmatmul.mubr.f32.gmra.mxu0 %v14313_v54  ;;  %10865 = vmatpush3.msra.mxu1 %v5178_v9  ;;  %v5157_v54 = vld [vmem:[#allocation15 + $0x48] sm:$0xff] }
 0x505   :  { %10854 = vmatprep.mubr.f32.mxu0 %v14318_v25  ;;  %10908 = vmatpush3.msra.mxu0 %v5160_v35  ;;  %v5174_v25 = vld [vmem:[#allocation15 + $0xc8] sm:$0xff] }
 0x506   :  { %10909 = vmatprep.subr.mxu0 %v5159_v45  ;;  %10866 = vmatprep.subr.mxu1 %v5177_v32 }
 0x507   :  { %10910 = vmatpush3.msra.mxu0 %v5159_v45  ;;  %10867 = vmatpush3.msra.mxu1 %v5177_v32 }
 0x508   :  { %10855 = vmatmul.mubr.f32.gmra.mxu0 %v4429_v44  ;;  %10911 = vmatprep.subr.mxu0 %v5158_v15 }
 0x509   :  { %10857 = vmatprep.mubr.f32.mxu0 %v4430_v40  ;;  %10868 = vmatprep.subr.mxu1 %v5176_v12 }
 0x50a   :  { %10912 = vmatpush3.msra.mxu0 %v5158_v15  ;;  %10869 = vmatpush3.msra.mxu1 %v5176_v12 }
 0x50b   :  { %10913 = vmatprep.subr.mxu0 %v5157_v54  ;;  %10870 = vmatprep.subr.mxu1 %v5175_v14 }
 0x50c   :  { %10858 = vmatmul.mubr.f32.gmra.mxu0 %v4431_v52  ;;  %10871 = vmatpush3.msra.mxu1 %v5175_v14 }
 0x50d   :  { %10914 = vmatpush3.msra.mxu0 %v5157_v54  ;;  %10872 = vmatprep.subr.mxu1 %v5174_v25 }
 0x50e   :  { %10915 = vmatprep.subr.mxu0 %v5156_v55  ;;  %10873 = vmatpush3.msra.mxu1 %v5174_v25 }
 0x50f   :  { %10916 = vmatpush3.msra.mxu0 %v5156_v55  ;;  %10874 = vmatprep.subr.mxu1 %v5173_v26 }
 0x510   :  { %10917 = vmatprep.subr.mxu0 %v5155_v8  ;;  %10875 = vmatpush3.msra.mxu1 %v5173_v26 }
 0x511   :  { %10918 = vmatpush3.msra.mxu0 %v5155_v8  ;;  %10876 = vmatprep.subr.mxu1 %v5172_v22 }
 0x512   :  { %10919 = vmatprep.subr.mxu0 %v5154_v23  ;;  %10877 = vmatpush3.msra.mxu1 %v5172_v22 }
 0x513   :  { %10920 = vmatpush3.msra.mxu0 %v5154_v23  ;;  %10878 = vmatprep.subr.mxu1 %v5171_v7  ;;  %v14377_v23 = vld [vmem:[#allocation13] ss:$0 sm:$0xff] }
 0x514   :  { %10921 = vmatprep.subr.mxu0 %v5153_v62  ;;  %10879 = vmatpush3.msra.mxu1 %v5171_v7 }
 0x515   :  { %10922 = vmatpush3.msra.mxu0 %v5153_v62  ;;  %10880 = vmatprep.subr.mxu1 %v5170_v16 }
 0x516   :  { %10923 = vmatprep.subr.mxu0 %v5152_v18  ;;  %10881 = vmatpush3.msra.mxu1 %v5170_v16 }
 0x517   :  { %10924 = vmatpush3.msra.mxu0 %v5152_v18  ;;  %10882 = vmatprep.subr.mxu1 %v5169_v37 }
 0x518   :  { %10925 = vmatprep.subr.mxu0 %v5151_v17  ;;  %10883 = vmatpush3.msra.mxu1 %v5169_v37 }
 0x519   :  { %10926 = vmatpush3.msra.mxu0 %v5151_v17  ;;  %10884 = vmatprep.subr.mxu1 %v5168_v61 }
 0x51a   :  { %10927 = vmatprep.subr.mxu0 %v5150_v58  ;;  %10885 = vmatpush3.msra.mxu1 %v5168_v61 }
 0x51b   :  { %10928 = vmatpush3.msra.mxu0 %v5150_v58  ;;  %10886 = vmatprep.subr.mxu1 %v5167_v51 }
 0x51c   :  { %10929 = vmatprep.subr.mxu0 %v5149_v41  ;;  %10887 = vmatpush3.msra.mxu1 %v5167_v51 }
 0x51d   :  { %10930 = vmatpush3.msra.mxu0 %v5149_v41  ;;  %10888 = vmatprep.subr.mxu1 %v5166_v63 }
 0x51e   :  { %10931 = vmatprep.subr.mxu0 %v5148_v43  ;;  %10889 = vmatpush3.msra.mxu1 %v5166_v63 }
 0x51f   :  { %10932 = vmatpush3.msra.mxu0 %v5148_v43  ;;  %10890 = vmatprep.subr.mxu1 %v5165_v5 }
 0x520   :  { %10983 = vmatprep.subr.mxu0 %v14357_v47  ;;  %10891 = vmatpush3.msra.mxu1 %v5165_v5 }
 0x521   :  { %10942 = vmatprep.subr.mxu1 %v14360_v31 }
 0x56c   :  { %v10706_v3 = vpop.f32.mrf.mxu1 }
 0x56e   :  { %v4646_v60 = vpop.f32.mrf.mxu1 }
 0x56f   :  { %v10659_v42 = vpop.f32.mrf.mxu0 }
 0x570   :  { %v4652_v0 = vadd.f32 %v10706_v3, %v10659_v42 }
 0x571   :  { %v4531_v20 = vpop.f32.mrf.mxu0 }
 0x572   :  { %v10709_v50 = vpop.f32.mrf.mxu1  ;;  %v4647_v9 = vadd.f32 %v4646_v60, %v4531_v20 }
 0x574   :  { %v4656_v28 = vpop.f32.mrf.mxu1 }
 0x575   :  { %v10662_v48 = vpop.f32.mrf.mxu0 }
 0x576   :  { %v4662_v32 = vadd.f32 %v10709_v50, %v10662_v48 }
 0x577   :  { %v4541_v57 = vpop.f32.mrf.mxu0 }
 0x578   :  { %v10712_v21 = vpop.f32.mrf.mxu1  ;;  %v4657_v12 = vadd.f32 %v4656_v28, %v4541_v57 }
 0x57a   :  { %v4666_v39 = vpop.f32.mrf.mxu1 }
 0x57b   :  { %v10665_v53 = vpop.f32.mrf.mxu0 }
 0x57c   :  { %v4672_v7 = vadd.f32 %v10712_v21, %v10665_v53 }
 0x57d   :  { %v4551_v56 = vpop.f32.mrf.mxu0 }
 0x57e   :  { %v14363_v33 = vpop.f32.mrf.mxu1  ;;  %v4667_v17 = vadd.f32 %v4666_v39, %v4551_v56 }
 0x580   :  { %v4676_v6 = vpop.f32.mrf.mxu1 }
 0x581   :  { %v14365_v30 = vpop.f32.mrf.mxu0 }
 0x583   :  { %v4561_v46 = vpop.f32.mrf.mxu0 }
 0x584   :  { %v10718_v44 = vpop.f32.mrf.mxu1  ;;  %v4677_v50 = vadd.f32 %v4676_v6, %v4561_v46  ;;  %v5503_v46 = vld [vmem:[#allocation15 + $0x1e8] sm:$0xff] }
 0x586   :  { %v14371_v4 = vpop.f32.mrf.mxu1 }
 0x588   :  { %v10671_v10 = vpop.f32.mrf.mxu0 }
 0x589   :  { %v4692_v29 = vadd.f32 %v10718_v44, %v10671_v10  ;;  %v5504_v10 = vld [vmem:[#allocation15 + $0x1f0] sm:$0xff] }
 0x58a   :  { %v14367_v40 = vpop.f32.mrf.mxu0 }
 0x595   :  { %v10800_v52 = vpop.f32.mrf.mxu1 }
 0x597   :  { %v4920_v49 = vpop.f32.mrf.mxu1 }
 0x598   :  { %v10753_v1 = vpop.f32.mrf.mxu0 }
 0x599   :  { %v10803_v13 = vpop.f32.mrf.mxu1  ;;  %v4828_v45 = vadd.f32 %v10753_v1, %v4652_v0 }
 0x59a   :  { %v4778_v36 = vpop.f32.mrf.mxu0 }
 0x59b   :  { %v4930_v35 = vpop.f32.mrf.mxu1  ;;  %v4827_v15 = vadd.f32 %v4778_v36, %v4647_v9  ;;  %v4970_v25 = vadd.f32 %v10800_v52, %v4828_v45  ;;  %v5386_v52 = vld [vmem:[#allocation15 + $0x170] sm:$0xff]  ;;  %v5385_v45 = vld [vmem:[#allocation15 + $0x168] sm:$0xff] }
 0x59d   :  { %v10756_v11 = vpop.f32.mrf.mxu0  ;;  %v4969_v62 = vadd.f32 %v4920_v49, %v4827_v15 }
 0x59e   :  { %v10806_v54 = vpop.f32.mrf.mxu1  ;;  %v4830_v55 = vadd.f32 %v10756_v11, %v4662_v32 }
 0x59f   :  { %v4788_v38 = vpop.f32.mrf.mxu0 }
 0x5a0   :  { %v4829_v8 = vadd.f32 %v4788_v38, %v4657_v12  ;;  %v4940_v18 = vpop.f32.mrf.mxu1  ;;  %v4972_v61 = vadd.f32 %v10803_v13, %v4830_v55  ;;  %v5501_v12 = vld [vmem:[#allocation15 + $0x1d8] sm:$0xff] }
 0x5a2   :  { %v10759_v27 = vpop.f32.mrf.mxu0  ;;  %v4971_v43 = vadd.f32 %v4930_v35, %v4829_v8  ;;  %v5502_v35 = vld [vmem:[#allocation15 + $0x1e0] sm:$0xff] }
 0x5a3   :  { %v4832_v41 = vadd.f32 %v10759_v27, %v4672_v7  ;;  %v14381_v42 = vpop.f32.mrf.mxu1  ;;  %v5498_v7 = vld [vmem:[#allocation15 + $0x1c0] sm:$0xff] }
 0x5a4   :  { %v4798_v34 = vpop.f32.mrf.mxu0 }
 0x5a5   :  { %v4831_v63 = vadd.f32 %v4798_v34, %v4667_v17  ;;  %v4974_v57 = vadd.f32 %v10806_v54, %v4832_v41  ;;  %v5380_v17 = vld [vmem:[#allocation15 + $0x140] sm:$0xff]  ;;  %v5378_v41 = vld [vmem:[#allocation15 + $0x130] sm:$0xff] }
 0x5a7   :  { %v14369_v24 = vpop.f32.mrf.mxu0  ;;  %v4973_v44 = vadd.f32 %v4940_v18, %v4831_v63  ;;  %v5381_v18 = vld [vmem:[#allocation15 + $0x148] sm:$0xff] }
 0x5a8   :  { %v5377_v63 = vld [vmem:[#allocation15 + $0x128] sm:$0xff] }
 0x5a9   :  { %v4808_v19 = vpop.f32.mrf.mxu0 }
 0x5aa   :  { %v4833_v53 = vadd.f32 %v4808_v19, %v4677_v50 }
 0x5ac   :  { %v10765_v59 = vpop.f32.mrf.mxu0 }
 0x5ad   :  { %v14373_v2 = vadd.f32 %v10765_v59, %v4692_v29  ;;  %v4950_v29 = vpop.f32.mrf.mxu1 }
 0x5ae   :  { %v14375_v14 = vpop.f32.mrf.mxu0  ;;  %v4975_v19 = vadd.f32 %v4950_v29, %v4833_v53  ;;  %v5373_v53 = vld [vmem:[#allocation15 + $0x108] sm:$0xff] }
 0x5af   :  { %v10812_v59 = vpop.f32.mrf.mxu1 }
 0x5b0   :  { %v4978_v9 = vadd.f32 %v10812_v59, %v14373_v2  ;;  %v5384_v2 = vld [vmem:[#allocation15 + $0x160] sm:$0xff]  ;;  %v5613_v59 = vld [vmem:[#allocation15 + $0x228] sm:$0xff] }
 0x5bc   :  { %v10847_v26 = vpop.f32.mrf.mxu0 }
 0x5bd   :  { %v5112_v22 = vadd.f32 %v10847_v26, %v4970_v25  ;;  %v5500_v25 = vld [vmem:[#allocation15 + $0x1d0] sm:$0xff]  ;;  %v5383_v26 = vld [vmem:[#allocation15 + $0x158] sm:$0xff] }
 0x5be   :  { %v5062_v16 = vpop.f32.mrf.mxu0 }
 0x5bf   :  { %v5129_v37 = vadd.f32 %v14377_v23, %v5112_v22  ;;  %v5111_v58 = vadd.f32 %v5062_v16, %v4969_v62  ;;  %v5499_v22 = vld [vmem:[#allocation15 + $0x1c8] sm:$0xff]  ;;  %v5382_v62 = vld [vmem:[#allocation15 + $0x150] sm:$0xff]  ;;  %v5497_v16 = vld [vmem:[#allocation15 + $0x1b8] sm:$0xff] }
 0x5c0   :  { %v10850_v51 = vpop.f32.mrf.mxu0 }
 0x5c1   :  { %v5139_v5 = vmax.f32 %v5129_v37, 0.0  ;;  %v5128_v3 = vadd.f32 %v14377_v23, %v5111_v58  ;;  %v5114_v60 = vadd.f32 %v10850_v51, %v4972_v61  ;;  %v5496_v37 = vld [vmem:[#allocation15 + $0x1b0] sm:$0xff]  ;;  %v5379_v58 = vld [vmem:[#allocation15 + $0x138] sm:$0xff]  ;;  %v5495_v61 = vld [vmem:[#allocation15 + $0x1a8] sm:$0xff]  ;;  %v4682_v51 = vadd.f32 %v14363_v33, %v14365_v30 }
 0x5c2   :  { %v5072_v20 = vpop.f32.mrf.mxu0  ;;  %v5492_v33 = vld [vmem:[#allocation15 + $0x190] sm:$0xff]  ;;  %v5375_v30 = vld [vmem:[#allocation15 + $0x118] sm:$0xff] }
 0x5c3   :  { %v5138_v28 = vmax.f32 %v5128_v3, 0.0  ;;  %v5113_v48 = vadd.f32 %v5072_v20, %v4971_v43  ;;  %10892 = vmatprep.mubr.f32.mxu1 %v5139_v5  ;;  %v5131_v39 = vadd.f32 %v14377_v23, %v5114_v60  ;;  %v5494_v43 = vld [vmem:[#allocation15 + $0x1a0] sm:$0xff]  ;;  %v5493_v3 = vld [vmem:[#allocation15 + $0x198] sm:$0xff]  ;;  %v4687_v20 = vadd.f32 %v14371_v4, %v14367_v40  ;;  %v4960_v4 = vpop.f32.mrf.mxu1 }
 0x5c4   :  { %v10853_v21 = vpop.f32.mrf.mxu0  ;;  %v5376_v60 = vld [vmem:[#allocation15 + $0x120] sm:$0xff] }
 0x5c5   :  { %v5130_v56 = vadd.f32 %v14377_v23, %v5113_v48  ;;  %10933 = vmatprep.mubr.f32.mxu0 %v5138_v28  ;;  %v5116_v11 = vadd.f32 %v10853_v21, %v4974_v57  ;;  %v14388_v27 = vmax.f32 %v5131_v39, 0.0  ;;  %v4835_v50 = vadd.f32 %v14375_v14, %v4687_v20  ;;  %v5374_v48 = vld [vmem:[#allocation15 + $0x110] sm:$0xff]  ;;  %v5490_v40 = vld [vmem:[#allocation15 + $0x180] sm:$0xff] }
 0x5c6   :  { %v5082_v1 = vpop.f32.mrf.mxu0  ;;  %10934 = vmatmul.mubr.f32.vlgmr.msra.gmra.mxu0 %v5139_v5  ;;  %v4834_v5 = vadd.f32 %v14369_v24, %v4682_v51  ;;  %v5491_v24 = vld [vmem:[#allocation15 + $0x188] sm:$0xff]  ;;  %v5372_v14 = vld [vmem:[#allocation15 + $0x100] sm:$0xff]  ;;  %v5947_v20 = vld [vmem:[#allocation18 + $0x650] sm:$0xff] }
 0x5c7   :  { %v5140_v36 = vmax.f32 %v5130_v56, 0.0  ;;  %v5115_v38 = vadd.f32 %v5082_v1, %v4973_v44  ;;  %10984 = vmatpush3.msra.mxu0 %v14357_v47  ;;  %v5133_v13 = vadd.f32 %v14377_v23, %v5116_v11  ;;  %v4977_v39 = vadd.f32 %v4960_v4, %v4835_v50  ;;  %v5623_v44 = vld [vmem:[#allocation15 + $0x278] sm:$0xff]  ;;  %v5622_v1 = vld [vmem:[#allocation15 + $0x270] sm:$0xff]  ;;  %v5937_v50 = vld [vmem:[#allocation18 + $0x600] sm:$0xff] }
 0x5c8   :  { %10985 = vmatprep.subr.mxu0 %v5504_v10  ;;  %v14386_v6 = vpop.f32.mrf.mxu0  ;;  %v4976_v28 = vadd.f32 %v14381_v42, %v4834_v5  ;;  %v5956_v51 = vld [vmem:[#allocation18 + $0x698] sm:$0xff]  ;;  %v5946_v5 = vld [vmem:[#allocation18 + $0x648] sm:$0xff] }
 0x5c9   :  { %v5132_v34 = vadd.f32 %v14377_v23, %v5115_v38  ;;  %10986 = vmatpush3.msra.mxu0 %v5504_v10  ;;  %10893 = vmatmul.mubr.f32.vlgmr.msra.gmra.mxu1 %v5140_v36  ;;  %v14399_v54 = vmax.f32 %v5133_v13, 0.0  ;;  %v5620_v38 = vld [vmem:[#allocation15 + $0x260] sm:$0xff]  ;;  %v5611_v13 = vld [vmem:[#allocation15 + $0x218] sm:$0xff]  ;;  %v5922_v4 = vld [vmem:[#allocation18 + $0x588] sm:$0xff] }
 0x5ca   :  { %10936 = vmatprep.mubr.f32.mxu0 %v5140_v36  ;;  %10943 = vmatpush3.msra.mxu1 %v14360_v31  ;;  %v5092_v49 = vpop.f32.mrf.mxu0  ;;  %v5118_v57 = vadd.f32 %v14386_v6, %v4976_v28  ;;  %v14681_v6 = vmov 0.0   ;;  %v5939_v28 = vld [vmem:[#allocation18 + $0x610] sm:$0xff] }
 0x5cb   :  { %v14393_v47 = vmax.f32 %v5132_v34, 0.0  ;;  %10987 = vmatprep.subr.mxu0 %v5503_v46  ;;  %v5117_v0 = vadd.f32 %v5092_v49, %v4975_v19  ;;  %10895 = vmatprep.mubr.f32.mxu1 %v14388_v27  ;;  %v5616_v34 = vld [vmem:[#allocation15 + $0x240] sm:$0xff]  ;;  %v5615_v19 = vld [vmem:[#allocation15 + $0x238] sm:$0xff] }
 0x5cc   :  { %10937 = vmatmul.mubr.f32.gmra.mxu0 %v14388_v27  ;;  %10944 = vmatprep.subr.mxu1 %v5386_v52  ;;  %v10859_v32 = vpop.f32.mrf.mxu0  ;;  %v5135_v42 = vadd.f32 %v14377_v23, %v5118_v57  ;;  %v5612_v49 = vld [vmem:[#allocation15 + $0x220] sm:$0xff] }
 0x5cd   :  { %10988 = vmatpush3.msra.mxu0 %v5503_v46  ;;  %10945 = vmatpush3.msra.mxu1 %v5386_v52  ;;  %v5120_v31 = vadd.f32 %v10859_v32, %v4978_v9  ;;  %v5134_v15 = vadd.f32 %v14377_v23, %v5117_v0  ;;  %v5618_v46 = vld [vmem:[#allocation15 + $0x250] sm:$0xff]  ;;  %v5609_v0 = vld [vmem:[#allocation15 + $0x208] sm:$0xff]  ;;  %v5996_v32 = vld [vmem:[#allocation18 + $0x7d8] sm:$0xff] }
 0x5ce   :  { %10989 = vmatprep.subr.mxu0 %v5502_v35  ;;  %10946 = vmatprep.subr.mxu1 %v5385_v45  ;;  %v5102_v21 = vpop.f32.mrf.mxu0  ;;  %v5145_v10 = vmax.f32 %v5135_v42, 0.0  ;;  %v5614_v52 = vld [vmem:[#allocation15 + $0x230] sm:$0xff]  ;;  %v5929_v57 = vld [vmem:[#allocation18 + $0x5c0] sm:$0xff]  ;;  %v5916_v42 = vld [vmem:[#allocation18 + $0x558] sm:$0xff] }
 0x5cf   :  { %v14402_v55 = vadd.f32 %v14377_v23, %v5120_v31  ;;  %10990 = vmatpush3.msra.mxu0 %v5502_v35  ;;  %10896 = vmatmul.mubr.f32.gmra.mxu1 %v14393_v47  ;;  %v14407_v8 = vmax.f32 %v5134_v15, 0.0  ;;  %v5119_v56 = vadd.f32 %v5102_v21, %v4977_v39  ;;  %v5608_v35 = vld [vmem:[#allocation15 + $0x200] sm:$0xff]  ;;  %v5995_v15 = vld [vmem:[#allocation18 + $0x7d0] sm:$0xff] }
 0x5d0   :  { %10939 = vmatprep.mubr.f32.mxu0 %v14393_v47  ;;  %10947 = vmatpush3.msra.mxu1 %v5385_v45  ;;  %v5994_v45 = vld [vmem:[#allocation18 + $0x7c8] sm:$0xff]  ;;  %v5993_v31 = vld [vmem:[#allocation18 + $0x7c0] sm:$0xff]  ;;  %v5924_v21 = vld [vmem:[#allocation18 + $0x598] sm:$0xff] }
 0x5d1   :  { %10991 = vmatprep.subr.mxu0 %v5501_v12  ;;  %10898 = vmatprep.mubr.f32.mxu1 %v14399_v54  ;;  %v5136_v29 = vadd.f32 %v14377_v23, %v5119_v56  ;;  %v5619_v23 = vld [vmem:[#allocation15 + $0x258] sm:$0xff]  ;;  %v5147_v9 = vmax.f32 %v14402_v55, 0.0  ;;  %v5978_v55 = vld [vmem:[#allocation18 + $0x748] sm:$0xff]  ;;  %v5913_v56 = vld [vmem:[#allocation18 + $0x540] sm:$0xff] }
 0x5d2   :  { %10940 = vmatmul.mubr.f32.gmra.mxu0 %v14399_v54  ;;  %10948 = vmatprep.subr.mxu1 %v5384_v2  ;;  %v5923_v39 = vld [vmem:[#allocation18 + $0x590] sm:$0xff] }
 0x5d3   :  { %10992 = vmatpush3.msra.mxu0 %v5501_v12  ;;  %10949 = vmatpush3.msra.mxu1 %v5384_v2  ;;  %v5146_v11 = vmax.f32 %v5136_v29, 0.0  ;;  %v5986_v12 = vld [vmem:[#allocation18 + $0x788] sm:$0xff]  ;;  %v5988_v2 = vld [vmem:[#allocation18 + $0x798] sm:$0xff] }
 0x5d4   :  { %10993 = vmatprep.subr.mxu0 %v5500_v25  ;;  %11015 = vmatprep.mubr.f32.mxu0 %v14388_v27  ;;  %v5908_v29 = vld [vmem:[#allocation18 + $0x518] sm:$0xff] }
 0x5d5   :  { %10950 = vmatprep.subr.mxu1 %v5383_v26  ;;  %10994 = vmatpush3.msra.mxu0 %v5500_v25  ;;  %v5987_v25 = vld [vmem:[#allocation18 + $0x790] sm:$0xff] }
 0x5d6   :  { %10899 = vmatmul.mubr.f32.gmra.mxu1 %v14407_v8  ;;  %10995 = vmatprep.subr.mxu0 %v5499_v22 }
 0x5d7   :  { %10951 = vmatpush3.msra.mxu1 %v5383_v26  ;;  %10974 = vmatprep.mubr.f32.mxu1 %v5140_v36  ;;  %v5621_v36 = vld [vmem:[#allocation15 + $0x268] sm:$0xff] }
 0x5d8   :  { %10952 = vmatprep.subr.mxu1 %v5382_v62  ;;  %10996 = vmatpush3.msra.mxu0 %v5499_v22  ;;  %v5977_v26 = vld [vmem:[#allocation18 + $0x740] sm:$0xff]  ;;  %v5979_v22 = vld [vmem:[#allocation18 + $0x750] sm:$0xff] }
 0x5d9   :  { %10953 = vmatpush3.msra.mxu1 %v5382_v62  ;;  %10997 = vmatprep.subr.mxu0 %v5498_v7  ;;  %v5970_v62 = vld [vmem:[#allocation18 + $0x708] sm:$0xff] }
 0x5da   :  { %10954 = vmatprep.subr.mxu1 %v5381_v18  ;;  %10998 = vmatpush3.msra.mxu0 %v5498_v7  ;;  %v5972_v7 = vld [vmem:[#allocation18 + $0x718] sm:$0xff] }
 0x5db   :  { %10955 = vmatpush3.msra.mxu1 %v5381_v18  ;;  %10999 = vmatprep.subr.mxu0 %v5497_v16  ;;  %v5969_v18 = vld [vmem:[#allocation18 + $0x700] sm:$0xff] }
 0x5dc   :  { %10956 = vmatprep.subr.mxu1 %v5380_v17  ;;  %11000 = vmatpush3.msra.mxu0 %v5497_v16  ;;  %v5971_v16 = vld [vmem:[#allocation18 + $0x710] sm:$0xff] }
 0x5dd   :  { %10957 = vmatpush3.msra.mxu1 %v5380_v17  ;;  %11001 = vmatprep.subr.mxu0 %v5496_v37  ;;  %v5962_v17 = vld [vmem:[#allocation18 + $0x6c8] sm:$0xff] }
 0x5de   :  { %10958 = vmatprep.subr.mxu1 %v5379_v58  ;;  %11002 = vmatpush3.msra.mxu0 %v5496_v37  ;;  %v5964_v37 = vld [vmem:[#allocation18 + $0x6d8] sm:$0xff] }
 0x5df   :  { %10959 = vmatpush3.msra.mxu1 %v5379_v58  ;;  %11003 = vmatprep.subr.mxu0 %v5495_v61  ;;  %v5961_v58 = vld [vmem:[#allocation18 + $0x6c0] sm:$0xff] }
 0x5e0   :  { %10960 = vmatprep.subr.mxu1 %v5378_v41  ;;  %11004 = vmatpush3.msra.mxu0 %v5495_v61  ;;  %v5963_v61 = vld [vmem:[#allocation18 + $0x6d0] sm:$0xff] }
 0x5e1   :  { %10961 = vmatpush3.msra.mxu1 %v5378_v41  ;;  %11005 = vmatprep.subr.mxu0 %v5494_v43  ;;  %v5954_v41 = vld [vmem:[#allocation18 + $0x688] sm:$0xff] }
 0x5e2   :  { %10962 = vmatprep.subr.mxu1 %v5377_v63  ;;  %11006 = vmatpush3.msra.mxu0 %v5494_v43  ;;  %v5953_v43 = vld [vmem:[#allocation18 + $0x680] sm:$0xff] }
 0x5e3   :  { %10963 = vmatpush3.msra.mxu1 %v5377_v63  ;;  %11007 = vmatprep.subr.mxu0 %v5493_v3  ;;  %v5955_v63 = vld [vmem:[#allocation18 + $0x690] sm:$0xff] }
 0x5e4   :  { %10964 = vmatprep.subr.mxu1 %v5376_v60  ;;  %11008 = vmatpush3.msra.mxu0 %v5493_v3  ;;  %v5948_v3 = vld [vmem:[#allocation18 + $0x658] sm:$0xff] }
 0x5e5   :  { %10965 = vmatpush3.msra.mxu1 %v5376_v60  ;;  %11009 = vmatprep.subr.mxu0 %v5492_v33  ;;  %v5945_v60 = vld [vmem:[#allocation18 + $0x640] sm:$0xff] }
 0x5e6   :  { %10966 = vmatprep.subr.mxu1 %v5375_v30  ;;  %11010 = vmatpush3.msra.mxu0 %v5492_v33  ;;  %v5938_v33 = vld [vmem:[#allocation18 + $0x608] sm:$0xff] }
 0x5e7   :  { %10967 = vmatpush3.msra.mxu1 %v5375_v30  ;;  %11011 = vmatprep.subr.mxu0 %v5491_v24  ;;  %v5940_v30 = vld [vmem:[#allocation18 + $0x618] sm:$0xff] }
 0x5e8   :  { %10968 = vmatprep.subr.mxu1 %v5374_v48  ;;  %11012 = vmatpush3.msra.mxu0 %v5491_v24  ;;  %v5930_v24 = vld [vmem:[#allocation18 + $0x5c8] sm:$0xff] }
 0x5e9   :  { %10969 = vmatpush3.msra.mxu1 %v5374_v48  ;;  %11013 = vmatprep.subr.mxu0 %v5490_v40  ;;  %v5932_v48 = vld [vmem:[#allocation18 + $0x5d8] sm:$0xff] }
 0x5ea   :  { %10970 = vmatprep.subr.mxu1 %v5373_v53  ;;  %11014 = vmatpush3.msra.mxu0 %v5490_v40  ;;  %v5931_v40 = vld [vmem:[#allocation18 + $0x5d0] sm:$0xff] }
 0x5eb   :  { %10971 = vmatpush3.msra.mxu1 %v5373_v53  ;;  %11016 = vmatmul.mubr.f32.vlgmr.msra.gmra.mxu0 %v14393_v47  ;;  %v5921_v53 = vld [vmem:[#allocation18 + $0x580] sm:$0xff] }
 0x5ec   :  { %10972 = vmatprep.subr.mxu1 %v5372_v14  ;;  %11018 = vmatprep.mubr.f32.mxu0 %v14399_v54 }
 0x5ed   :  { %10973 = vmatpush3.msra.mxu1 %v5372_v14  ;;  %6001 = vmatprep.subr.mxu0 %v5994_v45  ;;  %v5914_v14 = vld [vmem:[#allocation18 + $0x548] sm:$0xff]  ;;  %v5875_v45 = vld [vmem:[#allocation18 + $0x410] sm:$0xff] }
 0x5ee   :  { %10975 = vmatmul.mubr.f32.vlgmr.msra.gmra.mxu1 %v14388_v27  ;;  %11024 = vmatprep.subr.mxu1 %v5623_v44  ;;  %v5617_v27 = vld [vmem:[#allocation15 + $0x248] sm:$0xff] }
 0x5ef   :  { %10977 = vmatprep.mubr.f32.mxu1 %v14393_v47  ;;  %11019 = vmatmul.mubr.f32.gmra.mxu0 %v14407_v8 }
 0x5f0   :  { %11025 = vmatpush3.msra.mxu1 %v5623_v44  ;;  %11021 = vmatprep.mubr.f32.mxu0 %v5145_v10  ;;  %v5915_v44 = vld [vmem:[#allocation18 + $0x550] sm:$0xff] }
 0x5f1   :  { %11026 = vmatprep.subr.mxu1 %v5622_v1  ;;  %6002 = vmatpush1.msra.mxu0 %v5993_v31  ;;  %v6000_v31 = vld [vmem:[#allocation18 + $0x7f8] sm:$0xff] }
 0x5f2   :  { %11027 = vmatpush3.msra.mxu1 %v5622_v1  ;;  %6003 = vmatprep.subr.mxu0 %v5986_v12  ;;  %v5905_v1 = vld [vmem:[#allocation18 + $0x500] sm:$0xff] }
 0x5f3   :  { %10978 = vmatmul.mubr.f32.gmra.mxu1 %v14399_v54  ;;  %11028 = vmatprep.subr.mxu1 %v5621_v36 }
 0x5f4   :  { %10980 = vmatprep.mubr.f32.mxu1 %v14407_v8  ;;  %11022 = vmatmul.mubr.f32.gmra.mxu0 %v5146_v11 }
 0x5f5   :  { %11029 = vmatpush3.msra.mxu1 %v5621_v36  ;;  %6065 = vmatprep.mubr.f32.mxu0 %v14681_v6  ;;  %v5907_v36 = vld [vmem:[#allocation18 + $0x510] sm:$0xff] }
 0x5f6   :  { %11030 = vmatprep.subr.mxu1 %v5620_v38 }
 0x5f7   :  { %11031 = vmatpush3.msra.mxu1 %v5620_v38  ;;  %v5900_v38 = vld [vmem:[#allocation18 + $0x4d8] sm:$0xff] }
 0x5f8   :  { %10981 = vmatmul.mubr.f32.gmra.mxu1 %v5145_v10  ;;  %11032 = vmatprep.subr.mxu1 %v5619_v23 }
 0x5f9   :  { %11033 = vmatpush3.msra.mxu1 %v5619_v23  ;;  %11056 = vmatprep.mubr.f32.mxu1 %v14393_v47  ;;  %v5610_v47 = vld [vmem:[#allocation15 + $0x210] sm:$0xff]  ;;  %v5897_v23 = vld [vmem:[#allocation18 + $0x4c0] sm:$0xff] }
 0x5fa   :  { %11034 = vmatprep.subr.mxu1 %v5618_v46 }
 0x5fb   :  { %11035 = vmatpush3.msra.mxu1 %v5618_v46  ;;  %v5899_v46 = vld [vmem:[#allocation18 + $0x4d0] sm:$0xff] }
 0x5fc   :  { %11036 = vmatprep.subr.mxu1 %v5617_v27 }
 0x5fd   :  { %11037 = vmatpush3.msra.mxu1 %v5617_v27  ;;  %v5890_v27 = vld [vmem:[#allocation18 + $0x488] sm:$0xff] }
 0x5fe   :  { %11038 = vmatprep.subr.mxu1 %v5616_v34 }
 0x5ff   :  { %11039 = vmatpush3.msra.mxu1 %v5616_v34  ;;  %v5892_v34 = vld [vmem:[#allocation18 + $0x498] sm:$0xff] }
 0x600   :  { %11040 = vmatprep.subr.mxu1 %v5615_v19 }
 0x601   :  { %11041 = vmatpush3.msra.mxu1 %v5615_v19  ;;  %v5889_v19 = vld [vmem:[#allocation18 + $0x480] sm:$0xff] }
 0x602   :  { %11042 = vmatprep.subr.mxu1 %v5614_v52 }
 0x603   :  { %11043 = vmatpush3.msra.mxu1 %v5614_v52  ;;  %v5891_v52 = vld [vmem:[#allocation18 + $0x490] sm:$0xff] }
 0x604   :  { %11044 = vmatprep.subr.mxu1 %v5613_v59 }
 0x605   :  { %11045 = vmatpush3.msra.mxu1 %v5613_v59  ;;  %v5882_v59 = vld [vmem:[#allocation18 + $0x448] sm:$0xff] }
 0x606   :  { %11046 = vmatprep.subr.mxu1 %v5612_v49 }
 0x607   :  { %11047 = vmatpush3.msra.mxu1 %v5612_v49  ;;  %v5884_v49 = vld [vmem:[#allocation18 + $0x458] sm:$0xff] }
 0x608   :  { %11048 = vmatprep.subr.mxu1 %v5611_v13 }
 0x609   :  { %11049 = vmatpush3.msra.mxu1 %v5611_v13  ;;  %v5881_v13 = vld [vmem:[#allocation18 + $0x440] sm:$0xff] }
 0x60a   :  { %11050 = vmatprep.subr.mxu1 %v5610_v47 }
 0x60b   :  { %11051 = vmatpush3.msra.mxu1 %v5610_v47  ;;  %v5883_v47 = vld [vmem:[#allocation18 + $0x450] sm:$0xff] }
 0x60c   :  { %11052 = vmatprep.subr.mxu1 %v5609_v0 }
 0x60d   :  { %11053 = vmatpush3.msra.mxu1 %v5609_v0  ;;  %v5874_v0 = vld [vmem:[#allocation18 + $0x408] sm:$0xff] }
 0x60e   :  { %11054 = vmatprep.subr.mxu1 %v5608_v35 }
 0x60f   :  { %11055 = vmatpush3.msra.mxu1 %v5608_v35  ;;  %v5876_v35 = vld [vmem:[#allocation18 + $0x418] sm:$0xff] }
 0x610   :  { %11057 = vmatmul.mubr.f32.vlgmr.msra.gmra.mxu1 %v14399_v54  ;;  %6072 = vmatprep.subr.mxu1 %v5996_v32  ;;  %v5985_v54 = vld [vmem:[#allocation18 + $0x780] sm:$0xff]  ;;  %v5998_v32 = vld [vmem:[#allocation18 + $0x7e8] sm:$0xff] }
 0x611   :  { %11059 = vmatprep.mubr.f32.mxu1 %v14407_v8  ;;  %6073 = vmatpush1.msra.mxu1 %v5995_v15  ;;  %v5980_v8 = vld [vmem:[#allocation18 + $0x758] sm:$0xff] }
 0x612   :  { %6074 = vmatprep.subr.mxu1 %v5988_v2  ;;  %6004 = vmatpush1.msra.mxu0 %v5985_v54 }
 0x613   :  { %6075 = vmatpush1.msra.mxu1 %v5987_v25  ;;  %6005 = vmatprep.subr.mxu0 %v5978_v55 }
 0x614   :  { %11060 = vmatmul.mubr.f32.gmra.mxu1 %v5145_v10  ;;  %6076 = vmatprep.subr.mxu1 %v5980_v8  ;;  %v5906_v10 = vld [vmem:[#allocation18 + $0x508] sm:$0xff] }
 0x615   :  { %11062 = vmatprep.mubr.f32.mxu1 %v5146_v11  ;;  %6006 = vmatpush1.msra.mxu0 %v5977_v26  ;;  %v5898_v11 = vld [vmem:[#allocation18 + $0x4c8] sm:$0xff] }
 0x616   :  { %6077 = vmatpush1.msra.mxu1 %v5979_v22  ;;  %6007 = vmatprep.subr.mxu0 %v5970_v62 }
 0x617   :  { %6078 = vmatprep.subr.mxu1 %v5972_v7  ;;  %6008 = vmatpush1.msra.mxu0 %v5969_v18 }
 0x618   :  { %11063 = vmatmul.mubr.f32.gmra.mxu1 %v5147_v9  ;;  %6009 = vmatprep.subr.mxu0 %v5962_v17  ;;  %v5873_v9 = vld [vmem:[#allocation18 + $0x400] sm:$0xff] }
 0x619   :  { %6136 = vmatprep.mubr.f32.mxu1 %v14681_v6  ;;  %6079 = vmatpush1.msra.mxu1 %v5971_v16 }
 0x61a   :  { %6080 = vmatprep.subr.mxu1 %v5964_v37  ;;  %6010 = vmatpush1.msra.mxu0 %v5961_v58 }
 0x61b   :  { %6081 = vmatpush1.msra.mxu1 %v5963_v61  ;;  %6011 = vmatprep.subr.mxu0 %v5954_v41 }
 0x61c   :  { %6082 = vmatprep.subr.mxu1 %v5956_v51  ;;  %6012 = vmatpush1.msra.mxu0 %v5953_v43 }
 0x61d   :  { %6083 = vmatpush1.msra.mxu1 %v5955_v63  ;;  %6013 = vmatprep.subr.mxu0 %v5946_v5 }
 0x61e   :  { %6084 = vmatprep.subr.mxu1 %v5948_v3  ;;  %6014 = vmatpush1.msra.mxu0 %v5945_v60 }
 0x61f   :  { %6085 = vmatpush1.msra.mxu1 %v5947_v20  ;;  %6015 = vmatprep.subr.mxu0 %v5938_v33 }
 0x620   :  { %6086 = vmatprep.subr.mxu1 %v5940_v30  ;;  %6016 = vmatpush1.msra.mxu0 %v5937_v50 }
 0x621   :  { %6087 = vmatpush1.msra.mxu1 %v5939_v28  ;;  %6017 = vmatprep.subr.mxu0 %v5930_v24 }
 0x622   :  { %6088 = vmatprep.subr.mxu1 %v5932_v48  ;;  %6018 = vmatpush1.msra.mxu0 %v5929_v57 }
 0x623   :  { %6089 = vmatpush1.msra.mxu1 %v5931_v40  ;;  %6019 = vmatprep.subr.mxu0 %v5922_v4 }
 0x624   :  { %6090 = vmatprep.subr.mxu1 %v5924_v21  ;;  %6020 = vmatpush1.msra.mxu0 %v5921_v53 }
 0x625   :  { %6091 = vmatpush1.msra.mxu1 %v5923_v39  ;;  %6021 = vmatprep.subr.mxu0 %v5914_v14 }
 0x626   :  { %6092 = vmatprep.subr.mxu1 %v5916_v42  ;;  %6022 = vmatpush1.msra.mxu0 %v5913_v56  ;;  %v8753_v56 = vld [vmem:[#allocation16] ss:$0 sm:$0xff] }
 0x627   :  { %6093 = vmatpush1.msra.mxu1 %v5915_v44  ;;  %6023 = vmatprep.subr.mxu0 %v5906_v10 }
 0x628   :  { %6094 = vmatprep.subr.mxu1 %v5908_v29  ;;  %6024 = vmatpush1.msra.mxu0 %v5905_v1 }
 0x629   :  { %6095 = vmatpush1.msra.mxu1 %v5907_v36  ;;  %6025 = vmatprep.subr.mxu0 %v5898_v11 }
 0x62a   :  { %6096 = vmatprep.subr.mxu1 %v5900_v38  ;;  %6026 = vmatpush1.msra.mxu0 %v5897_v23 }
 0x62b   :  { %6097 = vmatpush1.msra.mxu1 %v5899_v46  ;;  %6027 = vmatprep.subr.mxu0 %v5890_v27 }
 0x62c   :  { %6098 = vmatprep.subr.mxu1 %v5892_v34  ;;  %6028 = vmatpush1.msra.mxu0 %v5889_v19  ;;  %v5997_v34 = vld [vmem:[#allocation18 + $0x7e0] sm:$0xff]  ;;  %v5999_v19 = vld [vmem:[#allocation18 + $0x7f0] sm:$0xff] }
 0x62d   :  { %6099 = vmatpush1.msra.mxu1 %v5891_v52  ;;  %6029 = vmatprep.subr.mxu0 %v5882_v59  ;;  %v5990_v59 = vld [vmem:[#allocation18 + $0x7a8] sm:$0xff] }
 0x62e   :  { %6100 = vmatprep.subr.mxu1 %v5884_v49  ;;  %6030 = vmatpush1.msra.mxu0 %v5881_v13  ;;  %v5992_v49 = vld [vmem:[#allocation18 + $0x7b8] sm:$0xff] }
 0x62f   :  { %6101 = vmatpush1.msra.mxu1 %v5883_v47  ;;  %6031 = vmatprep.subr.mxu0 %v5874_v0  ;;  %v5989_v0 = vld [vmem:[#allocation18 + $0x7a0] sm:$0xff] }
 0x630   :  { %6102 = vmatprep.subr.mxu1 %v5876_v35  ;;  %6032 = vmatpush1.msra.mxu0 %v5873_v9  ;;  %v5991_v35 = vld [vmem:[#allocation18 + $0x7b0] sm:$0xff] }
 0x631   :  { %6103 = vmatpush1.msra.mxu1 %v5875_v45  ;;  %6143 = vmatprep.subr.mxu0 %v5998_v32  ;;  %v5982_v32 = vld [vmem:[#allocation18 + $0x768] sm:$0xff] }
 0x632   :  { %6214 = vmatprep.subr.mxu1 %v6000_v31  ;;  %v5984_v31 = vld [vmem:[#allocation18 + $0x778] sm:$0xff] }
 0x686   :  { %v10935_v15 = vpop.f32.mrf.mxu0 }
 0x688   :  { %v5342_v12 = vpop.f32.mrf.mxu0 }
 0x689   :  { %v10894_v2 = vpop.f32.mrf.mxu1 }
 0x68a   :  { %v5348_v53 = vadd.f32 %v10935_v15, %v10894_v2 }
 0x68b   :  { %v5247_v54 = vpop.f32.mrf.mxu1 }
 0x68c   :  { %v10938_v25 = vpop.f32.mrf.mxu0  ;;  %v5343_v55 = vadd.f32 %v5342_v12, %v5247_v54  ;;  %v5981_v54 = vld [vmem:[#allocation18 + $0x760] sm:$0xff] }
 0x68e   :  { %v5352_v26 = vpop.f32.mrf.mxu0 }
 0x68f   :  { %v10897_v8 = vpop.f32.mrf.mxu1 }
 0x690   :  { %v5358_v22 = vadd.f32 %v10938_v25, %v10897_v8  ;;  %v5983_v25 = vld [vmem:[#allocation18 + $0x770] sm:$0xff]  ;;  %v5974_v8 = vld [vmem:[#allocation18 + $0x728] sm:$0xff] }
 0x691   :  { %v5257_v62 = vpop.f32.mrf.mxu1 }
 0x692   :  { %v5353_v7 = vadd.f32 %v5352_v26, %v5257_v62  ;;  %v10941_v18 = vpop.f32.mrf.mxu0  ;;  %v5976_v26 = vld [vmem:[#allocation18 + $0x738] sm:$0xff] }
 0x694   :  { %v5362_v37 = vpop.f32.mrf.mxu0 }
 0x696   :  { %v10900_v16 = vpop.f32.mrf.mxu1 }
 0x697   :  { %v5368_v17 = vadd.f32 %v10941_v18, %v10900_v16  ;;  %v5975_v18 = vld [vmem:[#allocation18 + $0x730] sm:$0xff]  ;;  %v5966_v16 = vld [vmem:[#allocation18 + $0x6e8] sm:$0xff] }
 0x698   :  { %v5267_v58 = vpop.f32.mrf.mxu1 }
 0x699   :  { %v5363_v61 = vadd.f32 %v5362_v37, %v5267_v58  ;;  %v5965_v58 = vld [vmem:[#allocation18 + $0x6e0] sm:$0xff] }
 0x6ab   :  { %v11017_v41 = vpop.f32.mrf.mxu0 }
 0x6ad   :  { %v5572_v51 = vpop.f32.mrf.mxu0 }
 0x6ae   :  { %v10976_v43 = vpop.f32.mrf.mxu1 }
 0x6af   :  { %v11020_v3 = vpop.f32.mrf.mxu0  ;;  %v5484_v39 = vadd.f32 %v10976_v43, %v5348_v53  ;;  %v5957_v43 = vld [vmem:[#allocation18 + $0x6a0] sm:$0xff] }
 0x6b0   :  { %v5454_v63 = vpop.f32.mrf.mxu1  ;;  %v5925_v53 = vld [vmem:[#allocation18 + $0x5a0] sm:$0xff] }
 0x6b1   :  { %v5483_v5 = vadd.f32 %v5454_v63, %v5343_v55  ;;  %v5582_v30 = vpop.f32.mrf.mxu0  ;;  %v5602_v14 = vadd.f32 %v11017_v41, %v5484_v39  ;;  %v5958_v41 = vld [vmem:[#allocation18 + $0x6a8] sm:$0xff]  ;;  %v5959_v63 = vld [vmem:[#allocation18 + $0x6b0] sm:$0xff] }
 0x6b2   :  { %v5927_v39 = vld [vmem:[#allocation18 + $0x5b0] sm:$0xff] }
 0x6b3   :  { %v10979_v60 = vpop.f32.mrf.mxu1  ;;  %v5601_v10 = vadd.f32 %v5572_v51, %v5483_v5  ;;  %v5960_v51 = vld [vmem:[#allocation18 + $0x6b8] sm:$0xff]  ;;  %v5950_v5 = vld [vmem:[#allocation18 + $0x668] sm:$0xff] }
 0x6b4   :  { %v5486_v20 = vadd.f32 %v10979_v60, %v5358_v22  ;;  %v11023_v57 = vpop.f32.mrf.mxu0  ;;  %v5949_v60 = vld [vmem:[#allocation18 + $0x660] sm:$0xff] }
 0x6b5   :  { %v5464_v33 = vpop.f32.mrf.mxu1 }
 0x6b6   :  { %v5485_v50 = vadd.f32 %v5464_v33, %v5353_v7  ;;  %v5604_v28 = vadd.f32 %v11020_v3, %v5486_v20  ;;  %v5592_v9 = vpop.f32.mrf.mxu0  ;;  %v5973_v7 = vld [vmem:[#allocation18 + $0x720] sm:$0xff]  ;;  %v5952_v3 = vld [vmem:[#allocation18 + $0x678] sm:$0xff]  ;;  %v5951_v20 = vld [vmem:[#allocation18 + $0x670] sm:$0xff] }
 0x6b7   :  { %v5942_v33 = vld [vmem:[#allocation18 + $0x628] sm:$0xff] }
 0x6b8   :  { %v10982_v24 = vpop.f32.mrf.mxu1  ;;  %v5603_v27 = vadd.f32 %v5582_v30, %v5485_v50  ;;  %v5944_v30 = vld [vmem:[#allocation18 + $0x638] sm:$0xff]  ;;  %v5941_v50 = vld [vmem:[#allocation18 + $0x620] sm:$0xff] }
 0x6b9   :  { %v5488_v48 = vadd.f32 %v10982_v24, %v5368_v17  ;;  %v5968_v17 = vld [vmem:[#allocation18 + $0x6f8] sm:$0xff]  ;;  %v5934_v24 = vld [vmem:[#allocation18 + $0x5e8] sm:$0xff] }
 0x6ba   :  { %v5474_v40 = vpop.f32.mrf.mxu1 }
 0x6bb   :  { %v5487_v4 = vadd.f32 %v5474_v40, %v5363_v61  ;;  %v5606_v21 = vadd.f32 %v11023_v57, %v5488_v48  ;;  %v5967_v61 = vld [vmem:[#allocation18 + $0x6f0] sm:$0xff]  ;;  %v5936_v48 = vld [vmem:[#allocation18 + $0x5f8] sm:$0xff]  ;;  %v5933_v57 = vld [vmem:[#allocation18 + $0x5e0] sm:$0xff] }
 0x6bc   :  { %v5935_v40 = vld [vmem:[#allocation18 + $0x5f0] sm:$0xff] }
 0x6bd   :  { %v5605_v2 = vadd.f32 %v5592_v9, %v5487_v4  ;;  %v5926_v4 = vld [vmem:[#allocation18 + $0x5a8] sm:$0xff]  ;;  %v5887_v9 = vld [vmem:[#allocation18 + $0x470] sm:$0xff] }
 0x6d0   :  { %v11058_v42 = vpop.f32.mrf.mxu1 }
 0x6d1   :  { %v5720_v44 = vadd.f32 %v11058_v42, %v5602_v14  ;;  %v5918_v14 = vld [vmem:[#allocation18 + $0x568] sm:$0xff]  ;;  %v5920_v42 = vld [vmem:[#allocation18 + $0x578] sm:$0xff] }
 0x6d2   :  { %v5690_v29 = vpop.f32.mrf.mxu1 }
 0x6d3   :  { %v5733_v1 = vadd.f32 %v8753_v56, %v5720_v44  ;;  %v5719_v36 = vadd.f32 %v5690_v29, %v5601_v10  ;;  %v5919_v44 = vld [vmem:[#allocation18 + $0x570] sm:$0xff]  ;;  %v5910_v10 = vld [vmem:[#allocation18 + $0x528] sm:$0xff]  ;;  %v5912_v29 = vld [vmem:[#allocation18 + $0x538] sm:$0xff] }
 0x6d4   :  { %v11061_v11 = vpop.f32.mrf.mxu1 }
 0x6d5   :  { %v14435_v38 = vmax.f32 %v5733_v1, 0.0  ;;  %v14437_v23 = vadd.f32 %v8753_v56, %v5719_v36  ;;  %v5722_v46 = vadd.f32 %v11061_v11, %v5604_v28  ;;  %v5943_v28 = vld [vmem:[#allocation18 + $0x630] sm:$0xff]  ;;  %v5909_v1 = vld [vmem:[#allocation18 + $0x520] sm:$0xff]  ;;  %v5902_v11 = vld [vmem:[#allocation18 + $0x4e8] sm:$0xff] }
 0x6d6   :  { %v5700_v52 = vpop.f32.mrf.mxu1  ;;  %v5911_v36 = vld [vmem:[#allocation18 + $0x530] sm:$0xff] }
 0x6d7   :  { %v14439_v13 = vadd.f32 %v8753_v56, %v5722_v46  ;;  %v5721_v47 = vadd.f32 %v5700_v52, %v5603_v27  ;;  %6066 = vmatmul.mubr.f32.vlgmr.msra.gmra.mxu0 %v14435_v38  ;;  %6137 = vmatmul.mubr.f32.vlgmr.msra.gmra.mxu1 %v14435_v38  ;;  %v5904_v46 = vld [vmem:[#allocation18 + $0x4f8] sm:$0xff]  ;;  %v5901_v27 = vld [vmem:[#allocation18 + $0x4e0] sm:$0xff] }
 0x6d8   :  { %6144 = vmatpush1.msra.mxu0 %v5997_v34  ;;  %6215 = vmatpush1.msra.mxu1 %v5999_v19  ;;  %v11064_v45 = vpop.f32.mrf.mxu1  ;;  %v5903_v34 = vld [vmem:[#allocation18 + $0x4f0] sm:$0xff]  ;;  %v5894_v19 = vld [vmem:[#allocation18 + $0x4a8] sm:$0xff]  ;;  %v5896_v52 = vld [vmem:[#allocation18 + $0x4b8] sm:$0xff] }
 0x6d9   :  { %v14443_v15 = vadd.f32 %v8753_v56, %v5721_v47  ;;  %v5724_v12 = vadd.f32 %v11064_v45, %v5606_v21  ;;  %6145 = vmatprep.subr.mxu0 %v5990_v59  ;;  %6216 = vmatprep.subr.mxu1 %v5992_v49  ;;  %v5928_v21 = vld [vmem:[#allocation18 + $0x5b8] sm:$0xff]  ;;  %v5893_v59 = vld [vmem:[#allocation18 + $0x4a0] sm:$0xff]  ;;  %v5895_v49 = vld [vmem:[#allocation18 + $0x4b0] sm:$0xff] }
 0x6da   :  { %6146 = vmatpush1.msra.mxu0 %v5989_v0  ;;  %6217 = vmatpush1.msra.mxu1 %v5991_v35  ;;  %v5710_v55 = vpop.f32.mrf.mxu1  ;;  %v5886_v47 = vld [vmem:[#allocation18 + $0x468] sm:$0xff]  ;;  %v5888_v0 = vld [vmem:[#allocation18 + $0x478] sm:$0xff]  ;;  %v5885_v35 = vld [vmem:[#allocation18 + $0x460] sm:$0xff] }
 0x6db   :  { %v14445_v22 = vadd.f32 %v8753_v56, %v5724_v12  ;;  %v5723_v62 = vadd.f32 %v5710_v55, %v5605_v2  ;;  %6147 = vmatprep.subr.mxu0 %v5982_v32  ;;  %6218 = vmatprep.subr.mxu1 %v5984_v31  ;;  %v5878_v45 = vld [vmem:[#allocation18 + $0x428] sm:$0xff]  ;;  %v5880_v32 = vld [vmem:[#allocation18 + $0x438] sm:$0xff]  ;;  %v5877_v31 = vld [vmem:[#allocation18 + $0x420] sm:$0xff] }
 0x6dc   :  { %6148 = vmatpush1.msra.mxu0 %v5981_v54  ;;  %6219 = vmatpush1.msra.mxu1 %v5983_v25  ;;  %v5879_v12 = vld [vmem:[#allocation18 + $0x430] sm:$0xff]  ;;  %v5865_v2 = vld [vmem:[#allocation18 + $0x3c8] sm:$0xff]  ;;  %v5867_v54 = vld [vmem:[#allocation18 + $0x3d8] sm:$0xff] }
 0x6dd   :  { %v14447_v37 = vadd.f32 %v8753_v56, %v5723_v62  ;;  %6149 = vmatprep.subr.mxu0 %v5974_v8  ;;  %6220 = vmatprep.subr.mxu1 %v5976_v26  ;;  %v5917_v56 = vld [vmem:[#allocation18 + $0x560] sm:$0xff]  ;;  %v5866_v55 = vld [vmem:[#allocation18 + $0x3d0] sm:$0xff]  ;;  %v5857_v8 = vld [vmem:[#allocation18 + $0x388] sm:$0xff] }
 0x6de   :  { %6150 = vmatpush1.msra.mxu0 %v5973_v7  ;;  %6221 = vmatpush1.msra.mxu1 %v5975_v18  ;;  %v5864_v25 = vld [vmem:[#allocation18 + $0x3c0] sm:$0xff]  ;;  %v5859_v26 = vld [vmem:[#allocation18 + $0x398] sm:$0xff]  ;;  %v5858_v7 = vld [vmem:[#allocation18 + $0x390] sm:$0xff] }
 0x6df   :  { %6151 = vmatprep.subr.mxu0 %v5966_v16  ;;  %6222 = vmatprep.subr.mxu1 %v5968_v17  ;;  %v5856_v62 = vld [vmem:[#allocation18 + $0x380] sm:$0xff]  ;;  %v5849_v18 = vld [vmem:[#allocation18 + $0x348] sm:$0xff]  ;;  %v5851_v16 = vld [vmem:[#allocation18 + $0x358] sm:$0xff] }
 0x6e0   :  { %6152 = vmatpush1.msra.mxu0 %v5965_v58  ;;  %6223 = vmatpush1.msra.mxu1 %v5967_v61  ;;  %v5848_v17 = vld [vmem:[#allocation18 + $0x340] sm:$0xff]  ;;  %v5850_v58 = vld [vmem:[#allocation18 + $0x350] sm:$0xff]  ;;  %v5841_v61 = vld [vmem:[#allocation18 + $0x308] sm:$0xff] }
 0x6e1   :  { %6153 = vmatprep.subr.mxu0 %v5958_v41  ;;  %6224 = vmatprep.subr.mxu1 %v5960_v51  ;;  %v5843_v41 = vld [vmem:[#allocation18 + $0x318] sm:$0xff]  ;;  %v5842_v51 = vld [vmem:[#allocation18 + $0x310] sm:$0xff] }
 0x6e2   :  { %6154 = vmatpush1.msra.mxu0 %v5957_v43  ;;  %6225 = vmatpush1.msra.mxu1 %v5959_v63  ;;  %v5833_v43 = vld [vmem:[#allocation18 + $0x2c8] sm:$0xff]  ;;  %v5835_v63 = vld [vmem:[#allocation18 + $0x2d8] sm:$0xff] }
 0x6e3   :  { %6155 = vmatprep.subr.mxu0 %v5950_v5  ;;  %6226 = vmatprep.subr.mxu1 %v5952_v3  ;;  %v5832_v5 = vld [vmem:[#allocation18 + $0x2c0] sm:$0xff]  ;;  %v5834_v3 = vld [vmem:[#allocation18 + $0x2d0] sm:$0xff] }
 0x6e4   :  { %6156 = vmatpush1.msra.mxu0 %v5949_v60  ;;  %6227 = vmatpush1.msra.mxu1 %v5951_v20  ;;  %v5825_v60 = vld [vmem:[#allocation18 + $0x288] sm:$0xff]  ;;  %v5827_v20 = vld [vmem:[#allocation18 + $0x298] sm:$0xff] }
 0x6e5   :  { %6157 = vmatprep.subr.mxu0 %v5942_v33  ;;  %6228 = vmatprep.subr.mxu1 %v5944_v30  ;;  %v5824_v33 = vld [vmem:[#allocation18 + $0x280] sm:$0xff]  ;;  %v5826_v30 = vld [vmem:[#allocation18 + $0x290] sm:$0xff] }
 0x6e6   :  { %6158 = vmatpush1.msra.mxu0 %v5941_v50  ;;  %6229 = vmatpush1.msra.mxu1 %v5943_v28  ;;  %v5817_v50 = vld [vmem:[#allocation18 + $0x248] sm:$0xff]  ;;  %v5819_v28 = vld [vmem:[#allocation18 + $0x258] sm:$0xff] }
 0x6e7   :  { %6159 = vmatprep.subr.mxu0 %v5934_v24  ;;  %6230 = vmatprep.subr.mxu1 %v5936_v48  ;;  %v5816_v24 = vld [vmem:[#allocation18 + $0x240] sm:$0xff]  ;;  %v5818_v48 = vld [vmem:[#allocation18 + $0x250] sm:$0xff] }
 0x6e8   :  { %6160 = vmatpush1.msra.mxu0 %v5933_v57  ;;  %6231 = vmatpush1.msra.mxu1 %v5935_v40  ;;  %v5809_v57 = vld [vmem:[#allocation18 + $0x208] sm:$0xff]  ;;  %v5811_v40 = vld [vmem:[#allocation18 + $0x218] sm:$0xff] }
 0x6e9   :  { %6161 = vmatprep.subr.mxu0 %v5926_v4  ;;  %6232 = vmatprep.subr.mxu1 %v5928_v21  ;;  %v5808_v4 = vld [vmem:[#allocation18 + $0x200] sm:$0xff]  ;;  %v5810_v21 = vld [vmem:[#allocation18 + $0x210] sm:$0xff] }
 0x6ea   :  { %6162 = vmatpush1.msra.mxu0 %v5925_v53  ;;  %6233 = vmatpush1.msra.mxu1 %v5927_v39  ;;  %v5801_v53 = vld [vmem:[#allocation18 + $0x1c8] sm:$0xff]  ;;  %v5803_v39 = vld [vmem:[#allocation18 + $0x1d8] sm:$0xff] }
 0x6eb   :  { %6163 = vmatprep.subr.mxu0 %v5918_v14  ;;  %6234 = vmatprep.subr.mxu1 %v5920_v42  ;;  %v5800_v14 = vld [vmem:[#allocation18 + $0x1c0] sm:$0xff]  ;;  %v5802_v42 = vld [vmem:[#allocation18 + $0x1d0] sm:$0xff] }
 0x6ec   :  { %6164 = vmatpush1.msra.mxu0 %v5917_v56  ;;  %6235 = vmatpush1.msra.mxu1 %v5919_v44  ;;  %v5793_v56 = vld [vmem:[#allocation18 + $0x188] sm:$0xff]  ;;  %v5795_v44 = vld [vmem:[#allocation18 + $0x198] sm:$0xff] }
 0x6ed   :  { %6165 = vmatprep.subr.mxu0 %v5910_v10  ;;  %6236 = vmatprep.subr.mxu1 %v5912_v29  ;;  %v5792_v10 = vld [vmem:[#allocation18 + $0x180] sm:$0xff]  ;;  %v5794_v29 = vld [vmem:[#allocation18 + $0x190] sm:$0xff] }
 0x6ee   :  { %6166 = vmatpush1.msra.mxu0 %v5909_v1  ;;  %6237 = vmatpush1.msra.mxu1 %v5911_v36  ;;  %v5785_v1 = vld [vmem:[#allocation18 + $0x148] sm:$0xff]  ;;  %v5787_v36 = vld [vmem:[#allocation18 + $0x158] sm:$0xff] }
 0x6ef   :  { %6167 = vmatprep.subr.mxu0 %v5902_v11  ;;  %6238 = vmatprep.subr.mxu1 %v5904_v46  ;;  %v5784_v11 = vld [vmem:[#allocation18 + $0x140] sm:$0xff]  ;;  %v5786_v46 = vld [vmem:[#allocation18 + $0x150] sm:$0xff] }
 0x6f0   :  { %6168 = vmatpush1.msra.mxu0 %v5901_v27  ;;  %6239 = vmatpush1.msra.mxu1 %v5903_v34  ;;  %v5777_v27 = vld [vmem:[#allocation18 + $0x108] sm:$0xff]  ;;  %v5779_v34 = vld [vmem:[#allocation18 + $0x118] sm:$0xff] }
 0x6f1   :  { %6169 = vmatprep.subr.mxu0 %v5894_v19  ;;  %6240 = vmatprep.subr.mxu1 %v5896_v52  ;;  %v5776_v19 = vld [vmem:[#allocation18 + $0x100] sm:$0xff]  ;;  %v5778_v52 = vld [vmem:[#allocation18 + $0x110] sm:$0xff] }
 0x6f2   :  { %6170 = vmatpush1.msra.mxu0 %v5893_v59  ;;  %6241 = vmatpush1.msra.mxu1 %v5895_v49  ;;  %v5769_v59 = vld [vmem:[#allocation18 + $0xc8] sm:$0xff]  ;;  %v5771_v49 = vld [vmem:[#allocation18 + $0xd8] sm:$0xff] }
 0x6f3   :  { %6171 = vmatprep.subr.mxu0 %v5886_v47  ;;  %6242 = vmatprep.subr.mxu1 %v5888_v0  ;;  %v5768_v47 = vld [vmem:[#allocation18 + $0xc0] sm:$0xff]  ;;  %v5770_v0 = vld [vmem:[#allocation18 + $0xd0] sm:$0xff] }
 0x6f4   :  { %6172 = vmatpush1.msra.mxu0 %v5885_v35  ;;  %6243 = vmatpush1.msra.mxu1 %v5887_v9  ;;  %v5761_v35 = vld [vmem:[#allocation18 + $0x88] sm:$0xff]  ;;  %v5763_v9 = vld [vmem:[#allocation18 + $0x98] sm:$0xff] }
 0x6f5   :  { %6173 = vmatprep.subr.mxu0 %v5878_v45  ;;  %6244 = vmatprep.subr.mxu1 %v5880_v32  ;;  %v5760_v45 = vld [vmem:[#allocation18 + $0x80] sm:$0xff]  ;;  %v5762_v32 = vld [vmem:[#allocation18 + $0x90] sm:$0xff] }
 0x6f6   :  { %6174 = vmatpush1.msra.mxu0 %v5877_v31  ;;  %6207 = vmatprep.mubr.f32.mxu0 %v14681_v6  ;;  %v5753_v31 = vld [vmem:[#allocation18 + $0x48] sm:$0xff] }
 0x6f7   :  { %6245 = vmatpush1.msra.mxu1 %v5879_v12  ;;  %6278 = vmatprep.mubr.f32.mxu1 %v14681_v6  ;;  %v5755_v12 = vld [vmem:[#allocation18 + $0x58] sm:$0xff] }
 0x6f8   :  { %6208 = vmatmul.mubr.f32.vlgmr.msra.gmra.mxu0 %v14435_v38  ;;  %6279 = vmatmul.mubr.f32.vlgmr.msra.gmra.mxu1 %v14435_v38  ;;  %v5840_v38 = vld [vmem:[#allocation18 + $0x300] sm:$0xff] }
 0x6f9   :  { %6285 = vmatprep.subr.mxu0 %v5865_v2  ;;  %6356 = vmatprep.subr.mxu1 %v5867_v54  ;;  %v5752_v2 = vld [vmem:[#allocation18 + $0x40] sm:$0xff]  ;;  %v5754_v54 = vld [vmem:[#allocation18 + $0x50] sm:$0xff] }
 0x6fa   :  { %6286 = vmatpush1.msra.mxu0 %v5864_v25  ;;  %6357 = vmatpush1.msra.mxu1 %v5866_v55  ;;  %v5745_v25 = vld [vmem:[#allocation18 + $0x8] sm:$0xff]  ;;  %v5747_v55 = vld [vmem:[#allocation18 + $0x18] sm:$0xff] }
 0x6fb   :  { %6287 = vmatprep.subr.mxu0 %v5857_v8  ;;  %6358 = vmatprep.subr.mxu1 %v5859_v26  ;;  %v5744_v8 = vld [vmem:[#allocation18] sm:$0xff]  ;;  %v5746_v26 = vld [vmem:[#allocation18 + $0x10] sm:$0xff] }
 0x6fc   :  { %6288 = vmatpush1.msra.mxu0 %v5856_v62  ;;  %6359 = vmatpush1.msra.mxu1 %v5858_v7  ;;  %v14454_v62 = vmax.f32 %v14437_v23, 0.0  ;;  %v5869_v7 = vld [vmem:[#allocation18 + $0x3e8] sm:$0xff]  ;;  %v5860_v23 = vld [vmem:[#allocation18 + $0x3a0] sm:$0xff] }
 0x6fd   :  { %6289 = vmatprep.subr.mxu0 %v5849_v18  ;;  %6360 = vmatprep.subr.mxu1 %v5851_v16  ;;  %v5871_v18 = vld [vmem:[#allocation18 + $0x3f8] sm:$0xff]  ;;  %v5868_v16 = vld [vmem:[#allocation18 + $0x3e0] sm:$0xff] }
 0x6fe   :  { %6290 = vmatpush1.msra.mxu0 %v5848_v17  ;;  %6361 = vmatpush1.msra.mxu1 %v5850_v58  ;;  %v5870_v17 = vld [vmem:[#allocation18 + $0x3f0] sm:$0xff]  ;;  %v5861_v58 = vld [vmem:[#allocation18 + $0x3a8] sm:$0xff] }
 0x6ff   :  { %6291 = vmatprep.subr.mxu0 %v5841_v61  ;;  %6362 = vmatprep.subr.mxu1 %v5843_v41  ;;  %v5863_v61 = vld [vmem:[#allocation18 + $0x3b8] sm:$0xff]  ;;  %v5862_v41 = vld [vmem:[#allocation18 + $0x3b0] sm:$0xff] }
 0x700   :  { %6292 = vmatpush1.msra.mxu0 %v5840_v38  ;;  %6363 = vmatpush1.msra.mxu1 %v5842_v51  ;;  %v5853_v38 = vld [vmem:[#allocation18 + $0x368] sm:$0xff]  ;;  %v5855_v51 = vld [vmem:[#allocation18 + $0x378] sm:$0xff] }
 0x701   :  { %6293 = vmatprep.subr.mxu0 %v5833_v43  ;;  %6364 = vmatprep.subr.mxu1 %v5835_v63  ;;  %v5852_v43 = vld [vmem:[#allocation18 + $0x360] sm:$0xff]  ;;  %v5854_v63 = vld [vmem:[#allocation18 + $0x370] sm:$0xff] }
 0x702   :  { %6294 = vmatpush1.msra.mxu0 %v5832_v5  ;;  %6365 = vmatpush1.msra.mxu1 %v5834_v3  ;;  %v5845_v5 = vld [vmem:[#allocation18 + $0x328] sm:$0xff]  ;;  %v5847_v3 = vld [vmem:[#allocation18 + $0x338] sm:$0xff] }
 0x703   :  { %6295 = vmatprep.subr.mxu0 %v5825_v60  ;;  %6366 = vmatprep.subr.mxu1 %v5827_v20  ;;  %v5844_v60 = vld [vmem:[#allocation18 + $0x320] sm:$0xff]  ;;  %v5846_v20 = vld [vmem:[#allocation18 + $0x330] sm:$0xff] }
 0x704   :  { %6296 = vmatpush1.msra.mxu0 %v5824_v33  ;;  %6367 = vmatpush1.msra.mxu1 %v5826_v30  ;;  %v5837_v33 = vld [vmem:[#allocation18 + $0x2e8] sm:$0xff]  ;;  %v5839_v30 = vld [vmem:[#allocation18 + $0x2f8] sm:$0xff] }
 0x705   :  { %6297 = vmatprep.subr.mxu0 %v5817_v50  ;;  %6368 = vmatprep.subr.mxu1 %v5819_v28  ;;  %v5836_v50 = vld [vmem:[#allocation18 + $0x2e0] sm:$0xff]  ;;  %v5838_v28 = vld [vmem:[#allocation18 + $0x2f0] sm:$0xff] }
 0x706   :  { %6298 = vmatpush1.msra.mxu0 %v5816_v24  ;;  %6369 = vmatpush1.msra.mxu1 %v5818_v48  ;;  %v5829_v24 = vld [vmem:[#allocation18 + $0x2a8] sm:$0xff]  ;;  %v5831_v48 = vld [vmem:[#allocation18 + $0x2b8] sm:$0xff] }
 0x707   :  { %6299 = vmatprep.subr.mxu0 %v5809_v57  ;;  %6370 = vmatprep.subr.mxu1 %v5811_v40  ;;  %v5828_v57 = vld [vmem:[#allocation18 + $0x2a0] sm:$0xff]  ;;  %v5830_v40 = vld [vmem:[#allocation18 + $0x2b0] sm:$0xff] }
 0x708   :  { %6300 = vmatpush1.msra.mxu0 %v5808_v4  ;;  %6371 = vmatpush1.msra.mxu1 %v5810_v21  ;;  %v5821_v4 = vld [vmem:[#allocation18 + $0x268] sm:$0xff]  ;;  %v5823_v21 = vld [vmem:[#allocation18 + $0x278] sm:$0xff] }
 0x709   :  { %6301 = vmatprep.subr.mxu0 %v5801_v53  ;;  %6372 = vmatprep.subr.mxu1 %v5803_v39  ;;  %v5820_v53 = vld [vmem:[#allocation18 + $0x260] sm:$0xff]  ;;  %v5822_v39 = vld [vmem:[#allocation18 + $0x270] sm:$0xff] }
 0x70a   :  { %6302 = vmatpush1.msra.mxu0 %v5800_v14  ;;  %6373 = vmatpush1.msra.mxu1 %v5802_v42  ;;  %v5813_v14 = vld [vmem:[#allocation18 + $0x228] sm:$0xff]  ;;  %v5815_v42 = vld [vmem:[#allocation18 + $0x238] sm:$0xff] }
 0x70b   :  { %6303 = vmatprep.subr.mxu0 %v5793_v56  ;;  %6374 = vmatprep.subr.mxu1 %v5795_v44  ;;  %v5812_v56 = vld [vmem:[#allocation18 + $0x220] sm:$0xff]  ;;  %v5814_v44 = vld [vmem:[#allocation18 + $0x230] sm:$0xff] }
 0x70c   :  { %6304 = vmatpush1.msra.mxu0 %v5792_v10  ;;  %6375 = vmatpush1.msra.mxu1 %v5794_v29  ;;  %v5805_v10 = vld [vmem:[#allocation18 + $0x1e8] sm:$0xff]  ;;  %v5807_v29 = vld [vmem:[#allocation18 + $0x1f8] sm:$0xff] }
 0x70d   :  { %6305 = vmatprep.subr.mxu0 %v5785_v1  ;;  %6376 = vmatprep.subr.mxu1 %v5787_v36  ;;  %v5804_v1 = vld [vmem:[#allocation18 + $0x1e0] sm:$0xff]  ;;  %v5806_v36 = vld [vmem:[#allocation18 + $0x1f0] sm:$0xff] }
 0x70e   :  { %6306 = vmatpush1.msra.mxu0 %v5784_v11  ;;  %6377 = vmatpush1.msra.mxu1 %v5786_v46  ;;  %v5797_v11 = vld [vmem:[#allocation18 + $0x1a8] sm:$0xff]  ;;  %v5799_v46 = vld [vmem:[#allocation18 + $0x1b8] sm:$0xff] }
 0x70f   :  { %6307 = vmatprep.subr.mxu0 %v5777_v27  ;;  %6378 = vmatprep.subr.mxu1 %v5779_v34  ;;  %v5796_v27 = vld [vmem:[#allocation18 + $0x1a0] sm:$0xff]  ;;  %v5798_v34 = vld [vmem:[#allocation18 + $0x1b0] sm:$0xff] }
 0x710   :  { %6308 = vmatpush1.msra.mxu0 %v5776_v19  ;;  %6379 = vmatpush1.msra.mxu1 %v5778_v52  ;;  %v5789_v19 = vld [vmem:[#allocation18 + $0x168] sm:$0xff]  ;;  %v5791_v52 = vld [vmem:[#allocation18 + $0x178] sm:$0xff] }
 0x711   :  { %6309 = vmatprep.subr.mxu0 %v5769_v59  ;;  %6380 = vmatprep.subr.mxu1 %v5771_v49  ;;  %v5788_v59 = vld [vmem:[#allocation18 + $0x160] sm:$0xff]  ;;  %v5790_v49 = vld [vmem:[#allocation18 + $0x170] sm:$0xff] }
 0x712   :  { %6310 = vmatpush1.msra.mxu0 %v5768_v47  ;;  %6381 = vmatpush1.msra.mxu1 %v5770_v0  ;;  %v5781_v47 = vld [vmem:[#allocation18 + $0x128] sm:$0xff]  ;;  %v5783_v0 = vld [vmem:[#allocation18 + $0x138] sm:$0xff] }
 0x713   :  { %6311 = vmatprep.subr.mxu0 %v5761_v35  ;;  %6382 = vmatprep.subr.mxu1 %v5763_v9  ;;  %v5780_v35 = vld [vmem:[#allocation18 + $0x120] sm:$0xff]  ;;  %v5782_v9 = vld [vmem:[#allocation18 + $0x130] sm:$0xff] }
 0x714   :  { %6312 = vmatpush1.msra.mxu0 %v5760_v45  ;;  %6383 = vmatpush1.msra.mxu1 %v5762_v32  ;;  %v5773_v45 = vld [vmem:[#allocation18 + $0xe8] sm:$0xff]  ;;  %v5775_v32 = vld [vmem:[#allocation18 + $0xf8] sm:$0xff] }
 0x715   :  { %6313 = vmatprep.subr.mxu0 %v5753_v31  ;;  %6384 = vmatprep.subr.mxu1 %v5755_v12  ;;  %v5772_v31 = vld [vmem:[#allocation18 + $0xe0] sm:$0xff]  ;;  %v5774_v12 = vld [vmem:[#allocation18 + $0xf0] sm:$0xff] }
 0x716   :  { %6314 = vmatpush1.msra.mxu0 %v5752_v2  ;;  %6385 = vmatpush1.msra.mxu1 %v5754_v54  ;;  %v5765_v2 = vld [vmem:[#allocation18 + $0xa8] sm:$0xff]  ;;  %v5767_v54 = vld [vmem:[#allocation18 + $0xb8] sm:$0xff] }
 0x717   :  { %6315 = vmatprep.subr.mxu0 %v5745_v25  ;;  %6386 = vmatprep.subr.mxu1 %v5747_v55  ;;  %v5764_v25 = vld [vmem:[#allocation18 + $0xa0] sm:$0xff]  ;;  %v5766_v55 = vld [vmem:[#allocation18 + $0xb0] sm:$0xff] }
 0x718   :  { %6316 = vmatpush1.msra.mxu0 %v5744_v8  ;;  %6349 = vmatprep.mubr.f32.mxu0 %v14681_v6  ;;  %v5757_v8 = vld [vmem:[#allocation18 + $0x68] sm:$0xff] }
 0x719   :  { %6387 = vmatpush1.msra.mxu1 %v5746_v26  ;;  %6420 = vmatprep.mubr.f32.mxu1 %v14681_v6  ;;  %v5759_v26 = vld [vmem:[#allocation18 + $0x78] sm:$0xff] }
 0x71a   :  { %6350 = vmatmul.mubr.f32.vlgmr.msra.gmra.mxu0 %v14454_v62  ;;  %6421 = vmatmul.mubr.f32.vlgmr.msra.gmra.mxu1 %v14454_v62 }
 0x71b   :  { %6427 = vmatprep.subr.mxu0 %v5869_v7  ;;  %6498 = vmatprep.subr.mxu1 %v5871_v18  ;;  %v5756_v7 = vld [vmem:[#allocation18 + $0x60] sm:$0xff]  ;;  %v5758_v18 = vld [vmem:[#allocation18 + $0x70] sm:$0xff] }
 0x71c   :  { %6428 = vmatpush1.msra.mxu0 %v5868_v16  ;;  %6499 = vmatpush1.msra.mxu1 %v5870_v17  ;;  %v5749_v16 = vld [vmem:[#allocation18 + $0x28] sm:$0xff]  ;;  %v5751_v17 = vld [vmem:[#allocation18 + $0x38] sm:$0xff] }
 0x71d   :  { %6429 = vmatprep.subr.mxu0 %v5861_v58  ;;  %6500 = vmatprep.subr.mxu1 %v5863_v61  ;;  %v5748_v58 = vld [vmem:[#allocation18 + $0x20] sm:$0xff]  ;;  %v5750_v61 = vld [vmem:[#allocation18 + $0x30] sm:$0xff] }
 0x71e   :  { %6430 = vmatpush1.msra.mxu0 %v5860_v23  ;;  %6501 = vmatpush1.msra.mxu1 %v5862_v41  ;;  %v6691_v23 = vld [vmem:[#allocation18 + $0xbc8] sm:$0xff]  ;;  %v6693_v41 = vld [vmem:[#allocation18 + $0xbd8] sm:$0xff] }
 0x71f   :  { %6431 = vmatprep.subr.mxu0 %v5853_v38  ;;  %6502 = vmatprep.subr.mxu1 %v5855_v51  ;;  %v6690_v38 = vld [vmem:[#allocation18 + $0xbc0] sm:$0xff]  ;;  %v6692_v51 = vld [vmem:[#allocation18 + $0xbd0] sm:$0xff] }
 0x720   :  { %6432 = vmatpush1.msra.mxu0 %v5852_v43  ;;  %6503 = vmatpush1.msra.mxu1 %v5854_v63  ;;  %v6683_v43 = vld [vmem:[#allocation18 + $0xb88] sm:$0xff]  ;;  %v6685_v63 = vld [vmem:[#allocation18 + $0xb98] sm:$0xff] }
 0x721   :  { %6433 = vmatprep.subr.mxu0 %v5845_v5  ;;  %6504 = vmatprep.subr.mxu1 %v5847_v3  ;;  %v6682_v5 = vld [vmem:[#allocation18 + $0xb80] sm:$0xff]  ;;  %v6684_v3 = vld [vmem:[#allocation18 + $0xb90] sm:$0xff] }
 0x722   :  { %6434 = vmatpush1.msra.mxu0 %v5844_v60  ;;  %6505 = vmatpush1.msra.mxu1 %v5846_v20  ;;  %v6675_v60 = vld [vmem:[#allocation18 + $0xb48] sm:$0xff]  ;;  %v6677_v20 = vld [vmem:[#allocation18 + $0xb58] sm:$0xff] }
 0x723   :  { %6435 = vmatprep.subr.mxu0 %v5837_v33  ;;  %6506 = vmatprep.subr.mxu1 %v5839_v30  ;;  %v6674_v33 = vld [vmem:[#allocation18 + $0xb40] sm:$0xff]  ;;  %v6676_v30 = vld [vmem:[#allocation18 + $0xb50] sm:$0xff] }
 0x724   :  { %6436 = vmatpush1.msra.mxu0 %v5836_v50  ;;  %6507 = vmatpush1.msra.mxu1 %v5838_v28  ;;  %v6667_v50 = vld [vmem:[#allocation18 + $0xb08] sm:$0xff]  ;;  %v6669_v28 = vld [vmem:[#allocation18 + $0xb18] sm:$0xff] }
 0x725   :  { %6437 = vmatprep.subr.mxu0 %v5829_v24  ;;  %6508 = vmatprep.subr.mxu1 %v5831_v48  ;;  %v6668_v24 = vld [vmem:[#allocation18 + $0xb10] sm:$0xff]  ;;  %v6659_v48 = vld [vmem:[#allocation18 + $0xac8] sm:$0xff] }
 0x726   :  { %6438 = vmatpush1.msra.mxu0 %v5828_v57  ;;  %6509 = vmatpush1.msra.mxu1 %v5830_v40  ;;  %v6661_v57 = vld [vmem:[#allocation18 + $0xad8] sm:$0xff]  ;;  %v6658_v40 = vld [vmem:[#allocation18 + $0xac0] sm:$0xff] }
 0x727   :  { %6439 = vmatprep.subr.mxu0 %v5821_v4  ;;  %6510 = vmatprep.subr.mxu1 %v5823_v21  ;;  %v6660_v4 = vld [vmem:[#allocation18 + $0xad0] sm:$0xff]  ;;  %v6651_v21 = vld [vmem:[#allocation18 + $0xa88] sm:$0xff] }
 0x728   :  { %6440 = vmatpush1.msra.mxu0 %v5820_v53  ;;  %6511 = vmatpush1.msra.mxu1 %v5822_v39  ;;  %v6653_v53 = vld [vmem:[#allocation18 + $0xa98] sm:$0xff]  ;;  %v6650_v39 = vld [vmem:[#allocation18 + $0xa80] sm:$0xff] }
 0x729   :  { %6441 = vmatprep.subr.mxu0 %v5813_v14  ;;  %6512 = vmatprep.subr.mxu1 %v5815_v42  ;;  %v6652_v14 = vld [vmem:[#allocation18 + $0xa90] sm:$0xff]  ;;  %v6643_v42 = vld [vmem:[#allocation18 + $0xa48] sm:$0xff] }
 0x72a   :  { %6442 = vmatpush1.msra.mxu0 %v5812_v56  ;;  %6513 = vmatpush1.msra.mxu1 %v5814_v44  ;;  %v6645_v56 = vld [vmem:[#allocation18 + $0xa58] sm:$0xff]  ;;  %v6642_v44 = vld [vmem:[#allocation18 + $0xa40] sm:$0xff] }
 0x72b   :  { %6443 = vmatprep.subr.mxu0 %v5805_v10  ;;  %6514 = vmatprep.subr.mxu1 %v5807_v29  ;;  %v6644_v10 = vld [vmem:[#allocation18 + $0xa50] sm:$0xff]  ;;  %v6635_v29 = vld [vmem:[#allocation18 + $0xa08] sm:$0xff] }
 0x72c   :  { %6444 = vmatpush1.msra.mxu0 %v5804_v1  ;;  %6515 = vmatpush1.msra.mxu1 %v5806_v36  ;;  %v6637_v1 = vld [vmem:[#allocation18 + $0xa18] sm:$0xff]  ;;  %v6634_v36 = vld [vmem:[#allocation18 + $0xa00] sm:$0xff] }
 0x72d   :  { %6445 = vmatprep.subr.mxu0 %v5797_v11  ;;  %6516 = vmatprep.subr.mxu1 %v5799_v46  ;;  %v6636_v11 = vld [vmem:[#allocation18 + $0xa10] sm:$0xff]  ;;  %v6627_v46 = vld [vmem:[#allocation18 + $0x9c8] sm:$0xff] }
 0x72e   :  { %6446 = vmatpush1.msra.mxu0 %v5796_v27  ;;  %6517 = vmatpush1.msra.mxu1 %v5798_v34  ;;  %v6629_v27 = vld [vmem:[#allocation18 + $0x9d8] sm:$0xff]  ;;  %v6626_v34 = vld [vmem:[#allocation18 + $0x9c0] sm:$0xff] }
 0x72f   :  { %6447 = vmatprep.subr.mxu0 %v5789_v19  ;;  %6518 = vmatprep.subr.mxu1 %v5791_v52  ;;  %v6628_v19 = vld [vmem:[#allocation18 + $0x9d0] sm:$0xff]  ;;  %v6619_v52 = vld [vmem:[#allocation18 + $0x988] sm:$0xff] }
 0x730   :  { %6448 = vmatpush1.msra.mxu0 %v5788_v59  ;;  %6519 = vmatpush1.msra.mxu1 %v5790_v49  ;;  %v6621_v59 = vld [vmem:[#allocation18 + $0x998] sm:$0xff]  ;;  %v6618_v49 = vld [vmem:[#allocation18 + $0x980] sm:$0xff] }
 0x731   :  { %6449 = vmatprep.subr.mxu0 %v5781_v47  ;;  %6520 = vmatprep.subr.mxu1 %v5783_v0  ;;  %v6620_v47 = vld [vmem:[#allocation18 + $0x990] sm:$0xff]  ;;  %v6611_v0 = vld [vmem:[#allocation18 + $0x948] sm:$0xff] }
 0x732   :  { %6450 = vmatpush1.msra.mxu0 %v5780_v35  ;;  %6521 = vmatpush1.msra.mxu1 %v5782_v9  ;;  %v6613_v35 = vld [vmem:[#allocation18 + $0x958] sm:$0xff]  ;;  %v6610_v9 = vld [vmem:[#allocation18 + $0x940] sm:$0xff] }
 0x733   :  { %6451 = vmatprep.subr.mxu0 %v5773_v45  ;;  %6522 = vmatprep.subr.mxu1 %v5775_v32  ;;  %v6612_v45 = vld [vmem:[#allocation18 + $0x950] sm:$0xff]  ;;  %v6603_v32 = vld [vmem:[#allocation18 + $0x908] sm:$0xff] }
 0x734   :  { %6452 = vmatpush1.msra.mxu0 %v5772_v31  ;;  %6523 = vmatpush1.msra.mxu1 %v5774_v12  ;;  %v6605_v31 = vld [vmem:[#allocation18 + $0x918] sm:$0xff]  ;;  %v6602_v12 = vld [vmem:[#allocation18 + $0x900] sm:$0xff] }
 0x735   :  { %6453 = vmatprep.subr.mxu0 %v5765_v2  ;;  %6524 = vmatprep.subr.mxu1 %v5767_v54  ;;  %v6604_v2 = vld [vmem:[#allocation18 + $0x910] sm:$0xff]  ;;  %v6595_v54 = vld [vmem:[#allocation18 + $0x8c8] sm:$0xff] }
 0x736   :  { %6454 = vmatpush1.msra.mxu0 %v5764_v25  ;;  %6525 = vmatpush1.msra.mxu1 %v5766_v55  ;;  %v6597_v25 = vld [vmem:[#allocation18 + $0x8d8] sm:$0xff]  ;;  %v6594_v55 = vld [vmem:[#allocation18 + $0x8c0] sm:$0xff] }
 0x737   :  { %6455 = vmatprep.subr.mxu0 %v5757_v8  ;;  %6526 = vmatprep.subr.mxu1 %v5759_v26  ;;  %v6596_v8 = vld [vmem:[#allocation18 + $0x8d0] sm:$0xff]  ;;  %v6587_v26 = vld [vmem:[#allocation18 + $0x888] sm:$0xff] }
 0x738   :  { %6456 = vmatpush1.msra.mxu0 %v5756_v7  ;;  %6527 = vmatpush1.msra.mxu1 %v5758_v18  ;;  %v6589_v7 = vld [vmem:[#allocation18 + $0x898] sm:$0xff]  ;;  %v6586_v18 = vld [vmem:[#allocation18 + $0x880] sm:$0xff] }
 0x739   :  { %6457 = vmatprep.subr.mxu0 %v5749_v16  ;;  %6528 = vmatprep.subr.mxu1 %v5751_v17  ;;  %v6588_v16 = vld [vmem:[#allocation18 + $0x890] sm:$0xff]  ;;  %v6579_v17 = vld [vmem:[#allocation18 + $0x848] sm:$0xff] }
 0x73a   :  { %6458 = vmatpush1.msra.mxu0 %v5748_v58  ;;  %6491 = vmatprep.mubr.f32.mxu0 %v14681_v6  ;;  %v6581_v58 = vld [vmem:[#allocation18 + $0x858] sm:$0xff] }
 0x73b   :  { %6529 = vmatpush1.msra.mxu1 %v5750_v61  ;;  %6562 = vmatprep.mubr.f32.mxu1 %v14681_v6  ;;  %v6578_v61 = vld [vmem:[#allocation18 + $0x840] sm:$0xff] }
 0x73c   :  { %6492 = vmatmul.mubr.f32.vlgmr.msra.gmra.mxu0 %v14454_v62  ;;  %6563 = vmatmul.mubr.f32.vlgmr.msra.gmra.mxu1 %v14454_v62  ;;  %v6666_v62 = vld [vmem:[#allocation18 + $0xb00] sm:$0xff] }
 0x73d   :  { %6698 = vmatprep.subr.mxu0 %v6691_v23  ;;  %6769 = vmatprep.subr.mxu1 %v6693_v41  ;;  %v6580_v23 = vld [vmem:[#allocation18 + $0x850] sm:$0xff]  ;;  %v6571_v41 = vld [vmem:[#allocation18 + $0x808] sm:$0xff] }
 0x73e   :  { %6699 = vmatpush1.msra.mxu0 %v6690_v38  ;;  %6770 = vmatpush1.msra.mxu1 %v6692_v51  ;;  %v6573_v38 = vld [vmem:[#allocation18 + $0x818] sm:$0xff]  ;;  %v6570_v51 = vld [vmem:[#allocation18 + $0x800] sm:$0xff] }
 0x73f   :  { %6700 = vmatprep.subr.mxu0 %v6683_v43  ;;  %6771 = vmatprep.subr.mxu1 %v6685_v63  ;;  %v6572_v43 = vld [vmem:[#allocation18 + $0x810] sm:$0xff]  ;;  %v14465_v63 = vmax.f32 %v14443_v15, 0.0  ;;  %v6686_v15 = vld [vmem:[#allocation18 + $0xba0] sm:$0xff] }
 0x740   :  { %6701 = vmatpush1.msra.mxu0 %v6682_v5  ;;  %6772 = vmatpush1.msra.mxu1 %v6684_v3  ;;  %v6695_v5 = vld [vmem:[#allocation18 + $0xbe8] sm:$0xff]  ;;  %v6697_v3 = vld [vmem:[#allocation18 + $0xbf8] sm:$0xff] }
 0x741   :  { %6702 = vmatprep.subr.mxu0 %v6675_v60  ;;  %6773 = vmatprep.subr.mxu1 %v6677_v20  ;;  %v6694_v60 = vld [vmem:[#allocation18 + $0xbe0] sm:$0xff]  ;;  %v6696_v20 = vld [vmem:[#allocation18 + $0xbf0] sm:$0xff] }
 0x742   :  { %6703 = vmatpush1.msra.mxu0 %v6674_v33  ;;  %6774 = vmatpush1.msra.mxu1 %v6676_v30  ;;  %v6687_v33 = vld [vmem:[#allocation18 + $0xba8] sm:$0xff]  ;;  %v6689_v30 = vld [vmem:[#allocation18 + $0xbb8] sm:$0xff] }
 0x743   :  { %6704 = vmatprep.subr.mxu0 %v6667_v50  ;;  %6775 = vmatprep.subr.mxu1 %v6669_v28  ;;  %v6688_v50 = vld [vmem:[#allocation18 + $0xbb0] sm:$0xff]  ;;  %v6679_v28 = vld [vmem:[#allocation18 + $0xb68] sm:$0xff] }
 0x744   :  { %6705 = vmatpush1.msra.mxu0 %v6666_v62  ;;  %6776 = vmatpush1.msra.mxu1 %v6668_v24  ;;  %v6681_v62 = vld [vmem:[#allocation18 + $0xb78] sm:$0xff]  ;;  %v6678_v24 = vld [vmem:[#allocation18 + $0xb60] sm:$0xff] }
 0x745   :  { %6706 = vmatprep.subr.mxu0 %v6659_v48  ;;  %6777 = vmatprep.subr.mxu1 %v6661_v57  ;;  %v6680_v48 = vld [vmem:[#allocation18 + $0xb70] sm:$0xff]  ;;  %v6671_v57 = vld [vmem:[#allocation18 + $0xb28] sm:$0xff] }
 0x746   :  { %6707 = vmatpush1.msra.mxu0 %v6658_v40  ;;  %6778 = vmatpush1.msra.mxu1 %v6660_v4  ;;  %v6673_v40 = vld [vmem:[#allocation18 + $0xb38] sm:$0xff]  ;;  %v6670_v4 = vld [vmem:[#allocation18 + $0xb20] sm:$0xff] }
 0x747   :  { %6708 = vmatprep.subr.mxu0 %v6651_v21  ;;  %6779 = vmatprep.subr.mxu1 %v6653_v53  ;;  %v6672_v21 = vld [vmem:[#allocation18 + $0xb30] sm:$0xff]  ;;  %v6663_v53 = vld [vmem:[#allocation18 + $0xae8] sm:$0xff] }
 0x748   :  { %6709 = vmatpush1.msra.mxu0 %v6650_v39  ;;  %6780 = vmatpush1.msra.mxu1 %v6652_v14  ;;  %v6665_v39 = vld [vmem:[#allocation18 + $0xaf8] sm:$0xff]  ;;  %v6662_v14 = vld [vmem:[#allocation18 + $0xae0] sm:$0xff] }
 0x749   :  { %6710 = vmatprep.subr.mxu0 %v6643_v42  ;;  %6781 = vmatprep.subr.mxu1 %v6645_v56  ;;  %v6664_v42 = vld [vmem:[#allocation18 + $0xaf0] sm:$0xff]  ;;  %v6655_v56 = vld [vmem:[#allocation18 + $0xaa8] sm:$0xff] }
 0x74a   :  { %6711 = vmatpush1.msra.mxu0 %v6642_v44  ;;  %6782 = vmatpush1.msra.mxu1 %v6644_v10  ;;  %v6657_v44 = vld [vmem:[#allocation18 + $0xab8] sm:$0xff]  ;;  %v6654_v10 = vld [vmem:[#allocation18 + $0xaa0] sm:$0xff] }
 0x74b   :  { %6712 = vmatprep.subr.mxu0 %v6635_v29  ;;  %6783 = vmatprep.subr.mxu1 %v6637_v1  ;;  %v6656_v29 = vld [vmem:[#allocation18 + $0xab0] sm:$0xff]  ;;  %v6647_v1 = vld [vmem:[#allocation18 + $0xa68] sm:$0xff] }
 0x74c   :  { %6713 = vmatpush1.msra.mxu0 %v6634_v36  ;;  %6784 = vmatpush1.msra.mxu1 %v6636_v11  ;;  %v6649_v36 = vld [vmem:[#allocation18 + $0xa78] sm:$0xff]  ;;  %v6646_v11 = vld [vmem:[#allocation18 + $0xa60] sm:$0xff] }
 0x74d   :  { %6714 = vmatprep.subr.mxu0 %v6627_v46  ;;  %6785 = vmatprep.subr.mxu1 %v6629_v27  ;;  %v6648_v46 = vld [vmem:[#allocation18 + $0xa70] sm:$0xff]  ;;  %v6639_v27 = vld [vmem:[#allocation18 + $0xa28] sm:$0xff] }
 0x74e   :  { %6715 = vmatpush1.msra.mxu0 %v6626_v34  ;;  %6786 = vmatpush1.msra.mxu1 %v6628_v19  ;;  %v6641_v34 = vld [vmem:[#allocation18 + $0xa38] sm:$0xff]  ;;  %v6638_v19 = vld [vmem:[#allocation18 + $0xa20] sm:$0xff] }
 0x74f   :  { %6716 = vmatprep.subr.mxu0 %v6619_v52  ;;  %6787 = vmatprep.subr.mxu1 %v6621_v59  ;;  %v6640_v52 = vld [vmem:[#allocation18 + $0xa30] sm:$0xff]  ;;  %v6631_v59 = vld [vmem:[#allocation18 + $0x9e8] sm:$0xff] }
 0x750   :  { %6717 = vmatpush1.msra.mxu0 %v6618_v49  ;;  %6788 = vmatpush1.msra.mxu1 %v6620_v47  ;;  %v6633_v49 = vld [vmem:[#allocation18 + $0x9f8] sm:$0xff]  ;;  %v6630_v47 = vld [vmem:[#allocation18 + $0x9e0] sm:$0xff] }
 0x751   :  { %6718 = vmatprep.subr.mxu0 %v6611_v0  ;;  %6789 = vmatprep.subr.mxu1 %v6613_v35  ;;  %v6632_v0 = vld [vmem:[#allocation18 + $0x9f0] sm:$0xff]  ;;  %v6623_v35 = vld [vmem:[#allocation18 + $0x9a8] sm:$0xff] }
 0x752   :  { %6719 = vmatpush1.msra.mxu0 %v6610_v9  ;;  %6790 = vmatpush1.msra.mxu1 %v6612_v45  ;;  %v6625_v9 = vld [vmem:[#allocation18 + $0x9b8] sm:$0xff]  ;;  %v6622_v45 = vld [vmem:[#allocation18 + $0x9a0] sm:$0xff] }
 0x753   :  { %6720 = vmatprep.subr.mxu0 %v6603_v32  ;;  %6791 = vmatprep.subr.mxu1 %v6605_v31  ;;  %v6624_v32 = vld [vmem:[#allocation18 + $0x9b0] sm:$0xff]  ;;  %v6615_v31 = vld [vmem:[#allocation18 + $0x968] sm:$0xff] }
 0x754   :  { %6721 = vmatpush1.msra.mxu0 %v6602_v12  ;;  %6792 = vmatpush1.msra.mxu1 %v6604_v2  ;;  %v6617_v12 = vld [vmem:[#allocation18 + $0x978] sm:$0xff]  ;;  %v6614_v2 = vld [vmem:[#allocation18 + $0x960] sm:$0xff] }
 0x755   :  { %6722 = vmatprep.subr.mxu0 %v6595_v54  ;;  %6793 = vmatprep.subr.mxu1 %v6597_v25  ;;  %v6616_v54 = vld [vmem:[#allocation18 + $0x970] sm:$0xff]  ;;  %v6607_v25 = vld [vmem:[#allocation18 + $0x928] sm:$0xff] }
 0x756   :  { %6723 = vmatpush1.msra.mxu0 %v6594_v55  ;;  %6794 = vmatpush1.msra.mxu1 %v6596_v8  ;;  %v6609_v55 = vld [vmem:[#allocation18 + $0x938] sm:$0xff]  ;;  %v6606_v8 = vld [vmem:[#allocation18 + $0x920] sm:$0xff] }
 0x757   :  { %6724 = vmatprep.subr.mxu0 %v6587_v26  ;;  %6795 = vmatprep.subr.mxu1 %v6589_v7  ;;  %v6608_v26 = vld [vmem:[#allocation18 + $0x930] sm:$0xff]  ;;  %v6599_v7 = vld [vmem:[#allocation18 + $0x8e8] sm:$0xff] }
 0x758   :  { %6725 = vmatpush1.msra.mxu0 %v6586_v18  ;;  %6796 = vmatpush1.msra.mxu1 %v6588_v16  ;;  %v6601_v18 = vld [vmem:[#allocation18 + $0x8f8] sm:$0xff]  ;;  %v6598_v16 = vld [vmem:[#allocation18 + $0x8e0] sm:$0xff] }
 0x759   :  { %6726 = vmatprep.subr.mxu0 %v6579_v17  ;;  %6797 = vmatprep.subr.mxu1 %v6581_v58  ;;  %v6600_v17 = vld [vmem:[#allocation18 + $0x8f0] sm:$0xff]  ;;  %v6591_v58 = vld [vmem:[#allocation18 + $0x8a8] sm:$0xff] }
 0x75a   :  { %6727 = vmatpush1.msra.mxu0 %v6578_v61  ;;  %6798 = vmatpush1.msra.mxu1 %v6580_v23  ;;  %v6593_v61 = vld [vmem:[#allocation18 + $0x8b8] sm:$0xff]  ;;  %v6590_v23 = vld [vmem:[#allocation18 + $0x8a0] sm:$0xff] }
 0x75b   :  { %6728 = vmatprep.subr.mxu0 %v6571_v41  ;;  %6799 = vmatprep.subr.mxu1 %v6573_v38  ;;  %v6592_v41 = vld [vmem:[#allocation18 + $0x8b0] sm:$0xff]  ;;  %v6583_v38 = vld [vmem:[#allocation18 + $0x868] sm:$0xff] }
 0x75c   :  { %6729 = vmatpush1.msra.mxu0 %v6570_v51  ;;  %6762 = vmatprep.mubr.f32.mxu0 %v14681_v6  ;;  %v6585_v51 = vld [vmem:[#allocation18 + $0x878] sm:$0xff] }
 0x75d   :  { %6800 = vmatpush1.msra.mxu1 %v6572_v43  ;;  %6833 = vmatprep.mubr.f32.mxu1 %v14681_v6  ;;  %v6582_v43 = vld [vmem:[#allocation18 + $0x860] sm:$0xff] }
 0x75e   :  { %6763 = vmatmul.mubr.f32.vlgmr.msra.gmra.mxu0 %v14465_v63  ;;  %6834 = vmatmul.mubr.f32.vlgmr.msra.gmra.mxu1 %v14465_v63 }
 0x75f   :  { %6840 = vmatprep.subr.mxu0 %v6695_v5  ;;  %6911 = vmatprep.subr.mxu1 %v6697_v3  ;;  %v6584_v5 = vld [vmem:[#allocation18 + $0x870] sm:$0xff]  ;;  %v6575_v3 = vld [vmem:[#allocation18 + $0x828] sm:$0xff] }
 0x760   :  { %6841 = vmatpush1.msra.mxu0 %v6694_v60  ;;  %6912 = vmatpush1.msra.mxu1 %v6696_v20  ;;  %v6577_v60 = vld [vmem:[#allocation18 + $0x838] sm:$0xff]  ;;  %v6574_v20 = vld [vmem:[#allocation18 + $0x820] sm:$0xff] }
 0x761   :  { %6842 = vmatprep.subr.mxu0 %v6687_v33  ;;  %6913 = vmatprep.subr.mxu1 %v6689_v30  ;;  %v6576_v33 = vld [vmem:[#allocation18 + $0x830] sm:$0xff]  ;;  %v7112_v30 = vld [vmem:[#allocation18 + $0xfc8] sm:$0xff] }
 0x762   :  { %6843 = vmatpush1.msra.mxu0 %v6686_v15  ;;  %6914 = vmatpush1.msra.mxu1 %v6688_v50  ;;  %v7114_v15 = vld [vmem:[#allocation18 + $0xfd8] sm:$0xff]  ;;  %v7111_v50 = vld [vmem:[#allocation18 + $0xfc0] sm:$0xff] }
 0x763   :  { %6844 = vmatprep.subr.mxu0 %v6679_v28  ;;  %6915 = vmatprep.subr.mxu1 %v6681_v62  ;;  %v7113_v28 = vld [vmem:[#allocation18 + $0xfd0] sm:$0xff]  ;;  %v7104_v62 = vld [vmem:[#allocation18 + $0xf88] sm:$0xff] }
 0x764   :  { %6845 = vmatpush1.msra.mxu0 %v6678_v24  ;;  %6916 = vmatpush1.msra.mxu1 %v6680_v48  ;;  %v7106_v24 = vld [vmem:[#allocation18 + $0xf98] sm:$0xff]  ;;  %v7103_v48 = vld [vmem:[#allocation18 + $0xf80] sm:$0xff] }
 0x765   :  { %6846 = vmatprep.subr.mxu0 %v6671_v57  ;;  %6917 = vmatprep.subr.mxu1 %v6673_v40  ;;  %v7105_v57 = vld [vmem:[#allocation18 + $0xf90] sm:$0xff]  ;;  %v7096_v40 = vld [vmem:[#allocation18 + $0xf48] sm:$0xff] }
 0x766   :  { %6847 = vmatpush1.msra.mxu0 %v6670_v4  ;;  %6918 = vmatpush1.msra.mxu1 %v6672_v21  ;;  %v7098_v4 = vld [vmem:[#allocation18 + $0xf58] sm:$0xff]  ;;  %v7095_v21 = vld [vmem:[#allocation18 + $0xf40] sm:$0xff] }
 0x767   :  { %6848 = vmatprep.subr.mxu0 %v6663_v53  ;;  %6919 = vmatprep.subr.mxu1 %v6665_v39  ;;  %v7097_v53 = vld [vmem:[#allocation18 + $0xf50] sm:$0xff]  ;;  %v7088_v39 = vld [vmem:[#allocation18 + $0xf08] sm:$0xff] }
 0x768   :  { %6849 = vmatpush1.msra.mxu0 %v6662_v14  ;;  %6920 = vmatpush1.msra.mxu1 %v6664_v42  ;;  %v7090_v14 = vld [vmem:[#allocation18 + $0xf18] sm:$0xff]  ;;  %v7089_v42 = vld [vmem:[#allocation18 + $0xf10] sm:$0xff] }
 0x769   :  { %6850 = vmatprep.subr.mxu0 %v6655_v56  ;;  %6921 = vmatprep.subr.mxu1 %v6657_v44  ;;  %v7080_v56 = vld [vmem:[#allocation18 + $0xec8] sm:$0xff]  ;;  %v7082_v44 = vld [vmem:[#allocation18 + $0xed8] sm:$0xff] }
 0x76a   :  { %6851 = vmatpush1.msra.mxu0 %v6654_v10  ;;  %6922 = vmatpush1.msra.mxu1 %v6656_v29  ;;  %v7079_v10 = vld [vmem:[#allocation18 + $0xec0] sm:$0xff]  ;;  %v7081_v29 = vld [vmem:[#allocation18 + $0xed0] sm:$0xff] }
 0x76b   :  { %6852 = vmatprep.subr.mxu0 %v6647_v1  ;;  %6923 = vmatprep.subr.mxu1 %v6649_v36  ;;  %v7072_v1 = vld [vmem:[#allocation18 + $0xe88] sm:$0xff]  ;;  %v7074_v36 = vld [vmem:[#allocation18 + $0xe98] sm:$0xff] }
 0x76c   :  { %6853 = vmatpush1.msra.mxu0 %v6646_v11  ;;  %6924 = vmatpush1.msra.mxu1 %v6648_v46  ;;  %v7071_v11 = vld [vmem:[#allocation18 + $0xe80] sm:$0xff]  ;;  %v7073_v46 = vld [vmem:[#allocation18 + $0xe90] sm:$0xff] }
 0x76d   :  { %6854 = vmatprep.subr.mxu0 %v6639_v27  ;;  %6925 = vmatprep.subr.mxu1 %v6641_v34  ;;  %v7064_v27 = vld [vmem:[#allocation18 + $0xe48] sm:$0xff]  ;;  %v7066_v34 = vld [vmem:[#allocation18 + $0xe58] sm:$0xff] }
 0x76e   :  { %6855 = vmatpush1.msra.mxu0 %v6638_v19  ;;  %6926 = vmatpush1.msra.mxu1 %v6640_v52  ;;  %v7063_v19 = vld [vmem:[#allocation18 + $0xe40] sm:$0xff]  ;;  %v7065_v52 = vld [vmem:[#allocation18 + $0xe50] sm:$0xff] }
 0x76f   :  { %6856 = vmatprep.subr.mxu0 %v6631_v59  ;;  %6927 = vmatprep.subr.mxu1 %v6633_v49  ;;  %v7056_v59 = vld [vmem:[#allocation18 + $0xe08] sm:$0xff]  ;;  %v7058_v49 = vld [vmem:[#allocation18 + $0xe18] sm:$0xff] }
 0x770   :  { %6857 = vmatpush1.msra.mxu0 %v6630_v47  ;;  %6928 = vmatpush1.msra.mxu1 %v6632_v0  ;;  %v7055_v47 = vld [vmem:[#allocation18 + $0xe00] sm:$0xff]  ;;  %v7057_v0 = vld [vmem:[#allocation18 + $0xe10] sm:$0xff] }
 0x771   :  { %6858 = vmatprep.subr.mxu0 %v6623_v35  ;;  %6929 = vmatprep.subr.mxu1 %v6625_v9  ;;  %v7048_v35 = vld [vmem:[#allocation18 + $0xdc8] sm:$0xff]  ;;  %v7050_v9 = vld [vmem:[#allocation18 + $0xdd8] sm:$0xff] }
 0x772   :  { %6859 = vmatpush1.msra.mxu0 %v6622_v45  ;;  %6930 = vmatpush1.msra.mxu1 %v6624_v32  ;;  %v7047_v45 = vld [vmem:[#allocation18 + $0xdc0] sm:$0xff]  ;;  %v7049_v32 = vld [vmem:[#allocation18 + $0xdd0] sm:$0xff] }
 0x773   :  { %6860 = vmatprep.subr.mxu0 %v6615_v31  ;;  %6931 = vmatprep.subr.mxu1 %v6617_v12  ;;  %v7040_v31 = vld [vmem:[#allocation18 + $0xd88] sm:$0xff]  ;;  %v7042_v12 = vld [vmem:[#allocation18 + $0xd98] sm:$0xff] }
 0x774   :  { %6861 = vmatpush1.msra.mxu0 %v6614_v2  ;;  %6932 = vmatpush1.msra.mxu1 %v6616_v54  ;;  %v7039_v2 = vld [vmem:[#allocation18 + $0xd80] sm:$0xff]  ;;  %v7041_v54 = vld [vmem:[#allocation18 + $0xd90] sm:$0xff] }
 0x775   :  { %6862 = vmatprep.subr.mxu0 %v6607_v25  ;;  %6933 = vmatprep.subr.mxu1 %v6609_v55  ;;  %v7032_v25 = vld [vmem:[#allocation18 + $0xd48] sm:$0xff]  ;;  %v7034_v55 = vld [vmem:[#allocation18 + $0xd58] sm:$0xff] }
 0x776   :  { %6863 = vmatpush1.msra.mxu0 %v6606_v8  ;;  %6934 = vmatpush1.msra.mxu1 %v6608_v26  ;;  %v7031_v8 = vld [vmem:[#allocation18 + $0xd40] sm:$0xff]  ;;  %v7033_v26 = vld [vmem:[#allocation18 + $0xd50] sm:$0xff] }
 0x777   :  { %6864 = vmatprep.subr.mxu0 %v6599_v7  ;;  %6935 = vmatprep.subr.mxu1 %v6601_v18  ;;  %v7024_v7 = vld [vmem:[#allocation18 + $0xd08] sm:$0xff]  ;;  %v7026_v18 = vld [vmem:[#allocation18 + $0xd18] sm:$0xff] }
 0x778   :  { %6865 = vmatpush1.msra.mxu0 %v6598_v16  ;;  %6936 = vmatpush1.msra.mxu1 %v6600_v17  ;;  %v7023_v16 = vld [vmem:[#allocation18 + $0xd00] sm:$0xff]  ;;  %v7025_v17 = vld [vmem:[#allocation18 + $0xd10] sm:$0xff] }
 0x779   :  { %6866 = vmatprep.subr.mxu0 %v6591_v58  ;;  %6937 = vmatprep.subr.mxu1 %v6593_v61  ;;  %v7016_v58 = vld [vmem:[#allocation18 + $0xcc8] sm:$0xff]  ;;  %v7018_v61 = vld [vmem:[#allocation18 + $0xcd8] sm:$0xff] }
 0x77a   :  { %6867 = vmatpush1.msra.mxu0 %v6590_v23  ;;  %6938 = vmatpush1.msra.mxu1 %v6592_v41  ;;  %v7015_v23 = vld [vmem:[#allocation18 + $0xcc0] sm:$0xff]  ;;  %v7017_v41 = vld [vmem:[#allocation18 + $0xcd0] sm:$0xff] }
 0x77b   :  { %6868 = vmatprep.subr.mxu0 %v6583_v38  ;;  %6939 = vmatprep.subr.mxu1 %v6585_v51  ;;  %v7008_v38 = vld [vmem:[#allocation18 + $0xc88] sm:$0xff]  ;;  %v7010_v51 = vld [vmem:[#allocation18 + $0xc98] sm:$0xff] }
 0x77c   :  { %6869 = vmatpush1.msra.mxu0 %v6582_v43  ;;  %6940 = vmatpush1.msra.mxu1 %v6584_v5  ;;  %v7007_v43 = vld [vmem:[#allocation18 + $0xc80] sm:$0xff]  ;;  %v7009_v5 = vld [vmem:[#allocation18 + $0xc90] sm:$0xff] }
 0x77d   :  { %6870 = vmatprep.subr.mxu0 %v6575_v3  ;;  %6941 = vmatprep.subr.mxu1 %v6577_v60  ;;  %v7000_v3 = vld [vmem:[#allocation18 + $0xc48] sm:$0xff]  ;;  %v7002_v60 = vld [vmem:[#allocation18 + $0xc58] sm:$0xff] }
 0x77e   :  { %6871 = vmatpush1.msra.mxu0 %v6574_v20  ;;  %6904 = vmatprep.mubr.f32.mxu0 %v14681_v6  ;;  %v6999_v20 = vld [vmem:[#allocation18 + $0xc40] sm:$0xff] }
 0x77f   :  { %6942 = vmatpush1.msra.mxu1 %v6576_v33  ;;  %6975 = vmatprep.mubr.f32.mxu1 %v14681_v6  ;;  %v7001_v33 = vld [vmem:[#allocation18 + $0xc50] sm:$0xff] }
 0x780   :  { %6905 = vmatmul.mubr.f32.vlgmr.msra.gmra.mxu0 %v14465_v63  ;;  %6976 = vmatmul.mubr.f32.vlgmr.msra.gmra.mxu1 %v14465_v63  ;;  %v7087_v63 = vld [vmem:[#allocation18 + $0xf00] sm:$0xff] }
 0x781   :  { %7119 = vmatprep.subr.mxu0 %v7112_v30  ;;  %7190 = vmatprep.subr.mxu1 %v7114_v15  ;;  %v6992_v30 = vld [vmem:[#allocation18 + $0xc08] sm:$0xff]  ;;  %v6994_v15 = vld [vmem:[#allocation18 + $0xc18] sm:$0xff] }
 0x782   :  { %7120 = vmatpush1.msra.mxu0 %v7111_v50  ;;  %7191 = vmatpush1.msra.mxu1 %v7113_v28  ;;  %v6991_v50 = vld [vmem:[#allocation18 + $0xc00] sm:$0xff]  ;;  %v6993_v28 = vld [vmem:[#allocation18 + $0xc10] sm:$0xff] }
 0x783   :  { %7121 = vmatprep.subr.mxu0 %v7104_v62  ;;  %7192 = vmatprep.subr.mxu1 %v7106_v24  ;;  %v14476_v62 = vmax.f32 %v14439_v13, 0.0  ;;  %v7116_v24 = vld [vmem:[#allocation18 + $0xfe8] sm:$0xff]  ;;  %v7107_v13 = vld [vmem:[#allocation18 + $0xfa0] sm:$0xff] }
 0x784   :  { %7122 = vmatpush1.msra.mxu0 %v7103_v48  ;;  %7193 = vmatpush1.msra.mxu1 %v7105_v57  ;;  %v7118_v48 = vld [vmem:[#allocation18 + $0xff8] sm:$0xff]  ;;  %v7115_v57 = vld [vmem:[#allocation18 + $0xfe0] sm:$0xff] }
 0x785   :  { %7123 = vmatprep.subr.mxu0 %v7096_v40  ;;  %7194 = vmatprep.subr.mxu1 %v7098_v4  ;;  %v7117_v40 = vld [vmem:[#allocation18 + $0xff0] sm:$0xff]  ;;  %v7108_v4 = vld [vmem:[#allocation18 + $0xfa8] sm:$0xff] }
 0x786   :  { %7124 = vmatpush1.msra.mxu0 %v7095_v21  ;;  %7195 = vmatpush1.msra.mxu1 %v7097_v53  ;;  %v7110_v21 = vld [vmem:[#allocation18 + $0xfb8] sm:$0xff]  ;;  %v7109_v53 = vld [vmem:[#allocation18 + $0xfb0] sm:$0xff] }
 0x787   :  { %7125 = vmatprep.subr.mxu0 %v7088_v39  ;;  %7196 = vmatprep.subr.mxu1 %v7090_v14  ;;  %v7100_v39 = vld [vmem:[#allocation18 + $0xf68] sm:$0xff]  ;;  %v7102_v14 = vld [vmem:[#allocation18 + $0xf78] sm:$0xff] }
 0x788   :  { %7126 = vmatpush1.msra.mxu0 %v7087_v63  ;;  %7197 = vmatpush1.msra.mxu1 %v7089_v42  ;;  %v7099_v63 = vld [vmem:[#allocation18 + $0xf60] sm:$0xff]  ;;  %v7101_v42 = vld [vmem:[#allocation18 + $0xf70] sm:$0xff] }
 0x789   :  { %7127 = vmatprep.subr.mxu0 %v7080_v56  ;;  %7198 = vmatprep.subr.mxu1 %v7082_v44  ;;  %v7092_v56 = vld [vmem:[#allocation18 + $0xf28] sm:$0xff]  ;;  %v7094_v44 = vld [vmem:[#allocation18 + $0xf38] sm:$0xff] }
 0x78a   :  { %7128 = vmatpush1.msra.mxu0 %v7079_v10  ;;  %7199 = vmatpush1.msra.mxu1 %v7081_v29  ;;  %v7091_v10 = vld [vmem:[#allocation18 + $0xf20] sm:$0xff]  ;;  %v7093_v29 = vld [vmem:[#allocation18 + $0xf30] sm:$0xff] }
 0x78b   :  { %7129 = vmatprep.subr.mxu0 %v7072_v1  ;;  %7200 = vmatprep.subr.mxu1 %v7074_v36  ;;  %v7084_v1 = vld [vmem:[#allocation18 + $0xee8] sm:$0xff]  ;;  %v7086_v36 = vld [vmem:[#allocation18 + $0xef8] sm:$0xff] }
 0x78c   :  { %7130 = vmatpush1.msra.mxu0 %v7071_v11  ;;  %7201 = vmatpush1.msra.mxu1 %v7073_v46  ;;  %v7083_v11 = vld [vmem:[#allocation18 + $0xee0] sm:$0xff]  ;;  %v7085_v46 = vld [vmem:[#allocation18 + $0xef0] sm:$0xff] }
 0x78d   :  { %7131 = vmatprep.subr.mxu0 %v7064_v27  ;;  %7202 = vmatprep.subr.mxu1 %v7066_v34  ;;  %v7076_v27 = vld [vmem:[#allocation18 + $0xea8] sm:$0xff]  ;;  %v7078_v34 = vld [vmem:[#allocation18 + $0xeb8] sm:$0xff] }
 0x78e   :  { %7132 = vmatpush1.msra.mxu0 %v7063_v19  ;;  %7203 = vmatpush1.msra.mxu1 %v7065_v52  ;;  %v7075_v19 = vld [vmem:[#allocation18 + $0xea0] sm:$0xff]  ;;  %v7077_v52 = vld [vmem:[#allocation18 + $0xeb0] sm:$0xff] }
 0x78f   :  { %7133 = vmatprep.subr.mxu0 %v7056_v59  ;;  %7204 = vmatprep.subr.mxu1 %v7058_v49  ;;  %v7068_v59 = vld [vmem:[#allocation18 + $0xe68] sm:$0xff]  ;;  %v7070_v49 = vld [vmem:[#allocation18 + $0xe78] sm:$0xff] }
 0x790   :  { %7134 = vmatpush1.msra.mxu0 %v7055_v47  ;;  %7205 = vmatpush1.msra.mxu1 %v7057_v0  ;;  %v7067_v47 = vld [vmem:[#allocation18 + $0xe60] sm:$0xff]  ;;  %v7069_v0 = vld [vmem:[#allocation18 + $0xe70] sm:$0xff] }
 0x791   :  { %7135 = vmatprep.subr.mxu0 %v7048_v35  ;;  %7206 = vmatprep.subr.mxu1 %v7050_v9  ;;  %v7060_v35 = vld [vmem:[#allocation18 + $0xe28] sm:$0xff]  ;;  %v7062_v9 = vld [vmem:[#allocation18 + $0xe38] sm:$0xff] }
 0x792   :  { %7136 = vmatpush1.msra.mxu0 %v7047_v45  ;;  %7207 = vmatpush1.msra.mxu1 %v7049_v32  ;;  %v7059_v45 = vld [vmem:[#allocation18 + $0xe20] sm:$0xff]  ;;  %v7061_v32 = vld [vmem:[#allocation18 + $0xe30] sm:$0xff] }
 0x793   :  { %7137 = vmatprep.subr.mxu0 %v7040_v31  ;;  %7208 = vmatprep.subr.mxu1 %v7042_v12  ;;  %v7052_v31 = vld [vmem:[#allocation18 + $0xde8] sm:$0xff]  ;;  %v7054_v12 = vld [vmem:[#allocation18 + $0xdf8] sm:$0xff] }
 0x794   :  { %7138 = vmatpush1.msra.mxu0 %v7039_v2  ;;  %7209 = vmatpush1.msra.mxu1 %v7041_v54  ;;  %v7051_v2 = vld [vmem:[#allocation18 + $0xde0] sm:$0xff]  ;;  %v7053_v54 = vld [vmem:[#allocation18 + $0xdf0] sm:$0xff] }
 0x795   :  { %7139 = vmatprep.subr.mxu0 %v7032_v25  ;;  %7210 = vmatprep.subr.mxu1 %v7034_v55  ;;  %v7044_v25 = vld [vmem:[#allocation18 + $0xda8] sm:$0xff]  ;;  %v7046_v55 = vld [vmem:[#allocation18 + $0xdb8] sm:$0xff] }
 0x796   :  { %7140 = vmatpush1.msra.mxu0 %v7031_v8  ;;  %7211 = vmatpush1.msra.mxu1 %v7033_v26  ;;  %v7043_v8 = vld [vmem:[#allocation18 + $0xda0] sm:$0xff]  ;;  %v7045_v26 = vld [vmem:[#allocation18 + $0xdb0] sm:$0xff] }
 0x797   :  { %7141 = vmatprep.subr.mxu0 %v7024_v7  ;;  %7212 = vmatprep.subr.mxu1 %v7026_v18  ;;  %v7036_v7 = vld [vmem:[#allocation18 + $0xd68] sm:$0xff]  ;;  %v7038_v18 = vld [vmem:[#allocation18 + $0xd78] sm:$0xff] }
 0x798   :  { %7142 = vmatpush1.msra.mxu0 %v7023_v16  ;;  %7213 = vmatpush1.msra.mxu1 %v7025_v17  ;;  %v7035_v16 = vld [vmem:[#allocation18 + $0xd60] sm:$0xff]  ;;  %v7037_v17 = vld [vmem:[#allocation18 + $0xd70] sm:$0xff] }
 0x799   :  { %7143 = vmatprep.subr.mxu0 %v7016_v58  ;;  %7214 = vmatprep.subr.mxu1 %v7018_v61  ;;  %v7028_v58 = vld [vmem:[#allocation18 + $0xd28] sm:$0xff]  ;;  %v7030_v61 = vld [vmem:[#allocation18 + $0xd38] sm:$0xff] }
 0x79a   :  { %7144 = vmatpush1.msra.mxu0 %v7015_v23  ;;  %7215 = vmatpush1.msra.mxu1 %v7017_v41  ;;  %v7027_v23 = vld [vmem:[#allocation18 + $0xd20] sm:$0xff]  ;;  %v7029_v41 = vld [vmem:[#allocation18 + $0xd30] sm:$0xff] }
 0x79b   :  { %7145 = vmatprep.subr.mxu0 %v7008_v38  ;;  %7216 = vmatprep.subr.mxu1 %v7010_v51  ;;  %v7020_v38 = vld [vmem:[#allocation18 + $0xce8] sm:$0xff]  ;;  %v7022_v51 = vld [vmem:[#allocation18 + $0xcf8] sm:$0xff] }
 0x79c   :  { %7146 = vmatpush1.msra.mxu0 %v7007_v43  ;;  %7217 = vmatpush1.msra.mxu1 %v7009_v5  ;;  %v7019_v43 = vld [vmem:[#allocation18 + $0xce0] sm:$0xff]  ;;  %v7021_v5 = vld [vmem:[#allocation18 + $0xcf0] sm:$0xff] }
 0x79d   :  { %7147 = vmatprep.subr.mxu0 %v7000_v3  ;;  %7218 = vmatprep.subr.mxu1 %v7002_v60  ;;  %v7012_v3 = vld [vmem:[#allocation18 + $0xca8] sm:$0xff]  ;;  %v7014_v60 = vld [vmem:[#allocation18 + $0xcb8] sm:$0xff] }
 0x79e   :  { %7148 = vmatpush1.msra.mxu0 %v6999_v20  ;;  %7219 = vmatpush1.msra.mxu1 %v7001_v33  ;;  %v7011_v20 = vld [vmem:[#allocation18 + $0xca0] sm:$0xff]  ;;  %v7013_v33 = vld [vmem:[#allocation18 + $0xcb0] sm:$0xff] }
 0x79f   :  { %7149 = vmatprep.subr.mxu0 %v6992_v30  ;;  %7220 = vmatprep.subr.mxu1 %v6994_v15  ;;  %v7004_v30 = vld [vmem:[#allocation18 + $0xc68] sm:$0xff]  ;;  %v7006_v15 = vld [vmem:[#allocation18 + $0xc78] sm:$0xff] }
 0x7a0   :  { %7150 = vmatpush1.msra.mxu0 %v6991_v50  ;;  %7183 = vmatprep.mubr.f32.mxu0 %v14681_v6  ;;  %v7003_v50 = vld [vmem:[#allocation18 + $0xc60] sm:$0xff] }
 0x7a1   :  { %7221 = vmatpush1.msra.mxu1 %v6993_v28  ;;  %7254 = vmatprep.mubr.f32.mxu1 %v14681_v6  ;;  %v7005_v28 = vld [vmem:[#allocation18 + $0xc70] sm:$0xff] }
 0x7a2   :  { %7184 = vmatmul.mubr.f32.vlgmr.msra.gmra.mxu0 %v14476_v62  ;;  %7255 = vmatmul.mubr.f32.vlgmr.msra.gmra.mxu1 %v14476_v62 }
 0x7a3   :  { %7261 = vmatprep.subr.mxu0 %v7116_v24  ;;  %7332 = vmatprep.subr.mxu1 %v7118_v48  ;;  %v6996_v24 = vld [vmem:[#allocation18 + $0xc28] sm:$0xff]  ;;  %v6998_v48 = vld [vmem:[#allocation18 + $0xc38] sm:$0xff] }
 0x7a4   :  { %7262 = vmatpush1.msra.mxu0 %v7115_v57  ;;  %7333 = vmatpush1.msra.mxu1 %v7117_v40  ;;  %v6995_v57 = vld [vmem:[#allocation18 + $0xc20] sm:$0xff]  ;;  %v6997_v40 = vld [vmem:[#allocation18 + $0xc30] sm:$0xff] }
 0x7a5   :  { %7263 = vmatprep.subr.mxu0 %v7108_v4  ;;  %7334 = vmatprep.subr.mxu1 %v7110_v21  ;;  %v7533_v4 = vld [vmem:[#allocation18 + $0x13c8] sm:$0xff]  ;;  %v7535_v21 = vld [vmem:[#allocation18 + $0x13d8] sm:$0xff] }
 0x7a6   :  { %7264 = vmatpush1.msra.mxu0 %v7107_v13  ;;  %7335 = vmatpush1.msra.mxu1 %v7109_v53  ;;  %v7532_v13 = vld [vmem:[#allocation18 + $0x13c0] sm:$0xff]  ;;  %v7534_v53 = vld [vmem:[#allocation18 + $0x13d0] sm:$0xff] }
 0x7a7   :  { %7265 = vmatprep.subr.mxu0 %v7100_v39  ;;  %7336 = vmatprep.subr.mxu1 %v7102_v14  ;;  %v7525_v39 = vld [vmem:[#allocation18 + $0x1388] sm:$0xff]  ;;  %v7527_v14 = vld [vmem:[#allocation18 + $0x1398] sm:$0xff] }
 0x7a8   :  { %7266 = vmatpush1.msra.mxu0 %v7099_v63  ;;  %7337 = vmatpush1.msra.mxu1 %v7101_v42  ;;  %v7524_v63 = vld [vmem:[#allocation18 + $0x1380] sm:$0xff]  ;;  %v7526_v42 = vld [vmem:[#allocation18 + $0x1390] sm:$0xff] }
 0x7a9   :  { %7267 = vmatprep.subr.mxu0 %v7092_v56  ;;  %7338 = vmatprep.subr.mxu1 %v7094_v44  ;;  %v7517_v56 = vld [vmem:[#allocation18 + $0x1348] sm:$0xff]  ;;  %v7519_v44 = vld [vmem:[#allocation18 + $0x1358] sm:$0xff] }
 0x7aa   :  { %7268 = vmatpush1.msra.mxu0 %v7091_v10  ;;  %7339 = vmatpush1.msra.mxu1 %v7093_v29  ;;  %v7516_v10 = vld [vmem:[#allocation18 + $0x1340] sm:$0xff]  ;;  %v7518_v29 = vld [vmem:[#allocation18 + $0x1350] sm:$0xff] }
 0x7ab   :  { %7269 = vmatprep.subr.mxu0 %v7084_v1  ;;  %7340 = vmatprep.subr.mxu1 %v7086_v36  ;;  %v7509_v1 = vld [vmem:[#allocation18 + $0x1308] sm:$0xff]  ;;  %v7511_v36 = vld [vmem:[#allocation18 + $0x1318] sm:$0xff] }
 0x7ac   :  { %7270 = vmatpush1.msra.mxu0 %v7083_v11  ;;  %7341 = vmatpush1.msra.mxu1 %v7085_v46  ;;  %v7510_v11 = vld [vmem:[#allocation18 + $0x1310] sm:$0xff]  ;;  %v7501_v46 = vld [vmem:[#allocation18 + $0x12c8] sm:$0xff] }
 0x7ad   :  { %7271 = vmatprep.subr.mxu0 %v7076_v27  ;;  %7342 = vmatprep.subr.mxu1 %v7078_v34  ;;  %v7503_v27 = vld [vmem:[#allocation18 + $0x12d8] sm:$0xff]  ;;  %v7500_v34 = vld [vmem:[#allocation18 + $0x12c0] sm:$0xff] }
 0x7ae   :  { %7272 = vmatpush1.msra.mxu0 %v7075_v19  ;;  %7343 = vmatpush1.msra.mxu1 %v7077_v52  ;;  %v7502_v19 = vld [vmem:[#allocation18 + $0x12d0] sm:$0xff]  ;;  %v7493_v52 = vld [vmem:[#allocation18 + $0x1288] sm:$0xff] }
 0x7af   :  { %7273 = vmatprep.subr.mxu0 %v7068_v59  ;;  %7344 = vmatprep.subr.mxu1 %v7070_v49  ;;  %v7495_v59 = vld [vmem:[#allocation18 + $0x1298] sm:$0xff]  ;;  %v7492_v49 = vld [vmem:[#allocation18 + $0x1280] sm:$0xff] }
 0x7b0   :  { %7274 = vmatpush1.msra.mxu0 %v7067_v47  ;;  %7345 = vmatpush1.msra.mxu1 %v7069_v0  ;;  %v7494_v47 = vld [vmem:[#allocation18 + $0x1290] sm:$0xff]  ;;  %v7485_v0 = vld [vmem:[#allocation18 + $0x1248] sm:$0xff] }
 0x7b1   :  { %7275 = vmatprep.subr.mxu0 %v7060_v35  ;;  %7346 = vmatprep.subr.mxu1 %v7062_v9  ;;  %v7487_v35 = vld [vmem:[#allocation18 + $0x1258] sm:$0xff]  ;;  %v7484_v9 = vld [vmem:[#allocation18 + $0x1240] sm:$0xff] }
 0x7b2   :  { %7276 = vmatpush1.msra.mxu0 %v7059_v45  ;;  %7347 = vmatpush1.msra.mxu1 %v7061_v32  ;;  %v7486_v45 = vld [vmem:[#allocation18 + $0x1250] sm:$0xff]  ;;  %v7477_v32 = vld [vmem:[#allocation18 + $0x1208] sm:$0xff] }
 0x7b3   :  { %7277 = vmatprep.subr.mxu0 %v7052_v31  ;;  %7348 = vmatprep.subr.mxu1 %v7054_v12  ;;  %v7479_v31 = vld [vmem:[#allocation18 + $0x1218] sm:$0xff]  ;;  %v7476_v12 = vld [vmem:[#allocation18 + $0x1200] sm:$0xff] }
 0x7b4   :  { %7278 = vmatpush1.msra.mxu0 %v7051_v2  ;;  %7349 = vmatpush1.msra.mxu1 %v7053_v54  ;;  %v7478_v2 = vld [vmem:[#allocation18 + $0x1210] sm:$0xff]  ;;  %v7469_v54 = vld [vmem:[#allocation18 + $0x11c8] sm:$0xff] }
 0x7b5   :  { %7279 = vmatprep.subr.mxu0 %v7044_v25  ;;  %7350 = vmatprep.subr.mxu1 %v7046_v55  ;;  %v7471_v25 = vld [vmem:[#allocation18 + $0x11d8] sm:$0xff]  ;;  %v7468_v55 = vld [vmem:[#allocation18 + $0x11c0] sm:$0xff] }
 0x7b6   :  { %7280 = vmatpush1.msra.mxu0 %v7043_v8  ;;  %7351 = vmatpush1.msra.mxu1 %v7045_v26  ;;  %v7470_v8 = vld [vmem:[#allocation18 + $0x11d0] sm:$0xff]  ;;  %v7461_v26 = vld [vmem:[#allocation18 + $0x1188] sm:$0xff] }
 0x7b7   :  { %7281 = vmatprep.subr.mxu0 %v7036_v7  ;;  %7352 = vmatprep.subr.mxu1 %v7038_v18  ;;  %v7463_v7 = vld [vmem:[#allocation18 + $0x1198] sm:$0xff]  ;;  %v7460_v18 = vld [vmem:[#allocation18 + $0x1180] sm:$0xff] }
 0x7b8   :  { %7282 = vmatpush1.msra.mxu0 %v7035_v16  ;;  %7353 = vmatpush1.msra.mxu1 %v7037_v17  ;;  %v7462_v16 = vld [vmem:[#allocation18 + $0x1190] sm:$0xff]  ;;  %v7453_v17 = vld [vmem:[#allocation18 + $0x1148] sm:$0xff] }
 0x7b9   :  { %7283 = vmatprep.subr.mxu0 %v7028_v58  ;;  %7354 = vmatprep.subr.mxu1 %v7030_v61  ;;  %v7455_v58 = vld [vmem:[#allocation18 + $0x1158] sm:$0xff]  ;;  %v7452_v61 = vld [vmem:[#allocation18 + $0x1140] sm:$0xff] }
 0x7ba   :  { %7284 = vmatpush1.msra.mxu0 %v7027_v23  ;;  %7355 = vmatpush1.msra.mxu1 %v7029_v41  ;;  %v7454_v23 = vld [vmem:[#allocation18 + $0x1150] sm:$0xff]  ;;  %v7445_v41 = vld [vmem:[#allocation18 + $0x1108] sm:$0xff] }
 0x7bb   :  { %7285 = vmatprep.subr.mxu0 %v7020_v38  ;;  %7356 = vmatprep.subr.mxu1 %v7022_v51  ;;  %v7447_v38 = vld [vmem:[#allocation18 + $0x1118] sm:$0xff]  ;;  %v7444_v51 = vld [vmem:[#allocation18 + $0x1100] sm:$0xff] }
 0x7bc   :  { %7286 = vmatpush1.msra.mxu0 %v7019_v43  ;;  %7357 = vmatpush1.msra.mxu1 %v7021_v5  ;;  %v7446_v43 = vld [vmem:[#allocation18 + $0x1110] sm:$0xff]  ;;  %v7437_v5 = vld [vmem:[#allocation18 + $0x10c8] sm:$0xff] }
 0x7bd   :  { %7287 = vmatprep.subr.mxu0 %v7012_v3  ;;  %7358 = vmatprep.subr.mxu1 %v7014_v60  ;;  %v7439_v3 = vld [vmem:[#allocation18 + $0x10d8] sm:$0xff]  ;;  %v7436_v60 = vld [vmem:[#allocation18 + $0x10c0] sm:$0xff] }
 0x7be   :  { %7288 = vmatpush1.msra.mxu0 %v7011_v20  ;;  %7359 = vmatpush1.msra.mxu1 %v7013_v33  ;;  %v7438_v20 = vld [vmem:[#allocation18 + $0x10d0] sm:$0xff]  ;;  %v7429_v33 = vld [vmem:[#allocation18 + $0x1088] sm:$0xff] }
 0x7bf   :  { %7289 = vmatprep.subr.mxu0 %v7004_v30  ;;  %7360 = vmatprep.subr.mxu1 %v7006_v15  ;;  %v7431_v30 = vld [vmem:[#allocation18 + $0x1098] sm:$0xff]  ;;  %v7428_v15 = vld [vmem:[#allocation18 + $0x1080] sm:$0xff] }
 0x7c0   :  { %7290 = vmatpush1.msra.mxu0 %v7003_v50  ;;  %7361 = vmatpush1.msra.mxu1 %v7005_v28  ;;  %v7430_v50 = vld [vmem:[#allocation18 + $0x1090] sm:$0xff]  ;;  %v7421_v28 = vld [vmem:[#allocation18 + $0x1048] sm:$0xff] }
 0x7c1   :  { %7291 = vmatprep.subr.mxu0 %v6996_v24  ;;  %7362 = vmatprep.subr.mxu1 %v6998_v48  ;;  %v7423_v24 = vld [vmem:[#allocation18 + $0x1058] sm:$0xff]  ;;  %v7420_v48 = vld [vmem:[#allocation18 + $0x1040] sm:$0xff] }
 0x7c2   :  { %7292 = vmatpush1.msra.mxu0 %v6995_v57  ;;  %7325 = vmatprep.mubr.f32.mxu0 %v14681_v6  ;;  %v7422_v57 = vld [vmem:[#allocation18 + $0x1050] sm:$0xff] }
 0x7c3   :  { %7363 = vmatpush1.msra.mxu1 %v6997_v40  ;;  %7396 = vmatprep.mubr.f32.mxu1 %v14681_v6  ;;  %v7413_v40 = vld [vmem:[#allocation18 + $0x1008] sm:$0xff] }
 0x7c4   :  { %7326 = vmatmul.mubr.f32.vlgmr.msra.gmra.mxu0 %v14476_v62  ;;  %7397 = vmatmul.mubr.f32.vlgmr.msra.gmra.mxu1 %v14476_v62  ;;  %v7508_v62 = vld [vmem:[#allocation18 + $0x1300] sm:$0xff] }
 0x7c5   :  { %7540 = vmatprep.subr.mxu0 %v7533_v4  ;;  %7611 = vmatprep.subr.mxu1 %v7535_v21  ;;  %v7415_v4 = vld [vmem:[#allocation18 + $0x1018] sm:$0xff]  ;;  %v7412_v21 = vld [vmem:[#allocation18 + $0x1000] sm:$0xff] }
 0x7c6   :  { %7541 = vmatpush1.msra.mxu0 %v7532_v13  ;;  %7612 = vmatpush1.msra.mxu1 %v7534_v53  ;;  %v7414_v13 = vld [vmem:[#allocation18 + $0x1010] sm:$0xff]  ;;  %v14487_v53 = vmax.f32 %v14447_v37, 0.0  ;;  %v7528_v37 = vld [vmem:[#allocation18 + $0x13a0] sm:$0xff] }
 0x7c7   :  { %7542 = vmatprep.subr.mxu0 %v7525_v39  ;;  %7613 = vmatprep.subr.mxu1 %v7527_v14  ;;  %v7537_v39 = vld [vmem:[#allocation18 + $0x13e8] sm:$0xff]  ;;  %v7539_v14 = vld [vmem:[#allocation18 + $0x13f8] sm:$0xff] }
 0x7c8   :  { %7543 = vmatpush1.msra.mxu0 %v7524_v63  ;;  %7614 = vmatpush1.msra.mxu1 %v7526_v42  ;;  %v7536_v63 = vld [vmem:[#allocation18 + $0x13e0] sm:$0xff]  ;;  %v7538_v42 = vld [vmem:[#allocation18 + $0x13f0] sm:$0xff] }
 0x7c9   :  { %7544 = vmatprep.subr.mxu0 %v7517_v56  ;;  %7615 = vmatprep.subr.mxu1 %v7519_v44  ;;  %v7529_v56 = vld [vmem:[#allocation18 + $0x13a8] sm:$0xff]  ;;  %v7531_v44 = vld [vmem:[#allocation18 + $0x13b8] sm:$0xff] }
 0x7ca   :  { %7545 = vmatpush1.msra.mxu0 %v7516_v10  ;;  %7616 = vmatpush1.msra.mxu1 %v7518_v29  ;;  %v7530_v10 = vld [vmem:[#allocation18 + $0x13b0] sm:$0xff]  ;;  %v7521_v29 = vld [vmem:[#allocation18 + $0x1368] sm:$0xff] }
 0x7cb   :  { %7546 = vmatprep.subr.mxu0 %v7509_v1  ;;  %7617 = vmatprep.subr.mxu1 %v7511_v36  ;;  %v7523_v1 = vld [vmem:[#allocation18 + $0x1378] sm:$0xff]  ;;  %v7520_v36 = vld [vmem:[#allocation18 + $0x1360] sm:$0xff] }
 0x7cc   :  { %7547 = vmatpush1.msra.mxu0 %v7508_v62  ;;  %7618 = vmatpush1.msra.mxu1 %v7510_v11  ;;  %v7522_v62 = vld [vmem:[#allocation18 + $0x1370] sm:$0xff]  ;;  %v7513_v11 = vld [vmem:[#allocation18 + $0x1328] sm:$0xff] }
 0x7cd   :  { %7548 = vmatprep.subr.mxu0 %v7501_v46  ;;  %7619 = vmatprep.subr.mxu1 %v7503_v27  ;;  %v7515_v46 = vld [vmem:[#allocation18 + $0x1338] sm:$0xff]  ;;  %v7512_v27 = vld [vmem:[#allocation18 + $0x1320] sm:$0xff] }
 0x7ce   :  { %7549 = vmatpush1.msra.mxu0 %v7500_v34  ;;  %7620 = vmatpush1.msra.mxu1 %v7502_v19  ;;  %v7514_v34 = vld [vmem:[#allocation18 + $0x1330] sm:$0xff]  ;;  %v7505_v19 = vld [vmem:[#allocation18 + $0x12e8] sm:$0xff] }
 0x7cf   :  { %7550 = vmatprep.subr.mxu0 %v7493_v52  ;;  %7621 = vmatprep.subr.mxu1 %v7495_v59  ;;  %v7507_v52 = vld [vmem:[#allocation18 + $0x12f8] sm:$0xff]  ;;  %v7504_v59 = vld [vmem:[#allocation18 + $0x12e0] sm:$0xff] }
 0x7d0   :  { %7551 = vmatpush1.msra.mxu0 %v7492_v49  ;;  %7622 = vmatpush1.msra.mxu1 %v7494_v47  ;;  %v7506_v49 = vld [vmem:[#allocation18 + $0x12f0] sm:$0xff]  ;;  %v7497_v47 = vld [vmem:[#allocation18 + $0x12a8] sm:$0xff] }
 0x7d1   :  { %7552 = vmatprep.subr.mxu0 %v7485_v0  ;;  %7623 = vmatprep.subr.mxu1 %v7487_v35  ;;  %v7499_v0 = vld [vmem:[#allocation18 + $0x12b8] sm:$0xff]  ;;  %v7496_v35 = vld [vmem:[#allocation18 + $0x12a0] sm:$0xff] }
 0x7d2   :  { %7553 = vmatpush1.msra.mxu0 %v7484_v9  ;;  %7624 = vmatpush1.msra.mxu1 %v7486_v45  ;;  %v7498_v9 = vld [vmem:[#allocation18 + $0x12b0] sm:$0xff]  ;;  %v7489_v45 = vld [vmem:[#allocation18 + $0x1268] sm:$0xff] }
 0x7d3   :  { %7554 = vmatprep.subr.mxu0 %v7477_v32  ;;  %7625 = vmatprep.subr.mxu1 %v7479_v31  ;;  %v7491_v32 = vld [vmem:[#allocation18 + $0x1278] sm:$0xff]  ;;  %v7488_v31 = vld [vmem:[#allocation18 + $0x1260] sm:$0xff] }
 0x7d4   :  { %7555 = vmatpush1.msra.mxu0 %v7476_v12  ;;  %7626 = vmatpush1.msra.mxu1 %v7478_v2  ;;  %v7490_v12 = vld [vmem:[#allocation18 + $0x1270] sm:$0xff]  ;;  %v7481_v2 = vld [vmem:[#allocation18 + $0x1228] sm:$0xff] }
 0x7d5   :  { %7556 = vmatprep.subr.mxu0 %v7469_v54  ;;  %7627 = vmatprep.subr.mxu1 %v7471_v25  ;;  %v7483_v54 = vld [vmem:[#allocation18 + $0x1238] sm:$0xff]  ;;  %v7480_v25 = vld [vmem:[#allocation18 + $0x1220] sm:$0xff] }
 0x7d6   :  { %7557 = vmatpush1.msra.mxu0 %v7468_v55  ;;  %7628 = vmatpush1.msra.mxu1 %v7470_v8  ;;  %v7482_v55 = vld [vmem:[#allocation18 + $0x1230] sm:$0xff]  ;;  %v7473_v8 = vld [vmem:[#allocation18 + $0x11e8] sm:$0xff] }
 0x7d7   :  { %7558 = vmatprep.subr.mxu0 %v7461_v26  ;;  %7629 = vmatprep.subr.mxu1 %v7463_v7  ;;  %v7475_v26 = vld [vmem:[#allocation18 + $0x11f8] sm:$0xff]  ;;  %v7472_v7 = vld [vmem:[#allocation18 + $0x11e0] sm:$0xff] }
 0x7d8   :  { %7559 = vmatpush1.msra.mxu0 %v7460_v18  ;;  %7630 = vmatpush1.msra.mxu1 %v7462_v16  ;;  %v7474_v18 = vld [vmem:[#allocation18 + $0x11f0] sm:$0xff]  ;;  %v7465_v16 = vld [vmem:[#allocation18 + $0x11a8] sm:$0xff] }
 0x7d9   :  { %7560 = vmatprep.subr.mxu0 %v7453_v17  ;;  %7631 = vmatprep.subr.mxu1 %v7455_v58  ;;  %v7467_v17 = vld [vmem:[#allocation18 + $0x11b8] sm:$0xff]  ;;  %v7464_v58 = vld [vmem:[#allocation18 + $0x11a0] sm:$0xff] }
 0x7da   :  { %7561 = vmatpush1.msra.mxu0 %v7452_v61  ;;  %7632 = vmatpush1.msra.mxu1 %v7454_v23  ;;  %v7466_v61 = vld [vmem:[#allocation18 + $0x11b0] sm:$0xff]  ;;  %v7457_v23 = vld [vmem:[#allocation18 + $0x1168] sm:$0xff] }
 0x7db   :  { %7562 = vmatprep.subr.mxu0 %v7445_v41  ;;  %7633 = vmatprep.subr.mxu1 %v7447_v38  ;;  %v7459_v41 = vld [vmem:[#allocation18 + $0x1178] sm:$0xff]  ;;  %v7456_v38 = vld [vmem:[#allocation18 + $0x1160] sm:$0xff] }
 0x7dc   :  { %7563 = vmatpush1.msra.mxu0 %v7444_v51  ;;  %7634 = vmatpush1.msra.mxu1 %v7446_v43  ;;  %v7458_v51 = vld [vmem:[#allocation18 + $0x1170] sm:$0xff]  ;;  %v7449_v43 = vld [vmem:[#allocation18 + $0x1128] sm:$0xff] }
 0x7dd   :  { %7564 = vmatprep.subr.mxu0 %v7437_v5  ;;  %7635 = vmatprep.subr.mxu1 %v7439_v3  ;;  %v7451_v5 = vld [vmem:[#allocation18 + $0x1138] sm:$0xff]  ;;  %v7448_v3 = vld [vmem:[#allocation18 + $0x1120] sm:$0xff] }
 0x7de   :  { %7565 = vmatpush1.msra.mxu0 %v7436_v60  ;;  %7636 = vmatpush1.msra.mxu1 %v7438_v20  ;;  %v7450_v60 = vld [vmem:[#allocation18 + $0x1130] sm:$0xff]  ;;  %v7441_v20 = vld [vmem:[#allocation18 + $0x10e8] sm:$0xff] }
 0x7df   :  { %7566 = vmatprep.subr.mxu0 %v7429_v33  ;;  %7637 = vmatprep.subr.mxu1 %v7431_v30  ;;  %v7443_v33 = vld [vmem:[#allocation18 + $0x10f8] sm:$0xff]  ;;  %v7440_v30 = vld [vmem:[#allocation18 + $0x10e0] sm:$0xff] }
 0x7e0   :  { %7567 = vmatpush1.msra.mxu0 %v7428_v15  ;;  %7638 = vmatpush1.msra.mxu1 %v7430_v50  ;;  %v7442_v15 = vld [vmem:[#allocation18 + $0x10f0] sm:$0xff]  ;;  %v7433_v50 = vld [vmem:[#allocation18 + $0x10a8] sm:$0xff] }
 0x7e1   :  { %7568 = vmatprep.subr.mxu0 %v7421_v28  ;;  %7639 = vmatprep.subr.mxu1 %v7423_v24  ;;  %v7435_v28 = vld [vmem:[#allocation18 + $0x10b8] sm:$0xff]  ;;  %v7432_v24 = vld [vmem:[#allocation18 + $0x10a0] sm:$0xff] }
 0x7e2   :  { %7569 = vmatpush1.msra.mxu0 %v7420_v48  ;;  %7640 = vmatpush1.msra.mxu1 %v7422_v57  ;;  %v7434_v48 = vld [vmem:[#allocation18 + $0x10b0] sm:$0xff]  ;;  %v7425_v57 = vld [vmem:[#allocation18 + $0x1068] sm:$0xff] }
 0x7e3   :  { %7570 = vmatprep.subr.mxu0 %v7413_v40  ;;  %7641 = vmatprep.subr.mxu1 %v7415_v4  ;;  %v7427_v40 = vld [vmem:[#allocation18 + $0x1078] sm:$0xff]  ;;  %v7424_v4 = vld [vmem:[#allocation18 + $0x1060] sm:$0xff] }
 0x7e4   :  { %7571 = vmatpush1.msra.mxu0 %v7412_v21  ;;  %7604 = vmatprep.mubr.f32.mxu0 %v14681_v6  ;;  %v7426_v21 = vld [vmem:[#allocation18 + $0x1070] sm:$0xff] }
 0x7e5   :  { %7642 = vmatpush1.msra.mxu1 %v7414_v13  ;;  %7675 = vmatprep.mubr.f32.mxu1 %v14681_v6  ;;  %v7417_v13 = vld [vmem:[#allocation18 + $0x1028] sm:$0xff] }
 0x7e6   :  { %7605 = vmatmul.mubr.f32.vlgmr.msra.gmra.mxu0 %v14487_v53  ;;  %7676 = vmatmul.mubr.f32.vlgmr.msra.gmra.mxu1 %v14487_v53 }
 0x7e7   :  { %7682 = vmatprep.subr.mxu0 %v7537_v39  ;;  %7753 = vmatprep.subr.mxu1 %v7539_v14  ;;  %v7419_v39 = vld [vmem:[#allocation18 + $0x1038] sm:$0xff]  ;;  %v7416_v14 = vld [vmem:[#allocation18 + $0x1020] sm:$0xff] }
 0x7e8   :  { %7683 = vmatpush1.msra.mxu0 %v7536_v63  ;;  %7754 = vmatpush1.msra.mxu1 %v7538_v42  ;;  %v7418_v63 = vld [vmem:[#allocation18 + $0x1030] sm:$0xff]  ;;  %v7954_v42 = vld [vmem:[#allocation18 + $0x17c8] sm:$0xff] }
 0x7e9   :  { %7684 = vmatprep.subr.mxu0 %v7529_v56  ;;  %7755 = vmatprep.subr.mxu1 %v7531_v44  ;;  %v7956_v56 = vld [vmem:[#allocation18 + $0x17d8] sm:$0xff]  ;;  %v7953_v44 = vld [vmem:[#allocation18 + $0x17c0] sm:$0xff] }
 0x7ea   :  { %7685 = vmatpush1.msra.mxu0 %v7528_v37  ;;  %7756 = vmatpush1.msra.mxu1 %v7530_v10  ;;  %v7955_v37 = vld [vmem:[#allocation18 + $0x17d0] sm:$0xff]  ;;  %v7946_v10 = vld [vmem:[#allocation18 + $0x1788] sm:$0xff] }
 0x7eb   :  { %7686 = vmatprep.subr.mxu0 %v7521_v29  ;;  %7757 = vmatprep.subr.mxu1 %v7523_v1  ;;  %v7948_v29 = vld [vmem:[#allocation18 + $0x1798] sm:$0xff]  ;;  %v7945_v1 = vld [vmem:[#allocation18 + $0x1780] sm:$0xff] }
 0x7ec   :  { %7687 = vmatpush1.msra.mxu0 %v7520_v36  ;;  %7758 = vmatpush1.msra.mxu1 %v7522_v62  ;;  %v7947_v36 = vld [vmem:[#allocation18 + $0x1790] sm:$0xff]  ;;  %v7938_v62 = vld [vmem:[#allocation18 + $0x1748] sm:$0xff] }
 0x7ed   :  { %7688 = vmatprep.subr.mxu0 %v7513_v11  ;;  %7759 = vmatprep.subr.mxu1 %v7515_v46  ;;  %v7940_v11 = vld [vmem:[#allocation18 + $0x1758] sm:$0xff]  ;;  %v7937_v46 = vld [vmem:[#allocation18 + $0x1740] sm:$0xff] }
 0x7ee   :  { %7689 = vmatpush1.msra.mxu0 %v7512_v27  ;;  %7760 = vmatpush1.msra.mxu1 %v7514_v34  ;;  %v7939_v27 = vld [vmem:[#allocation18 + $0x1750] sm:$0xff]  ;;  %v7930_v34 = vld [vmem:[#allocation18 + $0x1708] sm:$0xff] }
 0x7ef   :  { %7690 = vmatprep.subr.mxu0 %v7505_v19  ;;  %7761 = vmatprep.subr.mxu1 %v7507_v52  ;;  %v7932_v19 = vld [vmem:[#allocation18 + $0x1718] sm:$0xff]  ;;  %v7931_v52 = vld [vmem:[#allocation18 + $0x1710] sm:$0xff] }
 0x7f0   :  { %7691 = vmatpush1.msra.mxu0 %v7504_v59  ;;  %7762 = vmatpush1.msra.mxu1 %v7506_v49  ;;  %v7922_v59 = vld [vmem:[#allocation18 + $0x16c8] sm:$0xff]  ;;  %v7924_v49 = vld [vmem:[#allocation18 + $0x16d8] sm:$0xff] }
 0x7f1   :  { %7692 = vmatprep.subr.mxu0 %v7497_v47  ;;  %7763 = vmatprep.subr.mxu1 %v7499_v0  ;;  %v7921_v47 = vld [vmem:[#allocation18 + $0x16c0] sm:$0xff]  ;;  %v7923_v0 = vld [vmem:[#allocation18 + $0x16d0] sm:$0xff] }
 0x7f2   :  { %7693 = vmatpush1.msra.mxu0 %v7496_v35  ;;  %7764 = vmatpush1.msra.mxu1 %v7498_v9  ;;  %v7914_v35 = vld [vmem:[#allocation18 + $0x1688] sm:$0xff]  ;;  %v7916_v9 = vld [vmem:[#allocation18 + $0x1698] sm:$0xff] }
 0x7f3   :  { %7694 = vmatprep.subr.mxu0 %v7489_v45  ;;  %7765 = vmatprep.subr.mxu1 %v7491_v32  ;;  %v7913_v45 = vld [vmem:[#allocation18 + $0x1680] sm:$0xff]  ;;  %v7915_v32 = vld [vmem:[#allocation18 + $0x1690] sm:$0xff] }
 0x7f4   :  { %7695 = vmatpush1.msra.mxu0 %v7488_v31  ;;  %7766 = vmatpush1.msra.mxu1 %v7490_v12  ;;  %v7906_v31 = vld [vmem:[#allocation18 + $0x1648] sm:$0xff]  ;;  %v7908_v12 = vld [vmem:[#allocation18 + $0x1658] sm:$0xff] }
 0x7f5   :  { %7696 = vmatprep.subr.mxu0 %v7481_v2  ;;  %7767 = vmatprep.subr.mxu1 %v7483_v54  ;;  %v7905_v2 = vld [vmem:[#allocation18 + $0x1640] sm:$0xff]  ;;  %v7907_v54 = vld [vmem:[#allocation18 + $0x1650] sm:$0xff] }
 0x7f6   :  { %7697 = vmatpush1.msra.mxu0 %v7480_v25  ;;  %7768 = vmatpush1.msra.mxu1 %v7482_v55  ;;  %v7898_v25 = vld [vmem:[#allocation18 + $0x1608] sm:$0xff]  ;;  %v7900_v55 = vld [vmem:[#allocation18 + $0x1618] sm:$0xff] }
 0x7f7   :  { %7698 = vmatprep.subr.mxu0 %v7473_v8  ;;  %7769 = vmatprep.subr.mxu1 %v7475_v26  ;;  %v7897_v8 = vld [vmem:[#allocation18 + $0x1600] sm:$0xff]  ;;  %v7899_v26 = vld [vmem:[#allocation18 + $0x1610] sm:$0xff] }
 0x7f8   :  { %7699 = vmatpush1.msra.mxu0 %v7472_v7  ;;  %7770 = vmatpush1.msra.mxu1 %v7474_v18  ;;  %v7890_v7 = vld [vmem:[#allocation18 + $0x15c8] sm:$0xff]  ;;  %v7892_v18 = vld [vmem:[#allocation18 + $0x15d8] sm:$0xff] }
 0x7f9   :  { %7700 = vmatprep.subr.mxu0 %v7465_v16  ;;  %7771 = vmatprep.subr.mxu1 %v7467_v17  ;;  %v7889_v16 = vld [vmem:[#allocation18 + $0x15c0] sm:$0xff]  ;;  %v7891_v17 = vld [vmem:[#allocation18 + $0x15d0] sm:$0xff] }
 0x7fa   :  { %7701 = vmatpush1.msra.mxu0 %v7464_v58  ;;  %7772 = vmatpush1.msra.mxu1 %v7466_v61  ;;  %v7882_v58 = vld [vmem:[#allocation18 + $0x1588] sm:$0xff]  ;;  %v7884_v61 = vld [vmem:[#allocation18 + $0x1598] sm:$0xff] }
 0x7fb   :  { %7702 = vmatprep.subr.mxu0 %v7457_v23  ;;  %7773 = vmatprep.subr.mxu1 %v7459_v41  ;;  %v7881_v23 = vld [vmem:[#allocation18 + $0x1580] sm:$0xff]  ;;  %v7883_v41 = vld [vmem:[#allocation18 + $0x1590] sm:$0xff] }
 0x7fc   :  { %7703 = vmatpush1.msra.mxu0 %v7456_v38  ;;  %7774 = vmatpush1.msra.mxu1 %v7458_v51  ;;  %v7874_v38 = vld [vmem:[#allocation18 + $0x1548] sm:$0xff]  ;;  %v7876_v51 = vld [vmem:[#allocation18 + $0x1558] sm:$0xff] }
 0x7fd   :  { %7704 = vmatprep.subr.mxu0 %v7449_v43  ;;  %7775 = vmatprep.subr.mxu1 %v7451_v5  ;;  %v7873_v43 = vld [vmem:[#allocation18 + $0x1540] sm:$0xff]  ;;  %v7875_v5 = vld [vmem:[#allocation18 + $0x1550] sm:$0xff] }
 0x7fe   :  { %7705 = vmatpush1.msra.mxu0 %v7448_v3  ;;  %7776 = vmatpush1.msra.mxu1 %v7450_v60  ;;  %v7866_v3 = vld [vmem:[#allocation18 + $0x1508] sm:$0xff]  ;;  %v7868_v60 = vld [vmem:[#allocation18 + $0x1518] sm:$0xff] }
 0x7ff   :  { %7706 = vmatprep.subr.mxu0 %v7441_v20  ;;  %7777 = vmatprep.subr.mxu1 %v7443_v33  ;;  %v7865_v20 = vld [vmem:[#allocation18 + $0x1500] sm:$0xff]  ;;  %v7867_v33 = vld [vmem:[#allocation18 + $0x1510] sm:$0xff] }
 0x800   :  { %7707 = vmatpush1.msra.mxu0 %v7440_v30  ;;  %7778 = vmatpush1.msra.mxu1 %v7442_v15  ;;  %v7858_v30 = vld [vmem:[#allocation18 + $0x14c8] sm:$0xff]  ;;  %v7860_v15 = vld [vmem:[#allocation18 + $0x14d8] sm:$0xff] }
 0x801   :  { %7708 = vmatprep.subr.mxu0 %v7433_v50  ;;  %7779 = vmatprep.subr.mxu1 %v7435_v28  ;;  %v7857_v50 = vld [vmem:[#allocation18 + $0x14c0] sm:$0xff]  ;;  %v7859_v28 = vld [vmem:[#allocation18 + $0x14d0] sm:$0xff] }
 0x802   :  { %7709 = vmatpush1.msra.mxu0 %v7432_v24  ;;  %7780 = vmatpush1.msra.mxu1 %v7434_v48  ;;  %v7850_v24 = vld [vmem:[#allocation18 + $0x1488] sm:$0xff]  ;;  %v7852_v48 = vld [vmem:[#allocation18 + $0x1498] sm:$0xff] }
 0x803   :  { %7710 = vmatprep.subr.mxu0 %v7425_v57  ;;  %7781 = vmatprep.subr.mxu1 %v7427_v40  ;;  %v7849_v57 = vld [vmem:[#allocation18 + $0x1480] sm:$0xff]  ;;  %v7851_v40 = vld [vmem:[#allocation18 + $0x1490] sm:$0xff] }
 0x804   :  { %7711 = vmatpush1.msra.mxu0 %v7424_v4  ;;  %7782 = vmatpush1.msra.mxu1 %v7426_v21  ;;  %v7842_v4 = vld [vmem:[#allocation18 + $0x1448] sm:$0xff]  ;;  %v7844_v21 = vld [vmem:[#allocation18 + $0x1458] sm:$0xff] }
 0x805   :  { %7712 = vmatprep.subr.mxu0 %v7417_v13  ;;  %7783 = vmatprep.subr.mxu1 %v7419_v39  ;;  %v7841_v13 = vld [vmem:[#allocation18 + $0x1440] sm:$0xff]  ;;  %v7843_v39 = vld [vmem:[#allocation18 + $0x1450] sm:$0xff] }
 0x806   :  { %7713 = vmatpush1.msra.mxu0 %v7416_v14  ;;  %7746 = vmatprep.mubr.f32.mxu0 %v14681_v6  ;;  %v7834_v14 = vld [vmem:[#allocation18 + $0x1408] sm:$0xff] }
 0x807   :  { %7784 = vmatpush1.msra.mxu1 %v7418_v63  ;;  %7817 = vmatprep.mubr.f32.mxu1 %v14681_v6  ;;  %v7836_v63 = vld [vmem:[#allocation18 + $0x1418] sm:$0xff] }
 0x808   :  { %7747 = vmatmul.mubr.f32.vlgmr.msra.gmra.mxu0 %v14487_v53  ;;  %7818 = vmatmul.mubr.f32.vlgmr.msra.gmra.mxu1 %v14487_v53  ;;  %v7929_v53 = vld [vmem:[#allocation18 + $0x1700] sm:$0xff] }
 0x809   :  { %7961 = vmatprep.subr.mxu0 %v7954_v42  ;;  %8032 = vmatprep.subr.mxu1 %v7956_v56  ;;  %v7833_v42 = vld [vmem:[#allocation18 + $0x1400] sm:$0xff]  ;;  %v7835_v56 = vld [vmem:[#allocation18 + $0x1410] sm:$0xff] }
 0x80a   :  { %7962 = vmatpush1.msra.mxu0 %v7953_v44  ;;  %8033 = vmatpush1.msra.mxu1 %v7955_v37  ;;  %v14498_v44 = vmax.f32 %v14445_v22, 0.0  ;;  %v7958_v37 = vld [vmem:[#allocation18 + $0x17e8] sm:$0xff]  ;;  %v7949_v22 = vld [vmem:[#allocation18 + $0x17a0] sm:$0xff] }
 0x80b   :  { %7963 = vmatprep.subr.mxu0 %v7946_v10  ;;  %8034 = vmatprep.subr.mxu1 %v7948_v29  ;;  %v7960_v10 = vld [vmem:[#allocation18 + $0x17f8] sm:$0xff]  ;;  %v7957_v29 = vld [vmem:[#allocation18 + $0x17e0] sm:$0xff] }
 0x80c   :  { %7964 = vmatpush1.msra.mxu0 %v7945_v1  ;;  %8035 = vmatpush1.msra.mxu1 %v7947_v36  ;;  %v7959_v1 = vld [vmem:[#allocation18 + $0x17f0] sm:$0xff]  ;;  %v7950_v36 = vld [vmem:[#allocation18 + $0x17a8] sm:$0xff] }
 0x80d   :  { %7965 = vmatprep.subr.mxu0 %v7938_v62  ;;  %8036 = vmatprep.subr.mxu1 %v7940_v11  ;;  %v7952_v62 = vld [vmem:[#allocation18 + $0x17b8] sm:$0xff]  ;;  %v7951_v11 = vld [vmem:[#allocation18 + $0x17b0] sm:$0xff] }
 0x80e   :  { %7966 = vmatpush1.msra.mxu0 %v7937_v46  ;;  %8037 = vmatpush1.msra.mxu1 %v7939_v27  ;;  %v7942_v46 = vld [vmem:[#allocation18 + $0x1768] sm:$0xff]  ;;  %v7944_v27 = vld [vmem:[#allocation18 + $0x1778] sm:$0xff] }
 0x80f   :  { %7967 = vmatprep.subr.mxu0 %v7930_v34  ;;  %8038 = vmatprep.subr.mxu1 %v7932_v19  ;;  %v7941_v34 = vld [vmem:[#allocation18 + $0x1760] sm:$0xff]  ;;  %v7943_v19 = vld [vmem:[#allocation18 + $0x1770] sm:$0xff] }
 0x810   :  { %7968 = vmatpush1.msra.mxu0 %v7929_v53  ;;  %8039 = vmatpush1.msra.mxu1 %v7931_v52  ;;  %v7934_v53 = vld [vmem:[#allocation18 + $0x1728] sm:$0xff]  ;;  %v7936_v52 = vld [vmem:[#allocation18 + $0x1738] sm:$0xff] }
 0x811   :  { %7969 = vmatprep.subr.mxu0 %v7922_v59  ;;  %8040 = vmatprep.subr.mxu1 %v7924_v49  ;;  %v7933_v59 = vld [vmem:[#allocation18 + $0x1720] sm:$0xff]  ;;  %v7935_v49 = vld [vmem:[#allocation18 + $0x1730] sm:$0xff] }
 0x812   :  { %7970 = vmatpush1.msra.mxu0 %v7921_v47  ;;  %8041 = vmatpush1.msra.mxu1 %v7923_v0  ;;  %v7926_v47 = vld [vmem:[#allocation18 + $0x16e8] sm:$0xff]  ;;  %v7928_v0 = vld [vmem:[#allocation18 + $0x16f8] sm:$0xff] }
 0x813   :  { %7971 = vmatprep.subr.mxu0 %v7914_v35  ;;  %8042 = vmatprep.subr.mxu1 %v7916_v9  ;;  %v7925_v35 = vld [vmem:[#allocation18 + $0x16e0] sm:$0xff]  ;;  %v7927_v9 = vld [vmem:[#allocation18 + $0x16f0] sm:$0xff] }
 0x814   :  { %7972 = vmatpush1.msra.mxu0 %v7913_v45  ;;  %8043 = vmatpush1.msra.mxu1 %v7915_v32  ;;  %v7918_v45 = vld [vmem:[#allocation18 + $0x16a8] sm:$0xff]  ;;  %v7920_v32 = vld [vmem:[#allocation18 + $0x16b8] sm:$0xff] }
 0x815   :  { %7973 = vmatprep.subr.mxu0 %v7906_v31  ;;  %8044 = vmatprep.subr.mxu1 %v7908_v12  ;;  %v7917_v31 = vld [vmem:[#allocation18 + $0x16a0] sm:$0xff]  ;;  %v7919_v12 = vld [vmem:[#allocation18 + $0x16b0] sm:$0xff] }
 0x816   :  { %7974 = vmatpush1.msra.mxu0 %v7905_v2  ;;  %8045 = vmatpush1.msra.mxu1 %v7907_v54  ;;  %v7910_v2 = vld [vmem:[#allocation18 + $0x1668] sm:$0xff]  ;;  %v7912_v54 = vld [vmem:[#allocation18 + $0x1678] sm:$0xff] }
 0x817   :  { %7975 = vmatprep.subr.mxu0 %v7898_v25  ;;  %8046 = vmatprep.subr.mxu1 %v7900_v55  ;;  %v7909_v25 = vld [vmem:[#allocation18 + $0x1660] sm:$0xff]  ;;  %v7911_v55 = vld [vmem:[#allocation18 + $0x1670] sm:$0xff] }
 0x818   :  { %7976 = vmatpush1.msra.mxu0 %v7897_v8  ;;  %8047 = vmatpush1.msra.mxu1 %v7899_v26  ;;  %v7902_v8 = vld [vmem:[#allocation18 + $0x1628] sm:$0xff]  ;;  %v7904_v26 = vld [vmem:[#allocation18 + $0x1638] sm:$0xff] }
 0x819   :  { %7977 = vmatprep.subr.mxu0 %v7890_v7  ;;  %8048 = vmatprep.subr.mxu1 %v7892_v18  ;;  %v7901_v7 = vld [vmem:[#allocation18 + $0x1620] sm:$0xff]  ;;  %v7903_v18 = vld [vmem:[#allocation18 + $0x1630] sm:$0xff] }
 0x81a   :  { %7978 = vmatpush1.msra.mxu0 %v7889_v16  ;;  %8049 = vmatpush1.msra.mxu1 %v7891_v17  ;;  %v7894_v16 = vld [vmem:[#allocation18 + $0x15e8] sm:$0xff]  ;;  %v7896_v17 = vld [vmem:[#allocation18 + $0x15f8] sm:$0xff] }
 0x81b   :  { %7979 = vmatprep.subr.mxu0 %v7882_v58  ;;  %8050 = vmatprep.subr.mxu1 %v7884_v61  ;;  %v7893_v58 = vld [vmem:[#allocation18 + $0x15e0] sm:$0xff]  ;;  %v7895_v61 = vld [vmem:[#allocation18 + $0x15f0] sm:$0xff] }
 0x81c   :  { %7980 = vmatpush1.msra.mxu0 %v7881_v23  ;;  %8051 = vmatpush1.msra.mxu1 %v7883_v41  ;;  %v7886_v23 = vld [vmem:[#allocation18 + $0x15a8] sm:$0xff]  ;;  %v7888_v41 = vld [vmem:[#allocation18 + $0x15b8] sm:$0xff] }
 0x81d   :  { %7981 = vmatprep.subr.mxu0 %v7874_v38  ;;  %8052 = vmatprep.subr.mxu1 %v7876_v51  ;;  %v7885_v38 = vld [vmem:[#allocation18 + $0x15a0] sm:$0xff]  ;;  %v7887_v51 = vld [vmem:[#allocation18 + $0x15b0] sm:$0xff] }
 0x81e   :  { %7982 = vmatpush1.msra.mxu0 %v7873_v43  ;;  %8053 = vmatpush1.msra.mxu1 %v7875_v5  ;;  %v7878_v43 = vld [vmem:[#allocation18 + $0x1568] sm:$0xff]  ;;  %v7880_v5 = vld [vmem:[#allocation18 + $0x1578] sm:$0xff] }
 0x81f   :  { %7983 = vmatprep.subr.mxu0 %v7866_v3  ;;  %8054 = vmatprep.subr.mxu1 %v7868_v60  ;;  %v7877_v3 = vld [vmem:[#allocation18 + $0x1560] sm:$0xff]  ;;  %v7879_v60 = vld [vmem:[#allocation18 + $0x1570] sm:$0xff] }
 0x820   :  { %7984 = vmatpush1.msra.mxu0 %v7865_v20  ;;  %8055 = vmatpush1.msra.mxu1 %v7867_v33  ;;  %v7870_v20 = vld [vmem:[#allocation18 + $0x1528] sm:$0xff]  ;;  %v7872_v33 = vld [vmem:[#allocation18 + $0x1538] sm:$0xff] }
 0x821   :  { %7985 = vmatprep.subr.mxu0 %v7858_v30  ;;  %8056 = vmatprep.subr.mxu1 %v7860_v15  ;;  %v7869_v30 = vld [vmem:[#allocation18 + $0x1520] sm:$0xff]  ;;  %v7871_v15 = vld [vmem:[#allocation18 + $0x1530] sm:$0xff] }
 0x822   :  { %7986 = vmatpush1.msra.mxu0 %v7857_v50  ;;  %8057 = vmatpush1.msra.mxu1 %v7859_v28  ;;  %v7862_v50 = vld [vmem:[#allocation18 + $0x14e8] sm:$0xff]  ;;  %v7864_v28 = vld [vmem:[#allocation18 + $0x14f8] sm:$0xff] }
 0x823   :  { %7987 = vmatprep.subr.mxu0 %v7850_v24  ;;  %8058 = vmatprep.subr.mxu1 %v7852_v48  ;;  %v7861_v24 = vld [vmem:[#allocation18 + $0x14e0] sm:$0xff]  ;;  %v7863_v48 = vld [vmem:[#allocation18 + $0x14f0] sm:$0xff] }
 0x824   :  { %7988 = vmatpush1.msra.mxu0 %v7849_v57  ;;  %8059 = vmatpush1.msra.mxu1 %v7851_v40  ;;  %v7854_v57 = vld [vmem:[#allocation18 + $0x14a8] sm:$0xff]  ;;  %v7856_v40 = vld [vmem:[#allocation18 + $0x14b8] sm:$0xff] }
 0x825   :  { %7989 = vmatprep.subr.mxu0 %v7842_v4  ;;  %8060 = vmatprep.subr.mxu1 %v7844_v21  ;;  %v7853_v4 = vld [vmem:[#allocation18 + $0x14a0] sm:$0xff]  ;;  %v7855_v21 = vld [vmem:[#allocation18 + $0x14b0] sm:$0xff] }
 0x826   :  { %7990 = vmatpush1.msra.mxu0 %v7841_v13  ;;  %8061 = vmatpush1.msra.mxu1 %v7843_v39  ;;  %v7846_v13 = vld [vmem:[#allocation18 + $0x1468] sm:$0xff]  ;;  %v7848_v39 = vld [vmem:[#allocation18 + $0x1478] sm:$0xff] }
 0x827   :  { %7991 = vmatprep.subr.mxu0 %v7834_v14  ;;  %8062 = vmatprep.subr.mxu1 %v7836_v63  ;;  %v7845_v14 = vld [vmem:[#allocation18 + $0x1460] sm:$0xff]  ;;  %v7847_v63 = vld [vmem:[#allocation18 + $0x1470] sm:$0xff] }
 0x828   :  { %7992 = vmatpush1.msra.mxu0 %v7833_v42  ;;  %8025 = vmatprep.mubr.f32.mxu0 %v14681_v6  ;;  %v7838_v42 = vld [vmem:[#allocation18 + $0x1428] sm:$0xff] }
 0x829   :  { %8063 = vmatpush1.msra.mxu1 %v7835_v56  ;;  %8096 = vmatprep.mubr.f32.mxu1 %v14681_v6  ;;  %v7840_v56 = vld [vmem:[#allocation18 + $0x1438] sm:$0xff] }
 0x82a   :  { %8026 = vmatmul.mubr.f32.vlgmr.msra.gmra.mxu0 %v14498_v44  ;;  %8097 = vmatmul.mubr.f32.vlgmr.msra.gmra.mxu1 %v14498_v44 }
 0x82b   :  { %8103 = vmatprep.subr.mxu0 %v7958_v37  ;;  %8174 = vmatprep.subr.mxu1 %v7960_v10  ;;  %v7837_v37 = vld [vmem:[#allocation18 + $0x1420] sm:$0xff]  ;;  %v7839_v10 = vld [vmem:[#allocation18 + $0x1430] sm:$0xff] }
 0x82c   :  { %8104 = vmatpush1.msra.mxu0 %v7957_v29  ;;  %8175 = vmatpush1.msra.mxu1 %v7959_v1  ;;  %v8342_v29 = vld [vmem:[#allocation21 + $0xf8] sm:$0xff] }
 0x82d   :  { %8105 = vmatprep.subr.mxu0 %v7950_v36  ;;  %8176 = vmatprep.subr.mxu1 %v7952_v62  ;;  %v8374_v1 = vld [vmem:[#allocation21 + $0x1f8] sm:$0xff] }
 0x82e   :  { %8106 = vmatpush1.msra.mxu0 %v7949_v22  ;;  %8177 = vmatpush1.msra.mxu1 %v7951_v11  ;;  %v8326_v36 = vld [vmem:[#allocation21 + $0x78] sm:$0xff]  ;;  %v8341_v22 = vld [vmem:[#allocation21 + $0xf0] sm:$0xff] }
 0x82f   :  { %8107 = vmatprep.subr.mxu0 %v7942_v46  ;;  %8178 = vmatprep.subr.mxu1 %v7944_v27  ;;  %v8358_v62 = vld [vmem:[#allocation21 + $0x178] sm:$0xff]  ;;  %v8373_v11 = vld [vmem:[#allocation21 + $0x1f0] sm:$0xff] }
 0x830   :  { %8108 = vmatpush1.msra.mxu0 %v7941_v34  ;;  %8179 = vmatpush1.msra.mxu1 %v7943_v19  ;;  %v8325_v46 = vld [vmem:[#allocation21 + $0x70] sm:$0xff]  ;;  %v8340_v34 = vld [vmem:[#allocation21 + $0xe8] sm:$0xff] }
 0x831   :  { %8109 = vmatprep.subr.mxu0 %v7934_v53  ;;  %8180 = vmatprep.subr.mxu1 %v7936_v52  ;;  %v8357_v27 = vld [vmem:[#allocation21 + $0x170] sm:$0xff]  ;;  %v8372_v19 = vld [vmem:[#allocation21 + $0x1e8] sm:$0xff]  ;;  %v8339_v52 = vld [vmem:[#allocation21 + $0xe0] sm:$0xff] }
 0x832   :  { %8110 = vmatpush1.msra.mxu0 %v7933_v59  ;;  %8181 = vmatpush1.msra.mxu1 %v7935_v49  ;;  %v8356_v53 = vld [vmem:[#allocation21 + $0x168] sm:$0xff]  ;;  %v8371_v59 = vld [vmem:[#allocation21 + $0x1e0] sm:$0xff] }
 0x833   :  { %8111 = vmatprep.subr.mxu0 %v7926_v47  ;;  %8182 = vmatprep.subr.mxu1 %v7928_v0  ;;  %v8355_v49 = vld [vmem:[#allocation21 + $0x160] sm:$0xff]  ;;  %v8338_v47 = vld [vmem:[#allocation21 + $0xd8] sm:$0xff] }
 0x834   :  { %8112 = vmatpush1.msra.mxu0 %v7925_v35  ;;  %8183 = vmatpush1.msra.mxu1 %v7927_v9  ;;  %v8370_v0 = vld [vmem:[#allocation21 + $0x1d8] sm:$0xff] }
 0x835   :  { %8113 = vmatprep.subr.mxu0 %v7918_v45  ;;  %8184 = vmatprep.subr.mxu1 %v7920_v32  ;;  %v8322_v35 = vld [vmem:[#allocation21 + $0x58] sm:$0xff]  ;;  %v8337_v45 = vld [vmem:[#allocation21 + $0xd0] sm:$0xff] }
 0x836   :  { %8114 = vmatpush1.msra.mxu0 %v7917_v31  ;;  %8185 = vmatpush1.msra.mxu1 %v7919_v12  ;;  %v8354_v9 = vld [vmem:[#allocation21 + $0x158] sm:$0xff]  ;;  %v8369_v32 = vld [vmem:[#allocation21 + $0x1d0] sm:$0xff] }
 0x837   :  { %8115 = vmatprep.subr.mxu0 %v7910_v2  ;;  %8186 = vmatprep.subr.mxu1 %v7912_v54  ;;  %v8321_v31 = vld [vmem:[#allocation21 + $0x50] sm:$0xff]  ;;  %v8336_v2 = vld [vmem:[#allocation21 + $0xc8] sm:$0xff] }
 0x838   :  { %8116 = vmatpush1.msra.mxu0 %v7909_v25  ;;  %8187 = vmatpush1.msra.mxu1 %v7911_v55  ;;  %v8353_v12 = vld [vmem:[#allocation21 + $0x150] sm:$0xff]  ;;  %v8368_v54 = vld [vmem:[#allocation21 + $0x1c8] sm:$0xff] }
 0x839   :  { %8117 = vmatprep.subr.mxu0 %v7902_v8  ;;  %8188 = vmatprep.subr.mxu1 %v7904_v26  ;;  %v8320_v25 = vld [vmem:[#allocation21 + $0x48] sm:$0xff]  ;;  %v8335_v8 = vld [vmem:[#allocation21 + $0xc0] sm:$0xff] }
 0x83a   :  { %8118 = vmatpush1.msra.mxu0 %v7901_v7  ;;  %8189 = vmatpush1.msra.mxu1 %v7903_v18  ;;  %v8352_v55 = vld [vmem:[#allocation21 + $0x148] sm:$0xff]  ;;  %v8367_v26 = vld [vmem:[#allocation21 + $0x1c0] sm:$0xff] }
 0x83b   :  { %8119 = vmatprep.subr.mxu0 %v7894_v16  ;;  %8190 = vmatprep.subr.mxu1 %v7896_v17  ;;  %v8319_v7 = vld [vmem:[#allocation21 + $0x40] sm:$0xff]  ;;  %v8334_v16 = vld [vmem:[#allocation21 + $0xb8] sm:$0xff] }
 0x83c   :  { %8120 = vmatpush1.msra.mxu0 %v7893_v58  ;;  %8191 = vmatpush1.msra.mxu1 %v7895_v61  ;;  %v8351_v18 = vld [vmem:[#allocation21 + $0x140] sm:$0xff]  ;;  %v8366_v17 = vld [vmem:[#allocation21 + $0x1b8] sm:$0xff] }
 0x83d   :  { %8121 = vmatprep.subr.mxu0 %v7886_v23  ;;  %8192 = vmatprep.subr.mxu1 %v7888_v41  ;;  %v8318_v58 = vld [vmem:[#allocation21 + $0x38] sm:$0xff]  ;;  %v8333_v23 = vld [vmem:[#allocation21 + $0xb0] sm:$0xff] }
 0x83e   :  { %8122 = vmatpush1.msra.mxu0 %v7885_v38  ;;  %8193 = vmatpush1.msra.mxu1 %v7887_v51  ;;  %v8350_v61 = vld [vmem:[#allocation21 + $0x138] sm:$0xff]  ;;  %v8365_v41 = vld [vmem:[#allocation21 + $0x1b0] sm:$0xff] }
 0x83f   :  { %8123 = vmatprep.subr.mxu0 %v7878_v43  ;;  %8194 = vmatprep.subr.mxu1 %v7880_v5  ;;  %v8317_v38 = vld [vmem:[#allocation21 + $0x30] sm:$0xff]  ;;  %v8332_v43 = vld [vmem:[#allocation21 + $0xa8] sm:$0xff] }
 0x840   :  { %8124 = vmatpush1.msra.mxu0 %v7877_v3  ;;  %8195 = vmatpush1.msra.mxu1 %v7879_v60  ;;  %v8349_v51 = vld [vmem:[#allocation21 + $0x130] sm:$0xff]  ;;  %v8364_v5 = vld [vmem:[#allocation21 + $0x1a8] sm:$0xff] }
 0x841   :  { %8125 = vmatprep.subr.mxu0 %v7870_v20  ;;  %8196 = vmatprep.subr.mxu1 %v7872_v33  ;;  %v8316_v3 = vld [vmem:[#allocation21 + $0x28] sm:$0xff]  ;;  %v8331_v20 = vld [vmem:[#allocation21 + $0xa0] sm:$0xff] }
 0x842   :  { %8126 = vmatpush1.msra.mxu0 %v7869_v30  ;;  %8197 = vmatpush1.msra.mxu1 %v7871_v15  ;;  %v8348_v60 = vld [vmem:[#allocation21 + $0x128] sm:$0xff]  ;;  %v8363_v33 = vld [vmem:[#allocation21 + $0x1a0] sm:$0xff] }
 0x843   :  { %8127 = vmatprep.subr.mxu0 %v7862_v50  ;;  %8198 = vmatprep.subr.mxu1 %v7864_v28  ;;  %v8315_v30 = vld [vmem:[#allocation21 + $0x20] sm:$0xff]  ;;  %v8330_v50 = vld [vmem:[#allocation21 + $0x98] sm:$0xff] }
 0x844   :  { %8128 = vmatpush1.msra.mxu0 %v7861_v24  ;;  %8199 = vmatpush1.msra.mxu1 %v7863_v48  ;;  %v8347_v15 = vld [vmem:[#allocation21 + $0x120] sm:$0xff]  ;;  %v8362_v28 = vld [vmem:[#allocation21 + $0x198] sm:$0xff] }
 0x845   :  { %8129 = vmatprep.subr.mxu0 %v7854_v57  ;;  %8200 = vmatprep.subr.mxu1 %v7856_v40  ;;  %v8314_v24 = vld [vmem:[#allocation21 + $0x18] sm:$0xff]  ;;  %v8329_v57 = vld [vmem:[#allocation21 + $0x90] sm:$0xff] }
 0x846   :  { %8130 = vmatpush1.msra.mxu0 %v7853_v4  ;;  %8201 = vmatpush1.msra.mxu1 %v7855_v21  ;;  %v8346_v48 = vld [vmem:[#allocation21 + $0x118] sm:$0xff]  ;;  %v8361_v40 = vld [vmem:[#allocation21 + $0x190] sm:$0xff] }
 0x847   :  { %8131 = vmatprep.subr.mxu0 %v7846_v13  ;;  %8202 = vmatprep.subr.mxu1 %v7848_v39  ;;  %v8313_v4 = vld [vmem:[#allocation21 + $0x10] sm:$0xff]  ;;  %v8328_v13 = vld [vmem:[#allocation21 + $0x88] sm:$0xff] }
 0x848   :  { %8132 = vmatpush1.msra.mxu0 %v7845_v14  ;;  %8203 = vmatpush1.msra.mxu1 %v7847_v63  ;;  %v8345_v21 = vld [vmem:[#allocation21 + $0x110] sm:$0xff]  ;;  %v8360_v39 = vld [vmem:[#allocation21 + $0x188] sm:$0xff] }
 0x849   :  { %8133 = vmatprep.subr.mxu0 %v7838_v42  ;;  %8204 = vmatprep.subr.mxu1 %v7840_v56  ;;  %v8312_v14 = vld [vmem:[#allocation21 + $0x8] sm:$0xff]  ;;  %v8327_v42 = vld [vmem:[#allocation21 + $0x80] sm:$0xff] }
 0x84a   :  { %8134 = vmatpush1.msra.mxu0 %v7837_v37  ;;  %8167 = vmatprep.mubr.f32.mxu0 %v14681_v6  ;;  %v8344_v63 = vld [vmem:[#allocation21 + $0x108] sm:$0xff]  ;;  %v8359_v56 = vld [vmem:[#allocation21 + $0x180] sm:$0xff] }
 0x84b   :  { %8205 = vmatpush1.msra.mxu1 %v7839_v10  ;;  %8238 = vmatprep.mubr.f32.mxu1 %v14681_v6  ;;  %v8324_v6 = vld [vmem:[#allocation21 + $0x68] sm:$0xff]  ;;  %v8311_v37 = vld [vmem:[#allocation21] sm:$0xff] }
 0x84c   :  { %8168 = vmatmul.mubr.f32.vlgmr.msra.gmra.mxu0 %v14498_v44  ;;  %8239 = vmatmul.mubr.f32.vlgmr.msra.gmra.mxu1 %v14498_v44  ;;  %v8323_v44 = vld [vmem:[#allocation21 + $0x60] sm:$0xff] }
 0x84d   :  { %9455 = vmatprep.subr.mxu0 %v8342_v29  ;;  %9490 = vmatprep.subr.mxu1 %v8374_v1  ;;  %v8343_v10 = vld [vmem:[#allocation21 + $0x100] sm:$0xff]  ;;  %v8406_v29 = vld [vmem:[#allocation21 + $0x2f8] sm:$0xff] }
 0x84e   :  { %9456 = vmatpush3.msra.mxu0 %v8326_v36  ;;  %9491 = vmatpush3.msra.mxu1 %v8358_v62  ;;  %v8438_v1 = vld [vmem:[#allocation21 + $0x3f8] sm:$0xff]  ;;  %v6067_v36 = vpop.f32.mrf.mxu0  ;;  %v6138_v62 = vpop.f32.mrf.mxu1 }
 0x84f   :  { %9457 = vmatprep.subr.mxu0 %v8341_v22  ;;  %9492 = vmatprep.subr.mxu1 %v8373_v11 }
 0x850   :  { %9458 = vmatpush3.msra.mxu0 %v8325_v46  ;;  %9493 = vmatpush3.msra.mxu1 %v8357_v27  ;;  %v6069_v22 = vpop.f32.mrf.mxu0  ;;  %v6140_v11 = vpop.f32.mrf.mxu1 }
 0x851   :  { %9459 = vmatprep.subr.mxu0 %v8340_v34  ;;  %9494 = vmatprep.subr.mxu1 %v8372_v19 }
 0x852   :  { %9460 = vmatpush3.msra.mxu0 %v8324_v6  ;;  %9495 = vmatpush3.msra.mxu1 %v8356_v53  ;;  %v14508_v46 = vpop.f32.mrf.mxu0  ;;  %v14510_v27 = vpop.f32.mrf.mxu1 }
 0x853   :  { %9461 = vmatprep.subr.mxu0 %v8339_v52  ;;  %9496 = vmatprep.subr.mxu1 %v8371_v59 }
 0x854   :  { %9462 = vmatpush3.msra.mxu0 %v8323_v44  ;;  %9497 = vmatpush3.msra.mxu1 %v8355_v49  ;;  %v14512_v34 = vpop.f32.mrf.mxu0  ;;  %v14514_v19 = vpop.f32.mrf.mxu1 }
 0x855   :  { %9463 = vmatprep.subr.mxu0 %v8338_v47  ;;  %9498 = vmatprep.subr.mxu1 %v8370_v0 }
 0x856   :  { %9464 = vmatpush3.msra.mxu0 %v8322_v35  ;;  %9499 = vmatpush3.msra.mxu1 %v8354_v9  ;;  %v6351_v6 = vpop.f32.mrf.mxu0  ;;  %v6422_v53 = vpop.f32.mrf.mxu1 }
 0x857   :  { %9465 = vmatprep.subr.mxu0 %v8337_v45  ;;  %9500 = vmatprep.subr.mxu1 %v8369_v32 }
 0x858   :  { %9466 = vmatpush3.msra.mxu0 %v8321_v31  ;;  %9501 = vmatpush3.msra.mxu1 %v8353_v12  ;;  %v6353_v52 = vpop.f32.mrf.mxu0  ;;  %v6424_v59 = vpop.f32.mrf.mxu1 }
 0x859   :  { %9467 = vmatprep.subr.mxu0 %v8336_v2  ;;  %9502 = vmatprep.subr.mxu1 %v8368_v54 }
 0x85a   :  { %9468 = vmatpush3.msra.mxu0 %v8320_v25  ;;  %9503 = vmatpush3.msra.mxu1 %v8352_v55  ;;  %v14516_v44 = vpop.f32.mrf.mxu0  ;;  %v14518_v49 = vpop.f32.mrf.mxu1 }
 0x85b   :  { %9469 = vmatprep.subr.mxu0 %v8335_v8  ;;  %9504 = vmatprep.subr.mxu1 %v8367_v26 }
 0x85c   :  { %9470 = vmatpush3.msra.mxu0 %v8319_v7  ;;  %9505 = vmatpush3.msra.mxu1 %v8351_v18  ;;  %v14520_v47 = vpop.f32.mrf.mxu0  ;;  %v14522_v0 = vpop.f32.mrf.mxu1 }
 0x85d   :  { %9471 = vmatprep.subr.mxu0 %v8334_v16  ;;  %9506 = vmatprep.subr.mxu1 %v8366_v17 }
 0x85e   :  { %9472 = vmatpush3.msra.mxu0 %v8318_v58  ;;  %9507 = vmatpush3.msra.mxu1 %v8350_v61  ;;  %v6764_v35 = vpop.f32.mrf.mxu0  ;;  %v6835_v9 = vpop.f32.mrf.mxu1 }
 0x85f   :  { %9473 = vmatprep.subr.mxu0 %v8333_v23  ;;  %9508 = vmatprep.subr.mxu1 %v8365_v41  ;;  %v8255_v23 = vlaneseq }
 0x860   :  { %9474 = vmatpush3.msra.mxu0 %v8317_v38  ;;  %9509 = vmatpush3.msra.mxu1 %v8349_v51  ;;  %v6766_v45 = vpop.f32.mrf.mxu0  ;;  %v6837_v32 = vpop.f32.mrf.mxu1 }
 0x861   :  { %9475 = vmatprep.subr.mxu0 %v8332_v43  ;;  %9510 = vmatprep.subr.mxu1 %v8364_v5  ;;  %v14540_v51 = vshrl.u32 %v8255_v23, 7  ;;  %v6352_v43 = vadd.f32 %v6351_v6, %v6067_v36  ;;  %v6423_v5 = vadd.f32 %v6422_v53, %v6138_v62 }
 0x862   :  { %9476 = vmatpush3.msra.mxu0 %v8316_v3  ;;  %9511 = vmatpush3.msra.mxu1 %v8348_v60  ;;  %v14524_v31 = vpop.f32.mrf.mxu0  ;;  %v14526_v12 = vpop.f32.mrf.mxu1 }
 0x863   :  { %9477 = vmatprep.subr.mxu0 %v8331_v20  ;;  %9512 = vmatprep.subr.mxu1 %v8363_v33  ;;  %v6354_v20 = vadd.f32 %v6353_v52, %v6069_v22  ;;  %v6425_v33 = vadd.f32 %v6424_v59, %v6140_v11 }
 0x864   :  { %9478 = vmatpush3.msra.mxu0 %v8315_v30  ;;  %9513 = vmatpush3.msra.mxu1 %v8347_v15  ;;  %v14528_v2 = vpop.f32.mrf.mxu0  ;;  %v14530_v54 = vpop.f32.mrf.mxu1  ;;  %v6982_v30 = vadd.f32 %v6764_v35, %v6352_v43  ;;  %v6984_v15 = vadd.f32 %v6835_v9, %v6423_v5  ;;  %v8390_v43 = vld [vmem:[#allocation21 + $0x278] sm:$0xff] }
 0x865   :  { %9479 = vmatprep.subr.mxu0 %v8330_v50  ;;  %9514 = vmatprep.subr.mxu1 %v8362_v28  ;;  %v8257_v50 = vsub.s32 0, %v14540_v51  ;;  %v8265_v28 = vsub.s32 2, %v14540_v51  ;;  %v8422_v5 = vld [vmem:[#allocation21 + $0x378] sm:$0xff] }
 0x866   :  { %9480 = vmatpush3.msra.mxu0 %v8314_v24  ;;  %9515 = vmatpush3.msra.mxu1 %v8346_v48  ;;  %v7185_v25 = vpop.f32.mrf.mxu0  ;;  %v7256_v55 = vpop.f32.mrf.mxu1  ;;  %v8261_v24 = vsub.s32 1, %v14540_v51  ;;  %v8269_v48 = vsub.s32 3, %v14540_v51 }
 0x867   :  { %9481 = vmatprep.subr.mxu0 %v8329_v57  ;;  %9516 = vmatprep.subr.mxu1 %v8361_v40  ;;  %v6983_v57 = vadd.f32 %v6766_v45, %v6354_v20  ;;  %v6985_v40 = vadd.f32 %v6837_v32, %v6425_v33  ;;  %v8389_v20 = vld [vmem:[#allocation21 + $0x270] sm:$0xff] }
 0x868   :  { %9482 = vmatpush3.msra.mxu0 %v8313_v4  ;;  %9517 = vmatpush3.msra.mxu1 %v8345_v21  ;;  %v7187_v8 = vpop.f32.mrf.mxu0  ;;  %v7258_v26 = vpop.f32.mrf.mxu1  ;;  %v7403_v4 = vadd.f32 %v7185_v25, %v6982_v30  ;;  %v7405_v21 = vadd.f32 %v7256_v55, %v6984_v15  ;;  %v8421_v33 = vld [vmem:[#allocation21 + $0x370] sm:$0xff]  ;;  %v8404_v30 = vld [vmem:[#allocation21 + $0x2e8] sm:$0xff] }
 0x869   :  { %9483 = vmatprep.subr.mxu0 %v8328_v13  ;;  %9518 = vmatprep.subr.mxu1 %v8360_v39  ;;  %v14550_v13 = vld [vmem:[#allocation19] sm:$0xff]  ;;  %v8436_v15 = vld [vmem:[#allocation21 + $0x3e8] sm:$0xff] }
 0x86a   :  { %9484 = vmatpush3.msra.mxu0 %v8312_v14  ;;  %9519 = vmatpush3.msra.mxu1 %v8344_v63  ;;  %v7404_v63 = vadd.f32 %v7187_v8, %v6983_v57  ;;  %v8266_v36 = vrot.slane %v14550_v13, %v8265_v28  ;;  %v8262_v62 = vrot.slane %v14550_v13, %v8261_v24  ;;  %v8420_v28 = vld [vmem:[#allocation21 + $0x368] sm:$0xff]  ;;  %v8403_v24 = vld [vmem:[#allocation21 + $0x2e0] sm:$0xff] }
 0x86b   :  { %9485 = vmatprep.subr.mxu0 %v8327_v42  ;;  %9520 = vmatprep.subr.mxu1 %v8359_v56  ;;  %v7406_v42 = vadd.f32 %v7258_v26, %v6985_v40  ;;  %v8270_v22 = vrot.slane %v14550_v13, %v8269_v48  ;;  %v8435_v48 = vld [vmem:[#allocation21 + $0x3e0] sm:$0xff] }
 0x86c   :  { %9486 = vmatpush3.msra.mxu0 %v8311_v37  ;;  %9521 = vmatpush3.msra.mxu1 %v8343_v10  ;;  %v8387_v57 = vld [vmem:[#allocation21 + $0x260] sm:$0xff] }
 0x86d   :  { %9525 = vmatprep.subr.mxu0 %v8406_v29  ;;  %9560 = vmatprep.subr.mxu1 %v8438_v1  ;;  %v8258_v29 = vrot.slane %v14550_v13, %v8257_v50  ;;  %v8388_v50 = vld [vmem:[#allocation21 + $0x268] sm:$0xff]  ;;  %v8419_v40 = vld [vmem:[#allocation21 + $0x360] sm:$0xff] }
 0x884   :  { %v14532_v7 = vpop.f32.mrf.mxu0  ;;  %v14534_v18 = vpop.f32.mrf.mxu1 }
 0x886   :  { %v14536_v16 = vpop.f32.mrf.mxu0  ;;  %v14538_v17 = vpop.f32.mrf.mxu1 }
 0x8a6   :  { %v7606_v58 = vpop.f32.mrf.mxu0  ;;  %v7677_v61 = vpop.f32.mrf.mxu1 }
 0x8a7   :  { %v7824_v56 = vadd.f32 %v7606_v58, %v7403_v4  ;;  %v7826_v37 = vadd.f32 %v7677_v61, %v7405_v21  ;;  %v8402_v4 = vld [vmem:[#allocation21 + $0x2d8] sm:$0xff] }
 0x8a8   :  { %v7608_v41 = vpop.f32.mrf.mxu0  ;;  %v7679_v38 = vpop.f32.mrf.mxu1  ;;  %v8434_v21 = vld [vmem:[#allocation21 + $0x3d8] sm:$0xff] }
 0x8a9   :  { %v7825_v11 = vadd.f32 %v7608_v41, %v7404_v63  ;;  %v7827_v6 = vadd.f32 %v7679_v38, %v7406_v42  ;;  %v8405_v41 = vld [vmem:[#allocation21 + $0x2f0] sm:$0xff]  ;;  %v8386_v63 = vld [vmem:[#allocation21 + $0x258] sm:$0xff] }
 0x8aa   :  { %v8437_v38 = vld [vmem:[#allocation21 + $0x3f0] sm:$0xff]  ;;  %v8418_v42 = vld [vmem:[#allocation21 + $0x358] sm:$0xff] }
 0x8c8   :  { %v14542_v3 = vpop.f32.mrf.mxu0  ;;  %v14544_v60 = vpop.f32.mrf.mxu1 }
 0x8ca   :  { %v14552_v39 = vpop.f32.mrf.mxu0  ;;  %v14554_v14 = vpop.f32.mrf.mxu1 }
 0x8ea   :  { %v8027_v10 = vpop.f32.mrf.mxu0  ;;  %v8098_v1 = vpop.f32.mrf.mxu1 }
 0x8eb   :  { %v8245_v53 = vadd.f32 %v8027_v10, %v7824_v56  ;;  %v8247_v52 = vadd.f32 %v8098_v1, %v7826_v37  ;;  %v8401_v56 = vld [vmem:[#allocation21 + $0x2d0] sm:$0xff]  ;;  %v8400_v1 = vld [vmem:[#allocation21 + $0x2c8] sm:$0xff] }
 0x8ec   :  { %v8029_v59 = vpop.f32.mrf.mxu0  ;;  %v8100_v35 = vpop.f32.mrf.mxu1  ;;  %v8433_v37 = vld [vmem:[#allocation21 + $0x3d0] sm:$0xff] }
 0x8ed   :  { %v8246_v9 = vadd.f32 %v8029_v59, %v7825_v11  ;;  %v8248_v45 = vadd.f32 %v8100_v35, %v7827_v6  ;;  %v8295_v32 = vadd.f32 %v8258_v29, %v8245_v53  ;;  %v8297_v25 = vadd.f32 %v8266_v36, %v8247_v52  ;;  %v8385_v10 = vld [vmem:[#allocation21 + $0x250] sm:$0xff]  ;;  %v8432_v36 = vld [vmem:[#allocation21 + $0x3c8] sm:$0xff]  ;;  %v8399_v11 = vld [vmem:[#allocation21 + $0x2c0] sm:$0xff] }
 0x8ee   :  { %v8417_v29 = vld [vmem:[#allocation21 + $0x350] sm:$0xff]  ;;  %v8431_v6 = vld [vmem:[#allocation21 + $0x3c0] sm:$0xff]  ;;  %v8398_v59 = vld [vmem:[#allocation21 + $0x2b8] sm:$0xff] }
 0x8ef   :  { %v8296_v55 = vadd.f32 %v8262_v62, %v8246_v9  ;;  %v8298_v8 = vadd.f32 %v8270_v22, %v8248_v45  ;;  %v8303_v61 = vmax.f32 %v8295_v32, 0.0  ;;  %v8305_v23 = vmax.f32 %v8297_v25, 0.0  ;;  %v8384_v62 = vld [vmem:[#allocation21 + $0x248] sm:$0xff]  ;;  %v8383_v53 = vld [vmem:[#allocation21 + $0x240] sm:$0xff]  ;;  %v8430_v35 = vld [vmem:[#allocation21 + $0x3b8] sm:$0xff] }
 0x8f0   :  { %v8416_v22 = vld [vmem:[#allocation21 + $0x348] sm:$0xff]  ;;  %v8415_v52 = vld [vmem:[#allocation21 + $0x340] sm:$0xff]  ;;  %v8382_v9 = vld [vmem:[#allocation21 + $0x238] sm:$0xff] }
 0x8f1   :  { %v8304_v26 = vmax.f32 %v8296_v55, 0.0  ;;  %v8306_v58 = vmax.f32 %v8298_v8, 0.0  ;;  %v8414_v45 = vld [vmem:[#allocation21 + $0x338] sm:$0xff]  ;;  %v8397_v32 = vld [vmem:[#allocation21 + $0x2b0] sm:$0xff] }
 0x8f2   :  { %v8429_v25 = vld [vmem:[#allocation21 + $0x3b0] sm:$0xff] }
 0x8f3   :  { %8510 = vmatprep.mubr.f32.mxu0 %v8304_v26  ;;  %8580 = vmatprep.mubr.f32.mxu1 %v8306_v58  ;;  %v8381_v55 = vld [vmem:[#allocation21 + $0x230] sm:$0xff]  ;;  %v6494_v26 = vadd.f32 %v14516_v44, %v14508_v46  ;;  %v6565_v58 = vadd.f32 %v14518_v49, %v14510_v27  ;;  %v8281_v44 = vsub.s32 6, %v14540_v51  ;;  %v8395_v49 = vld [vmem:[#allocation21 + $0x2a0] sm:$0xff] }
 0x8f4   :  { %8511 = vmatmul.mubr.f32.vlgmr.msra.gmra.mxu0 %v8303_v61  ;;  %8581 = vmatmul.mubr.f32.vlgmr.msra.gmra.mxu1 %v8305_v23  ;;  %v8413_v8 = vld [vmem:[#allocation21 + $0x330] sm:$0xff]  ;;  %v8396_v61 = vld [vmem:[#allocation21 + $0x2a8] sm:$0xff] }
 0x8f5   :  { %9526 = vmatpush3.msra.mxu0 %v8390_v43  ;;  %9561 = vmatpush3.msra.mxu1 %v8422_v5  ;;  %v8428_v23 = vld [vmem:[#allocation21 + $0x3a8] sm:$0xff]  ;;  %v6496_v43 = vadd.f32 %v14520_v47, %v14512_v34  ;;  %v6567_v5 = vadd.f32 %v14522_v0, %v14514_v19  ;;  %v6986_v46 = vadd.f32 %v14524_v31, %v6494_v26  ;;  %v8379_v47 = vld [vmem:[#allocation21 + $0x220] sm:$0xff]  ;;  %v8285_v31 = vsub.s32 7, %v14540_v51 }
 0x8f6   :  { %9527 = vmatprep.subr.mxu0 %v8405_v41  ;;  %9562 = vmatprep.subr.mxu1 %v8437_v38  ;;  %v8380_v41 = vld [vmem:[#allocation21 + $0x228] sm:$0xff]  ;;  %v6988_v27 = vadd.f32 %v14526_v12, %v6565_v58  ;;  %v8411_v0 = vld [vmem:[#allocation21 + $0x320] sm:$0xff] }
 0x8f7   :  { %9528 = vmatpush3.msra.mxu0 %v8389_v20  ;;  %9563 = vmatpush3.msra.mxu1 %v8421_v33  ;;  %v8412_v38 = vld [vmem:[#allocation21 + $0x328] sm:$0xff]  ;;  %v8273_v20 = vsub.s32 4, %v14540_v51  ;;  %v8427_v33 = vld [vmem:[#allocation21 + $0x3a0] sm:$0xff]  ;;  %v6987_v34 = vadd.f32 %v14528_v2, %v6496_v43  ;;  %v6989_v19 = vadd.f32 %v14530_v54, %v6567_v5  ;;  %v7407_v12 = vadd.f32 %v14532_v7, %v6986_v46 }
 0x8f8   :  { %9529 = vmatprep.subr.mxu0 %v8404_v30  ;;  %9564 = vmatprep.subr.mxu1 %v8436_v15  ;;  %v8277_v30 = vsub.s32 5, %v14540_v51  ;;  %v7409_v15 = vadd.f32 %v14534_v18, %v6988_v27  ;;  %v8282_v18 = vrot.slane %v14550_v13, %v8281_v44  ;;  %v8754_v43 = vld [vmem:[#allocation22] ss:$0 sm:$0xff] }
 0x8f9   :  { %9530 = vmatpush3.msra.mxu0 %v8388_v50  ;;  %9565 = vmatpush3.msra.mxu1 %v8420_v28  ;;  %v8394_v50 = vld [vmem:[#allocation21 + $0x298] sm:$0xff]  ;;  %v7408_v2 = vadd.f32 %v14536_v16, %v6987_v34  ;;  %v7410_v54 = vadd.f32 %v14538_v17, %v6989_v19  ;;  %v7828_v51 = vadd.f32 %v14542_v3, %v7407_v12 }
 0x8fa   :  { %9531 = vmatprep.subr.mxu0 %v8403_v24  ;;  %9566 = vmatprep.subr.mxu1 %v8435_v48  ;;  %v8426_v28 = vld [vmem:[#allocation21 + $0x398] sm:$0xff]  ;;  %v8274_v24 = vrot.slane %v14550_v13, %v8273_v20  ;;  %v7830_v7 = vadd.f32 %v14544_v60, %v7409_v15 }
 0x8fb   :  { %9532 = vmatpush3.msra.mxu0 %v8387_v57  ;;  %9567 = vmatpush3.msra.mxu1 %v8419_v40  ;;  %v8378_v48 = vld [vmem:[#allocation21 + $0x218] sm:$0xff]  ;;  %v8393_v40 = vld [vmem:[#allocation21 + $0x290] sm:$0xff]  ;;  %v7829_v16 = vadd.f32 %v14552_v39, %v7408_v2  ;;  %v7831_v3 = vadd.f32 %v14554_v14, %v7410_v54  ;;  %v8424_v39 = vld [vmem:[#allocation21 + $0x388] sm:$0xff] }
 0x8fc   :  { %9533 = vmatprep.subr.mxu0 %v8402_v4  ;;  %9568 = vmatprep.subr.mxu1 %v8434_v21  ;;  %v8410_v57 = vld [vmem:[#allocation21 + $0x318] sm:$0xff]  ;;  %v8425_v4 = vld [vmem:[#allocation21 + $0x390] sm:$0xff]  ;;  %v8423_v14 = vld [vmem:[#allocation21 + $0x380] sm:$0xff] }
 0x8fd   :  { %9534 = vmatpush3.msra.mxu0 %v8386_v63  ;;  %9569 = vmatpush3.msra.mxu1 %v8418_v42  ;;  %v8278_v63 = vrot.slane %v14550_v13, %v8277_v30  ;;  %v8286_v42 = vrot.slane %v14550_v13, %v8285_v31  ;;  %v8408_v13 = vld [vmem:[#allocation21 + $0x308] sm:$0xff] }
 0x8fe   :  { %9535 = vmatprep.subr.mxu0 %v8401_v56  ;;  %9570 = vmatprep.subr.mxu1 %v8433_v37  ;;  %v8377_v56 = vld [vmem:[#allocation21 + $0x210] sm:$0xff] }
 0x8ff   :  { %9536 = vmatpush3.msra.mxu0 %v8385_v10  ;;  %9571 = vmatpush3.msra.mxu1 %v8417_v29  ;;  %v8409_v10 = vld [vmem:[#allocation21 + $0x310] sm:$0xff]  ;;  %v8392_v29 = vld [vmem:[#allocation21 + $0x288] sm:$0xff] }
 0x900   :  { %9537 = vmatprep.subr.mxu0 %v8400_v1  ;;  %9572 = vmatprep.subr.mxu1 %v8432_v36 }
 0x901   :  { %9538 = vmatpush3.msra.mxu0 %v8384_v62  ;;  %9573 = vmatpush3.msra.mxu1 %v8416_v22  ;;  %v8376_v62 = vld [vmem:[#allocation21 + $0x208] sm:$0xff] }
 0x902   :  { %9539 = vmatprep.subr.mxu0 %v8399_v11  ;;  %9574 = vmatprep.subr.mxu1 %v8431_v6  ;;  %v8391_v6 = vld [vmem:[#allocation21 + $0x280] sm:$0xff] }
 0x903   :  { %9540 = vmatpush3.msra.mxu0 %v8383_v53  ;;  %9575 = vmatpush3.msra.mxu1 %v8415_v52 }
 0x904   :  { %9541 = vmatprep.subr.mxu0 %v8398_v59  ;;  %9576 = vmatprep.subr.mxu1 %v8430_v35  ;;  %v8375_v59 = vld [vmem:[#allocation21 + $0x200] sm:$0xff] }
 0x905   :  { %9542 = vmatpush3.msra.mxu0 %v8382_v9  ;;  %9577 = vmatpush3.msra.mxu1 %v8414_v45  ;;  %v8407_v45 = vld [vmem:[#allocation21 + $0x300] sm:$0xff] }
 0x906   :  { %9543 = vmatprep.subr.mxu0 %v8397_v32  ;;  %9578 = vmatprep.subr.mxu1 %v8429_v25 }
 0x907   :  { %9544 = vmatpush3.msra.mxu0 %v8381_v55  ;;  %9579 = vmatpush3.msra.mxu1 %v8413_v8 }
 0x908   :  { %9545 = vmatprep.subr.mxu0 %v8396_v61  ;;  %9580 = vmatprep.subr.mxu1 %v8428_v23 }
 0x909   :  { %9546 = vmatpush3.msra.mxu0 %v8380_v41  ;;  %9581 = vmatpush3.msra.mxu1 %v8412_v38 }
 0x90a   :  { %9547 = vmatprep.subr.mxu0 %v8395_v49  ;;  %9582 = vmatprep.subr.mxu1 %v8427_v33 }
 0x90b   :  { %9548 = vmatpush3.msra.mxu0 %v8379_v47  ;;  %9583 = vmatpush3.msra.mxu1 %v8411_v0 }
 0x90c   :  { %v8169_v21 = vpop.f32.mrf.mxu0  ;;  %v8240_v17 = vpop.f32.mrf.mxu1  ;;  %9549 = vmatprep.subr.mxu0 %v8394_v50  ;;  %9584 = vmatprep.subr.mxu1 %v8426_v28 }
 0x90d   :  { %v8249_v60 = vadd.f32 %v8169_v21, %v7828_v51  ;;  %v8251_v37 = vadd.f32 %v8240_v17, %v7830_v7  ;;  %9550 = vmatpush3.msra.mxu0 %v8378_v48  ;;  %9585 = vmatpush3.msra.mxu1 %v8410_v57 }
 0x90e   :  { %v8171_v1 = vpop.f32.mrf.mxu0  ;;  %v8242_v36 = vpop.f32.mrf.mxu1  ;;  %9551 = vmatprep.subr.mxu0 %v8393_v40  ;;  %9586 = vmatprep.subr.mxu1 %v8425_v4 }
 0x90f   :  { %v8250_v22 = vadd.f32 %v8171_v1, %v7829_v16  ;;  %v8252_v11 = vadd.f32 %v8242_v36, %v7831_v3  ;;  %9552 = vmatpush3.msra.mxu0 %v8377_v56  ;;  %v8299_v53 = vadd.f32 %v8274_v24, %v8249_v60  ;;  %v8301_v52 = vadd.f32 %v8282_v18, %v8251_v37 }
 0x910   :  { %9587 = vmatpush3.msra.mxu1 %v8409_v10  ;;  %9553 = vmatprep.subr.mxu0 %v8392_v29 }
 0x911   :  { %v8300_v35 = vadd.f32 %v8278_v63, %v8250_v22  ;;  %v8302_v9 = vadd.f32 %v8286_v42, %v8252_v11  ;;  %9588 = vmatprep.subr.mxu1 %v8424_v39  ;;  %9554 = vmatpush3.msra.mxu0 %v8376_v62  ;;  %v8307_v55 = vmax.f32 %v8299_v53, 0.0  ;;  %v8309_v8 = vmax.f32 %v8301_v52, 0.0 }
 0x912   :  { %9589 = vmatpush3.msra.mxu1 %v8408_v13  ;;  %9555 = vmatprep.subr.mxu0 %v8391_v6 }
 0x913   :  { %v8308_v32 = vmax.f32 %v8300_v35, 0.0  ;;  %v8310_v25 = vmax.f32 %v8302_v9, 0.0  ;;  %9590 = vmatprep.subr.mxu1 %v8423_v14  ;;  %9556 = vmatpush3.msra.mxu0 %v8375_v59 }
 0x914   :  { %9591 = vmatpush3.msra.mxu1 %v8407_v45 }
 0x915   :  { %8650 = vmatprep.mubr.f32.mxu0 %v8308_v32  ;;  %8720 = vmatprep.mubr.f32.mxu1 %v8310_v25 }
 0x916   :  { %8651 = vmatmul.mubr.f32.vlgmr.msra.gmra.mxu0 %v8307_v55  ;;  %8721 = vmatmul.mubr.f32.vlgmr.msra.gmra.mxu1 %v8309_v8 }
 0x9b4   :  { %v9487_v26 = vpop.f32.mrf.mxu0  ;;  %v9522_v61 = vpop.f32.mrf.mxu1 }
 0x9b6   :  { %v9488_v58 = vpop.f32.mrf.mxu0  ;;  %v9523_v5 = vpop.f32.mrf.mxu1 }
 0x9b7   :  { %v9489_v23 = vadd.f32 %v9488_v58, %v9487_v26  ;;  %v9524_v46 = vadd.f32 %v9523_v5, %v9522_v61 }
 0x9b9   :  { %v8513_v41 = vadd.f32 %v9489_v23, %v8754_v43 }
 0x9bb   :  { %v8583_v49 = vadd.f32 %v9524_v46, %v8513_v41 }
 0x9d6   :  { %v9557_v38 = vpop.f32.mrf.mxu0  ;;  %v9592_v20 = vpop.f32.mrf.mxu1 }
 0x9d8   :  { %v9558_v27 = vpop.f32.mrf.mxu0  ;;  %v9593_v44 = vpop.f32.mrf.mxu1 }
 0x9d9   :  { %v9559_v33 = vadd.f32 %v9558_v27, %v9557_v38  ;;  %v9594_v19 = vadd.f32 %v9593_v44, %v9592_v20 }
 0x9db   :  { %v8653_v34 = vadd.f32 %v9559_v33, %v8583_v49 }
 0x9dd   :  { %v8723_v47 = vadd.f32 %v9594_v19, %v8653_v34 }
 0x9df   :  { %8726 = vst [vmem:[%s14606_s15] sm:$0xff] %v8723_v47 }
 0x9e0   :  { %8731 = vsyncpa [#allocation3], 1 }
 0x9e1   :  { %8732 = vsyncpa [#allocation5], 1 }
 0x9e2   :  { %8733 = vsyncpa [#allocation8], 1 }
 0x9e3   :  { %8734 = vsyncpa [#allocation11], 1 }
 0x9e4   :  { %8735 = vsyncpa [#allocation14], 1 }
 0x9e5   :  { %8736 = vsyncpa [#allocation17], 1 }
 0x9e6   :  { %8737 = vsyncpa [#allocation20], 1 }
 0x9e7   :  { %8738 = vsyncpa [#allocation23], 1 }

</bundles_post_ra>
